<compile_context>
chip_gen: v5e
topology: v5e:2x2
jax: 0.10.0
libtpu: 0.0.40
codegen_flags: <defaults>
</compile_context>

<pallas_src>
import math
import numpy as np
import jax
import jax.numpy as jnp
from jax.experimental import pallas as pl
from jax.experimental.pallas import tpu as pltpu

# ---------------- config ----------------
SRC_VOCAB = 13
TGT_VOCAB = 11
MODEL_DIM = 32
HEAD = 4
DK = MODEL_DIM // HEAD
FF_DIM = 64
MAX_LEN = 8
N_LAYERS = 2
EPS = 1e-6
B = 2
S_SRC = MAX_LEN
S_TGT = MAX_LEN
M_SRC = B * S_SRC                      # 16 (batch folded into rows)
M_TGT = B * S_TGT                      # 16
VPAD = 128                             # generator logits padded to 128 lanes
SCALE = 1.0 / math.sqrt(DK)
NEG_INF = -1e9

# ---------------- const-slab layout (all offsets are static Python ints) ------
N_ATT = 3 * N_LAYERS                   # enc-self x2, dec-self x2, dec-cross x2
N_FFN = 2 * N_LAYERS                   # enc x2, dec x2
LN_ENC_FINAL = 5 * N_LAYERS            # LN instance indices: enc layers 0..3,
LN_DEC_FINAL = 5 * N_LAYERS + 1        # dec layers 4..9, finals 10, 11
N_LN = 5 * N_LAYERS + 2

ROW_ATT = 0                                      # N_ATT blocks of 32 rows: [Wqkv(0:96)|Wo(96:128)]
ROW_W1 = ROW_ATT + N_ATT * MODEL_DIM             # (N_FFN//2) blocks of 32 rows: two w1 side by side
ROW_W2 = ROW_W1 + (N_FFN // 2) * MODEL_DIM       # 64 rows: ffn f's w2 at lanes f*32:(f+1)*32
ROW_GEN = ROW_W2 + FF_DIM                        # 32 rows: generator W padded to 128 lanes
ROW_ABIAS = ROW_GEN + MODEL_DIM                  # N_ATT rows: [bq|bk|bv|bo]
ROW_FBIAS = ROW_ABIAS + N_ATT                    # N_FFN rows: [b1(0:64)|b2(64:96)]
ROW_LN = ROW_FBIAS + N_FFN                       # ceil(N_LN/2) rows: LN i -> row i//2, lanes (i%2)*64
ROW_GENB = ROW_LN + (N_LN + 1) // 2              # 1 row: generator bias (padded cols = -1e9)
N_ROWS = ROW_GENB + 1
N_ROWS_PAD = ((N_ROWS + 7) // 8) * 8             # sublane-pad to multiple of 8

VMEM_SPEC = pl.BlockSpec(memory_space=pltpu.MemorySpace.VMEM)


# ---------------- in-kernel helpers ----------------
def _ln_vec(c_ref, i):
    row = ROW_LN + i // 2
    col = (i % 2) * (2 * MODEL_DIM)
    v = c_ref[row:row + 1, :]                                # [1, 128]
    return v[:, col:col + MODEL_DIM], v[:, col + MODEL_DIM:col + 2 * MODEL_DIM]


def _layer_norm(x, alpha, beta):
    # reference quirk reproduced: numerator is (x - x.sum(-1)); std is unbiased.
    d = x.shape[-1]
    x_sum = jnp.sum(x, axis=-1, keepdims=True)
    mu = x_sum * (1.0 / d)
    ex2 = jnp.sum(x * x, axis=-1, keepdims=True)
    var = jnp.maximum(ex2 - d * (mu * mu), 0.0) * (1.0 / (d - 1))
    return alpha * ((x - x_sum) / (jnp.sqrt(var) + EPS)) + beta


def _attend(q, k, v, bias):
    """q:[Mq,D], k,v:[Mk,D] with head blocks along lanes; bias: additive [Mq,Mk]."""
    ctxs = []
    for h in range(HEAD):                                     # static unroll, 2-D ops only
        sl = slice(h * DK, (h + 1) * DK)
        s = jax.lax.dot_general(q[:, sl], k[:, sl], (((1,), (1,)), ((), ())),
                                preferred_element_type=jnp.float32) * SCALE + bias
        s = s - jnp.max(s, axis=-1, keepdims=True)
        e = jnp.exp(s)
        p = e / jnp.sum(e, axis=-1, keepdims=True)
        ctxs.append(jnp.dot(p, v[:, sl], preferred_element_type=jnp.float32))
    return jnp.concatenate(ctxs, axis=-1)                     # == concat(heads), [Mq, D]


def _attention_block(c_ref, blk, xq, xkv, bias, fused_qkv):
    w = c_ref[ROW_ATT + blk * MODEL_DIM: ROW_ATT + (blk + 1) * MODEL_DIM, :]   # [32, 128]
    bb = c_ref[ROW_ABIAS + blk: ROW_ABIAS + blk + 1, :]                        # [1, 128]
    if fused_qkv:                       # self-attention: ONE fused QKV matmul [M,32]@[32,96]
        qkv = jnp.dot(xq, w[:, 0:3 * MODEL_DIM],
                      preferred_element_type=jnp.float32) + bb[:, 0:3 * MODEL_DIM]
        q = qkv[:, 0:MODEL_DIM]
        k = qkv[:, MODEL_DIM:2 * MODEL_DIM]
        v = qkv[:, 2 * MODEL_DIM:3 * MODEL_DIM]
    else:                               # cross-attention: Q [M,32]@[32,32], fused KV [M,32]@[32,64]
        q = jnp.dot(xq, w[:, 0:MODEL_DIM],
                    preferred_element_type=jnp.float32) + bb[:, 0:MODEL_DIM]
        kv = jnp.dot(xkv, w[:, MODEL_DIM:3 * MODEL_DIM],
                     preferred_element_type=jnp.float32) + bb[:, MODEL_DIM:3 * MODEL_DIM]
        k = kv[:, 0:MODEL_DIM]
        v = kv[:, MODEL_DIM:2 * MODEL_DIM]
    ctx = _attend(q, k, v, bias)
    # output projection: concat(heads) @ Wo — one [M,32]@[32,32] matmul
    return jnp.dot(ctx, w[:, 3 * MODEL_DIM:4 * MODEL_DIM],
                   preferred_element_type=jnp.float32) + bb[:, 3 * MODEL_DIM:4 * MODEL_DIM]


def _ffn_block(c_ref, f, x):
    w1 = c_ref[ROW_W1 + (f // 2) * MODEL_DIM: ROW_W1 + (f // 2 + 1) * MODEL_DIM, :]
    w1 = w1[:, (f % 2) * FF_DIM:(f % 2) * FF_DIM + FF_DIM]                     # [32, 64]
    w2 = c_ref[ROW_W2:ROW_W2 + FF_DIM, :][:, f * MODEL_DIM:(f + 1) * MODEL_DIM]  # [64, 32]
    fb = c_ref[ROW_FBIAS + f: ROW_FBIAS + f + 1, :]                            # [1, 128]
    h = jnp.maximum(jnp.dot(x, w1, preferred_element_type=jnp.float32) + fb[:, 0:FF_DIM], 0.0)
    return jnp.dot(h, w2, preferred_element_type=jnp.float32) + fb[:, FF_DIM:FF_DIM + MODEL_DIM]


# ---------------- the fused kernel ----------------
def _transformer_kernel(x_ref, bias_ref, c_ref, out_ref):
    biases = bias_ref[...]                                    # [16, 48]
    enc_bias = biases[:, 0:M_SRC]
    dec_self_bias = biases[:, M_SRC:M_SRC + M_TGT]
    dec_cross_bias = biases[:, M_SRC + M_TGT:M_SRC + M_TGT + M_SRC]

    # ---- encoder ----
    x = x_ref[0:M_SRC, :]
    for l in range(N_LAYERS):                                 # static unroll
        a, bt = _ln_vec(c_ref, 2 * l)
        x = x + _attention_block(c_ref, l, _layer_norm(x, a, bt), None, enc_bias, True)
        a, bt = _ln_vec(c_ref, 2 * l + 1)
        x = x + _ffn_block(c_ref, l, _layer_norm(x, a, bt))
    a, bt = _ln_vec(c_ref, LN_ENC_FINAL)
    memory = _layer_norm(x, a, bt)

    # ---- decoder ----
    y = x_ref[M_SRC:M_SRC + M_TGT, :]
    for l in range(N_LAYERS):
        base = 2 * N_LAYERS + 3 * l
        a, bt = _ln_vec(c_ref, base)
        y = y + _attention_block(c_ref, N_LAYERS + l, _layer_norm(y, a, bt),
                                 None, dec_self_bias, True)
        a, bt = _ln_vec(c_ref, base + 1)
        y = y + _attention_block(c_ref, 2 * N_LAYERS + l, _layer_norm(y, a, bt),
                                 memory, dec_cross_bias, False)
        a, bt = _ln_vec(c_ref, base + 2)
        y = y + _ffn_block(c_ref, N_LAYERS + l, _layer_norm(y, a, bt))
    a, bt = _ln_vec(c_ref, LN_DEC_FINAL)
    dec = _layer_norm(y, a, bt)

    # ---- generator: linear + log_softmax (lane-dense, padded to VPAD) ----
    gw = c_ref[ROW_GEN:ROW_GEN + MODEL_DIM, :]                # [32, 128]
    gb = c_ref[ROW_GENB:ROW_GENB + 1, :]                      # [1, 128]; padded cols = -1e9
    logits = jnp.dot(dec, gw, preferred_element_type=jnp.float32) + gb
    z = logits - jnp.max(logits, axis=-1, keepdims=True)
    out_ref[...] = z - jnp.log(jnp.sum(jnp.exp(z), axis=-1, keepdims=True))


# ---------------- parameter init (same math as reference module) ----------------
def _init_linear(key, din, dout):
    return {'w': 0.02 * jax.random.normal(key, (din, dout), jnp.float32),
            'b': jnp.zeros((1, dout), jnp.float32)}


def _init_mha(key):
    ks = jax.random.split(key, 4)
    p = {}
    for name, kk in zip(('q', 'k', 'v', 'o'), ks):
        lin = _init_linear(kk, MODEL_DIM, MODEL_DIM)
        p['w' + name] = lin['w']
        p['b' + name] = lin['b']
    return p


def _init_ffn(key):
    k1, k2 = jax.random.split(key)
    l1 = _init_linear(k1, MODEL_DIM, FF_DIM)
    l2 = _init_linear(k2, FF_DIM, MODEL_DIM)
    return {'w1': l1['w'], 'b1': l1['b'], 'w2': l2['w'], 'b2': l2['b']}


def _init_ln():
    return {'a': jnp.ones((MODEL_DIM,), jnp.float32),
            'b': jnp.zeros((MODEL_DIM,), jnp.float32)}


def _positional_encoding(max_len, d):
    pos = jnp.arange(max_len, dtype=jnp.float32)[:, None]
    div = jnp.exp(jnp.arange(0, d, 2, dtype=jnp.float32) * (-math.log(10000.0) / d))
    pe = jnp.zeros((max_len, d), jnp.float32)
    pe = pe.at[:, 0::2].set(jnp.sin(pos * div))
    pe = pe.at[:, 1::2].set(jnp.cos(pos * div))
    return pe[None]                                           # [1, max_len, d]


def init_params(key):
    k_src, k_tgt = jax.random.split(jax.random.fold_in(key, 1))
    params = {
        'src_emb': jax.random.normal(k_src, (SRC_VOCAB, MODEL_DIM), jnp.float32),
        'tgt_emb': jax.random.normal(k_tgt, (TGT_VOCAB, MODEL_DIM), jnp.float32),
        'pe': _positional_encoding(MAX_LEN, MODEL_DIM),
    }
    enc_layers = []
    for i in range(N_LAYERS):
        k = jax.random.fold_in(key, 100 + i)
        ka, kf = jax.random.split(k)
        enc_layers.append({'self_attn': _init_mha(ka), 'ff': _init_ffn(kf),
                           'ln0': _init_ln(), 'ln1': _init_ln()})
    params['encoder_layers'] = enc_layers
    params['enc_ln'] = _init_ln()
    dec_layers = []
    for i in range(N_LAYERS):
        k = jax.random.fold_in(key, 200 + i)
        ka, kb, kf = jax.random.split(k, 3)
        dec_layers.append({'self_attn': _init_mha(ka), 'src_attn': _init_mha(kb),
                           'ff': _init_ffn(kf),
                           'ln0': _init_ln(), 'ln1': _init_ln(), 'ln2': _init_ln()})
    params['decoder_layers'] = dec_layers
    params['dec_ln'] = _init_ln()
    params['generator'] = _init_linear(jax.random.fold_in(key, 300), MODEL_DIM, TGT_VOCAB)
    return params


# ---------------- one-time host-side packing (hoisted out of the jit path) ----------------
def pack_constants(params):
    """Pack ALL weights / biases / LN params / generator into ONE lane-dense
    [N_ROWS_PAD, 128] f32 slab (single HBM->VMEM DMA)."""
    c = np.zeros((N_ROWS_PAD, 128), np.float32)

    def put_att(blk, p):
        r = ROW_ATT + blk * MODEL_DIM
        c[r:r + MODEL_DIM, 0:3 * MODEL_DIM] = np.concatenate(
            [np.asarray(p['wq']), np.asarray(p['wk']), np.asarray(p['wv'])], axis=1)
        c[r:r + MODEL_DIM, 3 * MODEL_DIM:4 * MODEL_DIM] = np.asarray(p['wo'])
        br = ROW_ABIAS + blk
        c[br, 0:3 * MODEL_DIM] = np.concatenate(
            [np.asarray(p['bq']), np.asarray(p['bk']), np.asarray(p['bv'])], axis=1)[0]
        c[br, 3 * MODEL_DIM:4 * MODEL_DIM] = np.asarray(p['bo'])[0]

    def put_ffn(f, p):
        r1 = ROW_W1 + (f // 2) * MODEL_DIM
        c1 = (f % 2) * FF_DIM
        c[r1:r1 + MODEL_DIM, c1:c1 + FF_DIM] = np.asarray(p['w1'])
        c[ROW_W2:ROW_W2 + FF_DIM, f * MODEL_DIM:(f + 1) * MODEL_DIM] = np.asarray(p['w2'])
        fr = ROW_FBIAS + f
        c[fr, 0:FF_DIM] = np.asarray(p['b1'])[0]
        c[fr, FF_DIM:FF_DIM + MODEL_DIM] = np.asarray(p['b2'])[0]

    def put_ln(i, ln):
        row = ROW_LN + i // 2
        col = (i % 2) * (2 * MODEL_DIM)
        c[row, col:col + MODEL_DIM] = np.asarray(ln['a'])
        c[row, col + MODEL_DIM:col + 2 * MODEL_DIM] = np.asarray(ln['b'])

    for l, layer in enumerate(params['encoder_layers']):
        put_att(l, layer['self_attn'])
        put_ffn(l, layer['ff'])
        put_ln(2 * l, layer['ln0'])
        put_ln(2 * l + 1, layer['ln1'])
    for l, layer in enumerate(params['decoder_layers']):
        put_att(N_LAYERS + l, layer['self_attn'])
        put_att(2 * N_LAYERS + l, layer['src_attn'])
        put_ffn(N_LAYERS + l, layer['ff'])
        base = 2 * N_LAYERS + 3 * l
        put_ln(base, layer['ln0'])
        put_ln(base + 1, layer['ln1'])
        put_ln(base + 2, layer['ln2'])
    put_ln(LN_ENC_FINAL, params['enc_ln'])
    put_ln(LN_DEC_FINAL, params['dec_ln'])

    # generator: weight padded with zeros; bias padded with -1e9 so the 128-lane
    # log-softmax equals the 11-class one.
    c[ROW_GEN:ROW_GEN + MODEL_DIM, 0:TGT_VOCAB] = np.asarray(params['generator']['w'])
    c[ROW_GENB, :] = NEG_INF
    c[ROW_GENB, 0:TGT_VOCAB] = np.asarray(params['generator']['b'])[0]
    return jnp.asarray(c)


def _attn_bias(mask, s_q, s_kv):
    """Additive bias [B*s_q, B*s_kv]: 0 where attended, -1e9 where the reference
    mask is 0 OR query/key belong to different batches (batch folded into rows)."""
    mask = jnp.broadcast_to(mask, (B, s_q, s_kv))
    same_batch = (jnp.arange(B)[:, None, None, None] ==
                  jnp.arange(B)[None, None, :, None])                  # [B,1,B,1]
    allowed = jnp.logical_and(same_batch, (mask != 0)[:, :, None, :])  # [B,s_q,B,s_kv]
    return jnp.where(allowed, 0.0, NEG_INF).astype(jnp.float32).reshape(B * s_q, B * s_kv)


def make_attn_bias_slab(src_mask, tgt_mask):
    """All three attention biases packed into one [16, 48] slab (built once)."""
    return jnp.concatenate([_attn_bias(src_mask, S_SRC, S_SRC),
                            _attn_bias(tgt_mask, S_TGT, S_TGT),
                            _attn_bias(src_mask, S_TGT, S_SRC)], axis=1)


# ---------------- forward (jitted): minimal glue + one fused kernel ----------------
def transformer_forward(const_slab, bias_slab, src_emb, tgt_emb, pe, src, tgt):
    # embedding * sqrt(d) + full positional-encoding buffer (reference quirk: seq == max_len)
    src_x = (src_emb[src] * math.sqrt(MODEL_DIM) + pe).reshape(M_SRC, MODEL_DIM)
    tgt_x = (tgt_emb[tgt] * math.sqrt(MODEL_DIM) + pe).reshape(M_TGT, MODEL_DIM)
    x_slab = jnp.concatenate([src_x, tgt_x], axis=0).astype(jnp.float32)   # [32, 32]

    out = pl.pallas_call(
        _transformer_kernel,
        out_shape=jax.ShapeDtypeStruct((M_TGT, VPAD), jnp.float32),
        in_specs=[VMEM_SPEC, VMEM_SPEC, VMEM_SPEC],
        out_specs=VMEM_SPEC,
        cost_estimate=pl.CostEstimate(flops=1_700_000, transcendentals=9_000,
                                      bytes_accessed=210_000),
    )(x_slab, bias_slab, const_slab)
    return out[:, :TGT_VOCAB].reshape(B, S_TGT, TGT_VOCAB)


if __name__ == "__main__":
    key = jax.random.PRNGKey(0)
    params = init_params(key)

    # hoisted one-time packing (not part of the per-call jit graph)
    const_slab = pack_constants(params)

    k_src, k_tgt = jax.random.split(jax.random.fold_in(key, 999))
    src = jax.random.randint(k_src, (B, S_SRC), 0, SRC_VOCAB, dtype=jnp.int32)
    tgt = jax.random.randint(k_tgt, (B, S_TGT), 0, TGT_VOCAB, dtype=jnp.int32)
    src_mask = jnp.ones((B, 1, S_SRC), jnp.float32)
    tgt_mask = jnp.broadcast_to(
        jnp.tril(jnp.ones((S_TGT, S_TGT), jnp.float32))[None], (B, S_TGT, S_TGT))

    # hoisted mask -> additive-bias conversion (masks are static for this run)
    bias_slab = make_attn_bias_slab(src_mask, tgt_mask)

    fwd = jax.jit(transformer_forward)
    out = fwd(const_slab, bias_slab, params['src_emb'], params['tgt_emb'], params['pe'],
              src, tgt)
    jax.block_until_ready(out)
    assert out.shape == (B, S_TGT, TGT_VOCAB)
    assert bool(jnp.all(jnp.isfinite(out)))
    print("KERNEL_OK")
</pallas_src>

<mosaic_0001>
module attributes {stable_mosaic.version = 11 : i64} {
  func.func @_transformer_kernel(%arg0: memref<32x32xf32, #tpu.memory_space<vmem>>, %arg1: memref<16x48xf32, #tpu.memory_space<vmem>>, %arg2: memref<376x128xf32, #tpu.memory_space<vmem>>, %arg3: memref<16x128xf32, #tpu.memory_space<vmem>>) attributes {dimension_semantics = [], scalar_prefetch = 0 : i64, scratch_operands = 0 : i64, tpu.core_type = #tpu.core_type<tc>} {
    %c0 = arith.constant 0 : index
    %c0_0 = arith.constant 0 : index
    %0 = vector.load %arg1[%c0, %c0_0] : memref<16x48xf32, #tpu.memory_space<vmem>>, vector<16x48xf32>
    %1 = vector.extract_strided_slice %0 {offsets = [0, 0], sizes = [16, 16], strides = [1, 1]} : vector<16x48xf32> to vector<16x16xf32>
    %2 = vector.extract_strided_slice %0 {offsets = [0, 16], sizes = [16, 16], strides = [1, 1]} : vector<16x48xf32> to vector<16x16xf32>
    %3 = vector.extract_strided_slice %0 {offsets = [0, 32], sizes = [16, 16], strides = [1, 1]} : vector<16x48xf32> to vector<16x16xf32>
    %c0_1 = arith.constant 0 : index
    %c0_2 = arith.constant 0 : index
    %4 = vector.load %arg0[%c0_1, %c0_2] : memref<32x32xf32, #tpu.memory_space<vmem>>, vector<16x32xf32>
    %c362 = arith.constant 362 : index
    %c0_3 = arith.constant 0 : index
    %5 = vector.load %arg2[%c362, %c0_3] : memref<376x128xf32, #tpu.memory_space<vmem>>, vector<1x128xf32>
    %6 = vector.extract_strided_slice %5 {offsets = [0, 0], sizes = [1, 32], strides = [1, 1]} : vector<1x128xf32> to vector<1x32xf32>
    %7 = vector.extract_strided_slice %5 {offsets = [0, 32], sizes = [1, 32], strides = [1, 1]} : vector<1x128xf32> to vector<1x32xf32>
    %cst = arith.constant dense<0.000000e+00> : vector<16xf32>
    %8 = vector.multi_reduction <add>, %4, %cst [1] : vector<16x32xf32> to vector<16xf32>
    %9 = vector.shape_cast %8 : vector<16xf32> to vector<16x1xf32>
    %cst_4 = arith.constant 3.125000e-02 : f32
    %10 = vector.broadcast %cst_4 : f32 to vector<16x1xf32>
    %11 = arith.mulf %9, %10 : vector<16x1xf32>
    %12 = arith.mulf %4, %4 : vector<16x32xf32>
    %cst_5 = arith.constant dense<0.000000e+00> : vector<16xf32>
    %13 = vector.multi_reduction <add>, %12, %cst_5 [1] : vector<16x32xf32> to vector<16xf32>
    %14 = vector.shape_cast %13 : vector<16xf32> to vector<16x1xf32>
    %15 = arith.mulf %11, %11 : vector<16x1xf32>
    %cst_6 = arith.constant 3.200000e+01 : f32
    %16 = vector.broadcast %cst_6 : f32 to vector<16x1xf32>
    %17 = arith.mulf %16, %15 : vector<16x1xf32>
    %18 = arith.subf %14, %17 : vector<16x1xf32>
    %cst_7 = arith.constant 0.000000e+00 : f32
    %19 = vector.broadcast %cst_7 : f32 to vector<16x1xf32>
    %20 = arith.maximumf %18, %19 : vector<16x1xf32>
    %cst_8 = arith.constant 0.0322580636 : f32
    %21 = vector.broadcast %cst_8 : f32 to vector<16x1xf32>
    %22 = arith.mulf %20, %21 : vector<16x1xf32>
    %23 = vector.broadcast %9 : vector<16x1xf32> to vector<16x32xf32>
    %24 = arith.subf %4, %23 : vector<16x32xf32>
    %25 = math.sqrt %22 : vector<16x1xf32>
    %cst_9 = arith.constant 9.99999997E-7 : f32
    %26 = vector.broadcast %cst_9 : f32 to vector<16x1xf32>
    %27 = arith.addf %25, %26 : vector<16x1xf32>
    %28 = vector.broadcast %27 : vector<16x1xf32> to vector<16x32xf32>
    %29 = arith.divf %24, %28 : vector<16x32xf32>
    %30 = vector.broadcast %6 : vector<1x32xf32> to vector<16x32xf32>
    %31 = arith.mulf %30, %29 : vector<16x32xf32>
    %32 = vector.broadcast %7 : vector<1x32xf32> to vector<16x32xf32>
    %33 = arith.addf %31, %32 : vector<16x32xf32>
    %c0_10 = arith.constant 0 : index
    %c0_11 = arith.constant 0 : index
    %34 = vector.load %arg2[%c0_10, %c0_11] : memref<376x128xf32, #tpu.memory_space<vmem>>, vector<32x128xf32>
    %c352 = arith.constant 352 : index
    %c0_12 = arith.constant 0 : index
    %35 = vector.load %arg2[%c352, %c0_12] : memref<376x128xf32, #tpu.memory_space<vmem>>, vector<1x128xf32>
    %36 = vector.extract_strided_slice %34 {offsets = [0, 0], sizes = [32, 96], strides = [1, 1]} : vector<32x128xf32> to vector<32x96xf32>
    %cst_13 = arith.constant dense<0.000000e+00> : vector<16x96xf32>
    %37 = tpu.matmul %33, %36, %cst_13 {dimension_numbers = #tpu.dot_dimension_numbers<[1], [0], [0], [1], [0, 0, 1, 1], [], []>} : vector<16x32xf32>, vector<32x96xf32>, vector<16x96xf32> -> vector<16x96xf32>
    %38 = vector.extract_strided_slice %35 {offsets = [0, 0], sizes = [1, 96], strides = [1, 1]} : vector<1x128xf32> to vector<1x96xf32>
    %39 = vector.broadcast %38 : vector<1x96xf32> to vector<16x96xf32>
    %40 = arith.addf %37, %39 : vector<16x96xf32>
    %41 = vector.extract_strided_slice %40 {offsets = [0, 0], sizes = [16, 32], strides = [1, 1]} : vector<16x96xf32> to vector<16x32xf32>
    %42 = vector.extract_strided_slice %40 {offsets = [0, 32], sizes = [16, 32], strides = [1, 1]} : vector<16x96xf32> to vector<16x32xf32>
    %43 = vector.extract_strided_slice %40 {offsets = [0, 64], sizes = [16, 32], strides = [1, 1]} : vector<16x96xf32> to vector<16x32xf32>
    %44 = vector.extract_strided_slice %41 {offsets = [0, 0], sizes = [16, 8], strides = [1, 1]} : vector<16x32xf32> to vector<16x8xf32>
    %45 = vector.extract_strided_slice %42 {offsets = [0, 0], sizes = [16, 8], strides = [1, 1]} : vector<16x32xf32> to vector<16x8xf32>
    %cst_14 = arith.constant dense<0.000000e+00> : vector<16x16xf32>
    %46 = tpu.matmul %44, %45, %cst_14 {dimension_numbers = #tpu.dot_dimension_numbers<[1], [1], [0], [0], [0, 0, 1, 0], [], []>} : vector<16x8xf32>, vector<16x8xf32>, vector<16x16xf32> -> vector<16x16xf32>
    %cst_15 = arith.constant 0.353553385 : f32
    %47 = vector.broadcast %cst_15 : f32 to vector<16x16xf32>
    %48 = arith.mulf %46, %47 : vector<16x16xf32>
    %49 = arith.addf %48, %1 : vector<16x16xf32>
    %cst_16 = arith.constant dense<0xFF800000> : vector<16xf32>
    %50 = vector.multi_reduction <maximumf>, %49, %cst_16 [1] : vector<16x16xf32> to vector<16xf32>
    %51 = vector.shape_cast %50 : vector<16xf32> to vector<16x1xf32>
    %52 = vector.broadcast %51 : vector<16x1xf32> to vector<16x16xf32>
    %53 = arith.subf %49, %52 : vector<16x16xf32>
    %54 = math.exp %53 : vector<16x16xf32>
    %cst_17 = arith.constant dense<0.000000e+00> : vector<16xf32>
    %55 = vector.multi_reduction <add>, %54, %cst_17 [1] : vector<16x16xf32> to vector<16xf32>
    %56 = vector.shape_cast %55 : vector<16xf32> to vector<16x1xf32>
    %57 = vector.broadcast %56 : vector<16x1xf32> to vector<16x16xf32>
    %58 = arith.divf %54, %57 : vector<16x16xf32>
    %59 = vector.extract_strided_slice %43 {offsets = [0, 0], sizes = [16, 8], strides = [1, 1]} : vector<16x32xf32> to vector<16x8xf32>
    %cst_18 = arith.constant dense<0.000000e+00> : vector<16x8xf32>
    %60 = tpu.matmul %58, %59, %cst_18 {dimension_numbers = #tpu.dot_dimension_numbers<[1], [0], [0], [1], [0, 0, 1, 1], [], []>} : vector<16x16xf32>, vector<16x8xf32>, vector<16x8xf32> -> vector<16x8xf32>
    %61 = vector.extract_strided_slice %41 {offsets = [0, 8], sizes = [16, 8], strides = [1, 1]} : vector<16x32xf32> to vector<16x8xf32>
    %62 = vector.extract_strided_slice %42 {offsets = [0, 8], sizes = [16, 8], strides = [1, 1]} : vector<16x32xf32> to vector<16x8xf32>
    %cst_19 = arith.constant dense<0.000000e+00> : vector<16x16xf32>
    %63 = tpu.matmul %61, %62, %cst_19 {dimension_numbers = #tpu.dot_dimension_numbers<[1], [1], [0], [0], [0, 0, 1, 0], [], []>} : vector<16x8xf32>, vector<16x8xf32>, vector<16x16xf32> -> vector<16x16xf32>
    %cst_20 = arith.constant 0.353553385 : f32
    %64 = vector.broadcast %cst_20 : f32 to vector<16x16xf32>
    %65 = arith.mulf %63, %64 : vector<16x16xf32>
    %66 = arith.addf %65, %1 : vector<16x16xf32>
    %cst_21 = arith.constant dense<0xFF800000> : vector<16xf32>
    %67 = vector.multi_reduction <maximumf>, %66, %cst_21 [1] : vector<16x16xf32> to vector<16xf32>
    %68 = vector.shape_cast %67 : vector<16xf32> to vector<16x1xf32>
    %69 = vector.broadcast %68 : vector<16x1xf32> to vector<16x16xf32>
    %70 = arith.subf %66, %69 : vector<16x16xf32>
    %71 = math.exp %70 : vector<16x16xf32>
    %cst_22 = arith.constant dense<0.000000e+00> : vector<16xf32>
    %72 = vector.multi_reduction <add>, %71, %cst_22 [1] : vector<16x16xf32> to vector<16xf32>
    %73 = vector.shape_cast %72 : vector<16xf32> to vector<16x1xf32>
    %74 = vector.broadcast %73 : vector<16x1xf32> to vector<16x16xf32>
    %75 = arith.divf %71, %74 : vector<16x16xf32>
    %76 = vector.extract_strided_slice %43 {offsets = [0, 8], sizes = [16, 8], strides = [1, 1]} : vector<16x32xf32> to vector<16x8xf32>
    %cst_23 = arith.constant dense<0.000000e+00> : vector<16x8xf32>
    %77 = tpu.matmul %75, %76, %cst_23 {dimension_numbers = #tpu.dot_dimension_numbers<[1], [0], [0], [1], [0, 0, 1, 1], [], []>} : vector<16x16xf32>, vector<16x8xf32>, vector<16x8xf32> -> vector<16x8xf32>
    %78 = vector.extract_strided_slice %41 {offsets = [0, 16], sizes = [16, 8], strides = [1, 1]} : vector<16x32xf32> to vector<16x8xf32>
    %79 = vector.extract_strided_slice %42 {offsets = [0, 16], sizes = [16, 8], strides = [1, 1]} : vector<16x32xf32> to vector<16x8xf32>
    %cst_24 = arith.constant dense<0.000000e+00> : vector<16x16xf32>
    %80 = tpu.matmul %78, %79, %cst_24 {dimension_numbers = #tpu.dot_dimension_numbers<[1], [1], [0], [0], [0, 0, 1, 0], [], []>} : vector<16x8xf32>, vector<16x8xf32>, vector<16x16xf32> -> vector<16x16xf32>
    %cst_25 = arith.constant 0.353553385 : f32
    %81 = vector.broadcast %cst_25 : f32 to vector<16x16xf32>
    %82 = arith.mulf %80, %81 : vector<16x16xf32>
    %83 = arith.addf %82, %1 : vector<16x16xf32>
    %cst_26 = arith.constant dense<0xFF800000> : vector<16xf32>
    %84 = vector.multi_reduction <maximumf>, %83, %cst_26 [1] : vector<16x16xf32> to vector<16xf32>
    %85 = vector.shape_cast %84 : vector<16xf32> to vector<16x1xf32>
    %86 = vector.broadcast %85 : vector<16x1xf32> to vector<16x16xf32>
    %87 = arith.subf %83, %86 : vector<16x16xf32>
    %88 = math.exp %87 : vector<16x16xf32>
    %cst_27 = arith.constant dense<0.000000e+00> : vector<16xf32>
    %89 = vector.multi_reduction <add>, %88, %cst_27 [1] : vector<16x16xf32> to vector<16xf32>
    %90 = vector.shape_cast %89 : vector<16xf32> to vector<16x1xf32>
    %91 = vector.broadcast %90 : vector<16x1xf32> to vector<16x16xf32>
    %92 = arith.divf %88, %91 : vector<16x16xf32>
    %93 = vector.extract_strided_slice %43 {offsets = [0, 16], sizes = [16, 8], strides = [1, 1]} : vector<16x32xf32> to vector<16x8xf32>
    %cst_28 = arith.constant dense<0.000000e+00> : vector<16x8xf32>
    %94 = tpu.matmul %92, %93, %cst_28 {dimension_numbers = #tpu.dot_dimension_numbers<[1], [0], [0], [1], [0, 0, 1, 1], [], []>} : vector<16x16xf32>, vector<16x8xf32>, vector<16x8xf32> -> vector<16x8xf32>
    %95 = vector.extract_strided_slice %41 {offsets = [0, 24], sizes = [16, 8], strides = [1, 1]} : vector<16x32xf32> to vector<16x8xf32>
    %96 = vector.extract_strided_slice %42 {offsets = [0, 24], sizes = [16, 8], strides = [1, 1]} : vector<16x32xf32> to vector<16x8xf32>
    %cst_29 = arith.constant dense<0.000000e+00> : vector<16x16xf32>
    %97 = tpu.matmul %95, %96, %cst_29 {dimension_numbers = #tpu.dot_dimension_numbers<[1], [1], [0], [0], [0, 0, 1, 0], [], []>} : vector<16x8xf32>, vector<16x8xf32>, vector<16x16xf32> -> vector<16x16xf32>
    %cst_30 = arith.constant 0.353553385 : f32
    %98 = vector.broadcast %cst_30 : f32 to vector<16x16xf32>
    %99 = arith.mulf %97, %98 : vector<16x16xf32>
    %100 = arith.addf %99, %1 : vector<16x16xf32>
    %cst_31 = arith.constant dense<0xFF800000> : vector<16xf32>
    %101 = vector.multi_reduction <maximumf>, %100, %cst_31 [1] : vector<16x16xf32> to vector<16xf32>
    %102 = vector.shape_cast %101 : vector<16xf32> to vector<16x1xf32>
    %103 = vector.broadcast %102 : vector<16x1xf32> to vector<16x16xf32>
    %104 = arith.subf %100, %103 : vector<16x16xf32>
    %105 = math.exp %104 : vector<16x16xf32>
    %cst_32 = arith.constant dense<0.000000e+00> : vector<16xf32>
    %106 = vector.multi_reduction <add>, %105, %cst_32 [1] : vector<16x16xf32> to vector<16xf32>
    %107 = vector.shape_cast %106 : vector<16xf32> to vector<16x1xf32>
    %108 = vector.broadcast %107 : vector<16x1xf32> to vector<16x16xf32>
    %109 = arith.divf %105, %108 : vector<16x16xf32>
    %110 = vector.extract_strided_slice %43 {offsets = [0, 24], sizes = [16, 8], strides = [1, 1]} : vector<16x32xf32> to vector<16x8xf32>
    %cst_33 = arith.constant dense<0.000000e+00> : vector<16x8xf32>
    %111 = tpu.matmul %109, %110, %cst_33 {dimension_numbers = #tpu.dot_dimension_numbers<[1], [0], [0], [1], [0, 0, 1, 1], [], []>} : vector<16x16xf32>, vector<16x8xf32>, vector<16x8xf32> -> vector<16x8xf32>
    %112 = tpu.concatenate %60, %77, %94, %111 in 1 : vector<16x8xf32>, vector<16x8xf32>, vector<16x8xf32>, vector<16x8xf32> -> vector<16x32xf32>
    %113 = vector.extract_strided_slice %34 {offsets = [0, 96], sizes = [32, 32], strides = [1, 1]} : vector<32x128xf32> to vector<32x32xf32>
    %cst_34 = arith.constant dense<0.000000e+00> : vector<16x32xf32>
    %114 = tpu.matmul %112, %113, %cst_34 {dimension_numbers = #tpu.dot_dimension_numbers<[1], [0], [0], [1], [0, 0, 1, 1], [], []>} : vector<16x32xf32>, vector<32x32xf32>, vector<16x32xf32> -> vector<16x32xf32>
    %115 = vector.extract_strided_slice %35 {offsets = [0, 96], sizes = [1, 32], strides = [1, 1]} : vector<1x128xf32> to vector<1x32xf32>
    %116 = vector.broadcast %115 : vector<1x32xf32> to vector<16x32xf32>
    %117 = arith.addf %114, %116 : vector<16x32xf32>
    %118 = arith.addf %4, %117 : vector<16x32xf32>
    %c362_35 = arith.constant 362 : index
    %c0_36 = arith.constant 0 : index
    %119 = vector.load %arg2[%c362_35, %c0_36] : memref<376x128xf32, #tpu.memory_space<vmem>>, vector<1x128xf32>
    %120 = vector.extract_strided_slice %119 {offsets = [0, 64], sizes = [1, 32], strides = [1, 1]} : vector<1x128xf32> to vector<1x32xf32>
    %121 = vector.extract_strided_slice %119 {offsets = [0, 96], sizes = [1, 32], strides = [1, 1]} : vector<1x128xf32> to vector<1x32xf32>
    %cst_37 = arith.constant dense<0.000000e+00> : vector<16xf32>
    %122 = vector.multi_reduction <add>, %118, %cst_37 [1] : vector<16x32xf32> to vector<16xf32>
    %123 = vector.shape_cast %122 : vector<16xf32> to vector<16x1xf32>
    %cst_38 = arith.constant 3.125000e-02 : f32
    %124 = vector.broadcast %cst_38 : f32 to vector<16x1xf32>
    %125 = arith.mulf %123, %124 : vector<16x1xf32>
    %126 = arith.mulf %118, %118 : vector<16x32xf32>
    %cst_39 = arith.constant dense<0.000000e+00> : vector<16xf32>
    %127 = vector.multi_reduction <add>, %126, %cst_39 [1] : vector<16x32xf32> to vector<16xf32>
    %128 = vector.shape_cast %127 : vector<16xf32> to vector<16x1xf32>
    %129 = arith.mulf %125, %125 : vector<16x1xf32>
    %cst_40 = arith.constant 3.200000e+01 : f32
    %130 = vector.broadcast %cst_40 : f32 to vector<16x1xf32>
    %131 = arith.mulf %130, %129 : vector<16x1xf32>
    %132 = arith.subf %128, %131 : vector<16x1xf32>
    %cst_41 = arith.constant 0.000000e+00 : f32
    %133 = vector.broadcast %cst_41 : f32 to vector<16x1xf32>
    %134 = arith.maximumf %132, %133 : vector<16x1xf32>
    %cst_42 = arith.constant 0.0322580636 : f32
    %135 = vector.broadcast %cst_42 : f32 to vector<16x1xf32>
    %136 = arith.mulf %134, %135 : vector<16x1xf32>
    %137 = vector.broadcast %123 : vector<16x1xf32> to vector<16x32xf32>
    %138 = arith.subf %118, %137 : vector<16x32xf32>
    %139 = math.sqrt %136 : vector<16x1xf32>
    %cst_43 = arith.constant 9.99999997E-7 : f32
    %140 = vector.broadcast %cst_43 : f32 to vector<16x1xf32>
    %141 = arith.addf %139, %140 : vector<16x1xf32>
    %142 = vector.broadcast %141 : vector<16x1xf32> to vector<16x32xf32>
    %143 = arith.divf %138, %142 : vector<16x32xf32>
    %144 = vector.broadcast %120 : vector<1x32xf32> to vector<16x32xf32>
    %145 = arith.mulf %144, %143 : vector<16x32xf32>
    %146 = vector.broadcast %121 : vector<1x32xf32> to vector<16x32xf32>
    %147 = arith.addf %145, %146 : vector<16x32xf32>
    %c192 = arith.constant 192 : index
    %c0_44 = arith.constant 0 : index
    %148 = vector.load %arg2[%c192, %c0_44] : memref<376x128xf32, #tpu.memory_space<vmem>>, vector<32x128xf32>
    %149 = vector.extract_strided_slice %148 {offsets = [0, 0], sizes = [32, 64], strides = [1, 1]} : vector<32x128xf32> to vector<32x64xf32>
    %c256 = arith.constant 256 : index
    %c0_45 = arith.constant 0 : index
    %150 = vector.load %arg2[%c256, %c0_45] : memref<376x128xf32, #tpu.memory_space<vmem>>, vector<64x128xf32>
    %151 = vector.extract_strided_slice %150 {offsets = [0, 0], sizes = [64, 32], strides = [1, 1]} : vector<64x128xf32> to vector<64x32xf32>
    %c358 = arith.constant 358 : index
    %c0_46 = arith.constant 0 : index
    %152 = vector.load %arg2[%c358, %c0_46] : memref<376x128xf32, #tpu.memory_space<vmem>>, vector<1x128xf32>
    %cst_47 = arith.constant dense<0.000000e+00> : vector<16x64xf32>
    %153 = tpu.matmul %147, %149, %cst_47 {dimension_numbers = #tpu.dot_dimension_numbers<[1], [0], [0], [1], [0, 0, 1, 1], [], []>} : vector<16x32xf32>, vector<32x64xf32>, vector<16x64xf32> -> vector<16x64xf32>
    %154 = vector.extract_strided_slice %152 {offsets = [0, 0], sizes = [1, 64], strides = [1, 1]} : vector<1x128xf32> to vector<1x64xf32>
    %155 = vector.broadcast %154 : vector<1x64xf32> to vector<16x64xf32>
    %156 = arith.addf %153, %155 : vector<16x64xf32>
    %cst_48 = arith.constant 0.000000e+00 : f32
    %157 = vector.broadcast %cst_48 : f32 to vector<16x64xf32>
    %158 = arith.maximumf %156, %157 : vector<16x64xf32>
    %cst_49 = arith.constant dense<0.000000e+00> : vector<16x32xf32>
    %159 = tpu.matmul %158, %151, %cst_49 {dimension_numbers = #tpu.dot_dimension_numbers<[1], [0], [0], [1], [0, 0, 1, 1], [], []>} : vector<16x64xf32>, vector<64x32xf32>, vector<16x32xf32> -> vector<16x32xf32>
    %160 = vector.extract_strided_slice %152 {offsets = [0, 64], sizes = [1, 32], strides = [1, 1]} : vector<1x128xf32> to vector<1x32xf32>
    %161 = vector.broadcast %160 : vector<1x32xf32> to vector<16x32xf32>
    %162 = arith.addf %159, %161 : vector<16x32xf32>
    %163 = arith.addf %118, %162 : vector<16x32xf32>
    %c363 = arith.constant 363 : index
    %c0_50 = arith.constant 0 : index
    %164 = vector.load %arg2[%c363, %c0_50] : memref<376x128xf32, #tpu.memory_space<vmem>>, vector<1x128xf32>
    %165 = vector.extract_strided_slice %164 {offsets = [0, 0], sizes = [1, 32], strides = [1, 1]} : vector<1x128xf32> to vector<1x32xf32>
    %166 = vector.extract_strided_slice %164 {offsets = [0, 32], sizes = [1, 32], strides = [1, 1]} : vector<1x128xf32> to vector<1x32xf32>
    %cst_51 = arith.constant dense<0.000000e+00> : vector<16xf32>
    %167 = vector.multi_reduction <add>, %163, %cst_51 [1] : vector<16x32xf32> to vector<16xf32>
    %168 = vector.shape_cast %167 : vector<16xf32> to vector<16x1xf32>
    %cst_52 = arith.constant 3.125000e-02 : f32
    %169 = vector.broadcast %cst_52 : f32 to vector<16x1xf32>
    %170 = arith.mulf %168, %169 : vector<16x1xf32>
    %171 = arith.mulf %163, %163 : vector<16x32xf32>
    %cst_53 = arith.constant dense<0.000000e+00> : vector<16xf32>
    %172 = vector.multi_reduction <add>, %171, %cst_53 [1] : vector<16x32xf32> to vector<16xf32>
    %173 = vector.shape_cast %172 : vector<16xf32> to vector<16x1xf32>
    %174 = arith.mulf %170, %170 : vector<16x1xf32>
    %cst_54 = arith.constant 3.200000e+01 : f32
    %175 = vector.broadcast %cst_54 : f32 to vector<16x1xf32>
    %176 = arith.mulf %175, %174 : vector<16x1xf32>
    %177 = arith.subf %173, %176 : vector<16x1xf32>
    %cst_55 = arith.constant 0.000000e+00 : f32
    %178 = vector.broadcast %cst_55 : f32 to vector<16x1xf32>
    %179 = arith.maximumf %177, %178 : vector<16x1xf32>
    %cst_56 = arith.constant 0.0322580636 : f32
    %180 = vector.broadcast %cst_56 : f32 to vector<16x1xf32>
    %181 = arith.mulf %179, %180 : vector<16x1xf32>
    %182 = vector.broadcast %168 : vector<16x1xf32> to vector<16x32xf32>
    %183 = arith.subf %163, %182 : vector<16x32xf32>
    %184 = math.sqrt %181 : vector<16x1xf32>
    %cst_57 = arith.constant 9.99999997E-7 : f32
    %185 = vector.broadcast %cst_57 : f32 to vector<16x1xf32>
    %186 = arith.addf %184, %185 : vector<16x1xf32>
    %187 = vector.broadcast %186 : vector<16x1xf32> to vector<16x32xf32>
    %188 = arith.divf %183, %187 : vector<16x32xf32>
    %189 = vector.broadcast %165 : vector<1x32xf32> to vector<16x32xf32>
    %190 = arith.mulf %189, %188 : vector<16x32xf32>
    %191 = vector.broadcast %166 : vector<1x32xf32> to vector<16x32xf32>
    %192 = arith.addf %190, %191 : vector<16x32xf32>
    %c32 = arith.constant 32 : index
    %c0_58 = arith.constant 0 : index
    %193 = vector.load %arg2[%c32, %c0_58] : memref<376x128xf32, #tpu.memory_space<vmem>>, vector<32x128xf32>
    %c353 = arith.constant 353 : index
    %c0_59 = arith.constant 0 : index
    %194 = vector.load %arg2[%c353, %c0_59] : memref<376x128xf32, #tpu.memory_space<vmem>>, vector<1x128xf32>
    %195 = vector.extract_strided_slice %193 {offsets = [0, 0], sizes = [32, 96], strides = [1, 1]} : vector<32x128xf32> to vector<32x96xf32>
    %cst_60 = arith.constant dense<0.000000e+00> : vector<16x96xf32>
    %196 = tpu.matmul %192, %195, %cst_60 {dimension_numbers = #tpu.dot_dimension_numbers<[1], [0], [0], [1], [0, 0, 1, 1], [], []>} : vector<16x32xf32>, vector<32x96xf32>, vector<16x96xf32> -> vector<16x96xf32>
    %197 = vector.extract_strided_slice %194 {offsets = [0, 0], sizes = [1, 96], strides = [1, 1]} : vector<1x128xf32> to vector<1x96xf32>
    %198 = vector.broadcast %197 : vector<1x96xf32> to vector<16x96xf32>
    %199 = arith.addf %196, %198 : vector<16x96xf32>
    %200 = vector.extract_strided_slice %199 {offsets = [0, 0], sizes = [16, 32], strides = [1, 1]} : vector<16x96xf32> to vector<16x32xf32>
    %201 = vector.extract_strided_slice %199 {offsets = [0, 32], sizes = [16, 32], strides = [1, 1]} : vector<16x96xf32> to vector<16x32xf32>
    %202 = vector.extract_strided_slice %199 {offsets = [0, 64], sizes = [16, 32], strides = [1, 1]} : vector<16x96xf32> to vector<16x32xf32>
    %203 = vector.extract_strided_slice %200 {offsets = [0, 0], sizes = [16, 8], strides = [1, 1]} : vector<16x32xf32> to vector<16x8xf32>
    %204 = vector.extract_strided_slice %201 {offsets = [0, 0], sizes = [16, 8], strides = [1, 1]} : vector<16x32xf32> to vector<16x8xf32>
    %cst_61 = arith.constant dense<0.000000e+00> : vector<16x16xf32>
    %205 = tpu.matmul %203, %204, %cst_61 {dimension_numbers = #tpu.dot_dimension_numbers<[1], [1], [0], [0], [0, 0, 1, 0], [], []>} : vector<16x8xf32>, vector<16x8xf32>, vector<16x16xf32> -> vector<16x16xf32>
    %cst_62 = arith.constant 0.353553385 : f32
    %206 = vector.broadcast %cst_62 : f32 to vector<16x16xf32>
    %207 = arith.mulf %205, %206 : vector<16x16xf32>
    %208 = arith.addf %207, %1 : vector<16x16xf32>
    %cst_63 = arith.constant dense<0xFF800000> : vector<16xf32>
    %209 = vector.multi_reduction <maximumf>, %208, %cst_63 [1] : vector<16x16xf32> to vector<16xf32>
    %210 = vector.shape_cast %209 : vector<16xf32> to vector<16x1xf32>
    %211 = vector.broadcast %210 : vector<16x1xf32> to vector<16x16xf32>
    %212 = arith.subf %208, %211 : vector<16x16xf32>
    %213 = math.exp %212 : vector<16x16xf32>
    %cst_64 = arith.constant dense<0.000000e+00> : vector<16xf32>
    %214 = vector.multi_reduction <add>, %213, %cst_64 [1] : vector<16x16xf32> to vector<16xf32>
    %215 = vector.shape_cast %214 : vector<16xf32> to vector<16x1xf32>
    %216 = vector.broadcast %215 : vector<16x1xf32> to vector<16x16xf32>
    %217 = arith.divf %213, %216 : vector<16x16xf32>
    %218 = vector.extract_strided_slice %202 {offsets = [0, 0], sizes = [16, 8], strides = [1, 1]} : vector<16x32xf32> to vector<16x8xf32>
    %cst_65 = arith.constant dense<0.000000e+00> : vector<16x8xf32>
    %219 = tpu.matmul %217, %218, %cst_65 {dimension_numbers = #tpu.dot_dimension_numbers<[1], [0], [0], [1], [0, 0, 1, 1], [], []>} : vector<16x16xf32>, vector<16x8xf32>, vector<16x8xf32> -> vector<16x8xf32>
    %220 = vector.extract_strided_slice %200 {offsets = [0, 8], sizes = [16, 8], strides = [1, 1]} : vector<16x32xf32> to vector<16x8xf32>
    %221 = vector.extract_strided_slice %201 {offsets = [0, 8], sizes = [16, 8], strides = [1, 1]} : vector<16x32xf32> to vector<16x8xf32>
    %cst_66 = arith.constant dense<0.000000e+00> : vector<16x16xf32>
    %222 = tpu.matmul %220, %221, %cst_66 {dimension_numbers = #tpu.dot_dimension_numbers<[1], [1], [0], [0], [0, 0, 1, 0], [], []>} : vector<16x8xf32>, vector<16x8xf32>, vector<16x16xf32> -> vector<16x16xf32>
    %cst_67 = arith.constant 0.353553385 : f32
    %223 = vector.broadcast %cst_67 : f32 to vector<16x16xf32>
    %224 = arith.mulf %222, %223 : vector<16x16xf32>
    %225 = arith.addf %224, %1 : vector<16x16xf32>
    %cst_68 = arith.constant dense<0xFF800000> : vector<16xf32>
    %226 = vector.multi_reduction <maximumf>, %225, %cst_68 [1] : vector<16x16xf32> to vector<16xf32>
    %227 = vector.shape_cast %226 : vector<16xf32> to vector<16x1xf32>
    %228 = vector.broadcast %227 : vector<16x1xf32> to vector<16x16xf32>
    %229 = arith.subf %225, %228 : vector<16x16xf32>
    %230 = math.exp %229 : vector<16x16xf32>
    %cst_69 = arith.constant dense<0.000000e+00> : vector<16xf32>
    %231 = vector.multi_reduction <add>, %230, %cst_69 [1] : vector<16x16xf32> to vector<16xf32>
    %232 = vector.shape_cast %231 : vector<16xf32> to vector<16x1xf32>
    %233 = vector.broadcast %232 : vector<16x1xf32> to vector<16x16xf32>
    %234 = arith.divf %230, %233 : vector<16x16xf32>
    %235 = vector.extract_strided_slice %202 {offsets = [0, 8], sizes = [16, 8], strides = [1, 1]} : vector<16x32xf32> to vector<16x8xf32>
    %cst_70 = arith.constant dense<0.000000e+00> : vector<16x8xf32>
    %236 = tpu.matmul %234, %235, %cst_70 {dimension_numbers = #tpu.dot_dimension_numbers<[1], [0], [0], [1], [0, 0, 1, 1], [], []>} : vector<16x16xf32>, vector<16x8xf32>, vector<16x8xf32> -> vector<16x8xf32>
    %237 = vector.extract_strided_slice %200 {offsets = [0, 16], sizes = [16, 8], strides = [1, 1]} : vector<16x32xf32> to vector<16x8xf32>
    %238 = vector.extract_strided_slice %201 {offsets = [0, 16], sizes = [16, 8], strides = [1, 1]} : vector<16x32xf32> to vector<16x8xf32>
    %cst_71 = arith.constant dense<0.000000e+00> : vector<16x16xf32>
    %239 = tpu.matmul %237, %238, %cst_71 {dimension_numbers = #tpu.dot_dimension_numbers<[1], [1], [0], [0], [0, 0, 1, 0], [], []>} : vector<16x8xf32>, vector<16x8xf32>, vector<16x16xf32> -> vector<16x16xf32>
    %cst_72 = arith.constant 0.353553385 : f32
    %240 = vector.broadcast %cst_72 : f32 to vector<16x16xf32>
    %241 = arith.mulf %239, %240 : vector<16x16xf32>
    %242 = arith.addf %241, %1 : vector<16x16xf32>
    %cst_73 = arith.constant dense<0xFF800000> : vector<16xf32>
    %243 = vector.multi_reduction <maximumf>, %242, %cst_73 [1] : vector<16x16xf32> to vector<16xf32>
    %244 = vector.shape_cast %243 : vector<16xf32> to vector<16x1xf32>
    %245 = vector.broadcast %244 : vector<16x1xf32> to vector<16x16xf32>
    %246 = arith.subf %242, %245 : vector<16x16xf32>
    %247 = math.exp %246 : vector<16x16xf32>
    %cst_74 = arith.constant dense<0.000000e+00> : vector<16xf32>
    %248 = vector.multi_reduction <add>, %247, %cst_74 [1] : vector<16x16xf32> to vector<16xf32>
    %249 = vector.shape_cast %248 : vector<16xf32> to vector<16x1xf32>
    %250 = vector.broadcast %249 : vector<16x1xf32> to vector<16x16xf32>
    %251 = arith.divf %247, %250 : vector<16x16xf32>
    %252 = vector.extract_strided_slice %202 {offsets = [0, 16], sizes = [16, 8], strides = [1, 1]} : vector<16x32xf32> to vector<16x8xf32>
    %cst_75 = arith.constant dense<0.000000e+00> : vector<16x8xf32>
    %253 = tpu.matmul %251, %252, %cst_75 {dimension_numbers = #tpu.dot_dimension_numbers<[1], [0], [0], [1], [0, 0, 1, 1], [], []>} : vector<16x16xf32>, vector<16x8xf32>, vector<16x8xf32> -> vector<16x8xf32>
    %254 = vector.extract_strided_slice %200 {offsets = [0, 24], sizes = [16, 8], strides = [1, 1]} : vector<16x32xf32> to vector<16x8xf32>
    %255 = vector.extract_strided_slice %201 {offsets = [0, 24], sizes = [16, 8], strides = [1, 1]} : vector<16x32xf32> to vector<16x8xf32>
    %cst_76 = arith.constant dense<0.000000e+00> : vector<16x16xf32>
    %256 = tpu.matmul %254, %255, %cst_76 {dimension_numbers = #tpu.dot_dimension_numbers<[1], [1], [0], [0], [0, 0, 1, 0], [], []>} : vector<16x8xf32>, vector<16x8xf32>, vector<16x16xf32> -> vector<16x16xf32>
    %cst_77 = arith.constant 0.353553385 : f32
    %257 = vector.broadcast %cst_77 : f32 to vector<16x16xf32>
    %258 = arith.mulf %256, %257 : vector<16x16xf32>
    %259 = arith.addf %258, %1 : vector<16x16xf32>
    %cst_78 = arith.constant dense<0xFF800000> : vector<16xf32>
    %260 = vector.multi_reduction <maximumf>, %259, %cst_78 [1] : vector<16x16xf32> to vector<16xf32>
    %261 = vector.shape_cast %260 : vector<16xf32> to vector<16x1xf32>
    %262 = vector.broadcast %261 : vector<16x1xf32> to vector<16x16xf32>
    %263 = arith.subf %259, %262 : vector<16x16xf32>
    %264 = math.exp %263 : vector<16x16xf32>
    %cst_79 = arith.constant dense<0.000000e+00> : vector<16xf32>
    %265 = vector.multi_reduction <add>, %264, %cst_79 [1] : vector<16x16xf32> to vector<16xf32>
    %266 = vector.shape_cast %265 : vector<16xf32> to vector<16x1xf32>
    %267 = vector.broadcast %266 : vector<16x1xf32> to vector<16x16xf32>
    %268 = arith.divf %264, %267 : vector<16x16xf32>
    %269 = vector.extract_strided_slice %202 {offsets = [0, 24], sizes = [16, 8], strides = [1, 1]} : vector<16x32xf32> to vector<16x8xf32>
    %cst_80 = arith.constant dense<0.000000e+00> : vector<16x8xf32>
    %270 = tpu.matmul %268, %269, %cst_80 {dimension_numbers = #tpu.dot_dimension_numbers<[1], [0], [0], [1], [0, 0, 1, 1], [], []>} : vector<16x16xf32>, vector<16x8xf32>, vector<16x8xf32> -> vector<16x8xf32>
    %271 = tpu.concatenate %219, %236, %253, %270 in 1 : vector<16x8xf32>, vector<16x8xf32>, vector<16x8xf32>, vector<16x8xf32> -> vector<16x32xf32>
    %272 = vector.extract_strided_slice %193 {offsets = [0, 96], sizes = [32, 32], strides = [1, 1]} : vector<32x128xf32> to vector<32x32xf32>
    %cst_81 = arith.constant dense<0.000000e+00> : vector<16x32xf32>
    %273 = tpu.matmul %271, %272, %cst_81 {dimension_numbers = #tpu.dot_dimension_numbers<[1], [0], [0], [1], [0, 0, 1, 1], [], []>} : vector<16x32xf32>, vector<32x32xf32>, vector<16x32xf32> -> vector<16x32xf32>
    %274 = vector.extract_strided_slice %194 {offsets = [0, 96], sizes = [1, 32], strides = [1, 1]} : vector<1x128xf32> to vector<1x32xf32>
    %275 = vector.broadcast %274 : vector<1x32xf32> to vector<16x32xf32>
    %276 = arith.addf %273, %275 : vector<16x32xf32>
    %277 = arith.addf %163, %276 : vector<16x32xf32>
    %c363_82 = arith.constant 363 : index
    %c0_83 = arith.constant 0 : index
    %278 = vector.load %arg2[%c363_82, %c0_83] : memref<376x128xf32, #tpu.memory_space<vmem>>, vector<1x128xf32>
    %279 = vector.extract_strided_slice %278 {offsets = [0, 64], sizes = [1, 32], strides = [1, 1]} : vector<1x128xf32> to vector<1x32xf32>
    %280 = vector.extract_strided_slice %278 {offsets = [0, 96], sizes = [1, 32], strides = [1, 1]} : vector<1x128xf32> to vector<1x32xf32>
    %cst_84 = arith.constant dense<0.000000e+00> : vector<16xf32>
    %281 = vector.multi_reduction <add>, %277, %cst_84 [1] : vector<16x32xf32> to vector<16xf32>
    %282 = vector.shape_cast %281 : vector<16xf32> to vector<16x1xf32>
    %cst_85 = arith.constant 3.125000e-02 : f32
    %283 = vector.broadcast %cst_85 : f32 to vector<16x1xf32>
    %284 = arith.mulf %282, %283 : vector<16x1xf32>
    %285 = arith.mulf %277, %277 : vector<16x32xf32>
    %cst_86 = arith.constant dense<0.000000e+00> : vector<16xf32>
    %286 = vector.multi_reduction <add>, %285, %cst_86 [1] : vector<16x32xf32> to vector<16xf32>
    %287 = vector.shape_cast %286 : vector<16xf32> to vector<16x1xf32>
    %288 = arith.mulf %284, %284 : vector<16x1xf32>
    %cst_87 = arith.constant 3.200000e+01 : f32
    %289 = vector.broadcast %cst_87 : f32 to vector<16x1xf32>
    %290 = arith.mulf %289, %288 : vector<16x1xf32>
    %291 = arith.subf %287, %290 : vector<16x1xf32>
    %cst_88 = arith.constant 0.000000e+00 : f32
    %292 = vector.broadcast %cst_88 : f32 to vector<16x1xf32>
    %293 = arith.maximumf %291, %292 : vector<16x1xf32>
    %cst_89 = arith.constant 0.0322580636 : f32
    %294 = vector.broadcast %cst_89 : f32 to vector<16x1xf32>
    %295 = arith.mulf %293, %294 : vector<16x1xf32>
    %296 = vector.broadcast %282 : vector<16x1xf32> to vector<16x32xf32>
    %297 = arith.subf %277, %296 : vector<16x32xf32>
    %298 = math.sqrt %295 : vector<16x1xf32>
    %cst_90 = arith.constant 9.99999997E-7 : f32
    %299 = vector.broadcast %cst_90 : f32 to vector<16x1xf32>
    %300 = arith.addf %298, %299 : vector<16x1xf32>
    %301 = vector.broadcast %300 : vector<16x1xf32> to vector<16x32xf32>
    %302 = arith.divf %297, %301 : vector<16x32xf32>
    %303 = vector.broadcast %279 : vector<1x32xf32> to vector<16x32xf32>
    %304 = arith.mulf %303, %302 : vector<16x32xf32>
    %305 = vector.broadcast %280 : vector<1x32xf32> to vector<16x32xf32>
    %306 = arith.addf %304, %305 : vector<16x32xf32>
    %c192_91 = arith.constant 192 : index
    %c0_92 = arith.constant 0 : index
    %307 = vector.load %arg2[%c192_91, %c0_92] : memref<376x128xf32, #tpu.memory_space<vmem>>, vector<32x128xf32>
    %308 = vector.extract_strided_slice %307 {offsets = [0, 64], sizes = [32, 64], strides = [1, 1]} : vector<32x128xf32> to vector<32x64xf32>
    %c256_93 = arith.constant 256 : index
    %c0_94 = arith.constant 0 : index
    %309 = vector.load %arg2[%c256_93, %c0_94] : memref<376x128xf32, #tpu.memory_space<vmem>>, vector<64x128xf32>
    %310 = vector.extract_strided_slice %309 {offsets = [0, 32], sizes = [64, 32], strides = [1, 1]} : vector<64x128xf32> to vector<64x32xf32>
    %c359 = arith.constant 359 : index
    %c0_95 = arith.constant 0 : index
    %311 = vector.load %arg2[%c359, %c0_95] : memref<376x128xf32, #tpu.memory_space<vmem>>, vector<1x128xf32>
    %cst_96 = arith.constant dense<0.000000e+00> : vector<16x64xf32>
    %312 = tpu.matmul %306, %308, %cst_96 {dimension_numbers = #tpu.dot_dimension_numbers<[1], [0], [0], [1], [0, 0, 1, 1], [], []>} : vector<16x32xf32>, vector<32x64xf32>, vector<16x64xf32> -> vector<16x64xf32>
    %313 = vector.extract_strided_slice %311 {offsets = [0, 0], sizes = [1, 64], strides = [1, 1]} : vector<1x128xf32> to vector<1x64xf32>
    %314 = vector.broadcast %313 : vector<1x64xf32> to vector<16x64xf32>
    %315 = arith.addf %312, %314 : vector<16x64xf32>
    %cst_97 = arith.constant 0.000000e+00 : f32
    %316 = vector.broadcast %cst_97 : f32 to vector<16x64xf32>
    %317 = arith.maximumf %315, %316 : vector<16x64xf32>
    %cst_98 = arith.constant dense<0.000000e+00> : vector<16x32xf32>
    %318 = tpu.matmul %317, %310, %cst_98 {dimension_numbers = #tpu.dot_dimension_numbers<[1], [0], [0], [1], [0, 0, 1, 1], [], []>} : vector<16x64xf32>, vector<64x32xf32>, vector<16x32xf32> -> vector<16x32xf32>
    %319 = vector.extract_strided_slice %311 {offsets = [0, 64], sizes = [1, 32], strides = [1, 1]} : vector<1x128xf32> to vector<1x32xf32>
    %320 = vector.broadcast %319 : vector<1x32xf32> to vector<16x32xf32>
    %321 = arith.addf %318, %320 : vector<16x32xf32>
    %322 = arith.addf %277, %321 : vector<16x32xf32>
    %c367 = arith.constant 367 : index
    %c0_99 = arith.constant 0 : index
    %323 = vector.load %arg2[%c367, %c0_99] : memref<376x128xf32, #tpu.memory_space<vmem>>, vector<1x128xf32>
    %324 = vector.extract_strided_slice %323 {offsets = [0, 0], sizes = [1, 32], strides = [1, 1]} : vector<1x128xf32> to vector<1x32xf32>
    %325 = vector.extract_strided_slice %323 {offsets = [0, 32], sizes = [1, 32], strides = [1, 1]} : vector<1x128xf32> to vector<1x32xf32>
    %cst_100 = arith.constant dense<0.000000e+00> : vector<16xf32>
    %326 = vector.multi_reduction <add>, %322, %cst_100 [1] : vector<16x32xf32> to vector<16xf32>
    %327 = vector.shape_cast %326 : vector<16xf32> to vector<16x1xf32>
    %cst_101 = arith.constant 3.125000e-02 : f32
    %328 = vector.broadcast %cst_101 : f32 to vector<16x1xf32>
    %329 = arith.mulf %327, %328 : vector<16x1xf32>
    %330 = arith.mulf %322, %322 : vector<16x32xf32>
    %cst_102 = arith.constant dense<0.000000e+00> : vector<16xf32>
    %331 = vector.multi_reduction <add>, %330, %cst_102 [1] : vector<16x32xf32> to vector<16xf32>
    %332 = vector.shape_cast %331 : vector<16xf32> to vector<16x1xf32>
    %333 = arith.mulf %329, %329 : vector<16x1xf32>
    %cst_103 = arith.constant 3.200000e+01 : f32
    %334 = vector.broadcast %cst_103 : f32 to vector<16x1xf32>
    %335 = arith.mulf %334, %333 : vector<16x1xf32>
    %336 = arith.subf %332, %335 : vector<16x1xf32>
    %cst_104 = arith.constant 0.000000e+00 : f32
    %337 = vector.broadcast %cst_104 : f32 to vector<16x1xf32>
    %338 = arith.maximumf %336, %337 : vector<16x1xf32>
    %cst_105 = arith.constant 0.0322580636 : f32
    %339 = vector.broadcast %cst_105 : f32 to vector<16x1xf32>
    %340 = arith.mulf %338, %339 : vector<16x1xf32>
    %341 = vector.broadcast %327 : vector<16x1xf32> to vector<16x32xf32>
    %342 = arith.subf %322, %341 : vector<16x32xf32>
    %343 = math.sqrt %340 : vector<16x1xf32>
    %cst_106 = arith.constant 9.99999997E-7 : f32
    %344 = vector.broadcast %cst_106 : f32 to vector<16x1xf32>
    %345 = arith.addf %343, %344 : vector<16x1xf32>
    %346 = vector.broadcast %345 : vector<16x1xf32> to vector<16x32xf32>
    %347 = arith.divf %342, %346 : vector<16x32xf32>
    %348 = vector.broadcast %324 : vector<1x32xf32> to vector<16x32xf32>
    %349 = arith.mulf %348, %347 : vector<16x32xf32>
    %350 = vector.broadcast %325 : vector<1x32xf32> to vector<16x32xf32>
    %351 = arith.addf %349, %350 : vector<16x32xf32>
    %c16 = arith.constant 16 : index
    %c0_107 = arith.constant 0 : index
    %352 = vector.load %arg0[%c16, %c0_107] : memref<32x32xf32, #tpu.memory_space<vmem>>, vector<16x32xf32>
    %c364 = arith.constant 364 : index
    %c0_108 = arith.constant 0 : index
    %353 = vector.load %arg2[%c364, %c0_108] : memref<376x128xf32, #tpu.memory_space<vmem>>, vector<1x128xf32>
    %354 = vector.extract_strided_slice %353 {offsets = [0, 0], sizes = [1, 32], strides = [1, 1]} : vector<1x128xf32> to vector<1x32xf32>
    %355 = vector.extract_strided_slice %353 {offsets = [0, 32], sizes = [1, 32], strides = [1, 1]} : vector<1x128xf32> to vector<1x32xf32>
    %cst_109 = arith.constant dense<0.000000e+00> : vector<16xf32>
    %356 = vector.multi_reduction <add>, %352, %cst_109 [1] : vector<16x32xf32> to vector<16xf32>
    %357 = vector.shape_cast %356 : vector<16xf32> to vector<16x1xf32>
    %cst_110 = arith.constant 3.125000e-02 : f32
    %358 = vector.broadcast %cst_110 : f32 to vector<16x1xf32>
    %359 = arith.mulf %357, %358 : vector<16x1xf32>
    %360 = arith.mulf %352, %352 : vector<16x32xf32>
    %cst_111 = arith.constant dense<0.000000e+00> : vector<16xf32>
    %361 = vector.multi_reduction <add>, %360, %cst_111 [1] : vector<16x32xf32> to vector<16xf32>
    %362 = vector.shape_cast %361 : vector<16xf32> to vector<16x1xf32>
    %363 = arith.mulf %359, %359 : vector<16x1xf32>
    %cst_112 = arith.constant 3.200000e+01 : f32
    %364 = vector.broadcast %cst_112 : f32 to vector<16x1xf32>
    %365 = arith.mulf %364, %363 : vector<16x1xf32>
    %366 = arith.subf %362, %365 : vector<16x1xf32>
    %cst_113 = arith.constant 0.000000e+00 : f32
    %367 = vector.broadcast %cst_113 : f32 to vector<16x1xf32>
    %368 = arith.maximumf %366, %367 : vector<16x1xf32>
    %cst_114 = arith.constant 0.0322580636 : f32
    %369 = vector.broadcast %cst_114 : f32 to vector<16x1xf32>
    %370 = arith.mulf %368, %369 : vector<16x1xf32>
    %371 = vector.broadcast %357 : vector<16x1xf32> to vector<16x32xf32>
    %372 = arith.subf %352, %371 : vector<16x32xf32>
    %373 = math.sqrt %370 : vector<16x1xf32>
    %cst_115 = arith.constant 9.99999997E-7 : f32
    %374 = vector.broadcast %cst_115 : f32 to vector<16x1xf32>
    %375 = arith.addf %373, %374 : vector<16x1xf32>
    %376 = vector.broadcast %375 : vector<16x1xf32> to vector<16x32xf32>
    %377 = arith.divf %372, %376 : vector<16x32xf32>
    %378 = vector.broadcast %354 : vector<1x32xf32> to vector<16x32xf32>
    %379 = arith.mulf %378, %377 : vector<16x32xf32>
    %380 = vector.broadcast %355 : vector<1x32xf32> to vector<16x32xf32>
    %381 = arith.addf %379, %380 : vector<16x32xf32>
    %c64 = arith.constant 64 : index
    %c0_116 = arith.constant 0 : index
    %382 = vector.load %arg2[%c64, %c0_116] : memref<376x128xf32, #tpu.memory_space<vmem>>, vector<32x128xf32>
    %c354 = arith.constant 354 : index
    %c0_117 = arith.constant 0 : index
    %383 = vector.load %arg2[%c354, %c0_117] : memref<376x128xf32, #tpu.memory_space<vmem>>, vector<1x128xf32>
    %384 = vector.extract_strided_slice %382 {offsets = [0, 0], sizes = [32, 96], strides = [1, 1]} : vector<32x128xf32> to vector<32x96xf32>
    %cst_118 = arith.constant dense<0.000000e+00> : vector<16x96xf32>
    %385 = tpu.matmul %381, %384, %cst_118 {dimension_numbers = #tpu.dot_dimension_numbers<[1], [0], [0], [1], [0, 0, 1, 1], [], []>} : vector<16x32xf32>, vector<32x96xf32>, vector<16x96xf32> -> vector<16x96xf32>
    %386 = vector.extract_strided_slice %383 {offsets = [0, 0], sizes = [1, 96], strides = [1, 1]} : vector<1x128xf32> to vector<1x96xf32>
    %387 = vector.broadcast %386 : vector<1x96xf32> to vector<16x96xf32>
    %388 = arith.addf %385, %387 : vector<16x96xf32>
    %389 = vector.extract_strided_slice %388 {offsets = [0, 0], sizes = [16, 32], strides = [1, 1]} : vector<16x96xf32> to vector<16x32xf32>
    %390 = vector.extract_strided_slice %388 {offsets = [0, 32], sizes = [16, 32], strides = [1, 1]} : vector<16x96xf32> to vector<16x32xf32>
    %391 = vector.extract_strided_slice %388 {offsets = [0, 64], sizes = [16, 32], strides = [1, 1]} : vector<16x96xf32> to vector<16x32xf32>
    %392 = vector.extract_strided_slice %389 {offsets = [0, 0], sizes = [16, 8], strides = [1, 1]} : vector<16x32xf32> to vector<16x8xf32>
    %393 = vector.extract_strided_slice %390 {offsets = [0, 0], sizes = [16, 8], strides = [1, 1]} : vector<16x32xf32> to vector<16x8xf32>
    %cst_119 = arith.constant dense<0.000000e+00> : vector<16x16xf32>
    %394 = tpu.matmul %392, %393, %cst_119 {dimension_numbers = #tpu.dot_dimension_numbers<[1], [1], [0], [0], [0, 0, 1, 0], [], []>} : vector<16x8xf32>, vector<16x8xf32>, vector<16x16xf32> -> vector<16x16xf32>
    %cst_120 = arith.constant 0.353553385 : f32
    %395 = vector.broadcast %cst_120 : f32 to vector<16x16xf32>
    %396 = arith.mulf %394, %395 : vector<16x16xf32>
    %397 = arith.addf %396, %2 : vector<16x16xf32>
    %cst_121 = arith.constant dense<0xFF800000> : vector<16xf32>
    %398 = vector.multi_reduction <maximumf>, %397, %cst_121 [1] : vector<16x16xf32> to vector<16xf32>
    %399 = vector.shape_cast %398 : vector<16xf32> to vector<16x1xf32>
    %400 = vector.broadcast %399 : vector<16x1xf32> to vector<16x16xf32>
    %401 = arith.subf %397, %400 : vector<16x16xf32>
    %402 = math.exp %401 : vector<16x16xf32>
    %cst_122 = arith.constant dense<0.000000e+00> : vector<16xf32>
    %403 = vector.multi_reduction <add>, %402, %cst_122 [1] : vector<16x16xf32> to vector<16xf32>
    %404 = vector.shape_cast %403 : vector<16xf32> to vector<16x1xf32>
    %405 = vector.broadcast %404 : vector<16x1xf32> to vector<16x16xf32>
    %406 = arith.divf %402, %405 : vector<16x16xf32>
    %407 = vector.extract_strided_slice %391 {offsets = [0, 0], sizes = [16, 8], strides = [1, 1]} : vector<16x32xf32> to vector<16x8xf32>
    %cst_123 = arith.constant dense<0.000000e+00> : vector<16x8xf32>
    %408 = tpu.matmul %406, %407, %cst_123 {dimension_numbers = #tpu.dot_dimension_numbers<[1], [0], [0], [1], [0, 0, 1, 1], [], []>} : vector<16x16xf32>, vector<16x8xf32>, vector<16x8xf32> -> vector<16x8xf32>
    %409 = vector.extract_strided_slice %389 {offsets = [0, 8], sizes = [16, 8], strides = [1, 1]} : vector<16x32xf32> to vector<16x8xf32>
    %410 = vector.extract_strided_slice %390 {offsets = [0, 8], sizes = [16, 8], strides = [1, 1]} : vector<16x32xf32> to vector<16x8xf32>
    %cst_124 = arith.constant dense<0.000000e+00> : vector<16x16xf32>
    %411 = tpu.matmul %409, %410, %cst_124 {dimension_numbers = #tpu.dot_dimension_numbers<[1], [1], [0], [0], [0, 0, 1, 0], [], []>} : vector<16x8xf32>, vector<16x8xf32>, vector<16x16xf32> -> vector<16x16xf32>
    %cst_125 = arith.constant 0.353553385 : f32
    %412 = vector.broadcast %cst_125 : f32 to vector<16x16xf32>
    %413 = arith.mulf %411, %412 : vector<16x16xf32>
    %414 = arith.addf %413, %2 : vector<16x16xf32>
    %cst_126 = arith.constant dense<0xFF800000> : vector<16xf32>
    %415 = vector.multi_reduction <maximumf>, %414, %cst_126 [1] : vector<16x16xf32> to vector<16xf32>
    %416 = vector.shape_cast %415 : vector<16xf32> to vector<16x1xf32>
    %417 = vector.broadcast %416 : vector<16x1xf32> to vector<16x16xf32>
    %418 = arith.subf %414, %417 : vector<16x16xf32>
    %419 = math.exp %418 : vector<16x16xf32>
    %cst_127 = arith.constant dense<0.000000e+00> : vector<16xf32>
    %420 = vector.multi_reduction <add>, %419, %cst_127 [1] : vector<16x16xf32> to vector<16xf32>
    %421 = vector.shape_cast %420 : vector<16xf32> to vector<16x1xf32>
    %422 = vector.broadcast %421 : vector<16x1xf32> to vector<16x16xf32>
    %423 = arith.divf %419, %422 : vector<16x16xf32>
    %424 = vector.extract_strided_slice %391 {offsets = [0, 8], sizes = [16, 8], strides = [1, 1]} : vector<16x32xf32> to vector<16x8xf32>
    %cst_128 = arith.constant dense<0.000000e+00> : vector<16x8xf32>
    %425 = tpu.matmul %423, %424, %cst_128 {dimension_numbers = #tpu.dot_dimension_numbers<[1], [0], [0], [1], [0, 0, 1, 1], [], []>} : vector<16x16xf32>, vector<16x8xf32>, vector<16x8xf32> -> vector<16x8xf32>
    %426 = vector.extract_strided_slice %389 {offsets = [0, 16], sizes = [16, 8], strides = [1, 1]} : vector<16x32xf32> to vector<16x8xf32>
    %427 = vector.extract_strided_slice %390 {offsets = [0, 16], sizes = [16, 8], strides = [1, 1]} : vector<16x32xf32> to vector<16x8xf32>
    %cst_129 = arith.constant dense<0.000000e+00> : vector<16x16xf32>
    %428 = tpu.matmul %426, %427, %cst_129 {dimension_numbers = #tpu.dot_dimension_numbers<[1], [1], [0], [0], [0, 0, 1, 0], [], []>} : vector<16x8xf32>, vector<16x8xf32>, vector<16x16xf32> -> vector<16x16xf32>
    %cst_130 = arith.constant 0.353553385 : f32
    %429 = vector.broadcast %cst_130 : f32 to vector<16x16xf32>
    %430 = arith.mulf %428, %429 : vector<16x16xf32>
    %431 = arith.addf %430, %2 : vector<16x16xf32>
    %cst_131 = arith.constant dense<0xFF800000> : vector<16xf32>
    %432 = vector.multi_reduction <maximumf>, %431, %cst_131 [1] : vector<16x16xf32> to vector<16xf32>
    %433 = vector.shape_cast %432 : vector<16xf32> to vector<16x1xf32>
    %434 = vector.broadcast %433 : vector<16x1xf32> to vector<16x16xf32>
    %435 = arith.subf %431, %434 : vector<16x16xf32>
    %436 = math.exp %435 : vector<16x16xf32>
    %cst_132 = arith.constant dense<0.000000e+00> : vector<16xf32>
    %437 = vector.multi_reduction <add>, %436, %cst_132 [1] : vector<16x16xf32> to vector<16xf32>
    %438 = vector.shape_cast %437 : vector<16xf32> to vector<16x1xf32>
    %439 = vector.broadcast %438 : vector<16x1xf32> to vector<16x16xf32>
    %440 = arith.divf %436, %439 : vector<16x16xf32>
    %441 = vector.extract_strided_slice %391 {offsets = [0, 16], sizes = [16, 8], strides = [1, 1]} : vector<16x32xf32> to vector<16x8xf32>
    %cst_133 = arith.constant dense<0.000000e+00> : vector<16x8xf32>
    %442 = tpu.matmul %440, %441, %cst_133 {dimension_numbers = #tpu.dot_dimension_numbers<[1], [0], [0], [1], [0, 0, 1, 1], [], []>} : vector<16x16xf32>, vector<16x8xf32>, vector<16x8xf32> -> vector<16x8xf32>
    %443 = vector.extract_strided_slice %389 {offsets = [0, 24], sizes = [16, 8], strides = [1, 1]} : vector<16x32xf32> to vector<16x8xf32>
    %444 = vector.extract_strided_slice %390 {offsets = [0, 24], sizes = [16, 8], strides = [1, 1]} : vector<16x32xf32> to vector<16x8xf32>
    %cst_134 = arith.constant dense<0.000000e+00> : vector<16x16xf32>
    %445 = tpu.matmul %443, %444, %cst_134 {dimension_numbers = #tpu.dot_dimension_numbers<[1], [1], [0], [0], [0, 0, 1, 0], [], []>} : vector<16x8xf32>, vector<16x8xf32>, vector<16x16xf32> -> vector<16x16xf32>
    %cst_135 = arith.constant 0.353553385 : f32
    %446 = vector.broadcast %cst_135 : f32 to vector<16x16xf32>
    %447 = arith.mulf %445, %446 : vector<16x16xf32>
    %448 = arith.addf %447, %2 : vector<16x16xf32>
    %cst_136 = arith.constant dense<0xFF800000> : vector<16xf32>
    %449 = vector.multi_reduction <maximumf>, %448, %cst_136 [1] : vector<16x16xf32> to vector<16xf32>
    %450 = vector.shape_cast %449 : vector<16xf32> to vector<16x1xf32>
    %451 = vector.broadcast %450 : vector<16x1xf32> to vector<16x16xf32>
    %452 = arith.subf %448, %451 : vector<16x16xf32>
    %453 = math.exp %452 : vector<16x16xf32>
    %cst_137 = arith.constant dense<0.000000e+00> : vector<16xf32>
    %454 = vector.multi_reduction <add>, %453, %cst_137 [1] : vector<16x16xf32> to vector<16xf32>
    %455 = vector.shape_cast %454 : vector<16xf32> to vector<16x1xf32>
    %456 = vector.broadcast %455 : vector<16x1xf32> to vector<16x16xf32>
    %457 = arith.divf %453, %456 : vector<16x16xf32>
    %458 = vector.extract_strided_slice %391 {offsets = [0, 24], sizes = [16, 8], strides = [1, 1]} : vector<16x32xf32> to vector<16x8xf32>
    %cst_138 = arith.constant dense<0.000000e+00> : vector<16x8xf32>
    %459 = tpu.matmul %457, %458, %cst_138 {dimension_numbers = #tpu.dot_dimension_numbers<[1], [0], [0], [1], [0, 0, 1, 1], [], []>} : vector<16x16xf32>, vector<16x8xf32>, vector<16x8xf32> -> vector<16x8xf32>
    %460 = tpu.concatenate %408, %425, %442, %459 in 1 : vector<16x8xf32>, vector<16x8xf32>, vector<16x8xf32>, vector<16x8xf32> -> vector<16x32xf32>
    %461 = vector.extract_strided_slice %382 {offsets = [0, 96], sizes = [32, 32], strides = [1, 1]} : vector<32x128xf32> to vector<32x32xf32>
    %cst_139 = arith.constant dense<0.000000e+00> : vector<16x32xf32>
    %462 = tpu.matmul %460, %461, %cst_139 {dimension_numbers = #tpu.dot_dimension_numbers<[1], [0], [0], [1], [0, 0, 1, 1], [], []>} : vector<16x32xf32>, vector<32x32xf32>, vector<16x32xf32> -> vector<16x32xf32>
    %463 = vector.extract_strided_slice %383 {offsets = [0, 96], sizes = [1, 32], strides = [1, 1]} : vector<1x128xf32> to vector<1x32xf32>
    %464 = vector.broadcast %463 : vector<1x32xf32> to vector<16x32xf32>
    %465 = arith.addf %462, %464 : vector<16x32xf32>
    %466 = arith.addf %352, %465 : vector<16x32xf32>
    %c364_140 = arith.constant 364 : index
    %c0_141 = arith.constant 0 : index
    %467 = vector.load %arg2[%c364_140, %c0_141] : memref<376x128xf32, #tpu.memory_space<vmem>>, vector<1x128xf32>
    %468 = vector.extract_strided_slice %467 {offsets = [0, 64], sizes = [1, 32], strides = [1, 1]} : vector<1x128xf32> to vector<1x32xf32>
    %469 = vector.extract_strided_slice %467 {offsets = [0, 96], sizes = [1, 32], strides = [1, 1]} : vector<1x128xf32> to vector<1x32xf32>
    %cst_142 = arith.constant dense<0.000000e+00> : vector<16xf32>
    %470 = vector.multi_reduction <add>, %466, %cst_142 [1] : vector<16x32xf32> to vector<16xf32>
    %471 = vector.shape_cast %470 : vector<16xf32> to vector<16x1xf32>
    %cst_143 = arith.constant 3.125000e-02 : f32
    %472 = vector.broadcast %cst_143 : f32 to vector<16x1xf32>
    %473 = arith.mulf %471, %472 : vector<16x1xf32>
    %474 = arith.mulf %466, %466 : vector<16x32xf32>
    %cst_144 = arith.constant dense<0.000000e+00> : vector<16xf32>
    %475 = vector.multi_reduction <add>, %474, %cst_144 [1] : vector<16x32xf32> to vector<16xf32>
    %476 = vector.shape_cast %475 : vector<16xf32> to vector<16x1xf32>
    %477 = arith.mulf %473, %473 : vector<16x1xf32>
    %cst_145 = arith.constant 3.200000e+01 : f32
    %478 = vector.broadcast %cst_145 : f32 to vector<16x1xf32>
    %479 = arith.mulf %478, %477 : vector<16x1xf32>
    %480 = arith.subf %476, %479 : vector<16x1xf32>
    %cst_146 = arith.constant 0.000000e+00 : f32
    %481 = vector.broadcast %cst_146 : f32 to vector<16x1xf32>
    %482 = arith.maximumf %480, %481 : vector<16x1xf32>
    %cst_147 = arith.constant 0.0322580636 : f32
    %483 = vector.broadcast %cst_147 : f32 to vector<16x1xf32>
    %484 = arith.mulf %482, %483 : vector<16x1xf32>
    %485 = vector.broadcast %471 : vector<16x1xf32> to vector<16x32xf32>
    %486 = arith.subf %466, %485 : vector<16x32xf32>
    %487 = math.sqrt %484 : vector<16x1xf32>
    %cst_148 = arith.constant 9.99999997E-7 : f32
    %488 = vector.broadcast %cst_148 : f32 to vector<16x1xf32>
    %489 = arith.addf %487, %488 : vector<16x1xf32>
    %490 = vector.broadcast %489 : vector<16x1xf32> to vector<16x32xf32>
    %491 = arith.divf %486, %490 : vector<16x32xf32>
    %492 = vector.broadcast %468 : vector<1x32xf32> to vector<16x32xf32>
    %493 = arith.mulf %492, %491 : vector<16x32xf32>
    %494 = vector.broadcast %469 : vector<1x32xf32> to vector<16x32xf32>
    %495 = arith.addf %493, %494 : vector<16x32xf32>
    %c128 = arith.constant 128 : index
    %c0_149 = arith.constant 0 : index
    %496 = vector.load %arg2[%c128, %c0_149] : memref<376x128xf32, #tpu.memory_space<vmem>>, vector<32x128xf32>
    %c356 = arith.constant 356 : index
    %c0_150 = arith.constant 0 : index
    %497 = vector.load %arg2[%c356, %c0_150] : memref<376x128xf32, #tpu.memory_space<vmem>>, vector<1x128xf32>
    %498 = vector.extract_strided_slice %496 {offsets = [0, 0], sizes = [32, 32], strides = [1, 1]} : vector<32x128xf32> to vector<32x32xf32>
    %cst_151 = arith.constant dense<0.000000e+00> : vector<16x32xf32>
    %499 = tpu.matmul %495, %498, %cst_151 {dimension_numbers = #tpu.dot_dimension_numbers<[1], [0], [0], [1], [0, 0, 1, 1], [], []>} : vector<16x32xf32>, vector<32x32xf32>, vector<16x32xf32> -> vector<16x32xf32>
    %500 = vector.extract_strided_slice %497 {offsets = [0, 0], sizes = [1, 32], strides = [1, 1]} : vector<1x128xf32> to vector<1x32xf32>
    %501 = vector.broadcast %500 : vector<1x32xf32> to vector<16x32xf32>
    %502 = arith.addf %499, %501 : vector<16x32xf32>
    %503 = vector.extract_strided_slice %496 {offsets = [0, 32], sizes = [32, 64], strides = [1, 1]} : vector<32x128xf32> to vector<32x64xf32>
    %cst_152 = arith.constant dense<0.000000e+00> : vector<16x64xf32>
    %504 = tpu.matmul %351, %503, %cst_152 {dimension_numbers = #tpu.dot_dimension_numbers<[1], [0], [0], [1], [0, 0, 1, 1], [], []>} : vector<16x32xf32>, vector<32x64xf32>, vector<16x64xf32> -> vector<16x64xf32>
    %505 = vector.extract_strided_slice %497 {offsets = [0, 32], sizes = [1, 64], strides = [1, 1]} : vector<1x128xf32> to vector<1x64xf32>
    %506 = vector.broadcast %505 : vector<1x64xf32> to vector<16x64xf32>
    %507 = arith.addf %504, %506 : vector<16x64xf32>
    %508 = vector.extract_strided_slice %507 {offsets = [0, 0], sizes = [16, 32], strides = [1, 1]} : vector<16x64xf32> to vector<16x32xf32>
    %509 = vector.extract_strided_slice %507 {offsets = [0, 32], sizes = [16, 32], strides = [1, 1]} : vector<16x64xf32> to vector<16x32xf32>
    %510 = vector.extract_strided_slice %502 {offsets = [0, 0], sizes = [16, 8], strides = [1, 1]} : vector<16x32xf32> to vector<16x8xf32>
    %511 = vector.extract_strided_slice %508 {offsets = [0, 0], sizes = [16, 8], strides = [1, 1]} : vector<16x32xf32> to vector<16x8xf32>
    %cst_153 = arith.constant dense<0.000000e+00> : vector<16x16xf32>
    %512 = tpu.matmul %510, %511, %cst_153 {dimension_numbers = #tpu.dot_dimension_numbers<[1], [1], [0], [0], [0, 0, 1, 0], [], []>} : vector<16x8xf32>, vector<16x8xf32>, vector<16x16xf32> -> vector<16x16xf32>
    %cst_154 = arith.constant 0.353553385 : f32
    %513 = vector.broadcast %cst_154 : f32 to vector<16x16xf32>
    %514 = arith.mulf %512, %513 : vector<16x16xf32>
    %515 = arith.addf %514, %3 : vector<16x16xf32>
    %cst_155 = arith.constant dense<0xFF800000> : vector<16xf32>
    %516 = vector.multi_reduction <maximumf>, %515, %cst_155 [1] : vector<16x16xf32> to vector<16xf32>
    %517 = vector.shape_cast %516 : vector<16xf32> to vector<16x1xf32>
    %518 = vector.broadcast %517 : vector<16x1xf32> to vector<16x16xf32>
    %519 = arith.subf %515, %518 : vector<16x16xf32>
    %520 = math.exp %519 : vector<16x16xf32>
    %cst_156 = arith.constant dense<0.000000e+00> : vector<16xf32>
    %521 = vector.multi_reduction <add>, %520, %cst_156 [1] : vector<16x16xf32> to vector<16xf32>
    %522 = vector.shape_cast %521 : vector<16xf32> to vector<16x1xf32>
    %523 = vector.broadcast %522 : vector<16x1xf32> to vector<16x16xf32>
    %524 = arith.divf %520, %523 : vector<16x16xf32>
    %525 = vector.extract_strided_slice %509 {offsets = [0, 0], sizes = [16, 8], strides = [1, 1]} : vector<16x32xf32> to vector<16x8xf32>
    %cst_157 = arith.constant dense<0.000000e+00> : vector<16x8xf32>
    %526 = tpu.matmul %524, %525, %cst_157 {dimension_numbers = #tpu.dot_dimension_numbers<[1], [0], [0], [1], [0, 0, 1, 1], [], []>} : vector<16x16xf32>, vector<16x8xf32>, vector<16x8xf32> -> vector<16x8xf32>
    %527 = vector.extract_strided_slice %502 {offsets = [0, 8], sizes = [16, 8], strides = [1, 1]} : vector<16x32xf32> to vector<16x8xf32>
    %528 = vector.extract_strided_slice %508 {offsets = [0, 8], sizes = [16, 8], strides = [1, 1]} : vector<16x32xf32> to vector<16x8xf32>
    %cst_158 = arith.constant dense<0.000000e+00> : vector<16x16xf32>
    %529 = tpu.matmul %527, %528, %cst_158 {dimension_numbers = #tpu.dot_dimension_numbers<[1], [1], [0], [0], [0, 0, 1, 0], [], []>} : vector<16x8xf32>, vector<16x8xf32>, vector<16x16xf32> -> vector<16x16xf32>
    %cst_159 = arith.constant 0.353553385 : f32
    %530 = vector.broadcast %cst_159 : f32 to vector<16x16xf32>
    %531 = arith.mulf %529, %530 : vector<16x16xf32>
    %532 = arith.addf %531, %3 : vector<16x16xf32>
    %cst_160 = arith.constant dense<0xFF800000> : vector<16xf32>
    %533 = vector.multi_reduction <maximumf>, %532, %cst_160 [1] : vector<16x16xf32> to vector<16xf32>
    %534 = vector.shape_cast %533 : vector<16xf32> to vector<16x1xf32>
    %535 = vector.broadcast %534 : vector<16x1xf32> to vector<16x16xf32>
    %536 = arith.subf %532, %535 : vector<16x16xf32>
    %537 = math.exp %536 : vector<16x16xf32>
    %cst_161 = arith.constant dense<0.000000e+00> : vector<16xf32>
    %538 = vector.multi_reduction <add>, %537, %cst_161 [1] : vector<16x16xf32> to vector<16xf32>
    %539 = vector.shape_cast %538 : vector<16xf32> to vector<16x1xf32>
    %540 = vector.broadcast %539 : vector<16x1xf32> to vector<16x16xf32>
    %541 = arith.divf %537, %540 : vector<16x16xf32>
    %542 = vector.extract_strided_slice %509 {offsets = [0, 8], sizes = [16, 8], strides = [1, 1]} : vector<16x32xf32> to vector<16x8xf32>
    %cst_162 = arith.constant dense<0.000000e+00> : vector<16x8xf32>
    %543 = tpu.matmul %541, %542, %cst_162 {dimension_numbers = #tpu.dot_dimension_numbers<[1], [0], [0], [1], [0, 0, 1, 1], [], []>} : vector<16x16xf32>, vector<16x8xf32>, vector<16x8xf32> -> vector<16x8xf32>
    %544 = vector.extract_strided_slice %502 {offsets = [0, 16], sizes = [16, 8], strides = [1, 1]} : vector<16x32xf32> to vector<16x8xf32>
    %545 = vector.extract_strided_slice %508 {offsets = [0, 16], sizes = [16, 8], strides = [1, 1]} : vector<16x32xf32> to vector<16x8xf32>
    %cst_163 = arith.constant dense<0.000000e+00> : vector<16x16xf32>
    %546 = tpu.matmul %544, %545, %cst_163 {dimension_numbers = #tpu.dot_dimension_numbers<[1], [1], [0], [0], [0, 0, 1, 0], [], []>} : vector<16x8xf32>, vector<16x8xf32>, vector<16x16xf32> -> vector<16x16xf32>
    %cst_164 = arith.constant 0.353553385 : f32
    %547 = vector.broadcast %cst_164 : f32 to vector<16x16xf32>
    %548 = arith.mulf %546, %547 : vector<16x16xf32>
    %549 = arith.addf %548, %3 : vector<16x16xf32>
    %cst_165 = arith.constant dense<0xFF800000> : vector<16xf32>
    %550 = vector.multi_reduction <maximumf>, %549, %cst_165 [1] : vector<16x16xf32> to vector<16xf32>
    %551 = vector.shape_cast %550 : vector<16xf32> to vector<16x1xf32>
    %552 = vector.broadcast %551 : vector<16x1xf32> to vector<16x16xf32>
    %553 = arith.subf %549, %552 : vector<16x16xf32>
    %554 = math.exp %553 : vector<16x16xf32>
    %cst_166 = arith.constant dense<0.000000e+00> : vector<16xf32>
    %555 = vector.multi_reduction <add>, %554, %cst_166 [1] : vector<16x16xf32> to vector<16xf32>
    %556 = vector.shape_cast %555 : vector<16xf32> to vector<16x1xf32>
    %557 = vector.broadcast %556 : vector<16x1xf32> to vector<16x16xf32>
    %558 = arith.divf %554, %557 : vector<16x16xf32>
    %559 = vector.extract_strided_slice %509 {offsets = [0, 16], sizes = [16, 8], strides = [1, 1]} : vector<16x32xf32> to vector<16x8xf32>
    %cst_167 = arith.constant dense<0.000000e+00> : vector<16x8xf32>
    %560 = tpu.matmul %558, %559, %cst_167 {dimension_numbers = #tpu.dot_dimension_numbers<[1], [0], [0], [1], [0, 0, 1, 1], [], []>} : vector<16x16xf32>, vector<16x8xf32>, vector<16x8xf32> -> vector<16x8xf32>
    %561 = vector.extract_strided_slice %502 {offsets = [0, 24], sizes = [16, 8], strides = [1, 1]} : vector<16x32xf32> to vector<16x8xf32>
    %562 = vector.extract_strided_slice %508 {offsets = [0, 24], sizes = [16, 8], strides = [1, 1]} : vector<16x32xf32> to vector<16x8xf32>
    %cst_168 = arith.constant dense<0.000000e+00> : vector<16x16xf32>
    %563 = tpu.matmul %561, %562, %cst_168 {dimension_numbers = #tpu.dot_dimension_numbers<[1], [1], [0], [0], [0, 0, 1, 0], [], []>} : vector<16x8xf32>, vector<16x8xf32>, vector<16x16xf32> -> vector<16x16xf32>
    %cst_169 = arith.constant 0.353553385 : f32
    %564 = vector.broadcast %cst_169 : f32 to vector<16x16xf32>
    %565 = arith.mulf %563, %564 : vector<16x16xf32>
    %566 = arith.addf %565, %3 : vector<16x16xf32>
    %cst_170 = arith.constant dense<0xFF800000> : vector<16xf32>
    %567 = vector.multi_reduction <maximumf>, %566, %cst_170 [1] : vector<16x16xf32> to vector<16xf32>
    %568 = vector.shape_cast %567 : vector<16xf32> to vector<16x1xf32>
    %569 = vector.broadcast %568 : vector<16x1xf32> to vector<16x16xf32>
    %570 = arith.subf %566, %569 : vector<16x16xf32>
    %571 = math.exp %570 : vector<16x16xf32>
    %cst_171 = arith.constant dense<0.000000e+00> : vector<16xf32>
    %572 = vector.multi_reduction <add>, %571, %cst_171 [1] : vector<16x16xf32> to vector<16xf32>
    %573 = vector.shape_cast %572 : vector<16xf32> to vector<16x1xf32>
    %574 = vector.broadcast %573 : vector<16x1xf32> to vector<16x16xf32>
    %575 = arith.divf %571, %574 : vector<16x16xf32>
    %576 = vector.extract_strided_slice %509 {offsets = [0, 24], sizes = [16, 8], strides = [1, 1]} : vector<16x32xf32> to vector<16x8xf32>
    %cst_172 = arith.constant dense<0.000000e+00> : vector<16x8xf32>
    %577 = tpu.matmul %575, %576, %cst_172 {dimension_numbers = #tpu.dot_dimension_numbers<[1], [0], [0], [1], [0, 0, 1, 1], [], []>} : vector<16x16xf32>, vector<16x8xf32>, vector<16x8xf32> -> vector<16x8xf32>
    %578 = tpu.concatenate %526, %543, %560, %577 in 1 : vector<16x8xf32>, vector<16x8xf32>, vector<16x8xf32>, vector<16x8xf32> -> vector<16x32xf32>
    %579 = vector.extract_strided_slice %496 {offsets = [0, 96], sizes = [32, 32], strides = [1, 1]} : vector<32x128xf32> to vector<32x32xf32>
    %cst_173 = arith.constant dense<0.000000e+00> : vector<16x32xf32>
    %580 = tpu.matmul %578, %579, %cst_173 {dimension_numbers = #tpu.dot_dimension_numbers<[1], [0], [0], [1], [0, 0, 1, 1], [], []>} : vector<16x32xf32>, vector<32x32xf32>, vector<16x32xf32> -> vector<16x32xf32>
    %581 = vector.extract_strided_slice %497 {offsets = [0, 96], sizes = [1, 32], strides = [1, 1]} : vector<1x128xf32> to vector<1x32xf32>
    %582 = vector.broadcast %581 : vector<1x32xf32> to vector<16x32xf32>
    %583 = arith.addf %580, %582 : vector<16x32xf32>
    %584 = arith.addf %466, %583 : vector<16x32xf32>
    %c365 = arith.constant 365 : index
    %c0_174 = arith.constant 0 : index
    %585 = vector.load %arg2[%c365, %c0_174] : memref<376x128xf32, #tpu.memory_space<vmem>>, vector<1x128xf32>
    %586 = vector.extract_strided_slice %585 {offsets = [0, 0], sizes = [1, 32], strides = [1, 1]} : vector<1x128xf32> to vector<1x32xf32>
    %587 = vector.extract_strided_slice %585 {offsets = [0, 32], sizes = [1, 32], strides = [1, 1]} : vector<1x128xf32> to vector<1x32xf32>
    %cst_175 = arith.constant dense<0.000000e+00> : vector<16xf32>
    %588 = vector.multi_reduction <add>, %584, %cst_175 [1] : vector<16x32xf32> to vector<16xf32>
    %589 = vector.shape_cast %588 : vector<16xf32> to vector<16x1xf32>
    %cst_176 = arith.constant 3.125000e-02 : f32
    %590 = vector.broadcast %cst_176 : f32 to vector<16x1xf32>
    %591 = arith.mulf %589, %590 : vector<16x1xf32>
    %592 = arith.mulf %584, %584 : vector<16x32xf32>
    %cst_177 = arith.constant dense<0.000000e+00> : vector<16xf32>
    %593 = vector.multi_reduction <add>, %592, %cst_177 [1] : vector<16x32xf32> to vector<16xf32>
    %594 = vector.shape_cast %593 : vector<16xf32> to vector<16x1xf32>
    %595 = arith.mulf %591, %591 : vector<16x1xf32>
    %cst_178 = arith.constant 3.200000e+01 : f32
    %596 = vector.broadcast %cst_178 : f32 to vector<16x1xf32>
    %597 = arith.mulf %596, %595 : vector<16x1xf32>
    %598 = arith.subf %594, %597 : vector<16x1xf32>
    %cst_179 = arith.constant 0.000000e+00 : f32
    %599 = vector.broadcast %cst_179 : f32 to vector<16x1xf32>
    %600 = arith.maximumf %598, %599 : vector<16x1xf32>
    %cst_180 = arith.constant 0.0322580636 : f32
    %601 = vector.broadcast %cst_180 : f32 to vector<16x1xf32>
    %602 = arith.mulf %600, %601 : vector<16x1xf32>
    %603 = vector.broadcast %589 : vector<16x1xf32> to vector<16x32xf32>
    %604 = arith.subf %584, %603 : vector<16x32xf32>
    %605 = math.sqrt %602 : vector<16x1xf32>
    %cst_181 = arith.constant 9.99999997E-7 : f32
    %606 = vector.broadcast %cst_181 : f32 to vector<16x1xf32>
    %607 = arith.addf %605, %606 : vector<16x1xf32>
    %608 = vector.broadcast %607 : vector<16x1xf32> to vector<16x32xf32>
    %609 = arith.divf %604, %608 : vector<16x32xf32>
    %610 = vector.broadcast %586 : vector<1x32xf32> to vector<16x32xf32>
    %611 = arith.mulf %610, %609 : vector<16x32xf32>
    %612 = vector.broadcast %587 : vector<1x32xf32> to vector<16x32xf32>
    %613 = arith.addf %611, %612 : vector<16x32xf32>
    %c224 = arith.constant 224 : index
    %c0_182 = arith.constant 0 : index
    %614 = vector.load %arg2[%c224, %c0_182] : memref<376x128xf32, #tpu.memory_space<vmem>>, vector<32x128xf32>
    %615 = vector.extract_strided_slice %614 {offsets = [0, 0], sizes = [32, 64], strides = [1, 1]} : vector<32x128xf32> to vector<32x64xf32>
    %c256_183 = arith.constant 256 : index
    %c0_184 = arith.constant 0 : index
    %616 = vector.load %arg2[%c256_183, %c0_184] : memref<376x128xf32, #tpu.memory_space<vmem>>, vector<64x128xf32>
    %617 = vector.extract_strided_slice %616 {offsets = [0, 64], sizes = [64, 32], strides = [1, 1]} : vector<64x128xf32> to vector<64x32xf32>
    %c360 = arith.constant 360 : index
    %c0_185 = arith.constant 0 : index
    %618 = vector.load %arg2[%c360, %c0_185] : memref<376x128xf32, #tpu.memory_space<vmem>>, vector<1x128xf32>
    %cst_186 = arith.constant dense<0.000000e+00> : vector<16x64xf32>
    %619 = tpu.matmul %613, %615, %cst_186 {dimension_numbers = #tpu.dot_dimension_numbers<[1], [0], [0], [1], [0, 0, 1, 1], [], []>} : vector<16x32xf32>, vector<32x64xf32>, vector<16x64xf32> -> vector<16x64xf32>
    %620 = vector.extract_strided_slice %618 {offsets = [0, 0], sizes = [1, 64], strides = [1, 1]} : vector<1x128xf32> to vector<1x64xf32>
    %621 = vector.broadcast %620 : vector<1x64xf32> to vector<16x64xf32>
    %622 = arith.addf %619, %621 : vector<16x64xf32>
    %cst_187 = arith.constant 0.000000e+00 : f32
    %623 = vector.broadcast %cst_187 : f32 to vector<16x64xf32>
    %624 = arith.maximumf %622, %623 : vector<16x64xf32>
    %cst_188 = arith.constant dense<0.000000e+00> : vector<16x32xf32>
    %625 = tpu.matmul %624, %617, %cst_188 {dimension_numbers = #tpu.dot_dimension_numbers<[1], [0], [0], [1], [0, 0, 1, 1], [], []>} : vector<16x64xf32>, vector<64x32xf32>, vector<16x32xf32> -> vector<16x32xf32>
    %626 = vector.extract_strided_slice %618 {offsets = [0, 64], sizes = [1, 32], strides = [1, 1]} : vector<1x128xf32> to vector<1x32xf32>
    %627 = vector.broadcast %626 : vector<1x32xf32> to vector<16x32xf32>
    %628 = arith.addf %625, %627 : vector<16x32xf32>
    %629 = arith.addf %584, %628 : vector<16x32xf32>
    %c365_189 = arith.constant 365 : index
    %c0_190 = arith.constant 0 : index
    %630 = vector.load %arg2[%c365_189, %c0_190] : memref<376x128xf32, #tpu.memory_space<vmem>>, vector<1x128xf32>
    %631 = vector.extract_strided_slice %630 {offsets = [0, 64], sizes = [1, 32], strides = [1, 1]} : vector<1x128xf32> to vector<1x32xf32>
    %632 = vector.extract_strided_slice %630 {offsets = [0, 96], sizes = [1, 32], strides = [1, 1]} : vector<1x128xf32> to vector<1x32xf32>
    %cst_191 = arith.constant dense<0.000000e+00> : vector<16xf32>
    %633 = vector.multi_reduction <add>, %629, %cst_191 [1] : vector<16x32xf32> to vector<16xf32>
    %634 = vector.shape_cast %633 : vector<16xf32> to vector<16x1xf32>
    %cst_192 = arith.constant 3.125000e-02 : f32
    %635 = vector.broadcast %cst_192 : f32 to vector<16x1xf32>
    %636 = arith.mulf %634, %635 : vector<16x1xf32>
    %637 = arith.mulf %629, %629 : vector<16x32xf32>
    %cst_193 = arith.constant dense<0.000000e+00> : vector<16xf32>
    %638 = vector.multi_reduction <add>, %637, %cst_193 [1] : vector<16x32xf32> to vector<16xf32>
    %639 = vector.shape_cast %638 : vector<16xf32> to vector<16x1xf32>
    %640 = arith.mulf %636, %636 : vector<16x1xf32>
    %cst_194 = arith.constant 3.200000e+01 : f32
    %641 = vector.broadcast %cst_194 : f32 to vector<16x1xf32>
    %642 = arith.mulf %641, %640 : vector<16x1xf32>
    %643 = arith.subf %639, %642 : vector<16x1xf32>
    %cst_195 = arith.constant 0.000000e+00 : f32
    %644 = vector.broadcast %cst_195 : f32 to vector<16x1xf32>
    %645 = arith.maximumf %643, %644 : vector<16x1xf32>
    %cst_196 = arith.constant 0.0322580636 : f32
    %646 = vector.broadcast %cst_196 : f32 to vector<16x1xf32>
    %647 = arith.mulf %645, %646 : vector<16x1xf32>
    %648 = vector.broadcast %634 : vector<16x1xf32> to vector<16x32xf32>
    %649 = arith.subf %629, %648 : vector<16x32xf32>
    %650 = math.sqrt %647 : vector<16x1xf32>
    %cst_197 = arith.constant 9.99999997E-7 : f32
    %651 = vector.broadcast %cst_197 : f32 to vector<16x1xf32>
    %652 = arith.addf %650, %651 : vector<16x1xf32>
    %653 = vector.broadcast %652 : vector<16x1xf32> to vector<16x32xf32>
    %654 = arith.divf %649, %653 : vector<16x32xf32>
    %655 = vector.broadcast %631 : vector<1x32xf32> to vector<16x32xf32>
    %656 = arith.mulf %655, %654 : vector<16x32xf32>
    %657 = vector.broadcast %632 : vector<1x32xf32> to vector<16x32xf32>
    %658 = arith.addf %656, %657 : vector<16x32xf32>
    %c96 = arith.constant 96 : index
    %c0_198 = arith.constant 0 : index
    %659 = vector.load %arg2[%c96, %c0_198] : memref<376x128xf32, #tpu.memory_space<vmem>>, vector<32x128xf32>
    %c355 = arith.constant 355 : index
    %c0_199 = arith.constant 0 : index
    %660 = vector.load %arg2[%c355, %c0_199] : memref<376x128xf32, #tpu.memory_space<vmem>>, vector<1x128xf32>
    %661 = vector.extract_strided_slice %659 {offsets = [0, 0], sizes = [32, 96], strides = [1, 1]} : vector<32x128xf32> to vector<32x96xf32>
    %cst_200 = arith.constant dense<0.000000e+00> : vector<16x96xf32>
    %662 = tpu.matmul %658, %661, %cst_200 {dimension_numbers = #tpu.dot_dimension_numbers<[1], [0], [0], [1], [0, 0, 1, 1], [], []>} : vector<16x32xf32>, vector<32x96xf32>, vector<16x96xf32> -> vector<16x96xf32>
    %663 = vector.extract_strided_slice %660 {offsets = [0, 0], sizes = [1, 96], strides = [1, 1]} : vector<1x128xf32> to vector<1x96xf32>
    %664 = vector.broadcast %663 : vector<1x96xf32> to vector<16x96xf32>
    %665 = arith.addf %662, %664 : vector<16x96xf32>
    %666 = vector.extract_strided_slice %665 {offsets = [0, 0], sizes = [16, 32], strides = [1, 1]} : vector<16x96xf32> to vector<16x32xf32>
    %667 = vector.extract_strided_slice %665 {offsets = [0, 32], sizes = [16, 32], strides = [1, 1]} : vector<16x96xf32> to vector<16x32xf32>
    %668 = vector.extract_strided_slice %665 {offsets = [0, 64], sizes = [16, 32], strides = [1, 1]} : vector<16x96xf32> to vector<16x32xf32>
    %669 = vector.extract_strided_slice %666 {offsets = [0, 0], sizes = [16, 8], strides = [1, 1]} : vector<16x32xf32> to vector<16x8xf32>
    %670 = vector.extract_strided_slice %667 {offsets = [0, 0], sizes = [16, 8], strides = [1, 1]} : vector<16x32xf32> to vector<16x8xf32>
    %cst_201 = arith.constant dense<0.000000e+00> : vector<16x16xf32>
    %671 = tpu.matmul %669, %670, %cst_201 {dimension_numbers = #tpu.dot_dimension_numbers<[1], [1], [0], [0], [0, 0, 1, 0], [], []>} : vector<16x8xf32>, vector<16x8xf32>, vector<16x16xf32> -> vector<16x16xf32>
    %cst_202 = arith.constant 0.353553385 : f32
    %672 = vector.broadcast %cst_202 : f32 to vector<16x16xf32>
    %673 = arith.mulf %671, %672 : vector<16x16xf32>
    %674 = arith.addf %673, %2 : vector<16x16xf32>
    %cst_203 = arith.constant dense<0xFF800000> : vector<16xf32>
    %675 = vector.multi_reduction <maximumf>, %674, %cst_203 [1] : vector<16x16xf32> to vector<16xf32>
    %676 = vector.shape_cast %675 : vector<16xf32> to vector<16x1xf32>
    %677 = vector.broadcast %676 : vector<16x1xf32> to vector<16x16xf32>
    %678 = arith.subf %674, %677 : vector<16x16xf32>
    %679 = math.exp %678 : vector<16x16xf32>
    %cst_204 = arith.constant dense<0.000000e+00> : vector<16xf32>
    %680 = vector.multi_reduction <add>, %679, %cst_204 [1] : vector<16x16xf32> to vector<16xf32>
    %681 = vector.shape_cast %680 : vector<16xf32> to vector<16x1xf32>
    %682 = vector.broadcast %681 : vector<16x1xf32> to vector<16x16xf32>
    %683 = arith.divf %679, %682 : vector<16x16xf32>
    %684 = vector.extract_strided_slice %668 {offsets = [0, 0], sizes = [16, 8], strides = [1, 1]} : vector<16x32xf32> to vector<16x8xf32>
    %cst_205 = arith.constant dense<0.000000e+00> : vector<16x8xf32>
    %685 = tpu.matmul %683, %684, %cst_205 {dimension_numbers = #tpu.dot_dimension_numbers<[1], [0], [0], [1], [0, 0, 1, 1], [], []>} : vector<16x16xf32>, vector<16x8xf32>, vector<16x8xf32> -> vector<16x8xf32>
    %686 = vector.extract_strided_slice %666 {offsets = [0, 8], sizes = [16, 8], strides = [1, 1]} : vector<16x32xf32> to vector<16x8xf32>
    %687 = vector.extract_strided_slice %667 {offsets = [0, 8], sizes = [16, 8], strides = [1, 1]} : vector<16x32xf32> to vector<16x8xf32>
    %cst_206 = arith.constant dense<0.000000e+00> : vector<16x16xf32>
    %688 = tpu.matmul %686, %687, %cst_206 {dimension_numbers = #tpu.dot_dimension_numbers<[1], [1], [0], [0], [0, 0, 1, 0], [], []>} : vector<16x8xf32>, vector<16x8xf32>, vector<16x16xf32> -> vector<16x16xf32>
    %cst_207 = arith.constant 0.353553385 : f32
    %689 = vector.broadcast %cst_207 : f32 to vector<16x16xf32>
    %690 = arith.mulf %688, %689 : vector<16x16xf32>
    %691 = arith.addf %690, %2 : vector<16x16xf32>
    %cst_208 = arith.constant dense<0xFF800000> : vector<16xf32>
    %692 = vector.multi_reduction <maximumf>, %691, %cst_208 [1] : vector<16x16xf32> to vector<16xf32>
    %693 = vector.shape_cast %692 : vector<16xf32> to vector<16x1xf32>
    %694 = vector.broadcast %693 : vector<16x1xf32> to vector<16x16xf32>
    %695 = arith.subf %691, %694 : vector<16x16xf32>
    %696 = math.exp %695 : vector<16x16xf32>
    %cst_209 = arith.constant dense<0.000000e+00> : vector<16xf32>
    %697 = vector.multi_reduction <add>, %696, %cst_209 [1] : vector<16x16xf32> to vector<16xf32>
    %698 = vector.shape_cast %697 : vector<16xf32> to vector<16x1xf32>
    %699 = vector.broadcast %698 : vector<16x1xf32> to vector<16x16xf32>
    %700 = arith.divf %696, %699 : vector<16x16xf32>
    %701 = vector.extract_strided_slice %668 {offsets = [0, 8], sizes = [16, 8], strides = [1, 1]} : vector<16x32xf32> to vector<16x8xf32>
    %cst_210 = arith.constant dense<0.000000e+00> : vector<16x8xf32>
    %702 = tpu.matmul %700, %701, %cst_210 {dimension_numbers = #tpu.dot_dimension_numbers<[1], [0], [0], [1], [0, 0, 1, 1], [], []>} : vector<16x16xf32>, vector<16x8xf32>, vector<16x8xf32> -> vector<16x8xf32>
    %703 = vector.extract_strided_slice %666 {offsets = [0, 16], sizes = [16, 8], strides = [1, 1]} : vector<16x32xf32> to vector<16x8xf32>
    %704 = vector.extract_strided_slice %667 {offsets = [0, 16], sizes = [16, 8], strides = [1, 1]} : vector<16x32xf32> to vector<16x8xf32>
    %cst_211 = arith.constant dense<0.000000e+00> : vector<16x16xf32>
    %705 = tpu.matmul %703, %704, %cst_211 {dimension_numbers = #tpu.dot_dimension_numbers<[1], [1], [0], [0], [0, 0, 1, 0], [], []>} : vector<16x8xf32>, vector<16x8xf32>, vector<16x16xf32> -> vector<16x16xf32>
    %cst_212 = arith.constant 0.353553385 : f32
    %706 = vector.broadcast %cst_212 : f32 to vector<16x16xf32>
    %707 = arith.mulf %705, %706 : vector<16x16xf32>
    %708 = arith.addf %707, %2 : vector<16x16xf32>
    %cst_213 = arith.constant dense<0xFF800000> : vector<16xf32>
    %709 = vector.multi_reduction <maximumf>, %708, %cst_213 [1] : vector<16x16xf32> to vector<16xf32>
    %710 = vector.shape_cast %709 : vector<16xf32> to vector<16x1xf32>
    %711 = vector.broadcast %710 : vector<16x1xf32> to vector<16x16xf32>
    %712 = arith.subf %708, %711 : vector<16x16xf32>
    %713 = math.exp %712 : vector<16x16xf32>
    %cst_214 = arith.constant dense<0.000000e+00> : vector<16xf32>
    %714 = vector.multi_reduction <add>, %713, %cst_214 [1] : vector<16x16xf32> to vector<16xf32>
    %715 = vector.shape_cast %714 : vector<16xf32> to vector<16x1xf32>
    %716 = vector.broadcast %715 : vector<16x1xf32> to vector<16x16xf32>
    %717 = arith.divf %713, %716 : vector<16x16xf32>
    %718 = vector.extract_strided_slice %668 {offsets = [0, 16], sizes = [16, 8], strides = [1, 1]} : vector<16x32xf32> to vector<16x8xf32>
    %cst_215 = arith.constant dense<0.000000e+00> : vector<16x8xf32>
    %719 = tpu.matmul %717, %718, %cst_215 {dimension_numbers = #tpu.dot_dimension_numbers<[1], [0], [0], [1], [0, 0, 1, 1], [], []>} : vector<16x16xf32>, vector<16x8xf32>, vector<16x8xf32> -> vector<16x8xf32>
    %720 = vector.extract_strided_slice %666 {offsets = [0, 24], sizes = [16, 8], strides = [1, 1]} : vector<16x32xf32> to vector<16x8xf32>
    %721 = vector.extract_strided_slice %667 {offsets = [0, 24], sizes = [16, 8], strides = [1, 1]} : vector<16x32xf32> to vector<16x8xf32>
    %cst_216 = arith.constant dense<0.000000e+00> : vector<16x16xf32>
    %722 = tpu.matmul %720, %721, %cst_216 {dimension_numbers = #tpu.dot_dimension_numbers<[1], [1], [0], [0], [0, 0, 1, 0], [], []>} : vector<16x8xf32>, vector<16x8xf32>, vector<16x16xf32> -> vector<16x16xf32>
    %cst_217 = arith.constant 0.353553385 : f32
    %723 = vector.broadcast %cst_217 : f32 to vector<16x16xf32>
    %724 = arith.mulf %722, %723 : vector<16x16xf32>
    %725 = arith.addf %724, %2 : vector<16x16xf32>
    %cst_218 = arith.constant dense<0xFF800000> : vector<16xf32>
    %726 = vector.multi_reduction <maximumf>, %725, %cst_218 [1] : vector<16x16xf32> to vector<16xf32>
    %727 = vector.shape_cast %726 : vector<16xf32> to vector<16x1xf32>
    %728 = vector.broadcast %727 : vector<16x1xf32> to vector<16x16xf32>
    %729 = arith.subf %725, %728 : vector<16x16xf32>
    %730 = math.exp %729 : vector<16x16xf32>
    %cst_219 = arith.constant dense<0.000000e+00> : vector<16xf32>
    %731 = vector.multi_reduction <add>, %730, %cst_219 [1] : vector<16x16xf32> to vector<16xf32>
    %732 = vector.shape_cast %731 : vector<16xf32> to vector<16x1xf32>
    %733 = vector.broadcast %732 : vector<16x1xf32> to vector<16x16xf32>
    %734 = arith.divf %730, %733 : vector<16x16xf32>
    %735 = vector.extract_strided_slice %668 {offsets = [0, 24], sizes = [16, 8], strides = [1, 1]} : vector<16x32xf32> to vector<16x8xf32>
    %cst_220 = arith.constant dense<0.000000e+00> : vector<16x8xf32>
    %736 = tpu.matmul %734, %735, %cst_220 {dimension_numbers = #tpu.dot_dimension_numbers<[1], [0], [0], [1], [0, 0, 1, 1], [], []>} : vector<16x16xf32>, vector<16x8xf32>, vector<16x8xf32> -> vector<16x8xf32>
    %737 = tpu.concatenate %685, %702, %719, %736 in 1 : vector<16x8xf32>, vector<16x8xf32>, vector<16x8xf32>, vector<16x8xf32> -> vector<16x32xf32>
    %738 = vector.extract_strided_slice %659 {offsets = [0, 96], sizes = [32, 32], strides = [1, 1]} : vector<32x128xf32> to vector<32x32xf32>
    %cst_221 = arith.constant dense<0.000000e+00> : vector<16x32xf32>
    %739 = tpu.matmul %737, %738, %cst_221 {dimension_numbers = #tpu.dot_dimension_numbers<[1], [0], [0], [1], [0, 0, 1, 1], [], []>} : vector<16x32xf32>, vector<32x32xf32>, vector<16x32xf32> -> vector<16x32xf32>
    %740 = vector.extract_strided_slice %660 {offsets = [0, 96], sizes = [1, 32], strides = [1, 1]} : vector<1x128xf32> to vector<1x32xf32>
    %741 = vector.broadcast %740 : vector<1x32xf32> to vector<16x32xf32>
    %742 = arith.addf %739, %741 : vector<16x32xf32>
    %743 = arith.addf %629, %742 : vector<16x32xf32>
    %c366 = arith.constant 366 : index
    %c0_222 = arith.constant 0 : index
    %744 = vector.load %arg2[%c366, %c0_222] : memref<376x128xf32, #tpu.memory_space<vmem>>, vector<1x128xf32>
    %745 = vector.extract_strided_slice %744 {offsets = [0, 0], sizes = [1, 32], strides = [1, 1]} : vector<1x128xf32> to vector<1x32xf32>
    %746 = vector.extract_strided_slice %744 {offsets = [0, 32], sizes = [1, 32], strides = [1, 1]} : vector<1x128xf32> to vector<1x32xf32>
    %cst_223 = arith.constant dense<0.000000e+00> : vector<16xf32>
    %747 = vector.multi_reduction <add>, %743, %cst_223 [1] : vector<16x32xf32> to vector<16xf32>
    %748 = vector.shape_cast %747 : vector<16xf32> to vector<16x1xf32>
    %cst_224 = arith.constant 3.125000e-02 : f32
    %749 = vector.broadcast %cst_224 : f32 to vector<16x1xf32>
    %750 = arith.mulf %748, %749 : vector<16x1xf32>
    %751 = arith.mulf %743, %743 : vector<16x32xf32>
    %cst_225 = arith.constant dense<0.000000e+00> : vector<16xf32>
    %752 = vector.multi_reduction <add>, %751, %cst_225 [1] : vector<16x32xf32> to vector<16xf32>
    %753 = vector.shape_cast %752 : vector<16xf32> to vector<16x1xf32>
    %754 = arith.mulf %750, %750 : vector<16x1xf32>
    %cst_226 = arith.constant 3.200000e+01 : f32
    %755 = vector.broadcast %cst_226 : f32 to vector<16x1xf32>
    %756 = arith.mulf %755, %754 : vector<16x1xf32>
    %757 = arith.subf %753, %756 : vector<16x1xf32>
    %cst_227 = arith.constant 0.000000e+00 : f32
    %758 = vector.broadcast %cst_227 : f32 to vector<16x1xf32>
    %759 = arith.maximumf %757, %758 : vector<16x1xf32>
    %cst_228 = arith.constant 0.0322580636 : f32
    %760 = vector.broadcast %cst_228 : f32 to vector<16x1xf32>
    %761 = arith.mulf %759, %760 : vector<16x1xf32>
    %762 = vector.broadcast %748 : vector<16x1xf32> to vector<16x32xf32>
    %763 = arith.subf %743, %762 : vector<16x32xf32>
    %764 = math.sqrt %761 : vector<16x1xf32>
    %cst_229 = arith.constant 9.99999997E-7 : f32
    %765 = vector.broadcast %cst_229 : f32 to vector<16x1xf32>
    %766 = arith.addf %764, %765 : vector<16x1xf32>
    %767 = vector.broadcast %766 : vector<16x1xf32> to vector<16x32xf32>
    %768 = arith.divf %763, %767 : vector<16x32xf32>
    %769 = vector.broadcast %745 : vector<1x32xf32> to vector<16x32xf32>
    %770 = arith.mulf %769, %768 : vector<16x32xf32>
    %771 = vector.broadcast %746 : vector<1x32xf32> to vector<16x32xf32>
    %772 = arith.addf %770, %771 : vector<16x32xf32>
    %c160 = arith.constant 160 : index
    %c0_230 = arith.constant 0 : index
    %773 = vector.load %arg2[%c160, %c0_230] : memref<376x128xf32, #tpu.memory_space<vmem>>, vector<32x128xf32>
    %c357 = arith.constant 357 : index
    %c0_231 = arith.constant 0 : index
    %774 = vector.load %arg2[%c357, %c0_231] : memref<376x128xf32, #tpu.memory_space<vmem>>, vector<1x128xf32>
    %775 = vector.extract_strided_slice %773 {offsets = [0, 0], sizes = [32, 32], strides = [1, 1]} : vector<32x128xf32> to vector<32x32xf32>
    %cst_232 = arith.constant dense<0.000000e+00> : vector<16x32xf32>
    %776 = tpu.matmul %772, %775, %cst_232 {dimension_numbers = #tpu.dot_dimension_numbers<[1], [0], [0], [1], [0, 0, 1, 1], [], []>} : vector<16x32xf32>, vector<32x32xf32>, vector<16x32xf32> -> vector<16x32xf32>
    %777 = vector.extract_strided_slice %774 {offsets = [0, 0], sizes = [1, 32], strides = [1, 1]} : vector<1x128xf32> to vector<1x32xf32>
    %778 = vector.broadcast %777 : vector<1x32xf32> to vector<16x32xf32>
    %779 = arith.addf %776, %778 : vector<16x32xf32>
    %780 = vector.extract_strided_slice %773 {offsets = [0, 32], sizes = [32, 64], strides = [1, 1]} : vector<32x128xf32> to vector<32x64xf32>
    %cst_233 = arith.constant dense<0.000000e+00> : vector<16x64xf32>
    %781 = tpu.matmul %351, %780, %cst_233 {dimension_numbers = #tpu.dot_dimension_numbers<[1], [0], [0], [1], [0, 0, 1, 1], [], []>} : vector<16x32xf32>, vector<32x64xf32>, vector<16x64xf32> -> vector<16x64xf32>
    %782 = vector.extract_strided_slice %774 {offsets = [0, 32], sizes = [1, 64], strides = [1, 1]} : vector<1x128xf32> to vector<1x64xf32>
    %783 = vector.broadcast %782 : vector<1x64xf32> to vector<16x64xf32>
    %784 = arith.addf %781, %783 : vector<16x64xf32>
    %785 = vector.extract_strided_slice %784 {offsets = [0, 0], sizes = [16, 32], strides = [1, 1]} : vector<16x64xf32> to vector<16x32xf32>
    %786 = vector.extract_strided_slice %784 {offsets = [0, 32], sizes = [16, 32], strides = [1, 1]} : vector<16x64xf32> to vector<16x32xf32>
    %787 = vector.extract_strided_slice %779 {offsets = [0, 0], sizes = [16, 8], strides = [1, 1]} : vector<16x32xf32> to vector<16x8xf32>
    %788 = vector.extract_strided_slice %785 {offsets = [0, 0], sizes = [16, 8], strides = [1, 1]} : vector<16x32xf32> to vector<16x8xf32>
    %cst_234 = arith.constant dense<0.000000e+00> : vector<16x16xf32>
    %789 = tpu.matmul %787, %788, %cst_234 {dimension_numbers = #tpu.dot_dimension_numbers<[1], [1], [0], [0], [0, 0, 1, 0], [], []>} : vector<16x8xf32>, vector<16x8xf32>, vector<16x16xf32> -> vector<16x16xf32>
    %cst_235 = arith.constant 0.353553385 : f32
    %790 = vector.broadcast %cst_235 : f32 to vector<16x16xf32>
    %791 = arith.mulf %789, %790 : vector<16x16xf32>
    %792 = arith.addf %791, %3 : vector<16x16xf32>
    %cst_236 = arith.constant dense<0xFF800000> : vector<16xf32>
    %793 = vector.multi_reduction <maximumf>, %792, %cst_236 [1] : vector<16x16xf32> to vector<16xf32>
    %794 = vector.shape_cast %793 : vector<16xf32> to vector<16x1xf32>
    %795 = vector.broadcast %794 : vector<16x1xf32> to vector<16x16xf32>
    %796 = arith.subf %792, %795 : vector<16x16xf32>
    %797 = math.exp %796 : vector<16x16xf32>
    %cst_237 = arith.constant dense<0.000000e+00> : vector<16xf32>
    %798 = vector.multi_reduction <add>, %797, %cst_237 [1] : vector<16x16xf32> to vector<16xf32>
    %799 = vector.shape_cast %798 : vector<16xf32> to vector<16x1xf32>
    %800 = vector.broadcast %799 : vector<16x1xf32> to vector<16x16xf32>
    %801 = arith.divf %797, %800 : vector<16x16xf32>
    %802 = vector.extract_strided_slice %786 {offsets = [0, 0], sizes = [16, 8], strides = [1, 1]} : vector<16x32xf32> to vector<16x8xf32>
    %cst_238 = arith.constant dense<0.000000e+00> : vector<16x8xf32>
    %803 = tpu.matmul %801, %802, %cst_238 {dimension_numbers = #tpu.dot_dimension_numbers<[1], [0], [0], [1], [0, 0, 1, 1], [], []>} : vector<16x16xf32>, vector<16x8xf32>, vector<16x8xf32> -> vector<16x8xf32>
    %804 = vector.extract_strided_slice %779 {offsets = [0, 8], sizes = [16, 8], strides = [1, 1]} : vector<16x32xf32> to vector<16x8xf32>
    %805 = vector.extract_strided_slice %785 {offsets = [0, 8], sizes = [16, 8], strides = [1, 1]} : vector<16x32xf32> to vector<16x8xf32>
    %cst_239 = arith.constant dense<0.000000e+00> : vector<16x16xf32>
    %806 = tpu.matmul %804, %805, %cst_239 {dimension_numbers = #tpu.dot_dimension_numbers<[1], [1], [0], [0], [0, 0, 1, 0], [], []>} : vector<16x8xf32>, vector<16x8xf32>, vector<16x16xf32> -> vector<16x16xf32>
    %cst_240 = arith.constant 0.353553385 : f32
    %807 = vector.broadcast %cst_240 : f32 to vector<16x16xf32>
    %808 = arith.mulf %806, %807 : vector<16x16xf32>
    %809 = arith.addf %808, %3 : vector<16x16xf32>
    %cst_241 = arith.constant dense<0xFF800000> : vector<16xf32>
    %810 = vector.multi_reduction <maximumf>, %809, %cst_241 [1] : vector<16x16xf32> to vector<16xf32>
    %811 = vector.shape_cast %810 : vector<16xf32> to vector<16x1xf32>
    %812 = vector.broadcast %811 : vector<16x1xf32> to vector<16x16xf32>
    %813 = arith.subf %809, %812 : vector<16x16xf32>
    %814 = math.exp %813 : vector<16x16xf32>
    %cst_242 = arith.constant dense<0.000000e+00> : vector<16xf32>
    %815 = vector.multi_reduction <add>, %814, %cst_242 [1] : vector<16x16xf32> to vector<16xf32>
    %816 = vector.shape_cast %815 : vector<16xf32> to vector<16x1xf32>
    %817 = vector.broadcast %816 : vector<16x1xf32> to vector<16x16xf32>
    %818 = arith.divf %814, %817 : vector<16x16xf32>
    %819 = vector.extract_strided_slice %786 {offsets = [0, 8], sizes = [16, 8], strides = [1, 1]} : vector<16x32xf32> to vector<16x8xf32>
    %cst_243 = arith.constant dense<0.000000e+00> : vector<16x8xf32>
    %820 = tpu.matmul %818, %819, %cst_243 {dimension_numbers = #tpu.dot_dimension_numbers<[1], [0], [0], [1], [0, 0, 1, 1], [], []>} : vector<16x16xf32>, vector<16x8xf32>, vector<16x8xf32> -> vector<16x8xf32>
    %821 = vector.extract_strided_slice %779 {offsets = [0, 16], sizes = [16, 8], strides = [1, 1]} : vector<16x32xf32> to vector<16x8xf32>
    %822 = vector.extract_strided_slice %785 {offsets = [0, 16], sizes = [16, 8], strides = [1, 1]} : vector<16x32xf32> to vector<16x8xf32>
    %cst_244 = arith.constant dense<0.000000e+00> : vector<16x16xf32>
    %823 = tpu.matmul %821, %822, %cst_244 {dimension_numbers = #tpu.dot_dimension_numbers<[1], [1], [0], [0], [0, 0, 1, 0], [], []>} : vector<16x8xf32>, vector<16x8xf32>, vector<16x16xf32> -> vector<16x16xf32>
    %cst_245 = arith.constant 0.353553385 : f32
    %824 = vector.broadcast %cst_245 : f32 to vector<16x16xf32>
    %825 = arith.mulf %823, %824 : vector<16x16xf32>
    %826 = arith.addf %825, %3 : vector<16x16xf32>
    %cst_246 = arith.constant dense<0xFF800000> : vector<16xf32>
    %827 = vector.multi_reduction <maximumf>, %826, %cst_246 [1] : vector<16x16xf32> to vector<16xf32>
    %828 = vector.shape_cast %827 : vector<16xf32> to vector<16x1xf32>
    %829 = vector.broadcast %828 : vector<16x1xf32> to vector<16x16xf32>
    %830 = arith.subf %826, %829 : vector<16x16xf32>
    %831 = math.exp %830 : vector<16x16xf32>
    %cst_247 = arith.constant dense<0.000000e+00> : vector<16xf32>
    %832 = vector.multi_reduction <add>, %831, %cst_247 [1] : vector<16x16xf32> to vector<16xf32>
    %833 = vector.shape_cast %832 : vector<16xf32> to vector<16x1xf32>
    %834 = vector.broadcast %833 : vector<16x1xf32> to vector<16x16xf32>
    %835 = arith.divf %831, %834 : vector<16x16xf32>
    %836 = vector.extract_strided_slice %786 {offsets = [0, 16], sizes = [16, 8], strides = [1, 1]} : vector<16x32xf32> to vector<16x8xf32>
    %cst_248 = arith.constant dense<0.000000e+00> : vector<16x8xf32>
    %837 = tpu.matmul %835, %836, %cst_248 {dimension_numbers = #tpu.dot_dimension_numbers<[1], [0], [0], [1], [0, 0, 1, 1], [], []>} : vector<16x16xf32>, vector<16x8xf32>, vector<16x8xf32> -> vector<16x8xf32>
    %838 = vector.extract_strided_slice %779 {offsets = [0, 24], sizes = [16, 8], strides = [1, 1]} : vector<16x32xf32> to vector<16x8xf32>
    %839 = vector.extract_strided_slice %785 {offsets = [0, 24], sizes = [16, 8], strides = [1, 1]} : vector<16x32xf32> to vector<16x8xf32>
    %cst_249 = arith.constant dense<0.000000e+00> : vector<16x16xf32>
    %840 = tpu.matmul %838, %839, %cst_249 {dimension_numbers = #tpu.dot_dimension_numbers<[1], [1], [0], [0], [0, 0, 1, 0], [], []>} : vector<16x8xf32>, vector<16x8xf32>, vector<16x16xf32> -> vector<16x16xf32>
    %cst_250 = arith.constant 0.353553385 : f32
    %841 = vector.broadcast %cst_250 : f32 to vector<16x16xf32>
    %842 = arith.mulf %840, %841 : vector<16x16xf32>
    %843 = arith.addf %842, %3 : vector<16x16xf32>
    %cst_251 = arith.constant dense<0xFF800000> : vector<16xf32>
    %844 = vector.multi_reduction <maximumf>, %843, %cst_251 [1] : vector<16x16xf32> to vector<16xf32>
    %845 = vector.shape_cast %844 : vector<16xf32> to vector<16x1xf32>
    %846 = vector.broadcast %845 : vector<16x1xf32> to vector<16x16xf32>
    %847 = arith.subf %843, %846 : vector<16x16xf32>
    %848 = math.exp %847 : vector<16x16xf32>
    %cst_252 = arith.constant dense<0.000000e+00> : vector<16xf32>
    %849 = vector.multi_reduction <add>, %848, %cst_252 [1] : vector<16x16xf32> to vector<16xf32>
    %850 = vector.shape_cast %849 : vector<16xf32> to vector<16x1xf32>
    %851 = vector.broadcast %850 : vector<16x1xf32> to vector<16x16xf32>
    %852 = arith.divf %848, %851 : vector<16x16xf32>
    %853 = vector.extract_strided_slice %786 {offsets = [0, 24], sizes = [16, 8], strides = [1, 1]} : vector<16x32xf32> to vector<16x8xf32>
    %cst_253 = arith.constant dense<0.000000e+00> : vector<16x8xf32>
    %854 = tpu.matmul %852, %853, %cst_253 {dimension_numbers = #tpu.dot_dimension_numbers<[1], [0], [0], [1], [0, 0, 1, 1], [], []>} : vector<16x16xf32>, vector<16x8xf32>, vector<16x8xf32> -> vector<16x8xf32>
    %855 = tpu.concatenate %803, %820, %837, %854 in 1 : vector<16x8xf32>, vector<16x8xf32>, vector<16x8xf32>, vector<16x8xf32> -> vector<16x32xf32>
    %856 = vector.extract_strided_slice %773 {offsets = [0, 96], sizes = [32, 32], strides = [1, 1]} : vector<32x128xf32> to vector<32x32xf32>
    %cst_254 = arith.constant dense<0.000000e+00> : vector<16x32xf32>
    %857 = tpu.matmul %855, %856, %cst_254 {dimension_numbers = #tpu.dot_dimension_numbers<[1], [0], [0], [1], [0, 0, 1, 1], [], []>} : vector<16x32xf32>, vector<32x32xf32>, vector<16x32xf32> -> vector<16x32xf32>
    %858 = vector.extract_strided_slice %774 {offsets = [0, 96], sizes = [1, 32], strides = [1, 1]} : vector<1x128xf32> to vector<1x32xf32>
    %859 = vector.broadcast %858 : vector<1x32xf32> to vector<16x32xf32>
    %860 = arith.addf %857, %859 : vector<16x32xf32>
    %861 = arith.addf %743, %860 : vector<16x32xf32>
    %c366_255 = arith.constant 366 : index
    %c0_256 = arith.constant 0 : index
    %862 = vector.load %arg2[%c366_255, %c0_256] : memref<376x128xf32, #tpu.memory_space<vmem>>, vector<1x128xf32>
    %863 = vector.extract_strided_slice %862 {offsets = [0, 64], sizes = [1, 32], strides = [1, 1]} : vector<1x128xf32> to vector<1x32xf32>
    %864 = vector.extract_strided_slice %862 {offsets = [0, 96], sizes = [1, 32], strides = [1, 1]} : vector<1x128xf32> to vector<1x32xf32>
    %cst_257 = arith.constant dense<0.000000e+00> : vector<16xf32>
    %865 = vector.multi_reduction <add>, %861, %cst_257 [1] : vector<16x32xf32> to vector<16xf32>
    %866 = vector.shape_cast %865 : vector<16xf32> to vector<16x1xf32>
    %cst_258 = arith.constant 3.125000e-02 : f32
    %867 = vector.broadcast %cst_258 : f32 to vector<16x1xf32>
    %868 = arith.mulf %866, %867 : vector<16x1xf32>
    %869 = arith.mulf %861, %861 : vector<16x32xf32>
    %cst_259 = arith.constant dense<0.000000e+00> : vector<16xf32>
    %870 = vector.multi_reduction <add>, %869, %cst_259 [1] : vector<16x32xf32> to vector<16xf32>
    %871 = vector.shape_cast %870 : vector<16xf32> to vector<16x1xf32>
    %872 = arith.mulf %868, %868 : vector<16x1xf32>
    %cst_260 = arith.constant 3.200000e+01 : f32
    %873 = vector.broadcast %cst_260 : f32 to vector<16x1xf32>
    %874 = arith.mulf %873, %872 : vector<16x1xf32>
    %875 = arith.subf %871, %874 : vector<16x1xf32>
    %cst_261 = arith.constant 0.000000e+00 : f32
    %876 = vector.broadcast %cst_261 : f32 to vector<16x1xf32>
    %877 = arith.maximumf %875, %876 : vector<16x1xf32>
    %cst_262 = arith.constant 0.0322580636 : f32
    %878 = vector.broadcast %cst_262 : f32 to vector<16x1xf32>
    %879 = arith.mulf %877, %878 : vector<16x1xf32>
    %880 = vector.broadcast %866 : vector<16x1xf32> to vector<16x32xf32>
    %881 = arith.subf %861, %880 : vector<16x32xf32>
    %882 = math.sqrt %879 : vector<16x1xf32>
    %cst_263 = arith.constant 9.99999997E-7 : f32
    %883 = vector.broadcast %cst_263 : f32 to vector<16x1xf32>
    %884 = arith.addf %882, %883 : vector<16x1xf32>
    %885 = vector.broadcast %884 : vector<16x1xf32> to vector<16x32xf32>
    %886 = arith.divf %881, %885 : vector<16x32xf32>
    %887 = vector.broadcast %863 : vector<1x32xf32> to vector<16x32xf32>
    %888 = arith.mulf %887, %886 : vector<16x32xf32>
    %889 = vector.broadcast %864 : vector<1x32xf32> to vector<16x32xf32>
    %890 = arith.addf %888, %889 : vector<16x32xf32>
    %c224_264 = arith.constant 224 : index
    %c0_265 = arith.constant 0 : index
    %891 = vector.load %arg2[%c224_264, %c0_265] : memref<376x128xf32, #tpu.memory_space<vmem>>, vector<32x128xf32>
    %892 = vector.extract_strided_slice %891 {offsets = [0, 64], sizes = [32, 64], strides = [1, 1]} : vector<32x128xf32> to vector<32x64xf32>
    %c256_266 = arith.constant 256 : index
    %c0_267 = arith.constant 0 : index
    %893 = vector.load %arg2[%c256_266, %c0_267] : memref<376x128xf32, #tpu.memory_space<vmem>>, vector<64x128xf32>
    %894 = vector.extract_strided_slice %893 {offsets = [0, 96], sizes = [64, 32], strides = [1, 1]} : vector<64x128xf32> to vector<64x32xf32>
    %c361 = arith.constant 361 : index
    %c0_268 = arith.constant 0 : index
    %895 = vector.load %arg2[%c361, %c0_268] : memref<376x128xf32, #tpu.memory_space<vmem>>, vector<1x128xf32>
    %cst_269 = arith.constant dense<0.000000e+00> : vector<16x64xf32>
    %896 = tpu.matmul %890, %892, %cst_269 {dimension_numbers = #tpu.dot_dimension_numbers<[1], [0], [0], [1], [0, 0, 1, 1], [], []>} : vector<16x32xf32>, vector<32x64xf32>, vector<16x64xf32> -> vector<16x64xf32>
    %897 = vector.extract_strided_slice %895 {offsets = [0, 0], sizes = [1, 64], strides = [1, 1]} : vector<1x128xf32> to vector<1x64xf32>
    %898 = vector.broadcast %897 : vector<1x64xf32> to vector<16x64xf32>
    %899 = arith.addf %896, %898 : vector<16x64xf32>
    %cst_270 = arith.constant 0.000000e+00 : f32
    %900 = vector.broadcast %cst_270 : f32 to vector<16x64xf32>
    %901 = arith.maximumf %899, %900 : vector<16x64xf32>
    %cst_271 = arith.constant dense<0.000000e+00> : vector<16x32xf32>
    %902 = tpu.matmul %901, %894, %cst_271 {dimension_numbers = #tpu.dot_dimension_numbers<[1], [0], [0], [1], [0, 0, 1, 1], [], []>} : vector<16x64xf32>, vector<64x32xf32>, vector<16x32xf32> -> vector<16x32xf32>
    %903 = vector.extract_strided_slice %895 {offsets = [0, 64], sizes = [1, 32], strides = [1, 1]} : vector<1x128xf32> to vector<1x32xf32>
    %904 = vector.broadcast %903 : vector<1x32xf32> to vector<16x32xf32>
    %905 = arith.addf %902, %904 : vector<16x32xf32>
    %906 = arith.addf %861, %905 : vector<16x32xf32>
    %c367_272 = arith.constant 367 : index
    %c0_273 = arith.constant 0 : index
    %907 = vector.load %arg2[%c367_272, %c0_273] : memref<376x128xf32, #tpu.memory_space<vmem>>, vector<1x128xf32>
    %908 = vector.extract_strided_slice %907 {offsets = [0, 64], sizes = [1, 32], strides = [1, 1]} : vector<1x128xf32> to vector<1x32xf32>
    %909 = vector.extract_strided_slice %907 {offsets = [0, 96], sizes = [1, 32], strides = [1, 1]} : vector<1x128xf32> to vector<1x32xf32>
    %cst_274 = arith.constant dense<0.000000e+00> : vector<16xf32>
    %910 = vector.multi_reduction <add>, %906, %cst_274 [1] : vector<16x32xf32> to vector<16xf32>
    %911 = vector.shape_cast %910 : vector<16xf32> to vector<16x1xf32>
    %cst_275 = arith.constant 3.125000e-02 : f32
    %912 = vector.broadcast %cst_275 : f32 to vector<16x1xf32>
    %913 = arith.mulf %911, %912 : vector<16x1xf32>
    %914 = arith.mulf %906, %906 : vector<16x32xf32>
    %cst_276 = arith.constant dense<0.000000e+00> : vector<16xf32>
    %915 = vector.multi_reduction <add>, %914, %cst_276 [1] : vector<16x32xf32> to vector<16xf32>
    %916 = vector.shape_cast %915 : vector<16xf32> to vector<16x1xf32>
    %917 = arith.mulf %913, %913 : vector<16x1xf32>
    %cst_277 = arith.constant 3.200000e+01 : f32
    %918 = vector.broadcast %cst_277 : f32 to vector<16x1xf32>
    %919 = arith.mulf %918, %917 : vector<16x1xf32>
    %920 = arith.subf %916, %919 : vector<16x1xf32>
    %cst_278 = arith.constant 0.000000e+00 : f32
    %921 = vector.broadcast %cst_278 : f32 to vector<16x1xf32>
    %922 = arith.maximumf %920, %921 : vector<16x1xf32>
    %cst_279 = arith.constant 0.0322580636 : f32
    %923 = vector.broadcast %cst_279 : f32 to vector<16x1xf32>
    %924 = arith.mulf %922, %923 : vector<16x1xf32>
    %925 = vector.broadcast %911 : vector<16x1xf32> to vector<16x32xf32>
    %926 = arith.subf %906, %925 : vector<16x32xf32>
    %927 = math.sqrt %924 : vector<16x1xf32>
    %cst_280 = arith.constant 9.99999997E-7 : f32
    %928 = vector.broadcast %cst_280 : f32 to vector<16x1xf32>
    %929 = arith.addf %927, %928 : vector<16x1xf32>
    %930 = vector.broadcast %929 : vector<16x1xf32> to vector<16x32xf32>
    %931 = arith.divf %926, %930 : vector<16x32xf32>
    %932 = vector.broadcast %908 : vector<1x32xf32> to vector<16x32xf32>
    %933 = arith.mulf %932, %931 : vector<16x32xf32>
    %934 = vector.broadcast %909 : vector<1x32xf32> to vector<16x32xf32>
    %935 = arith.addf %933, %934 : vector<16x32xf32>
    %c320 = arith.constant 320 : index
    %c0_281 = arith.constant 0 : index
    %936 = vector.load %arg2[%c320, %c0_281] : memref<376x128xf32, #tpu.memory_space<vmem>>, vector<32x128xf32>
    %c368 = arith.constant 368 : index
    %c0_282 = arith.constant 0 : index
    %937 = vector.load %arg2[%c368, %c0_282] : memref<376x128xf32, #tpu.memory_space<vmem>>, vector<1x128xf32>
    %cst_283 = arith.constant dense<0.000000e+00> : vector<16x128xf32>
    %938 = tpu.matmul %935, %936, %cst_283 {dimension_numbers = #tpu.dot_dimension_numbers<[1], [0], [0], [1], [0, 0, 1, 1], [], []>} : vector<16x32xf32>, vector<32x128xf32>, vector<16x128xf32> -> vector<16x128xf32>
    %939 = vector.broadcast %937 : vector<1x128xf32> to vector<16x128xf32>
    %940 = arith.addf %938, %939 : vector<16x128xf32>
    %cst_284 = arith.constant dense<0xFF800000> : vector<16xf32>
    %941 = vector.multi_reduction <maximumf>, %940, %cst_284 [1] : vector<16x128xf32> to vector<16xf32>
    %942 = vector.shape_cast %941 : vector<16xf32> to vector<16x1xf32>
    %943 = vector.broadcast %942 : vector<16x1xf32> to vector<16x128xf32>
    %944 = arith.subf %940, %943 : vector<16x128xf32>
    %945 = math.exp %944 : vector<16x128xf32>
    %cst_285 = arith.constant dense<0.000000e+00> : vector<16xf32>
    %946 = vector.multi_reduction <add>, %945, %cst_285 [1] : vector<16x128xf32> to vector<16xf32>
    %947 = vector.shape_cast %946 : vector<16xf32> to vector<16x1xf32>
    %948 = math.log %947 : vector<16x1xf32>
    %949 = vector.broadcast %948 : vector<16x1xf32> to vector<16x128xf32>
    %950 = arith.subf %944, %949 : vector<16x128xf32>
    %c0_286 = arith.constant 0 : index
    %c0_287 = arith.constant 0 : index
    %951 = vector.load %arg3[%c0_286, %c0_287] : memref<16x128xf32, #tpu.memory_space<vmem>>, vector<16x128xf32>
    tpu.vector_store %arg3[%c0_286, %c0_287], %950 {strides = array<i32>} : memref<16x128xf32, #tpu.memory_space<vmem>>, vector<16x128xf32>,
    return
  }
}

</mosaic_0001>

<bundles_post_ra>
// kernel: transformer_forward.1
= control target key start
LH: loop header
LB: loop body
LE: loop exit
PB: predicated region body
PF: predicated region fallthrough
CT: control target
= control target key end

     0   :  { %vm19_vm0 = vcmask 261120   ;;  %s6290_s18 = smov 96   ;;  %s6291_s29 = smov 88   ;;  %vm154_vm13 = vcmask 64512   ;;  %vm190_vm14 = vcmask 130048   ;;  %s8299_s0 = inlined_call_operand.vmem [shape: f32[32,32], index: 0, kind: input, shape index: {}]   ;;  %s8300_s2 = inlined_call_operand.vmem [shape: f32[376,128], index: 2, kind: input, shape index: {}]   ;;  %s8301_s1 = inlined_call_operand.vmem [shape: f32[16,48], index: 1, kind: input, shape index: {}]   ;;  %s8302_s3 = inlined_call_operand.vmem [shape: f32[16,128], index: 3, kind: output, shape index: {}]  }
   0x1   :  { %v6328_v0 = vld [vmem:[%s8299_s0 + $0x8] sm:$0xff]  ;;  %v6333_v1 = vld [vmem:[%s8299_s0] sm:$0xff]  ;;  %v6361_v13 = vld [vmem:[%s8300_s2 + $0x18] sm:$0xff]  ;;  %s6292_s30 = smov 72   ;;  %s6293_s4 = smov 104  }
   0x2   :  { %v23_v2 = vsel %vm19_vm0, %v6328_v0, 0.0  ;;  %v20_v3 = vsel %vm19_vm0, %v6333_v1, 0.0  ;;  %v6342_v4 = vld [vmem:[%s8300_s2 + $0x16a] ss:$0 sm:$0xff]  ;;  %v29_v5 = vmul.f32 %v6328_v0, %v6328_v0  ;;  %v28_v6 = vmul.f32 %v6333_v1, %v6333_v1  ;;  %v6366_v14 = vld [vmem:[%s8300_s2 + $0x10] sm:$0xff]  ;;  %137 = vmatpush.msra.mxu0 %v6361_v13  ;;  %5640 = vmatpush.msra.mxu3 %v6361_v13  ;;  %v6380_v19 = vld [vmem:[%s8300_s2] sm:$0xff] }
   0x3   :  { %24 = vadd.xlane.f32.xlu0 %v23_v2  ;;  %21 = vadd.xlane.f32.xlu1 %v20_v3  ;;  %v6373_v17 = vld [vmem:[%s8300_s2 + $0x8] sm:$0xff]  ;;  %s6294_s5 = smov 80   ;;  %s6295_s6 = smov 120  }
   0x4   :  { %108 = vrot.lane.b32.xlu2 %v6342_v4, %s6290_s18  ;;  %v33_v7 = vsel %vm19_vm0, %v29_v5, 0.0  ;;  %v30_v8 = vsel %vm19_vm0, %v28_v6, 0.0  ;;  %138 = vmatpush.msra.mxu0 %v6366_v14  ;;  %s6296_s7 = smov 112   ;;  %s6297_s12 = smov 56  }
   0x5   :  { %5641 = vmatpush.msra.mxu3 %v6366_v14  ;;  %s6298_s13 = smov 64   ;;  %s6299_s14 = smov 48  }
   0x6   :  { %139 = vmatpush.msra.mxu0 %v6373_v17  ;;  %s6300_s15 = smov 40   ;;  %s6301_s16 = smov 32  }
   0x7   :  { %5642 = vmatpush.msra.mxu3 %v6373_v17  ;;  %s6302_s17 = smov 16   ;;  %s6303_s19 = smov 8  }
   0x8   :  { %140 = vmatpush.msra.mxu0 %v6380_v19  ;;  %s6304_s20 = smov 24  }
   0x9   :  { %5643 = vmatpush.msra.mxu3 %v6380_v19 }
   0xb   :  { %34 = vadd.xlane.f32.xlu0 %v33_v7  ;;  %31 = vadd.xlane.f32.xlu1 %v30_v8 }
  0x76   :  { %v6352_v9 = vpop.xlane.xlu0 %24  ;;  %v6354_v10 = vpop.xlane.xlu1 %21 }
  0x77   :  { %v27_v11 = vmul.f32 0.03125, %v6352_v9  ;;  %v26_v12 = vmul.f32 0.03125, %v6354_v10  ;;  %v47_v5 = vsub.f32 %v6328_v0, %v6352_v9  ;;  %v46_v8 = vsub.f32 %v6333_v1, %v6354_v10  ;;  %v6401_v10 = vld [vmem:[%s8300_s2 + $0x160] ss:$0 sm:$0xff] }
  0x79   :  { %v37_v15 = vmul.f32 %v27_v11, %v27_v11  ;;  %v36_v16 = vmul.f32 %v26_v12, %v26_v12 }
  0x7b   :  { %v38_v18 = vmul.f32 32.0, %v36_v16  ;;  %v39_v20 = vmul.f32 32.0, %v37_v15 }
  0x7e   :  { %v35_v21 = vpop.xlane.xlu0 %34  ;;  %v32_v22 = vpop.xlane.xlu1 %31 }
  0x7f   :  { %v41_v23 = vsub.f32 %v35_v21, %v39_v20  ;;  %v40_v24 = vsub.f32 %v32_v22, %v38_v18  ;;  %v6390_v18 = vpop.permute.xlu2 %108 }
  0x81   :  { %v43_v25 = vmax.f32 %v41_v23, 0.0  ;;  %v42_v26 = vmax.f32 %v40_v24, 0.0 }
  0x83   :  { %v45_v27 = vmul.f32 0.032258064, %v43_v25  ;;  %v44_v28 = vmul.f32 0.032258064, %v42_v26 }
  0x85   :  { %5956 = vrsqrt.f32 %v45_v27  ;;  %vm67_vm1 = vcmp.eq.f32.partialorder %v45_v27, inf  ;;  %v70_v42 = vand.u32 2147483648, %v45_v27  ;;  %vm55_vm2 = vcmp.eq.f32.partialorder %v44_v28, inf }
  0x86   :  { %5958 = vrsqrt.f32 %v44_v28  ;;  %v58_v44 = vand.u32 2147483648, %v44_v28  ;;  %vm69_vm3 = vcmp.eq.f32.partialorder %v45_v27, 0.0  ;;  %vm57_vm4 = vcmp.eq.f32.partialorder %v44_v28, 0.0 }
  0x8b   :  { %v5957_v29 = vpop.eup %5956 }
  0x8c   :  { %v5959_v30 = vpop.eup %5958  ;;  %v61_v31 = vmul.f32 %v5957_v29, %v45_v27 }
  0x8d   :  { %v49_v32 = vmul.f32 %v5959_v30, %v44_v28 }
  0x8e   :  { %v62_v33 = vmul.f32 %v5957_v29, %v61_v31 }
  0x8f   :  { %v50_v34 = vmul.f32 %v5959_v30, %v49_v32 }
  0x90   :  { %v63_v35 = vmul.f32 0.5, %v62_v33 }
  0x91   :  { %v51_v36 = vmul.f32 0.5, %v50_v34 }
  0x92   :  { %v64_v37 = vsub.f32 1.5, %v63_v35 }
  0x93   :  { %v52_v38 = vsub.f32 1.5, %v51_v36 }
  0x94   :  { %v65_v39 = vmul.f32 %v5957_v29, %v64_v37 }
  0x95   :  { %v53_v40 = vmul.f32 %v5959_v30, %v52_v38 }
  0x96   :  { %v66_v41 = vmul.f32 %v65_v39, %v45_v27 }
  0x97   :  { %v54_v43 = vmul.f32 %v53_v40, %v44_v28 }
  0x98   :  { %v68_v45 = vsel %vm67_vm1, %v45_v27, %v66_v41  ;;  %v14_v41 = vld [vmem:[%s8301_s1] sm:$0xff] }
  0x99   :  { %v56_v46 = vsel %vm55_vm2, %v44_v28, %v54_v43  ;;  %v71_v47 = vsel %vm69_vm3, %v70_v42, %v68_v45 }
  0x9a   :  { %v59_v48 = vsel %vm57_vm4, %v58_v44, %v56_v46  ;;  %v73_v49 = vadd.f32 1e-06, %v71_v47  ;;  %v15_v46 = vld [vmem:[%s8301_s1 + $0x8] sm:$0xff] }
  0x9b   :  { %v72_v50 = vadd.f32 1e-06, %v59_v48 }
  0x9c   :  { %5960 = vrcp.f32 %v73_v49  ;;  %v100_v57 = vand.u32 2147483648, %v73_v49  ;;  %v98_v60 = vand.u32 2147483647, %v73_v49  ;;  %vm94_vm7 = vweird.f32 %v73_v49 }
  0x9d   :  { %5962 = vrcp.f32 %v72_v50  ;;  %v85_v58 = vand.u32 2147483648, %v72_v50  ;;  %v83_v62 = vand.u32 2147483647, %v72_v50  ;;  %vm79_vm8 = vweird.f32 %v72_v50 }
  0x9e   :  { %v101_v3 = vor.u32 1.1754944e-38, %v100_v57  ;;  %vm99_vm11 = vcmp.eq.f32.partialorder %v98_v60, 8.507059e+37 }
  0x9f   :  { %v86_v6 = vor.u32 1.1754944e-38, %v85_v58  ;;  %vm84_vm12 = vcmp.eq.f32.partialorder %v83_v62, 8.507059e+37 }
  0xa2   :  { %v5961_v51 = vpop.eup %5960 }
  0xa3   :  { %v5963_v52 = vpop.eup %5962  ;;  %v90_v53 = vmul.f32 %v5961_v51, %v73_v49  ;;  %vm95_vm5 = vweird.f32 %v5961_v51 }
  0xa4   :  { %v75_v54 = vmul.f32 %v5963_v52, %v72_v50  ;;  %vm80_vm6 = vweird.f32 %v5963_v52  ;;  %vm96_vm9 = vmor %vm94_vm7, %vm95_vm5 }
  0xa5   :  { %v91_v55 = vsub.f32 1.0, %v90_v53  ;;  %vm81_vm10 = vmor %vm79_vm8, %vm80_vm6 }
  0xa6   :  { %v76_v56 = vsub.f32 1.0, %v75_v54 }
  0xa7   :  { %v92_v59 = vmul.f32 %v5961_v51, %v91_v55 }
  0xa8   :  { %v77_v61 = vmul.f32 %v5963_v52, %v76_v56 }
  0xa9   :  { %v93_v63 = vadd.f32 %v5961_v51, %v92_v59 }
  0xaa   :  { %v78_v2 = vadd.f32 %v5963_v52, %v77_v61 }
  0xab   :  { %v97_v7 = vsel %vm96_vm9, %v5961_v51, %v93_v63 }
  0xac   :  { %v82_v11 = vsel %vm81_vm10, %v5963_v52, %v78_v2  ;;  %v102_v12 = vsel %vm99_vm11, %v101_v3, %v97_v7 }
  0xad   :  { %v87_v15 = vsel %vm84_vm12, %v86_v6, %v82_v11  ;;  %v103_v16 = vmul.f32 %v102_v12, %v47_v5 }
  0xae   :  { %v88_v20 = vmul.f32 %v87_v15, %v46_v8 }
  0xaf   :  { %v106_v21 = vmul.f32 %v6342_v4, %v103_v16 }
  0xb0   :  { %v105_v22 = vmul.f32 %v6342_v4, %v88_v20 }
  0xb1   :  { %v112_v0 = vadd.f32 %v6390_v18, %v106_v21 }
  0xb2   :  { %v111_v9 = vadd.f32 %v6390_v18, %v105_v22 }
  0xb3   :  { %5451 = vmatmul.msk.f32.vlgmr.msra.gmra.mxu3 %vm19_vm0, %v112_v0 }
  0xb4   :  { %5450 = vmatmul.msk.f32.vlgmr.msra.gmra.mxu0 %vm19_vm0, %v111_v9 }
 0x131   :  { %v142_v23 = vpop.f32.mrf.mxu0 }
 0x132   :  { %v6404_v24 = vadd.f32 %v6401_v10, %v142_v23 }
 0x134   :  { %150 = vrot.lane.b32.xlu0 %v6404_v24, %s6290_s18 }
 0x136   :  { %v145_v4 = vpop.f32.mrf.mxu3 }
 0x137   :  { %v6409_v25 = vadd.f32 %v6401_v10, %v145_v4 }
 0x139   :  { %152 = vrot.lane.b32.xlu2 %v6409_v25, %s6290_s18  ;;  %280 = vrot.lane.b32.xlu1 %v6409_v25, %s6291_s29  ;;  %v6474_v20 = vpack.i.bf16 %v6404_v24, %v6409_v25 }
 0x13c   :  { %532 = vrot.lane.b32.xlu0 %v6409_v25, %s6292_s30 }
 0x141   :  { %526 = vrot.lane.b32.xlu1 %v6404_v24, %s6293_s4  ;;  %278 = vrot.lane.b32.xlu2 %v6404_v24, %s6291_s29 }
 0x144   :  { %406 = vrot.lane.b32.xlu0 %v6409_v25, %s6294_s5 }
 0x149   :  { %528 = vrot.lane.b32.xlu1 %v6409_v25, %s6293_s4  ;;  %274 = vrot.lane.b32.xlu2 %v6404_v24, %s6295_s6 }
 0x14c   :  { %400 = vrot.lane.b32.xlu0 %v6404_v24, %s6296_s7 }
 0x151   :  { %276 = vrot.lane.b32.xlu2 %v6409_v25, %s6295_s6 }
 0x159   :  { %530 = vrot.lane.b32.xlu2 %v6404_v24, %s6292_s30 }
 0x161   :  { %404 = vrot.lane.b32.xlu2 %v6404_v24, %s6294_s5 }
 0x169   :  { %402 = vrot.lane.b32.xlu2 %v6409_v25, %s6296_s7 }
 0x193   :  { %v153_v26 = vpop.permute.xlu2 %152 }
 0x194   :  { %5452 = vmatpush.xpose.msk.msra.mxu1 %vm154_vm13, %v153_v26 }
 0x19b   :  { %v279_v27 = vpop.permute.xlu2 %278 }
 0x1a3   :  { %v275_v28 = vpop.permute.xlu2 %274 }
 0x1a6   :  { %v151_v29 = vpop.permute.xlu0 %150 }
 0x1a7   :  { %5453 = vmatpush.xpose.msk.msra.mxu1 %vm154_vm13, %v151_v29 }
 0x1aa   :  { %5454 = vmatmul.msk.f32.vlgmr.msra.gmra.mxu1 %vm154_vm13, %v6404_v24 }
 0x1ab   :  { %v277_v30 = vpop.permute.xlu2 %276  ;;  %v281_v31 = vpop.permute.xlu1 %280 }
 0x1ac   :  { %5458 = vmatpush.xpose.msk.msrb.mxu3 %vm154_vm13, %v281_v31 }
 0x1ae   :  { %v533_v32 = vpop.permute.xlu0 %532 }
 0x1b0   :  { %5459 = vmatpush.xpose.msk.msrb.mxu3 %vm154_vm13, %v279_v27 }
 0x1b2   :  { %5455 = vmatmul.msk.f32.gmra.mxu1 %vm154_vm13, %v6409_v25 }
 0x1b3   :  { %v531_v33 = vpop.permute.xlu2 %530  ;;  %5460 = vmatmul.msk.f32.vlgmr.msrb.gmra.mxu3 %vm154_vm13, %v275_v28  ;;  %v527_v37 = vpop.permute.xlu1 %526 }
 0x1b4   :  { %5470 = vmatpush.xpose.msk.msra.mxu3 %vm154_vm13, %v533_v32 }
 0x1b6   :  { %v407_v34 = vpop.permute.xlu0 %406 }
 0x1b7   :  { %5464 = vmatpush.xpose.msk.msrb.mxu0 %vm154_vm13, %v407_v34 }
 0x1b8   :  { %5471 = vmatpush.xpose.msk.msra.mxu3 %vm154_vm13, %v531_v33 }
 0x1bb   :  { %v405_v35 = vpop.permute.xlu2 %404  ;;  %5461 = vmatmul.msk.f32.gmra.mxu3 %vm154_vm13, %v277_v30  ;;  %v529_v39 = vpop.permute.xlu1 %528 }
 0x1bc   :  { %5465 = vmatpush.xpose.msk.msrb.mxu0 %vm154_vm13, %v405_v35 }
 0x1be   :  { %v401_v36 = vpop.permute.xlu0 %400 }
 0x1bf   :  { %5466 = vmatmul.msk.f32.vlgmr.msrb.gmra.mxu0 %vm154_vm13, %v401_v36 }
 0x1c3   :  { %5472 = vmatmul.msk.f32.vlgmr.msra.gmra.mxu3 %vm154_vm13, %v527_v37  ;;  %v403_v38 = vpop.permute.xlu2 %402 }
 0x1c7   :  { %5467 = vmatmul.msk.f32.gmra.mxu0 %vm154_vm13, %v403_v38 }
 0x1cb   :  { %5473 = vmatmul.msk.f32.gmra.mxu3 %vm154_vm13, %v529_v39 }
 0x227   :  { %v180_v40 = vpop.f32.mrf.mxu1 }
 0x228   :  { %v186_v42 = vmul.f32 0.35355338, %v180_v40 }
 0x22a   :  { %v188_v43 = vadd.f32 %v186_v42, %v14_v41 }
 0x22c   :  { %v191_v44 = vsel %vm190_vm14, %v188_v43, -inf }
 0x22d   :  { %192 = vmax.xlane.f32.xlu1 %v191_v44 }
 0x22f   :  { %v183_v45 = vpop.f32.mrf.mxu1 }
 0x230   :  { %v187_v47 = vmul.f32 0.35355338, %v183_v45 }
 0x232   :  { %v189_v48 = vadd.f32 %v187_v47, %v15_v46 }
 0x234   :  { %v194_v49 = vsel %vm190_vm14, %v189_v48, -inf }
 0x235   :  { %195 = vmax.xlane.f32.xlu0 %v194_v49 }
 0x236   :  { %v307_v50 = vpop.f32.mrf.mxu3 }
 0x237   :  { %v313_v51 = vmul.f32 0.35355338, %v307_v50 }
 0x239   :  { %v315_v52 = vadd.f32 %v313_v51, %v14_v41 }
 0x23b   :  { %v317_v53 = vsel %vm190_vm14, %v315_v52, -inf }
 0x23c   :  { %v433_v54 = vpop.f32.mrf.mxu0  ;;  %318 = vmax.xlane.f32.xlu2 %v317_v53 }
 0x23d   :  { %v439_v55 = vmul.f32 0.35355338, %v433_v54 }
 0x23e   :  { %v310_v56 = vpop.f32.mrf.mxu3 }
 0x23f   :  { %v314_v57 = vmul.f32 0.35355338, %v310_v56  ;;  %v441_v58 = vadd.f32 %v439_v55, %v14_v41 }
 0x241   :  { %v316_v59 = vadd.f32 %v314_v57, %v15_v46  ;;  %v443_v60 = vsel %vm190_vm14, %v441_v58, -inf }
 0x243   :  { %v320_v61 = vsel %vm190_vm14, %v316_v59, -inf }
 0x244   :  { %v436_v62 = vpop.f32.mrf.mxu0  ;;  %444 = vmax.xlane.f32.xlu2 %v443_v60  ;;  %321 = vmax.xlane.f32.xlu1 %v320_v61 }
 0x245   :  { %v440_v63 = vmul.f32 0.35355338, %v436_v62 }
 0x246   :  { %v559_v2 = vpop.f32.mrf.mxu3 }
 0x247   :  { %v6466_v3 = vadd.f32 %v440_v63, %v15_v46  ;;  %v565_v5 = vmul.f32 0.35355338, %v559_v2 }
 0x249   :  { %v446_v6 = vsel %vm190_vm14, %v6466_v3, -inf  ;;  %v567_v7 = vadd.f32 %v565_v5, %v14_v41 }
 0x24a   :  { %447 = vmax.xlane.f32.xlu0 %v446_v6 }
 0x24b   :  { %v569_v12 = vsel %vm190_vm14, %v567_v7, -inf }
 0x24e   :  { %v562_v8 = vpop.f32.mrf.mxu3 }
 0x24f   :  { %v566_v11 = vmul.f32 0.35355338, %v562_v8 }
 0x251   :  { %v568_v15 = vadd.f32 %v566_v11, %v15_v46 }
 0x252   :  { %570 = vmax.xlane.f32.xlu0 %v569_v12 }
 0x253   :  { %v572_v16 = vsel %vm190_vm14, %v568_v15, -inf }
 0x254   :  { %573 = vmax.xlane.f32.xlu1 %v572_v16 }
 0x26d   :  { %5665 = vrot.lane.b32.xlu1 %v6474_v20, %s6297_s12 }
 0x2a0   :  { %v193_v21 = vpop.xlane.xlu1 %192 }
 0x2a1   :  { %v197_v22 = vsub.f32 %v188_v43, %v193_v21 }
 0x2a3   :  { %v199_v0 = vmul.f32 1.442695, %v197_v22 }
 0x2a5   :  { %5964 = vpow2.f32 %v199_v0 }
 0x2a8   :  { %v196_v9 = vpop.xlane.xlu0 %195 }
 0x2a9   :  { %v198_v23 = vsub.f32 %v189_v48, %v196_v9 }
 0x2ab   :  { %v6478_v4 = vpop.eup %5964  ;;  %v201_v26 = vmul.f32 1.442695, %v198_v23 }
 0x2ac   :  { %v203_v27 = vsel %vm190_vm14, %v6478_v4, 0.0 }
 0x2ad   :  { %5966 = vpow2.f32 %v201_v26  ;;  %204 = vadd.xlane.f32.xlu2 %v203_v27 }
 0x2af   :  { %v319_v24 = vpop.xlane.xlu2 %318 }
 0x2b0   :  { %v323_v33 = vsub.f32 %v315_v52, %v319_v24 }
 0x2b2   :  { %v325_v37 = vmul.f32 1.442695, %v323_v33 }
 0x2b3   :  { %v6482_v25 = vpop.eup %5966 }
 0x2b4   :  { %v206_v28 = vsel %vm190_vm14, %v6482_v25, 0.0 }
 0x2b5   :  { %207 = vadd.xlane.f32.xlu1 %v206_v28 }
 0x2b7   :  { %v445_v29 = vpop.xlane.xlu2 %444  ;;  %v322_v30 = vpop.xlane.xlu1 %321 }
 0x2b8   :  { %v449_v31 = vsub.f32 %v441_v58, %v445_v29  ;;  %v324_v32 = vsub.f32 %v316_v59, %v322_v30 }
 0x2ba   :  { %v451_v34 = vmul.f32 1.442695, %v449_v31  ;;  %v327_v35 = vmul.f32 1.442695, %v324_v32 }
 0x2bc   :  { %5968 = vpow2.f32 %v451_v34 }
 0x2bd   :  { %5970 = vpow2.f32 %v327_v35  ;;  %v448_v36 = vpop.xlane.xlu0 %447 }
 0x2be   :  { %5972 = vpow2.f32 %v325_v37  ;;  %v450_v54 = vsub.f32 %v6466_v3, %v448_v36 }
 0x2c0   :  { %v453_v55 = vmul.f32 1.442695, %v450_v54 }
 0x2c2   :  { %v6486_v38 = vpop.eup %5968 }
 0x2c3   :  { %v6488_v39 = vpop.eup %5970  ;;  %v455_v40 = vsel %vm190_vm14, %v6486_v38, 0.0 }
 0x2c4   :  { %456 = vadd.xlane.f32.xlu0 %v455_v40  ;;  %v332_v41 = vsel %vm190_vm14, %v6488_v39, 0.0  ;;  %v6496_v45 = vpop.eup %5972 }
 0x2c5   :  { %5660 = vrot.lane.b32.xlu2 %v6474_v20, %s6298_s13  ;;  %333 = vadd.xlane.f32.xlu1 %v332_v41  ;;  %v571_v42 = vpop.xlane.xlu0 %570  ;;  %v329_v48 = vsel %vm190_vm14, %v6496_v45, 0.0 }
 0x2c6   :  { %v575_v43 = vsub.f32 %v567_v7, %v571_v42 }
 0x2c7   :  { %v574_v44 = vpop.xlane.xlu1 %573 }
 0x2c8   :  { %v577_v46 = vmul.f32 1.442695, %v575_v43  ;;  %v576_v47 = vsub.f32 %v568_v15, %v574_v44 }
 0x2ca   :  { %5974 = vpow2.f32 %v577_v46  ;;  %v579_v49 = vmul.f32 1.442695, %v576_v47 }
 0x2cc   :  { %330 = vadd.xlane.f32.xlu0 %v329_v48  ;;  %5976 = vpow2.f32 %v579_v49 }
 0x2cd   :  { %5978 = vpow2.f32 %v453_v55 }
 0x2d0   :  { %v6500_v50 = vpop.eup %5974 }
 0x2d1   :  { %v581_v51 = vsel %vm190_vm14, %v6500_v50, 0.0 }
 0x2d2   :  { %v6504_v52 = vpop.eup %5976 }
 0x2d3   :  { %v584_v53 = vsel %vm190_vm14, %v6504_v52, 0.0  ;;  %v6511_v56 = vpop.eup %5978 }
 0x2d4   :  { %582 = vadd.xlane.f32.xlu0 %v581_v51  ;;  %v458_v57 = vsel %vm190_vm14, %v6511_v56, 0.0 }
 0x2dc   :  { %585 = vadd.xlane.f32.xlu0 %v584_v53 }
 0x2de   :  { %5675 = vrot.lane.b32.xlu1 %v6474_v20, %s6299_s14 }
 0x2df   :  { %v5666_v58 = vpop.permute.xlu1 %5665 }
 0x2e0   :  { %v5667_v7 = vunpack.i.l.bf16 %v5666_v58  ;;  %v5668_v12 = vunpack.i.h.bf16 %v5666_v58 }
 0x2ee   :  { %459 = vadd.xlane.f32.xlu2 %v458_v57 }
 0x2f0   :  { %5670 = vrot.lane.b32.xlu0 %v6474_v20, %s6300_s15 }
 0x320   :  { %v205_v59 = vpop.xlane.xlu2 %204 }
 0x321   :  { %5980 = vrcp.f32 %v205_v59  ;;  %v220_v6 = vand.u32 2147483648, %v205_v59  ;;  %v218_v11 = vand.u32 2147483647, %v205_v59  ;;  %vm214_vm1 = vweird.f32 %v205_v59 }
 0x323   :  { %v221_v20 = vor.u32 1.1754944e-38, %v220_v6  ;;  %vm219_vm3 = vcmp.eq.f32.partialorder %v218_v11, 8.507059e+37 }
 0x327   :  { %v5981_v60 = vpop.eup %5980 }
 0x328   :  { %v210_v61 = vmul.f32 %v5981_v60, %v205_v59  ;;  %v5661_v62 = vpop.permute.xlu2 %5660  ;;  %v208_v63 = vpop.xlane.xlu1 %207  ;;  %vm215_vm15 = vweird.f32 %v5981_v60 }
 0x329   :  { %5982 = vrcp.f32 %v208_v63  ;;  %v5662_v2 = vunpack.i.l.bf16 %v5661_v62  ;;  %v5663_v5 = vunpack.i.h.bf16 %v5661_v62  ;;  %vm216_vm2 = vmor %vm214_vm1, %vm215_vm15  ;;  %v235_v26 = vand.u32 2147483648, %v208_v63 }
 0x32a   :  { %v211_v3 = vsub.f32 1.0, %v210_v61  ;;  %v233_v24 = vand.u32 2147483647, %v208_v63  ;;  %vm229_vm5 = vweird.f32 %v208_v63 }
 0x32b   :  { %265 = vmatpush.msra.mxu2 %v5662_v2  ;;  %v236_v30 = vor.u32 1.1754944e-38, %v235_v26 }
 0x32c   :  { %v212_v8 = vmul.f32 %v5981_v60, %v211_v3  ;;  %vm234_vm7 = vcmp.eq.f32.partialorder %v233_v24, 8.507059e+37 }
 0x32d   :  { %266 = vmatpush.msra.mxu2 %v5663_v5 }
 0x32e   :  { %v213_v15 = vadd.f32 %v5981_v60, %v212_v8 }
 0x32f   :  { %391 = vmatpush.msrb.mxu2 %v5667_v7  ;;  %v5983_v16 = vpop.eup %5982 }
 0x330   :  { %v225_v21 = vmul.f32 %v5983_v16, %v208_v63  ;;  %v217_v22 = vsel %vm216_vm2, %v5981_v60, %v213_v15  ;;  %vm230_vm4 = vweird.f32 %v5983_v16 }
 0x331   :  { %392 = vmatpush.msrb.mxu2 %v5668_v12  ;;  %v222_v0 = vsel %vm219_vm3, %v221_v20, %v217_v22  ;;  %vm231_vm6 = vmor %vm229_vm5, %vm230_vm4 }
 0x332   :  { %v226_v9 = vsub.f32 1.0, %v225_v21  ;;  %v223_v23 = vmul.f32 %v6478_v4, %v222_v0 }
 0x334   :  { %5456 = vmatmul.msk.f32.vlgmr.msra.gmra.mxu2 %vm190_vm14, %v223_v23  ;;  %v227_v27 = vmul.f32 %v5983_v16, %v226_v9 }
 0x336   :  { %v228_v28 = vadd.f32 %v5983_v16, %v227_v27 }
 0x337   :  { %v457_v29 = vpop.xlane.xlu0 %456 }
 0x338   :  { %5984 = vrcp.f32 %v457_v29  ;;  %v6519_v31 = vpop.xlane.xlu1 %333  ;;  %v232_v32 = vsel %vm231_vm6, %v5983_v16, %v228_v28  ;;  %vm466_vm10 = vweird.f32 %v457_v29  ;;  %v470_v57 = vand.u32 2147483647, %v457_v29 }
 0x339   :  { %v237_v33 = vsel %vm234_vm7, %v236_v30, %v232_v32  ;;  %5986 = vrcp.f32 %v6519_v31  ;;  %vm355_vm15 = vweird.f32 %v6519_v31  ;;  %v361_v2 = vand.u32 2147483648, %v6519_v31 }
 0x33a   :  { %v238_v4 = vmul.f32 %v6482_v25, %v237_v33  ;;  %v472_v25 = vand.u32 2147483648, %v457_v29  ;;  %vm471_vm4 = vcmp.eq.f32.partialorder %v470_v57, 8.507059e+37  ;;  %v359_v20 = vand.u32 2147483647, %v6519_v31 }
 0x33b   :  { %v362_v23 = vor.u32 1.1754944e-38, %v361_v2 }
 0x33c   :  { %5457 = vmatmul.msk.f32.gmra.mxu2 %vm190_vm14, %v238_v4  ;;  %v473_v61 = vor.u32 1.1754944e-38, %v472_v25  ;;  %vm360_vm6 = vcmp.eq.f32.partialorder %v359_v20, 8.507059e+37 }
 0x33e   :  { %v5985_v34 = vpop.eup %5984 }
 0x33f   :  { %v462_v35 = vmul.f32 %v5985_v34, %v457_v29  ;;  %v331_v36 = vpop.xlane.xlu0 %330  ;;  %v5987_v37 = vpop.eup %5986  ;;  %vm467_vm8 = vweird.f32 %v5985_v34 }
 0x340   :  { %5988 = vrcp.f32 %v331_v36  ;;  %v351_v41 = vmul.f32 %v5987_v37, %v6519_v31  ;;  %v346_v49 = vand.u32 2147483648, %v331_v36  ;;  %v344_v54 = vand.u32 2147483647, %v331_v36  ;;  %vm6528_vm11 = vmor %vm466_vm10, %vm467_vm8 }
 0x341   :  { %v463_v40 = vsub.f32 1.0, %v462_v35  ;;  %vm340_vm12 = vweird.f32 %v331_v36  ;;  %vm356_vm3 = vweird.f32 %v5987_v37 }
 0x342   :  { %v352_v44 = vsub.f32 1.0, %v351_v41  ;;  %v347_v62 = vor.u32 1.1754944e-38, %v346_v49  ;;  %vm345_vm2 = vcmp.eq.f32.partialorder %v344_v54, 8.507059e+37  ;;  %vm357_vm5 = vmor %vm355_vm15, %vm356_vm3 }
 0x343   :  { %v464_v43 = vmul.f32 %v5985_v34, %v463_v40 }
 0x344   :  { %v353_v55 = vmul.f32 %v5987_v37, %v352_v44 }
 0x345   :  { %v465_v51 = vadd.f32 %v5985_v34, %v464_v43 }
 0x346   :  { %v5989_v42 = vpop.eup %5988  ;;  %v354_v6 = vadd.f32 %v5987_v37, %v353_v55 }
 0x347   :  { %v336_v46 = vmul.f32 %v5989_v42, %v331_v36  ;;  %v6525_v47 = vpop.xlane.xlu0 %582  ;;  %vm341_vm9 = vweird.f32 %v5989_v42  ;;  %v469_v63 = vsel %vm6528_vm11, %v5985_v34, %v465_v51 }
 0x348   :  { %5990 = vrcp.f32 %v6525_v47  ;;  %vm342_vm1 = vmor %vm340_vm12, %vm341_vm9  ;;  %v474_v16 = vsel %vm471_vm4, %v473_v61, %v469_v63  ;;  %v358_v22 = vsel %vm357_vm5, %v5987_v37, %v354_v6  ;;  %v598_v31 = vand.u32 2147483648, %v6525_v47 }
 0x349   :  { %v337_v48 = vsub.f32 1.0, %v336_v46  ;;  %v475_v9 = vmul.f32 %v6486_v38, %v474_v16  ;;  %vm592_vm8 = vweird.f32 %v6525_v47  ;;  %v596_v38 = vand.u32 2147483647, %v6525_v47 }
 0x34a   :  { %v599_v4 = vor.u32 1.1754944e-38, %v598_v31  ;;  %v5679_v61 = vpack.i.bf16 %v6366_v14, %v6361_v13 }
 0x34b   :  { %v338_v53 = vmul.f32 %v5989_v42, %v337_v48  ;;  %vm597_vm10 = vcmp.eq.f32.partialorder %v596_v38, 8.507059e+37 }
 0x34c   :  { %5680 = vrot.lane.b32.xlu1 %v5679_v61, %s6301_s16 }
 0x34d   :  { %v339_v59 = vadd.f32 %v5989_v42, %v338_v53 }
 0x34e   :  { %v5991_v60 = vpop.eup %5990 }
 0x34f   :  { %v586_v3 = vpop.xlane.xlu0 %585  ;;  %v343_v5 = vsel %vm342_vm1, %v5989_v42, %v339_v59  ;;  %v588_v7 = vmul.f32 %v5991_v60, %v6525_v47  ;;  %vm593_vm7 = vweird.f32 %v5991_v60 }
 0x350   :  { %5992 = vrcp.f32 %v586_v3  ;;  %v5676_v8 = vpop.permute.xlu1 %5675  ;;  %v348_v11 = vsel %vm345_vm2, %v347_v62, %v343_v5  ;;  %vm594_vm9 = vmor %vm592_vm8, %vm593_vm7  ;;  %v613_v41 = vand.u32 2147483648, %v586_v3  ;;  %vm607_vm12 = vweird.f32 %v586_v3 }
 0x351   :  { %v5677_v12 = vunpack.i.l.bf16 %v5676_v8  ;;  %v349_v15 = vmul.f32 %v6496_v45, %v348_v11  ;;  %v5678_v21 = vunpack.i.h.bf16 %v5676_v8  ;;  %v589_v0 = vsub.f32 1.0, %v588_v7 }
 0x352   :  { %v363_v45 = vsel %vm360_vm6, %v362_v23, %v358_v22  ;;  %v611_v43 = vand.u32 2147483647, %v586_v3  ;;  %v614_v48 = vor.u32 1.1754944e-38, %v613_v41  ;;  %vm680_vm6 = vcmask 195584  }
 0x353   :  { %517 = vmatpush.msrb.mxu1 %v5677_v12  ;;  %5462 = vmatmul.msk.f32.vlgmr.msrb.gmra.mxu2 %vm190_vm14, %v349_v15  ;;  %v590_v27 = vmul.f32 %v5991_v60, %v589_v0  ;;  %v364_v28 = vmul.f32 %v6488_v39, %v363_v45 }
 0x354   :  { %vm612_vm1 = vcmp.eq.f32.partialorder %v611_v43, 8.507059e+37 }
 0x355   :  { %518 = vmatpush.msrb.mxu1 %v5678_v21  ;;  %v591_v29 = vadd.f32 %v5991_v60, %v590_v27 }
 0x356   :  { %v5993_v26 = vpop.eup %5992  ;;  %5468 = vmatmul.msk.f32.vlgmr.msrb.gmra.mxu1 %vm190_vm14, %v475_v9 }
 0x357   :  { %v603_v24 = vmul.f32 %v5993_v26, %v586_v3  ;;  %v595_v32 = vsel %vm594_vm9, %v5991_v60, %v591_v29  ;;  %vm608_vm11 = vweird.f32 %v5993_v26 }
 0x358   :  { %v600_v36 = vsel %vm597_vm10, %v599_v4, %v595_v32  ;;  %vm609_vm15 = vmor %vm607_vm12, %vm608_vm11  ;;  %v6252_v4 = vld [vmem:[%s8299_s0 + $0x8] sm:$0xff] }
 0x359   :  { %v604_v30 = vsub.f32 1.0, %v603_v24  ;;  %v601_v42 = vmul.f32 %v6500_v50, %v600_v36 }
 0x35b   :  { %5463 = vmatmul.msk.f32.gmra.mxu2 %vm190_vm14, %v364_v28  ;;  %v605_v33 = vmul.f32 %v5993_v26, %v604_v30 }
 0x35d   :  { %v606_v37 = vadd.f32 %v5993_v26, %v605_v33 }
 0x35f   :  { %v610_v46 = vsel %vm609_vm15, %v5993_v26, %v606_v37 }
 0x360   :  { %v615_v49 = vsel %vm612_vm1, %v614_v48, %v610_v46 }
 0x361   :  { %v460_v34 = vpop.xlane.xlu2 %459  ;;  %v616_v55 = vmul.f32 %v6504_v52, %v615_v49  ;;  %v5684_v52 = vpack.i.bf16 %v6380_v19, %v6373_v17 }
 0x362   :  { %5994 = vrcp.f32 %v460_v34  ;;  %v5671_v35 = vpop.permute.xlu0 %5670  ;;  %v487_v51 = vand.u32 2147483648, %v460_v34  ;;  %v485_v54 = vand.u32 2147483647, %v460_v34  ;;  %vm481_vm3 = vweird.f32 %v460_v34 }
 0x363   :  { %v5672_v39 = vunpack.i.l.bf16 %v5671_v35  ;;  %v5673_v40 = vunpack.i.h.bf16 %v5671_v35  ;;  %5685 = vrot.lane.b32.xlu1 %v5684_v52, %s6301_s16 }
 0x364   :  { %v488_v57 = vor.u32 1.1754944e-38, %v487_v51  ;;  %vm486_vm5 = vcmp.eq.f32.partialorder %v485_v54, 8.507059e+37 }
 0x365   :  { %643 = vmatpush.msra.mxu2 %v5672_v39 }
 0x367   :  { %644 = vmatpush.msra.mxu2 %v5673_v40 }
 0x368   :  { %v5995_v44 = vpop.eup %5994  ;;  %5474 = vmatmul.msk.f32.vlgmr.msra.gmra.mxu2 %vm190_vm14, %v601_v42 }
 0x369   :  { %v477_v47 = vmul.f32 %v5995_v44, %v460_v34  ;;  %vm482_vm2 = vweird.f32 %v5995_v44 }
 0x36a   :  { %vm483_vm4 = vmor %vm481_vm3, %vm482_vm2 }
 0x36b   :  { %v478_v25 = vsub.f32 1.0, %v477_v47 }
 0x36d   :  { %v479_v53 = vmul.f32 %v5995_v44, %v478_v25 }
 0x36f   :  { %v480_v50 = vadd.f32 %v5995_v44, %v479_v53 }
 0x370   :  { %5475 = vmatmul.msk.f32.gmra.mxu2 %vm190_vm14, %v616_v55 }
 0x371   :  { %v484_v58 = vsel %vm483_vm4, %v5995_v44, %v480_v50 }
 0x372   :  { %v489_v59 = vsel %vm486_vm5, %v488_v57, %v484_v58 }
 0x373   :  { %v490_v60 = vmul.f32 %v6511_v56, %v489_v59 }
 0x375   :  { %5469 = vmatmul.msk.f32.gmra.mxu1 %vm190_vm14, %v490_v60 }
 0x3b7   :  { %v268_v62 = vpop.f32.mrf.mxu2 }
 0x3be   :  { %v5681_v19 = vpop.permute.xlu1 %5680 }
 0x3bf   :  { %v271_v63 = vpop.f32.mrf.mxu2  ;;  %v5683_v5 = vunpack.i.h.bf16 %v5681_v19  ;;  %v5682_v6 = vunpack.i.l.bf16 %v5681_v19 }
 0x3c1   :  { %721 = vmatpush.msra.mxu0 %v5682_v6 }
 0x3c3   :  { %722 = vmatpush.msra.mxu0 %v5683_v5 }
 0x3d3   :  { %v520_v2 = vpop.f32.mrf.mxu1 }
 0x3d4   :  { %662 = vrot.lane.b32.xlu0 %v520_v2, %s6302_s17 }
 0x3d5   :  { %v5686_v7 = vpop.permute.xlu1 %5685 }
 0x3d6   :  { %v394_v56 = vpop.f32.mrf.mxu2  ;;  %v5688_v8 = vunpack.i.h.bf16 %v5686_v7  ;;  %v5687_v11 = vunpack.i.l.bf16 %v5686_v7 }
 0x3d8   :  { %723 = vmatpush.msra.mxu0 %v5687_v11 }
 0x3da   :  { %724 = vmatpush.msra.mxu0 %v5688_v8 }
 0x3dc   :  { %654 = vrot.lane.b32.xlu0 %v394_v56, %s6303_s19 }
 0x3de   :  { %v397_v3 = vpop.f32.mrf.mxu2 }
 0x3e4   :  { %656 = vrot.lane.b32.xlu0 %v397_v3, %s6303_s19 }
 0x3eb   :  { %v646_v13 = vpop.f32.mrf.mxu2 }
 0x3ec   :  { %670 = vrot.lane.b32.xlu1 %v646_v13, %s6304_s20  ;;  %700 = vrot.lane.b32.xlu0 %v6401_v10, %s6301_s16 }
 0x3f2   :  { %v523_v14 = vpop.f32.mrf.mxu1 }
 0x3f3   :  { %664 = vrot.lane.b32.xlu2 %v523_v14, %s6302_s17  ;;  %v649_v17 = vpop.f32.mrf.mxu2 }
 0x3f4   :  { %672 = vrot.lane.b32.xlu1 %v649_v17, %s6304_s20 }
 0x446   :  { %v663_v12 = vpop.permute.xlu0 %662 }
 0x44d   :  { %v665_v9 = vpop.permute.xlu2 %664 }
 0x44e   :  { %v655_v15 = vpop.permute.xlu0 %654 }
 0x44f   :  { %v676_v10 = vsel %vm154_vm13, %v268_v62, %v655_v15 }
 0x450   :  { %v678_v16 = vsel %vm190_vm14, %v676_v10, %v663_v12 }
 0x456   :  { %v657_v22 = vpop.permute.xlu0 %656 }
 0x457   :  { %v677_v0 = vsel %vm154_vm13, %v271_v63, %v657_v22 }
 0x458   :  { %v679_v26 = vsel %vm190_vm14, %v677_v0, %v665_v9 }
 0x45e   :  { %v671_v20 = vpop.permute.xlu1 %670  ;;  %v701_v27 = vpop.permute.xlu0 %700 }
 0x45f   :  { %v681_v21 = vsel %vm680_vm6, %v678_v16, %v671_v20 }
 0x460   :  { %5476 = vmatmul.msk.f32.vlgmr.msra.gmra.mxu0 %vm19_vm0, %v681_v21 }
 0x466   :  { %v673_v23 = vpop.permute.xlu1 %672 }
 0x467   :  { %v682_v45 = vsel %vm680_vm6, %v679_v26, %v673_v23 }
 0x468   :  { %5477 = vmatmul.msk.f32.gmra.mxu0 %vm19_vm0, %v682_v45 }
 0x4dd   :  { %v726_v24 = vpop.f32.mrf.mxu0 }
 0x4de   :  { %v727_v28 = vadd.f32 %v726_v24, %v701_v27 }
 0x4e0   :  { %v6578_v29 = vadd.f32 %v727_v28, %v6333_v1 }
 0x4e2   :  { %v734_v30 = vsel %vm19_vm0, %v6578_v29, 0.0  ;;  %v742_v31 = vmul.f32 %v6578_v29, %v6578_v29 }
 0x4e3   :  { %735 = vadd.xlane.f32.xlu1 %v734_v30 }
 0x4e4   :  { %v744_v38 = vsel %vm19_vm0, %v742_v31, 0.0 }
 0x4e5   :  { %745 = vadd.xlane.f32.xlu0 %v744_v38  ;;  %v729_v32 = vpop.f32.mrf.mxu0 }
 0x4e6   :  { %v730_v33 = vadd.f32 %v729_v32, %v701_v27 }
 0x4e8   :  { %v6588_v34 = vadd.f32 %v6252_v4, %v730_v33 }
 0x4ea   :  { %v737_v1 = vsel %vm19_vm0, %v6588_v34, 0.0  ;;  %v743_v35 = vmul.f32 %v6588_v34, %v6588_v34 }
 0x4eb   :  { %738 = vadd.xlane.f32.xlu2 %v737_v1 }
 0x4ec   :  { %v747_v39 = vsel %vm19_vm0, %v743_v35, 0.0 }
 0x4ed   :  { %748 = vadd.xlane.f32.xlu1 %v747_v39 }
 0x556   :  { %v6595_v36 = vpop.xlane.xlu1 %735 }
 0x557   :  { %v740_v37 = vmul.f32 0.03125, %v6595_v36  ;;  %v760_v26 = vsub.f32 %v6578_v29, %v6595_v36 }
 0x558   :  { %v746_v42 = vpop.xlane.xlu0 %745 }
 0x559   :  { %v750_v40 = vmul.f32 %v740_v37, %v740_v37  ;;  %v6610_v37 = vld [vmem:[%s8300_s2 + $0xd8] sm:$0xff] }
 0x55a   :  { %866 = vmatpush.msra.mxu1 %v6610_v37 }
 0x55b   :  { %v752_v41 = vmul.f32 32.0, %v750_v40  ;;  %v6615_v40 = vld [vmem:[%s8300_s2 + $0xd0] sm:$0xff] }
 0x55c   :  { %867 = vmatpush.msra.mxu1 %v6615_v40 }
 0x55d   :  { %v754_v43 = vsub.f32 %v746_v42, %v752_v41  ;;  %v5719_v41 = vpack.i.bf16 %v6615_v40, %v6610_v37  ;;  %v6623_v42 = vld [vmem:[%s8300_s2 + $0xc8] sm:$0xff] }
 0x55e   :  { %v6598_v44 = vpop.xlane.xlu2 %738  ;;  %868 = vmatpush.msra.mxu1 %v6623_v42 }
 0x55f   :  { %v756_v46 = vmax.f32 %v754_v43, 0.0  ;;  %v741_v47 = vmul.f32 0.03125, %v6598_v44  ;;  %v761_v1 = vsub.f32 %v6588_v34, %v6598_v44  ;;  %v6628_v43 = vld [vmem:[%s8300_s2 + $0xc0] sm:$0xff] }
 0x560   :  { %v749_v51 = vpop.xlane.xlu1 %748  ;;  %v5724_v44 = vpack.i.bf16 %v6628_v43, %v6623_v42  ;;  %869 = vmatpush.msra.mxu1 %v6628_v43 }
 0x561   :  { %v758_v48 = vmul.f32 0.032258064, %v756_v46  ;;  %v751_v25 = vmul.f32 %v741_v47, %v741_v47  ;;  %v6253_v47 = vld [vmem:[%s8300_s2 + $0x16a] ss:$0 sm:$0xff] }
 0x563   :  { %5996 = vrsqrt.f32 %v758_v48  ;;  %v753_v49 = vmul.f32 32.0, %v751_v25  ;;  %vm769_vm7 = vcmp.eq.f32.partialorder %v758_v48, inf  ;;  %v772_v56 = vand.u32 2147483648, %v758_v48 }
 0x564   :  { %vm771_vm8 = vcmp.eq.f32.partialorder %v758_v48, 0.0 }
 0x565   :  { %v755_v53 = vsub.f32 %v749_v51, %v753_v49 }
 0x567   :  { %v757_v54 = vmax.f32 %v755_v53, 0.0 }
 0x569   :  { %v5997_v55 = vpop.eup %5996  ;;  %v759_v50 = vmul.f32 0.032258064, %v757_v54 }
 0x56a   :  { %v763_v57 = vmul.f32 %v5997_v55, %v758_v48 }
 0x56b   :  { %5998 = vrsqrt.f32 %v759_v50  ;;  %vm781_vm9 = vcmp.eq.f32.partialorder %v759_v50, inf  ;;  %v784_v7 = vand.u32 2147483648, %v759_v50  ;;  %vm783_vm10 = vcmp.eq.f32.partialorder %v759_v50, 0.0 }
 0x56c   :  { %v764_v58 = vmul.f32 %v5997_v55, %v763_v57  ;;  %v5941_v57 = vld [vmem:[%s8300_s2 + $0x166] ss:$0 sm:$0xff] }
 0x56e   :  { %v765_v59 = vmul.f32 0.5, %v764_v58  ;;  %v838_v58 = vld [vmem:[%s8300_s2 + $0x120] sm:$0xff] }
 0x570   :  { %v766_v60 = vsub.f32 1.5, %v765_v59  ;;  %v837_v59 = vld [vmem:[%s8300_s2 + $0x118] sm:$0xff] }
 0x571   :  { %v5999_v61 = vpop.eup %5998 }
 0x572   :  { %v775_v52 = vmul.f32 %v5999_v61, %v759_v50  ;;  %v767_v62 = vmul.f32 %v5997_v55, %v766_v60  ;;  %v841_v55 = vld [vmem:[%s8300_s2 + $0x138] sm:$0xff] }
 0x573   :  { %898 = vmatpush.msrb.mxu3 %v841_v55 }
 0x574   :  { %v776_v63 = vmul.f32 %v5999_v61, %v775_v52  ;;  %v768_v2 = vmul.f32 %v767_v62, %v758_v48  ;;  %v835_v52 = vld [vmem:[%s8300_s2 + $0x108] sm:$0xff]  ;;  %v834_v62 = vld [vmem:[%s8300_s2 + $0x100] sm:$0xff] }
 0x576   :  { %v777_v3 = vmul.f32 0.5, %v776_v63  ;;  %v770_v13 = vsel %vm769_vm7, %v758_v48, %v768_v2  ;;  %vm883_vm7 = vcmask 523264  }
 0x577   :  { %v773_v14 = vsel %vm771_vm8, %v772_v56, %v770_v13 }
 0x578   :  { %v778_v17 = vsub.f32 1.5, %v777_v3  ;;  %v786_v19 = vadd.f32 1e-06, %v773_v14 }
 0x57a   :  { %6000 = vrcp.f32 %v786_v19  ;;  %v779_v5 = vmul.f32 %v5999_v61, %v778_v17  ;;  %v799_v20 = vand.u32 2147483648, %v786_v19  ;;  %v797_v22 = vand.u32 2147483647, %v786_v19  ;;  %v836_v61 = vld [vmem:[%s8300_s2 + $0x110] sm:$0xff] }
 0x57b   :  { %vm793_vm12 = vweird.f32 %v786_v19 }
 0x57c   :  { %v780_v6 = vmul.f32 %v779_v5, %v759_v50  ;;  %v800_v9 = vor.u32 1.1754944e-38, %v799_v20  ;;  %vm798_vm1 = vcmp.eq.f32.partialorder %v797_v22, 8.507059e+37 }
 0x57e   :  { %v782_v8 = vsel %vm781_vm9, %v759_v50, %v780_v6  ;;  %v840_v50 = vld [vmem:[%s8300_s2 + $0x130] sm:$0xff] }
 0x57f   :  { %v785_v12 = vsel %vm783_vm10, %v784_v7, %v782_v8  ;;  %899 = vmatpush.msrb.mxu3 %v840_v50 }
 0x580   :  { %v6001_v11 = vpop.eup %6000  ;;  %v787_v10 = vadd.f32 1e-06, %v785_v12  ;;  %v6685_v12 = vld [vmem:[%s8300_s2 + $0x16b] ss:$0 sm:$0xff] }
 0x581   :  { %v789_v15 = vmul.f32 %v6001_v11, %v786_v19  ;;  %vm794_vm11 = vweird.f32 %v6001_v11 }
 0x582   :  { %6002 = vrcp.f32 %v787_v10  ;;  %vm795_vm15 = vmor %vm793_vm12, %vm794_vm11  ;;  %v814_v31 = vand.u32 2147483648, %v787_v10  ;;  %v812_v32 = vand.u32 2147483647, %v787_v10  ;;  %vm808_vm3 = vweird.f32 %v787_v10 }
 0x583   :  { %v790_v16 = vsub.f32 1.0, %v789_v15 }
 0x584   :  { %v815_v4 = vor.u32 1.1754944e-38, %v814_v31  ;;  %vm813_vm5 = vcmp.eq.f32.partialorder %v812_v32, 8.507059e+37 }
 0x585   :  { %v791_v21 = vmul.f32 %v6001_v11, %v790_v16 }
 0x587   :  { %v792_v0 = vadd.f32 %v6001_v11, %v791_v21 }
 0x588   :  { %v6003_v23 = vpop.eup %6002 }
 0x589   :  { %v796_v45 = vsel %vm795_vm15, %v6001_v11, %v792_v0  ;;  %v804_v24 = vmul.f32 %v6003_v23, %v787_v10  ;;  %vm809_vm2 = vweird.f32 %v6003_v23 }
 0x58a   :  { %v801_v27 = vsel %vm798_vm1, %v800_v9, %v796_v45  ;;  %vm810_vm4 = vmor %vm808_vm3, %vm809_vm2 }
 0x58b   :  { %v802_v28 = vmul.f32 %v801_v27, %v760_v26  ;;  %v805_v30 = vsub.f32 1.0, %v804_v24 }
 0x58d   :  { %820 = vrot.lane.b32.xlu0 %v802_v28, %s6298_s13  ;;  %v806_v38 = vmul.f32 %v6003_v23, %v805_v30  ;;  %v6700_v30 = vld [vmem:[%s8300_s2 + $0x38] sm:$0xff] }
 0x58e   :  { %1033 = vmatpush.msrb.mxu2 %v6700_v30 }
 0x58f   :  { %v807_v33 = vadd.f32 %v6003_v23, %v806_v38  ;;  %v6706_v38 = vld [vmem:[%s8300_s2 + $0x30] sm:$0xff] }
 0x590   :  { %1034 = vmatpush.msrb.mxu2 %v6706_v38 }
 0x591   :  { %v811_v35 = vsel %vm810_vm4, %v6003_v23, %v807_v33  ;;  %v6712_v33 = vld [vmem:[%s8300_s2 + $0x28] sm:$0xff] }
 0x592   :  { %v816_v39 = vsel %vm813_vm5, %v815_v4, %v811_v35  ;;  %1035 = vmatpush.msrb.mxu2 %v6712_v33 }
 0x593   :  { %v817_v36 = vmul.f32 %v816_v39, %v761_v1  ;;  %v6718_v1 = vld [vmem:[%s8300_s2 + $0x20] sm:$0xff] }
 0x594   :  { %1036 = vmatpush.msrb.mxu2 %v6718_v1 }
 0x595   :  { %822 = vrot.lane.b32.xlu1 %v817_v36, %s6298_s13 }
 0x59d   :  { %880 = vrot.lane.b32.xlu1 %v5941_v57, %s6298_s13 }
 0x5ff   :  { %v821_v46 = vpop.permute.xlu0 %820 }
 0x600   :  { %v826_v48 = vmul.f32 %v6253_v47, %v821_v46  ;;  %v5709_v46 = vpack.i.bf16 %v6706_v38, %v6700_v30 }
 0x602   :  { %v828_v25 = vadd.f32 %v826_v48, %v6390_v18 }
 0x604   :  { %846 = vrot.lane.b32.xlu2 %v828_v25, %s6298_s13 }
 0x607   :  { %v823_v49 = vpop.permute.xlu1 %822 }
 0x608   :  { %v827_v51 = vmul.f32 %v6253_v47, %v823_v49  ;;  %v5714_v47 = vpack.i.bf16 %v6718_v1, %v6712_v33 }
 0x60a   :  { %v829_v53 = vadd.f32 %v827_v51, %v6390_v18  ;;  %v839_v18 = vld [vmem:[%s8300_s2 + $0x128] sm:$0xff] }
 0x60b   :  { %900 = vmatpush.msrb.mxu3 %v839_v18 }
 0x60c   :  { %848 = vrot.lane.b32.xlu0 %v829_v53, %s6298_s13 }
 0x60d   :  { %901 = vmatpush.msrb.mxu3 %v838_v58 }
 0x60f   :  { %902 = vmatpush.msrb.mxu3 %v837_v59  ;;  %v881_v17 = vpop.permute.xlu1 %880 }
 0x611   :  { %903 = vmatpush.msrb.mxu3 %v836_v61 }
 0x613   :  { %904 = vmatpush.msrb.mxu3 %v835_v52 }
 0x615   :  { %905 = vmatpush.msrb.mxu3 %v834_v62 }
 0x65e   :  { %v847_v54 = vpop.permute.xlu2 %846 }
 0x65f   :  { %5478 = vmatmul.msk.f32.vlgmr.msra.gmra.mxu1 %vm19_vm0, %v847_v54 }
 0x67e   :  { %v849_v60 = vpop.permute.xlu0 %848 }
 0x67f   :  { %5479 = vmatmul.msk.f32.gmra.mxu1 %vm19_vm0, %v849_v60 }
 0x6dc   :  { %v871_v63 = vpop.f32.mrf.mxu1 }
 0x6dd   :  { %v872_v2 = vadd.f32 %v5941_v57, %v871_v63 }
 0x6df   :  { %v877_v56 = vmax.f32 %v872_v2, 0.0 }
 0x6e1   :  { %5480 = vmatmul.msk.f32.vlgmr.msrb.gmra.mxu3 %vm883_vm7, %v877_v56 }
 0x6fc   :  { %v874_v3 = vpop.f32.mrf.mxu1 }
 0x6fd   :  { %v875_v13 = vadd.f32 %v5941_v57, %v874_v3 }
 0x6ff   :  { %v878_v14 = vmax.f32 %v875_v13, 0.0 }
 0x701   :  { %5481 = vmatmul.msk.f32.gmra.mxu3 %vm883_vm7, %v878_v14 }
 0x764   :  { %v907_v19 = vpop.f32.mrf.mxu3 }
 0x765   :  { %v908_v5 = vadd.f32 %v907_v19, %v881_v17 }
 0x767   :  { %v6675_v6 = vadd.f32 %v908_v5, %v6578_v29 }
 0x769   :  { %v916_v7 = vsel %vm19_vm0, %v6675_v6, 0.0  ;;  %v924_v8 = vmul.f32 %v6675_v6, %v6675_v6 }
 0x76a   :  { %917 = vadd.xlane.f32.xlu0 %v916_v7 }
 0x76b   :  { %v926_v11 = vsel %vm19_vm0, %v924_v8, 0.0 }
 0x76c   :  { %927 = vadd.xlane.f32.xlu2 %v926_v11 }
 0x784   :  { %1004 = vrot.lane.b32.xlu2 %v6685_v12, %s6290_s18  ;;  %v910_v29 = vpop.f32.mrf.mxu3 }
 0x785   :  { %v911_v15 = vadd.f32 %v910_v29, %v881_v17 }
 0x787   :  { %v6690_v10 = vadd.f32 %v911_v15, %v6588_v34 }
 0x789   :  { %v919_v16 = vsel %vm19_vm0, %v6690_v10, 0.0  ;;  %v925_v20 = vmul.f32 %v6690_v10, %v6690_v10 }
 0x78a   :  { %920 = vadd.xlane.f32.xlu1 %v919_v16 }
 0x78b   :  { %v929_v21 = vsel %vm19_vm0, %v925_v20, 0.0 }
 0x78c   :  { %930 = vadd.xlane.f32.xlu0 %v929_v21 }
 0x7dd   :  { %v918_v22 = vpop.xlane.xlu0 %917 }
 0x7de   :  { %v922_v0 = vmul.f32 0.03125, %v918_v22  ;;  %v942_v3 = vsub.f32 %v6675_v6, %v918_v22 }
 0x7df   :  { %v928_v26 = vpop.xlane.xlu2 %927 }
 0x7e0   :  { %v932_v9 = vmul.f32 %v922_v0, %v922_v0 }
 0x7e2   :  { %v934_v23 = vmul.f32 32.0, %v932_v9 }
 0x7e4   :  { %v936_v45 = vsub.f32 %v928_v26, %v934_v23 }
 0x7e6   :  { %v938_v27 = vmax.f32 %v936_v45, 0.0 }
 0x7e7   :  { %v6726_v7 = vpop.permute.xlu2 %1004 }
 0x7e8   :  { %v940_v24 = vmul.f32 0.032258064, %v938_v27 }
 0x7ea   :  { %6004 = vrsqrt.f32 %v940_v24  ;;  %vm951_vm8 = vcmp.eq.f32.partialorder %v940_v24, inf  ;;  %v954_v36 = vand.u32 2147483648, %v940_v24  ;;  %vm953_vm9 = vcmp.eq.f32.partialorder %v940_v24, 0.0 }
 0x7f0   :  { %v6005_v34 = vpop.eup %6004 }
 0x7f1   :  { %v945_v28 = vmul.f32 %v6005_v34, %v940_v24 }
 0x7f3   :  { %v946_v31 = vmul.f32 %v6005_v34, %v945_v28 }
 0x7f5   :  { %v947_v32 = vmul.f32 0.5, %v946_v31 }
 0x7f7   :  { %v948_v4 = vsub.f32 1.5, %v947_v32 }
 0x7f9   :  { %v949_v35 = vmul.f32 %v6005_v34, %v948_v4 }
 0x7fb   :  { %v950_v39 = vmul.f32 %v949_v35, %v940_v24 }
 0x7fd   :  { %v952_v48 = vsel %vm951_vm8, %v940_v24, %v950_v39  ;;  %v921_v25 = vpop.xlane.xlu1 %920 }
 0x7fe   :  { %v955_v49 = vsel %vm953_vm9, %v954_v36, %v952_v48  ;;  %v923_v51 = vmul.f32 0.03125, %v921_v25  ;;  %v943_v4 = vsub.f32 %v6690_v10, %v921_v25 }
 0x7ff   :  { %v968_v53 = vadd.f32 1e-06, %v955_v49  ;;  %v931_v50 = vpop.xlane.xlu0 %930 }
 0x800   :  { %v933_v54 = vmul.f32 %v923_v51, %v923_v51  ;;  %v6738_v51 = vld [vmem:[%s8300_s2 + $0x161] ss:$0 sm:$0xff] }
 0x801   :  { %6006 = vrcp.f32 %v968_v53  ;;  %v981_v52 = vand.u32 2147483648, %v968_v53  ;;  %v979_v63 = vand.u32 2147483647, %v968_v53  ;;  %vm975_vm11 = vweird.f32 %v968_v53 }
 0x802   :  { %v935_v55 = vmul.f32 32.0, %v933_v54 }
 0x803   :  { %v982_v56 = vor.u32 1.1754944e-38, %v981_v52  ;;  %vm980_vm15 = vcmp.eq.f32.partialorder %v979_v63, 8.507059e+37 }
 0x804   :  { %v937_v57 = vsub.f32 %v931_v50, %v935_v55 }
 0x806   :  { %v939_v58 = vmax.f32 %v937_v57, 0.0 }
 0x807   :  { %v6007_v18 = vpop.eup %6006 }
 0x808   :  { %v971_v59 = vmul.f32 %v6007_v18, %v968_v53  ;;  %v941_v60 = vmul.f32 0.032258064, %v939_v58  ;;  %vm976_vm10 = vweird.f32 %v6007_v18 }
 0x809   :  { %vm977_vm12 = vmor %vm975_vm11, %vm976_vm10 }
 0x80a   :  { %v972_v61 = vsub.f32 1.0, %v971_v59  ;;  %6008 = vrsqrt.f32 %v941_v60  ;;  %vm963_vm1 = vcmp.eq.f32.partialorder %v941_v60, inf  ;;  %v966_v22 = vand.u32 2147483648, %v941_v60 }
 0x80b   :  { %vm965_vm2 = vcmp.eq.f32.partialorder %v941_v60, 0.0 }
 0x80c   :  { %v973_v62 = vmul.f32 %v6007_v18, %v972_v61 }
 0x80e   :  { %v974_v2 = vadd.f32 %v6007_v18, %v973_v62 }
 0x810   :  { %v978_v13 = vsel %vm977_vm12, %v6007_v18, %v974_v2  ;;  %v6009_v14 = vpop.eup %6008 }
 0x811   :  { %v983_v17 = vsel %vm980_vm15, %v982_v56, %v978_v13  ;;  %v957_v19 = vmul.f32 %v6009_v14, %v941_v60 }
 0x812   :  { %v984_v5 = vmul.f32 %v983_v17, %v942_v3 }
 0x813   :  { %v958_v8 = vmul.f32 %v6009_v14, %v957_v19 }
 0x814   :  { %v1001_v11 = vmul.f32 %v6685_v12, %v984_v5  ;;  %v6254_v5 = vld [vmem:[%s8301_s1] sm:$0xff] }
 0x815   :  { %v959_v29 = vmul.f32 0.5, %v958_v8 }
 0x816   :  { %v1007_v15 = vadd.f32 %v6726_v7, %v1001_v11 }
 0x817   :  { %v960_v16 = vsub.f32 1.5, %v959_v29 }
 0x818   :  { %5482 = vmatmul.msk.f32.vlgmr.msrb.gmra.mxu2 %vm19_vm0, %v1007_v15 }
 0x819   :  { %v961_v20 = vmul.f32 %v6009_v14, %v960_v16 }
 0x81b   :  { %v962_v21 = vmul.f32 %v961_v20, %v941_v60 }
 0x81d   :  { %v964_v0 = vsel %vm963_vm1, %v941_v60, %v962_v21 }
 0x81e   :  { %v967_v9 = vsel %vm965_vm2, %v966_v22, %v964_v0  ;;  %v6255_v0 = vld [vmem:[%s8301_s1 + $0x8] sm:$0xff] }
 0x81f   :  { %v969_v23 = vadd.f32 1e-06, %v967_v9 }
 0x821   :  { %6010 = vrcp.f32 %v969_v23  ;;  %v996_v24 = vand.u32 2147483648, %v969_v23  ;;  %v994_v28 = vand.u32 2147483647, %v969_v23  ;;  %vm990_vm4 = vweird.f32 %v969_v23 }
 0x823   :  { %v997_v32 = vor.u32 1.1754944e-38, %v996_v24  ;;  %vm995_vm8 = vcmp.eq.f32.partialorder %v994_v28, 8.507059e+37 }
 0x827   :  { %v6011_v26 = vpop.eup %6010 }
 0x828   :  { %v986_v45 = vmul.f32 %v6011_v26, %v969_v23  ;;  %vm991_vm3 = vweird.f32 %v6011_v26 }
 0x829   :  { %vm992_vm5 = vmor %vm990_vm4, %vm991_vm3 }
 0x82a   :  { %v987_v27 = vsub.f32 1.0, %v986_v45 }
 0x82c   :  { %v988_v34 = vmul.f32 %v6011_v26, %v987_v27 }
 0x82e   :  { %v989_v31 = vadd.f32 %v6011_v26, %v988_v34 }
 0x830   :  { %v993_v35 = vsel %vm992_vm5, %v6011_v26, %v989_v31 }
 0x831   :  { %v998_v39 = vsel %vm995_vm8, %v997_v32, %v993_v35 }
 0x832   :  { %v999_v36 = vmul.f32 %v998_v39, %v943_v4 }
 0x834   :  { %v1002_v48 = vmul.f32 %v6685_v12, %v999_v36 }
 0x836   :  { %v1008_v49 = vadd.f32 %v6726_v7, %v1002_v48 }
 0x838   :  { %5483 = vmatmul.msk.f32.gmra.mxu2 %vm19_vm0, %v1008_v49 }
 0x89b   :  { %v1038_v53 = vpop.f32.mrf.mxu2 }
 0x89c   :  { %v6741_v54 = vadd.f32 %v6738_v51, %v1038_v53 }
 0x89e   :  { %1168 = vrot.lane.b32.xlu2 %v6741_v54, %s6295_s6  ;;  %1172 = vrot.lane.b32.xlu0 %v6741_v54, %s6291_s29 }
 0x8bb   :  { %v1041_v12 = vpop.f32.mrf.mxu2 }
 0x8bc   :  { %v6748_v25 = vadd.f32 %v6738_v51, %v1041_v12 }
 0x8be   :  { %1170 = vrot.lane.b32.xlu2 %v6748_v25, %s6295_s6  ;;  %1048 = vrot.lane.b32.xlu0 %v6748_v25, %s6290_s18 }
 0x8bf   :  { %1174 = vrot.lane.b32.xlu1 %v6748_v25, %s6291_s29 }
 0x8c6   :  { %1420 = vrot.lane.b32.xlu2 %v6741_v54, %s6293_s4  ;;  %1426 = vrot.lane.b32.xlu0 %v6748_v25, %s6292_s30 }
 0x8c7   :  { %1046 = vrot.lane.b32.xlu1 %v6741_v54, %s6290_s18 }
 0x8ce   :  { %1422 = vrot.lane.b32.xlu2 %v6748_v25, %s6293_s4  ;;  %1300 = vrot.lane.b32.xlu0 %v6748_v25, %s6294_s5 }
 0x8cf   :  { %1424 = vrot.lane.b32.xlu1 %v6741_v54, %s6292_s30 }
 0x8d6   :  { %1294 = vrot.lane.b32.xlu0 %v6741_v54, %s6296_s7 }
 0x8d7   :  { %1298 = vrot.lane.b32.xlu1 %v6741_v54, %s6294_s5 }
 0x8df   :  { %1296 = vrot.lane.b32.xlu1 %v6748_v25, %s6296_s7 }
 0x8f8   :  { %v1169_v18 = vpop.permute.xlu2 %1168 }
 0x910   :  { %v1173_v55 = vpop.permute.xlu0 %1172 }
 0x918   :  { %v1171_v60 = vpop.permute.xlu2 %1170 }
 0x920   :  { %v1421_v62 = vpop.permute.xlu2 %1420 }
 0x928   :  { %v1423_v56 = vpop.permute.xlu2 %1422 }
 0x930   :  { %v1049_v50 = vpop.permute.xlu0 %1048 }
 0x931   :  { %v1175_v57 = vpop.permute.xlu1 %1174  ;;  %5484 = vmatpush.xpose.msk.msrb.mxu0 %vm154_vm13, %v1049_v50 }
 0x932   :  { %5490 = vmatpush.xpose.msk.msra.mxu3 %vm154_vm13, %v1175_v57 }
 0x936   :  { %5491 = vmatpush.xpose.msk.msra.mxu3 %vm154_vm13, %v1173_v55 }
 0x938   :  { %v1427_v58 = vpop.permute.xlu0 %1426 }
 0x939   :  { %v1047_v59 = vpop.permute.xlu1 %1046  ;;  %5492 = vmatmul.msk.f32.vlgmr.msra.gmra.mxu3 %vm154_vm13, %v1169_v18 }
 0x93a   :  { %5485 = vmatpush.xpose.msk.msrb.mxu0 %vm154_vm13, %v1047_v59  ;;  %5502 = vmatpush.xpose.msk.msrb.mxu3 %vm154_vm13, %v1427_v58 }
 0x93d   :  { %5486 = vmatmul.msk.f32.vlgmr.msrb.gmra.mxu0 %vm154_vm13, %v6741_v54 }
 0x940   :  { %v1301_v61 = vpop.permute.xlu0 %1300 }
 0x941   :  { %v1425_v52 = vpop.permute.xlu1 %1424  ;;  %5493 = vmatmul.msk.f32.gmra.mxu3 %vm154_vm13, %v1171_v60  ;;  %5496 = vmatpush.xpose.msk.msra.mxu0 %vm154_vm13, %v1301_v61 }
 0x942   :  { %5503 = vmatpush.xpose.msk.msrb.mxu3 %vm154_vm13, %v1425_v52 }
 0x945   :  { %5487 = vmatmul.msk.f32.gmra.mxu0 %vm154_vm13, %v6748_v25 }
 0x948   :  { %v1295_v2 = vpop.permute.xlu0 %1294 }
 0x949   :  { %v1299_v63 = vpop.permute.xlu1 %1298  ;;  %5504 = vmatmul.msk.f32.vlgmr.msrb.gmra.mxu3 %vm154_vm13, %v1421_v62 }
 0x94a   :  { %5497 = vmatpush.xpose.msk.msra.mxu0 %vm154_vm13, %v1299_v63 }
 0x94d   :  { %5498 = vmatmul.msk.f32.vlgmr.msra.gmra.mxu0 %vm154_vm13, %v1295_v2 }
 0x951   :  { %5505 = vmatmul.msk.f32.gmra.mxu3 %vm154_vm13, %v1423_v56  ;;  %v1297_v3 = vpop.permute.xlu1 %1296 }
 0x955   :  { %5499 = vmatmul.msk.f32.gmra.mxu0 %vm154_vm13, %v1297_v3 }
 0x9ba   :  { %v1075_v13 = vpop.f32.mrf.mxu0 }
 0x9bb   :  { %v1081_v14 = vmul.f32 0.35355338, %v1075_v13 }
 0x9bc   :  { %v1201_v17 = vpop.f32.mrf.mxu3 }
 0x9bd   :  { %v1207_v19 = vmul.f32 0.35355338, %v1201_v17  ;;  %v1083_v8 = vadd.f32 %v6254_v5, %v1081_v14 }
 0x9bf   :  { %v1085_v11 = vsel %vm190_vm14, %v1083_v8, -inf  ;;  %v1209_v29 = vadd.f32 %v6254_v5, %v1207_v19 }
 0x9c0   :  { %1086 = vmax.xlane.f32.xlu0 %v1085_v11 }
 0x9c1   :  { %v1211_v15 = vsel %vm190_vm14, %v1209_v29, -inf }
 0x9c2   :  { %1212 = vmax.xlane.f32.xlu2 %v1211_v15  ;;  %v1078_v16 = vpop.f32.mrf.mxu0 }
 0x9c3   :  { %v1082_v20 = vmul.f32 0.35355338, %v1078_v16 }
 0x9c4   :  { %v1204_v21 = vpop.f32.mrf.mxu3 }
 0x9c5   :  { %v1208_v22 = vmul.f32 0.35355338, %v1204_v21  ;;  %v1084_v9 = vadd.f32 %v6255_v0, %v1082_v20 }
 0x9c7   :  { %v1210_v23 = vadd.f32 %v6255_v0, %v1208_v22  ;;  %v1088_v45 = vsel %vm190_vm14, %v1084_v9, -inf }
 0x9c9   :  { %v1214_v26 = vsel %vm190_vm14, %v1210_v23, -inf }
 0x9ca   :  { %1215 = vmax.xlane.f32.xlu1 %v1214_v26  ;;  %1089 = vmax.xlane.f32.xlu2 %v1088_v45  ;;  %v1327_v27 = vpop.f32.mrf.mxu0  ;;  %v5694_v26 = vpack.i.bf16 %v6741_v54, %v6748_v25 }
 0x9cb   :  { %v1333_v24 = vmul.f32 0.35355338, %v1327_v27 }
 0x9cc   :  { %v1453_v34 = vpop.f32.mrf.mxu3 }
 0x9cd   :  { %v1459_v28 = vmul.f32 0.35355338, %v1453_v34  ;;  %v1335_v31 = vadd.f32 %v6254_v5, %v1333_v24 }
 0x9cf   :  { %v1461_v32 = vadd.f32 %v6254_v5, %v1459_v28  ;;  %v1337_v35 = vsel %vm190_vm14, %v1335_v31, -inf }
 0x9d1   :  { %v1463_v4 = vsel %vm190_vm14, %v1461_v32, -inf }
 0x9d2   :  { %1464 = vmax.xlane.f32.xlu0 %v1463_v4  ;;  %1338 = vmax.xlane.f32.xlu1 %v1337_v35  ;;  %v1330_v39 = vpop.f32.mrf.mxu0 }
 0x9d3   :  { %v1334_v36 = vmul.f32 0.35355338, %v1330_v39 }
 0x9d4   :  { %v1456_v48 = vpop.f32.mrf.mxu3 }
 0x9d5   :  { %v1460_v49 = vmul.f32 0.35355338, %v1456_v48  ;;  %v1336_v53 = vadd.f32 %v6255_v0, %v1334_v36 }
 0x9d7   :  { %v1462_v12 = vadd.f32 %v6255_v0, %v1460_v49  ;;  %v1340_v50 = vsel %vm190_vm14, %v1336_v53, -inf }
 0x9d9   :  { %v1466_v55 = vsel %vm190_vm14, %v1462_v12, -inf }
 0x9da   :  { %1467 = vmax.xlane.f32.xlu2 %v1466_v55  ;;  %1341 = vmax.xlane.f32.xlu0 %v1340_v50 }
 0xa33   :  { %v1087_v57 = vpop.xlane.xlu0 %1086 }
 0xa34   :  { %v1091_v18 = vsub.f32 %v1083_v8, %v1087_v57 }
 0xa35   :  { %v1213_v58 = vpop.xlane.xlu2 %1212 }
 0xa36   :  { %v1093_v59 = vmul.f32 1.442695, %v1091_v18  ;;  %v1217_v60 = vsub.f32 %v1209_v29, %v1213_v58 }
 0xa38   :  { %6012 = vpow2.f32 %v1093_v59  ;;  %v1219_v61 = vmul.f32 1.442695, %v1217_v60 }
 0xa3a   :  { %6014 = vpow2.f32 %v1219_v61 }
 0xa3d   :  { %v1216_v52 = vpop.xlane.xlu1 %1215  ;;  %v1090_v62 = vpop.xlane.xlu2 %1089 }
 0xa3e   :  { %v6806_v63 = vpop.eup %6012  ;;  %v1218_v2 = vsub.f32 %v1210_v23, %v1216_v52  ;;  %v1092_v56 = vsub.f32 %v1084_v9, %v1090_v62 }
 0xa3f   :  { %v1097_v3 = vsel %vm190_vm14, %v6806_v63, 0.0 }
 0xa40   :  { %v6810_v13 = vpop.eup %6014  ;;  %v1221_v14 = vmul.f32 1.442695, %v1218_v2  ;;  %v1095_v17 = vmul.f32 1.442695, %v1092_v56  ;;  %1098 = vadd.xlane.f32.xlu2 %v1097_v3 }
 0xa41   :  { %v1223_v19 = vsel %vm190_vm14, %v6810_v13, 0.0 }
 0xa42   :  { %6016 = vpow2.f32 %v1221_v14  ;;  %1224 = vadd.xlane.f32.xlu1 %v1223_v19 }
 0xa43   :  { %6018 = vpow2.f32 %v1095_v17 }
 0xa45   :  { %v1339_v5 = vpop.xlane.xlu1 %1338  ;;  %v1465_v24 = vpop.xlane.xlu0 %1464 }
 0xa46   :  { %v1343_v8 = vsub.f32 %v1335_v31, %v1339_v5  ;;  %v1469_v34 = vsub.f32 %v1461_v32, %v1465_v24 }
 0xa48   :  { %v6814_v11 = vpop.eup %6016  ;;  %v1345_v29 = vmul.f32 1.442695, %v1343_v8  ;;  %v1471_v28 = vmul.f32 1.442695, %v1469_v34 }
 0xa49   :  { %v6816_v15 = vpop.eup %6018  ;;  %v1226_v16 = vsel %vm190_vm14, %v6814_v11, 0.0 }
 0xa4a   :  { %6020 = vpow2.f32 %v1345_v29  ;;  %v1100_v20 = vsel %vm190_vm14, %v6816_v15, 0.0  ;;  %1227 = vadd.xlane.f32.xlu0 %v1226_v16 }
 0xa4b   :  { %1101 = vadd.xlane.f32.xlu1 %v1100_v20 }
 0xa4d   :  { %v1468_v21 = vpop.xlane.xlu2 %1467  ;;  %v1342_v31 = vpop.xlane.xlu0 %1341 }
 0xa4e   :  { %v1470_v22 = vsub.f32 %v1462_v12, %v1468_v21  ;;  %v1344_v4 = vsub.f32 %v1336_v53, %v1342_v31 }
 0xa50   :  { %v6822_v0 = vpop.eup %6020  ;;  %v1473_v9 = vmul.f32 1.442695, %v1470_v22  ;;  %v1347_v35 = vmul.f32 1.442695, %v1344_v4 }
 0xa51   :  { %v1349_v23 = vsel %vm190_vm14, %v6822_v0, 0.0 }
 0xa52   :  { %6022 = vpow2.f32 %v1473_v9 }
 0xa53   :  { %1350 = vadd.xlane.f32.xlu1 %v1349_v23  ;;  %6024 = vpow2.f32 %v1471_v28 }
 0xa54   :  { %6026 = vpow2.f32 %v1347_v35 }
 0xa58   :  { %v6828_v45 = vpop.eup %6022  ;;  %5695 = vrot.lane.b32.xlu2 %v5694_v26, %s6298_s13 }
 0xa59   :  { %v1478_v27 = vsel %vm190_vm14, %v6828_v45, 0.0  ;;  %v6835_v54 = vpop.eup %6024 }
 0xa5a   :  { %v1475_v25 = vsel %vm190_vm14, %v6835_v54, 0.0  ;;  %v6839_v39 = vpop.eup %6026 }
 0xa5b   :  { %1479 = vadd.xlane.f32.xlu1 %v1478_v27  ;;  %v1352_v36 = vsel %vm190_vm14, %v6839_v39, 0.0 }
 0xa5e   :  { %5690 = vrot.lane.b32.xlu0 %v5694_v26, %s6297_s12 }
 0xa74   :  { %5700 = vrot.lane.b32.xlu1 %v5694_v26, %s6300_s15 }
 0xa81   :  { %1476 = vadd.xlane.f32.xlu2 %v1475_v25 }
 0xa88   :  { %1353 = vadd.xlane.f32.xlu0 %v1352_v36 }
 0xa99   :  { %5705 = vrot.lane.b32.xlu2 %v5694_v26, %s6299_s14 }
 0xaa1   :  { %5710 = vrot.lane.b32.xlu2 %v5709_v46, %s6301_s16 }
 0xaa9   :  { %5715 = vrot.lane.b32.xlu2 %v5714_v47, %s6301_s16 }
 0xab3   :  { %v1099_v32 = vpop.xlane.xlu2 %1098 }
 0xab4   :  { %6028 = vrcp.f32 %v1099_v32  ;;  %v1114_v58 = vand.u32 2147483648, %v1099_v32  ;;  %v1112_v1 = vand.u32 2147483647, %v1099_v32  ;;  %vm1108_vm10 = vweird.f32 %v1099_v32 }
 0xab5   :  { %v1225_v48 = vpop.xlane.xlu1 %1224 }
 0xab6   :  { %6030 = vrcp.f32 %v1225_v48  ;;  %v1115_v59 = vor.u32 1.1754944e-38, %v1114_v58  ;;  %vm1113_vm12 = vcmp.eq.f32.partialorder %v1112_v1, 8.507059e+37  ;;  %vm1234_vm2 = vweird.f32 %v1225_v48 }
 0xab7   :  { %v1240_v21 = vand.u32 2147483648, %v1225_v48 }
 0xab9   :  { %v1241_v34 = vor.u32 1.1754944e-38, %v1240_v21 }
 0xaba   :  { %v6029_v49 = vpop.eup %6028 }
 0xabb   :  { %v1104_v53 = vmul.f32 %v6029_v49, %v1099_v32  ;;  %v5696_v12 = vpop.permute.xlu2 %5695  ;;  %vm1109_vm9 = vweird.f32 %v6029_v49 }
 0xabc   :  { %v6031_v55 = vpop.eup %6030  ;;  %v5697_v50 = vunpack.i.l.bf16 %v5696_v12  ;;  %v5698_v38 = vunpack.i.h.bf16 %v5696_v12  ;;  %vm1110_vm11 = vmor %vm1108_vm10, %vm1109_vm9 }
 0xabd   :  { %v1105_v57 = vsub.f32 1.0, %v1104_v53  ;;  %v6852_v18 = vpop.xlane.xlu0 %1227  ;;  %v1230_v30 = vmul.f32 %v6031_v55, %v1225_v48  ;;  %vm1235_vm15 = vweird.f32 %v6031_v55 }
 0xabe   :  { %v1102_v46 = vpop.xlane.xlu1 %1101  ;;  %6032 = vrcp.f32 %v6852_v18  ;;  %1159 = vmatpush.msrb.mxu1 %v5697_v50  ;;  %vm6858_vm3 = vmor %vm1234_vm2, %vm1235_vm15  ;;  %v1253_v12 = vand.u32 2147483647, %v6852_v18 }
 0xabf   :  { %v1106_v33 = vmul.f32 %v6029_v49, %v1105_v57  ;;  %6034 = vrcp.f32 %v1102_v46  ;;  %v1231_v60 = vsub.f32 1.0, %v1230_v30  ;;  %v1127_v5 = vand.u32 2147483647, %v1102_v46 }
 0xac0   :  { %1160 = vmatpush.msrb.mxu1 %v5698_v38  ;;  %v1129_v8 = vand.u32 2147483648, %v1102_v46  ;;  %vm1123_vm4 = vweird.f32 %v1102_v46  ;;  %vm1254_vm15 = vcmp.eq.f32.partialorder %v1253_v12, 8.507059e+37 }
 0xac1   :  { %v1107_v47 = vadd.f32 %v6029_v49, %v1106_v33  ;;  %v1232_v3 = vmul.f32 %v6031_v55, %v1231_v60  ;;  %vm1128_vm8 = vcmp.eq.f32.partialorder %v1127_v5, 8.507059e+37 }
 0xac2   :  { %v1130_v23 = vor.u32 1.1754944e-38, %v1129_v8 }
 0xac3   :  { %v1111_v61 = vsel %vm1110_vm11, %v6029_v49, %v1107_v47  ;;  %v1233_v29 = vadd.f32 %v6031_v55, %v1232_v3  ;;  %vm1249_vm11 = vweird.f32 %v6852_v18 }
 0xac4   :  { %v6033_v52 = vpop.eup %6032  ;;  %v1116_v62 = vsel %vm1113_vm12, %v1115_v59, %v1111_v61 }
 0xac5   :  { %v6035_v2 = vpop.eup %6034  ;;  %v1117_v56 = vmul.f32 %v6806_v63, %v1116_v62  ;;  %v1245_v17 = vmul.f32 %v6033_v52, %v6852_v18  ;;  %v1238_v63 = vand.u32 2147483647, %v1225_v48  ;;  %v1237_v26 = vsel %vm6858_vm3, %v6031_v55, %v1233_v29 }
 0xac6   :  { %v1119_v14 = vmul.f32 %v6035_v2, %v1102_v46  ;;  %vm1124_vm1 = vweird.f32 %v6035_v2  ;;  %vm1250_vm10 = vweird.f32 %v6033_v52  ;;  %v1255_v48 = vand.u32 2147483648, %v6852_v18  ;;  %v1351_v49 = vpop.xlane.xlu1 %1350 }
 0xac7   :  { %5488 = vmatmul.msk.f32.vlgmr.msrb.gmra.mxu1 %vm190_vm14, %v1117_v56  ;;  %v1246_v16 = vsub.f32 1.0, %v1245_v17  ;;  %vm1125_vm5 = vmor %vm1123_vm4, %vm1124_vm1  ;;  %vm1239_vm9 = vcmp.eq.f32.partialorder %v1238_v63, 8.507059e+37  ;;  %6036 = vrcp.f32 %v1351_v49  ;;  %v1366_v60 = vand.u32 2147483648, %v1351_v49 }
 0xac8   :  { %v1120_v19 = vsub.f32 1.0, %v1119_v14  ;;  %v1242_v25 = vsel %vm1239_vm9, %v1241_v34, %v1237_v26  ;;  %vm1251_vm12 = vmor %vm1249_vm11, %vm1250_vm10  ;;  %v1256_v55 = vor.u32 1.1754944e-38, %v1255_v48  ;;  %vm1360_vm2 = vweird.f32 %v1351_v49 }
 0xac9   :  { %v1247_v24 = vmul.f32 %v6033_v52, %v1246_v16  ;;  %v1243_v53 = vmul.f32 %v6810_v13, %v1242_v25  ;;  %v1364_v61 = vand.u32 2147483647, %v1351_v49 }
 0xaca   :  { %v1121_v20 = vmul.f32 %v6035_v2, %v1120_v19 }
 0xacb   :  { %v1248_v36 = vadd.f32 %v6033_v52, %v1247_v24  ;;  %vm1365_vm4 = vcmp.eq.f32.partialorder %v1364_v61, 8.507059e+37 }
 0xacc   :  { %v1122_v9 = vadd.f32 %v6035_v2, %v1121_v20 }
 0xacd   :  { %v6037_v13 = vpop.eup %6036 }
 0xace   :  { %v1126_v27 = vsel %vm1125_vm5, %v6035_v2, %v1122_v9  ;;  %v6872_v58 = vpop.xlane.xlu1 %1479  ;;  %v1356_v46 = vmul.f32 %v6037_v13, %v1351_v49  ;;  %vm1361_vm1 = vweird.f32 %v6037_v13  ;;  %v1367_v2 = vor.u32 1.1754944e-38, %v1366_v60 }
 0xacf   :  { %v1131_v28 = vsel %vm1128_vm8, %v1130_v23, %v1126_v27  ;;  %6038 = vrcp.f32 %v6872_v58  ;;  %vm1362_vm3 = vmor %vm1360_vm2, %vm1361_vm1 }
 0xad0   :  { %v5691_v31 = vpop.permute.xlu0 %5690  ;;  %v1132_v4 = vmul.f32 %v6816_v15, %v1131_v28  ;;  %v1252_v15 = vsel %vm1251_vm12, %v6033_v52, %v1248_v36  ;;  %v1357_v33 = vsub.f32 1.0, %v1356_v46  ;;  %vm1501_vm12 = vweird.f32 %v6872_v58 }
 0xad1   :  { %v5692_v35 = vunpack.i.l.bf16 %v5691_v31  ;;  %v5693_v32 = vunpack.i.h.bf16 %v5691_v31  ;;  %v1257_v50 = vsel %vm1254_vm15, %v1256_v55, %v1252_v15  ;;  %v1505_v36 = vand.u32 2147483647, %v6872_v58 }
 0xad2   :  { %5489 = vmatmul.msk.f32.gmra.mxu1 %vm190_vm14, %v1132_v4  ;;  %v1258_v57 = vmul.f32 %v6814_v11, %v1257_v50  ;;  %v1358_v1 = vmul.f32 %v6037_v13, %v1357_v33  ;;  %v1507_v4 = vand.u32 2147483648, %v6872_v58 }
 0xad3   :  { %1285 = vmatpush.msra.mxu2 %v5692_v35 }
 0xad4   :  { %v1359_v11 = vadd.f32 %v6037_v13, %v1358_v1  ;;  %v1508_v12 = vor.u32 1.1754944e-38, %v1507_v4 }
 0xad5   :  { %1286 = vmatpush.msra.mxu2 %v5693_v32  ;;  %v6876_v59 = vpop.eup %6038 }
 0xad6   :  { %5494 = vmatmul.msk.f32.vlgmr.msra.gmra.mxu2 %vm190_vm14, %v1243_v53  ;;  %v1497_v52 = vmul.f32 %v6876_v59, %v6872_v58  ;;  %v1363_v62 = vsel %vm1362_vm3, %v6037_v13, %v1359_v11  ;;  %vm1502_vm11 = vweird.f32 %v6876_v59 }
 0xad7   :  { %v1368_v5 = vsel %vm1365_vm4, %v1367_v2, %v1363_v62  ;;  %vm1503_vm1 = vmor %vm1501_vm12, %vm1502_vm11  ;;  %vm1506_vm4 = vcmp.eq.f32.partialorder %v1505_v36, 8.507059e+37 }
 0xad8   :  { %v1498_v14 = vsub.f32 1.0, %v1497_v52  ;;  %v1369_v21 = vmul.f32 %v6822_v0, %v1368_v5 }
 0xada   :  { %v1499_v9 = vmul.f32 %v6876_v59, %v1498_v14 }
 0xadc   :  { %v1500_v28 = vadd.f32 %v6876_v59, %v1499_v9 }
 0xade   :  { %5495 = vmatmul.msk.f32.gmra.mxu2 %vm190_vm14, %v1258_v57  ;;  %v1504_v49 = vsel %vm1503_vm1, %v6876_v59, %v1500_v28 }
 0xadf   :  { %v1509_v55 = vsel %vm1506_vm4, %v1508_v12, %v1504_v49 }
 0xae0   :  { %v1510_v58 = vmul.f32 %v6828_v45, %v1509_v55 }
 0xae6   :  { %v5701_v30 = vpop.permute.xlu1 %5700 }
 0xae7   :  { %v5702_v38 = vunpack.i.l.bf16 %v5701_v30  ;;  %v5703_v18 = vunpack.i.h.bf16 %v5701_v30 }
 0xae9   :  { %1537 = vmatpush.msrb.mxu2 %v5702_v38 }
 0xaeb   :  { %1538 = vmatpush.msrb.mxu2 %v5703_v18 }
 0xaf4   :  { %v1477_v47 = vpop.xlane.xlu2 %1476 }
 0xaf5   :  { %6040 = vrcp.f32 %v1477_v47  ;;  %v1492_v16 = vand.u32 2147483648, %v1477_v47  ;;  %v1490_v63 = vand.u32 2147483647, %v1477_v47  ;;  %vm1486_vm8 = vweird.f32 %v1477_v47 }
 0xaf7   :  { %v1493_v27 = vor.u32 1.1754944e-38, %v1492_v16  ;;  %vm1491_vm10 = vcmp.eq.f32.partialorder %v1490_v63, 8.507059e+37 }
 0xafb   :  { %v6041_v56 = vpop.eup %6040  ;;  %v1354_v3 = vpop.xlane.xlu0 %1353 }
 0xafc   :  { %v1482_v17 = vmul.f32 %v6041_v56, %v1477_v47  ;;  %6042 = vrcp.f32 %v1354_v3  ;;  %v5706_v19 = vpop.permute.xlu2 %5705  ;;  %vm1487_vm5 = vweird.f32 %v6041_v56  ;;  %v1381_v25 = vand.u32 2147483648, %v1354_v3 }
 0xafd   :  { %v5707_v8 = vunpack.i.l.bf16 %v5706_v19  ;;  %v5708_v20 = vunpack.i.h.bf16 %v5706_v19  ;;  %vm1488_vm9 = vmor %vm1486_vm8, %vm1487_vm5  ;;  %v1379_v48 = vand.u32 2147483647, %v1354_v3  ;;  %vm1375_vm2 = vweird.f32 %v1354_v3 }
 0xafe   :  { %v1483_v29 = vsub.f32 1.0, %v1482_v17  ;;  %v1382_v15 = vor.u32 1.1754944e-38, %v1381_v25 }
 0xaff   :  { %1411 = vmatpush.msra.mxu1 %v5707_v8  ;;  %vm1380_vm5 = vcmp.eq.f32.partialorder %v1379_v48, 8.507059e+37 }
 0xb00   :  { %v1484_v22 = vmul.f32 %v6041_v56, %v1483_v29 }
 0xb01   :  { %1412 = vmatpush.msra.mxu1 %v5708_v20 }
 0xb02   :  { %v6043_v23 = vpop.eup %6042  ;;  %v1485_v26 = vadd.f32 %v6041_v56, %v1484_v22  ;;  %5500 = vmatmul.msk.f32.vlgmr.msra.gmra.mxu1 %vm190_vm14, %v1369_v21 }
 0xb03   :  { %v1371_v24 = vmul.f32 %v6043_v23, %v1354_v3  ;;  %vm1376_vm15 = vweird.f32 %v6043_v23 }
 0xb04   :  { %v1489_v34 = vsel %vm1488_vm9, %v6041_v56, %v1485_v26  ;;  %vm1377_vm3 = vmor %vm1375_vm2, %vm1376_vm15  ;;  %v5711_v1 = vpop.permute.xlu2 %5710  ;;  %v6922_v26 = vld [vmem:[%s8299_s0 + $0x10] sm:$0xff] }
 0xb05   :  { %v1372_v0 = vsub.f32 1.0, %v1371_v24  ;;  %v1494_v31 = vsel %vm1491_vm10, %v1493_v27, %v1489_v34  ;;  %v5713_v47 = vunpack.i.h.bf16 %v5711_v1  ;;  %v5712_v59 = vunpack.i.l.bf16 %v5711_v1 }
 0xb06   :  { %v1495_v35 = vmul.f32 %v6835_v54, %v1494_v31  ;;  %v1948_v27 = vmul.f32 %v6922_v26, %v6922_v26 }
 0xb07   :  { %v1373_v32 = vmul.f32 %v6043_v23, %v1372_v0  ;;  %1614 = vmatpush.msrb.mxu0 %v5712_v59 }
 0xb08   :  { %5506 = vmatmul.msk.f32.vlgmr.msrb.gmra.mxu2 %vm190_vm14, %v1495_v35  ;;  %v6938_v35 = vld [vmem:[%s8299_s0 + $0x18] sm:$0xff] }
 0xb09   :  { %v1374_v53 = vadd.f32 %v6043_v23, %v1373_v32  ;;  %1615 = vmatpush.msrb.mxu0 %v5713_v47  ;;  %v1943_v25 = vsel %vm19_vm0, %v6938_v35, 0.0  ;;  %v1949_v36 = vmul.f32 %v6938_v35, %v6938_v35  ;;  %v6949_v32 = vld [vmem:[%s8300_s2 + $0x16c] ss:$0 sm:$0xff] }
 0xb0b   :  { %v1378_v54 = vsel %vm1377_vm3, %v6043_v23, %v1374_v53  ;;  %v1953_v48 = vsel %vm19_vm0, %v1949_v36, 0.0 }
 0xb0c   :  { %v1383_v50 = vsel %vm1380_vm5, %v1382_v15, %v1378_v54  ;;  %v5716_v11 = vpop.permute.xlu2 %5715 }
 0xb0d   :  { %v1384_v57 = vmul.f32 %v6839_v39, %v1383_v50  ;;  %v5718_v60 = vunpack.i.h.bf16 %v5716_v11  ;;  %v5717_v61 = vunpack.i.l.bf16 %v5716_v11 }
 0xb0f   :  { %5501 = vmatmul.msk.f32.gmra.mxu1 %vm190_vm14, %v1384_v57  ;;  %1616 = vmatpush.msrb.mxu0 %v5717_v61 }
 0xb10   :  { %5507 = vmatmul.msk.f32.gmra.mxu2 %vm190_vm14, %v1510_v58 }
 0xb11   :  { %1617 = vmatpush.msrb.mxu0 %v5718_v60 }
 0xb44   :  { %v1162_v30 = vpop.f32.mrf.mxu1 }
 0xb4f   :  { %v1165_v38 = vpop.f32.mrf.mxu1 }
 0xb59   :  { %v1288_v13 = vpop.f32.mrf.mxu2 }
 0xb5a   :  { %1548 = vrot.lane.b32.xlu1 %v1288_v13, %s6303_s19 }
 0xb61   :  { %v1291_v18 = vpop.f32.mrf.mxu2 }
 0xb7f   :  { %v1414_v46 = vpop.f32.mrf.mxu1 }
 0xb80   :  { %1556 = vrot.lane.b32.xlu1 %v1414_v46, %s6302_s17 }
 0xb88   :  { %1550 = vrot.lane.b32.xlu1 %v1291_v18, %s6303_s19 }
 0xb8b   :  { %v1540_v33 = vpop.f32.mrf.mxu2 }
 0xb8c   :  { %1564 = vrot.lane.b32.xlu2 %v1540_v33, %s6304_s20  ;;  %v1417_v45 = vpop.f32.mrf.mxu1 }
 0xb90   :  { %1593 = vrot.lane.b32.xlu1 %v6738_v51, %s6301_s16 }
 0xb93   :  { %v1543_v39 = vpop.f32.mrf.mxu2 }
 0xb94   :  { %1558 = vrot.lane.b32.xlu2 %v1417_v45, %s6302_s17  ;;  %1566 = vrot.lane.b32.xlu0 %v1543_v39, %s6304_s20 }
 0xbcc   :  { %v1549_v52 = vpop.permute.xlu1 %1548 }
 0xbcd   :  { %v1570_v62 = vsel %vm154_vm13, %v1162_v30, %v1549_v52 }
 0xbe6   :  { %v1565_v2 = vpop.permute.xlu2 %1564 }
 0xbee   :  { %v1559_v19 = vpop.permute.xlu2 %1558 }
 0xbf2   :  { %v1557_v51 = vpop.permute.xlu1 %1556 }
 0xbf3   :  { %v1572_v56 = vsel %vm190_vm14, %v1570_v62, %v1557_v51 }
 0xbf4   :  { %v1574_v3 = vsel %vm680_vm6, %v1572_v56, %v1565_v2 }
 0xbf5   :  { %5508 = vmatmul.msk.f32.vlgmr.msrb.gmra.mxu0 %vm19_vm0, %v1574_v3 }
 0xbfa   :  { %v1551_v14 = vpop.permute.xlu1 %1550 }
 0xbfb   :  { %v1571_v17 = vsel %vm154_vm13, %v1165_v38, %v1551_v14 }
 0xbfc   :  { %v1573_v8 = vsel %vm190_vm14, %v1571_v17, %v1559_v19 }
 0xc02   :  { %v1594_v16 = vpop.permute.xlu1 %1593 }
 0xc06   :  { %v1567_v5 = vpop.permute.xlu0 %1566 }
 0xc07   :  { %v1575_v29 = vsel %vm680_vm6, %v1573_v8, %v1567_v5 }
 0xc08   :  { %5509 = vmatmul.msk.f32.gmra.mxu0 %vm19_vm0, %v1575_v29 }
 0xc72   :  { %v1619_v20 = vpop.f32.mrf.mxu0 }
 0xc73   :  { %v1620_v21 = vadd.f32 %v1619_v20, %v1594_v16 }
 0xc75   :  { %v6912_v22 = vadd.f32 %v1620_v21, %v6675_v6  ;;  %v1950_v6 = vsel %vm19_vm0, %v1948_v27, 0.0 }
 0xc77   :  { %v1627_v63 = vsel %vm19_vm0, %v6912_v22, 0.0  ;;  %v1635_v9 = vmul.f32 %v6912_v22, %v6912_v22 }
 0xc78   :  { %1628 = vadd.xlane.f32.xlu2 %v1627_v63 }
 0xc79   :  { %v1637_v23 = vsel %vm19_vm0, %v1635_v9, 0.0 }
 0xc7a   :  { %1638 = vadd.xlane.f32.xlu1 %v1637_v23 }
 0xc82   :  { %1951 = vadd.xlane.f32.xlu1 %v1950_v6  ;;  %v6980_v6 = vld [vmem:[%s8300_s2 + $0x58] sm:$0xff] }
 0xc83   :  { %2057 = vmatpush.msra.mxu2 %v6980_v6 }
 0xc85   :  { %v1622_v24 = vpop.f32.mrf.mxu0 }
 0xc86   :  { %v1623_v34 = vadd.f32 %v1622_v24, %v1594_v16  ;;  %v6985_v24 = vld [vmem:[%s8300_s2 + $0x50] sm:$0xff] }
 0xc87   :  { %2058 = vmatpush.msra.mxu2 %v6985_v24 }
 0xc88   :  { %v6928_v28 = vadd.f32 %v1623_v34, %v6690_v10  ;;  %v1940_v10 = vsel %vm19_vm0, %v6922_v26, 0.0 }
 0xc8a   :  { %v1630_v0 = vsel %vm19_vm0, %v6928_v28, 0.0  ;;  %v1636_v31 = vmul.f32 %v6928_v28, %v6928_v28 }
 0xc8b   :  { %1631 = vadd.xlane.f32.xlu0 %v1630_v0 }
 0xc8c   :  { %v1640_v4 = vsel %vm19_vm0, %v1636_v31, 0.0 }
 0xc8d   :  { %1641 = vadd.xlane.f32.xlu2 %v1640_v4  ;;  %v5769_v4 = vpack.i.bf16 %v6985_v24, %v6980_v6 }
 0xc93   :  { %1944 = vadd.xlane.f32.xlu0 %v1943_v25 }
 0xc95   :  { %1941 = vadd.xlane.f32.xlu2 %v1940_v10  ;;  %v6995_v10 = vld [vmem:[%s8300_s2 + $0x48] sm:$0xff] }
 0xc96   :  { %2059 = vmatpush.msra.mxu2 %v6995_v10 }
 0xc9b   :  { %2028 = vrot.lane.b32.xlu1 %v6949_v32, %s6290_s18 }
 0xc9d   :  { %1954 = vadd.xlane.f32.xlu2 %v1953_v48 }
 0xca3   :  { %5725 = vrot.lane.b32.xlu1 %v5724_v44, %s6298_s13 }
 0xceb   :  { %v6958_v49 = vpop.xlane.xlu2 %1628 }
 0xcec   :  { %v1633_v53 = vmul.f32 0.03125, %v6958_v49 }
 0xced   :  { %v1639_v54 = vpop.xlane.xlu1 %1638 }
 0xcee   :  { %v1643_v12 = vmul.f32 %v1633_v53, %v1633_v53 }
 0xcf0   :  { %v1645_v15 = vmul.f32 32.0, %v1643_v12 }
 0xcf2   :  { %v1647_v55 = vsub.f32 %v1639_v54, %v1645_v15 }
 0xcf4   :  { %v1649_v50 = vmax.f32 %v1647_v55, 0.0 }
 0xcf5   :  { %v1952_v56 = vpop.xlane.xlu1 %1951 }
 0xcf6   :  { %v1651_v57 = vmul.f32 0.032258064, %v1649_v50  ;;  %v1653_v50 = vsub.f32 %v6912_v22, %v6958_v49 }
 0xcf8   :  { %6044 = vrsqrt.f32 %v1651_v57  ;;  %vm1662_vm8 = vcmp.eq.f32.partialorder %v1651_v57, inf  ;;  %v1665_v2 = vand.u32 2147483648, %v1651_v57  ;;  %vm1664_vm9 = vcmp.eq.f32.partialorder %v1651_v57, 0.0 }
 0xcfe   :  { %v6045_v58 = vpop.eup %6044  ;;  %v6961_v13 = vpop.xlane.xlu0 %1631 }
 0xcff   :  { %v1656_v30 = vmul.f32 %v6045_v58, %v1651_v57  ;;  %v1634_v38 = vmul.f32 0.03125, %v6961_v13 }
 0xd00   :  { %v1642_v46 = vpop.xlane.xlu2 %1641 }
 0xd01   :  { %v1657_v42 = vmul.f32 %v6045_v58, %v1656_v30  ;;  %v1644_v43 = vmul.f32 %v1634_v38, %v1634_v38 }
 0xd03   :  { %v1658_v44 = vmul.f32 0.5, %v1657_v42  ;;  %v1646_v18 = vmul.f32 32.0, %v1644_v43 }
 0xd05   :  { %v1659_v33 = vsub.f32 1.5, %v1658_v44  ;;  %v1648_v45 = vsub.f32 %v1642_v46, %v1646_v18 }
 0xd06   :  { %v6964_v39 = vpop.xlane.xlu0 %1944 }
 0xd07   :  { %v1650_v1 = vmax.f32 %v1648_v45, 0.0  ;;  %v1947_v47 = vmul.f32 0.03125, %v6964_v39  ;;  %v1660_v59 = vmul.f32 %v6045_v58, %v1659_v33 }
 0xd08   :  { %v6967_v11 = vpop.xlane.xlu2 %1941 }
 0xd09   :  { %v6969_v60 = vmul.f32 0.032258064, %v1650_v1  ;;  %v1946_v61 = vmul.f32 0.03125, %v6967_v11  ;;  %v1957_v52 = vmul.f32 %v1947_v47, %v1947_v47  ;;  %v1661_v62 = vmul.f32 %v1660_v59, %v1651_v57 }
 0xd0b   :  { %6046 = vrsqrt.f32 %v6969_v60  ;;  %v1956_v51 = vmul.f32 %v1946_v61, %v1946_v61  ;;  %v1663_v3 = vsel %vm1662_vm8, %v1651_v57, %v1661_v62  ;;  %v1959_v17 = vmul.f32 32.0, %v1957_v52  ;;  %v7012_v52 = vld [vmem:[%s8300_s2 + $0x40] sm:$0xff] }
 0xd0c   :  { %v1666_v19 = vsel %vm1664_vm9, %v1665_v2, %v1663_v3  ;;  %vm1674_vm12 = vcmp.eq.f32.partialorder %v6969_v60, inf  ;;  %v1677_v38 = vand.u32 2147483648, %v6969_v60  ;;  %vm1676_vm1 = vcmp.eq.f32.partialorder %v6969_v60, 0.0  ;;  %2060 = vmatpush.msra.mxu2 %v7012_v52 }
 0xd0d   :  { %v1958_v14 = vmul.f32 32.0, %v1956_v51  ;;  %v1679_v5 = vadd.f32 1e-06, %v1666_v19  ;;  %v5774_v51 = vpack.i.bf16 %v7012_v52, %v6995_v10 }
 0xd0f   :  { %v1960_v8 = vsub.f32 %v1952_v56, %v1958_v14  ;;  %6048 = vrcp.f32 %v1679_v5  ;;  %v1692_v53 = vand.u32 2147483648, %v1679_v5  ;;  %v1690_v55 = vand.u32 2147483647, %v1679_v5 }
 0xd10   :  { %v1955_v29 = vpop.xlane.xlu2 %1954  ;;  %vm1686_vm11 = vweird.f32 %v1679_v5 }
 0xd11   :  { %v6047_v16 = vpop.eup %6046  ;;  %v1962_v20 = vmax.f32 %v1960_v8, 0.0  ;;  %v1961_v21 = vsub.f32 %v1955_v29, %v1959_v17  ;;  %v1693_v43 = vor.u32 1.1754944e-38, %v1692_v53  ;;  %vm1691_vm2 = vcmp.eq.f32.partialorder %v1690_v55, 8.507059e+37 }
 0xd12   :  { %v1668_v63 = vmul.f32 %v6047_v16, %v6969_v60 }
 0xd13   :  { %v6974_v9 = vmul.f32 0.032258064, %v1962_v20  ;;  %v1963_v23 = vmax.f32 %v1961_v21, 0.0 }
 0xd14   :  { %v1669_v27 = vmul.f32 %v6047_v16, %v1668_v63 }
 0xd15   :  { %6050 = vrsqrt.f32 %v6974_v9  ;;  %v6049_v34 = vpop.eup %6048  ;;  %v6987_v31 = vmul.f32 0.032258064, %v1963_v23  ;;  %vm1975_vm3 = vcmp.eq.f32.partialorder %v6974_v9, inf  ;;  %v1978_v14 = vand.u32 2147483648, %v6974_v9 }
 0xd16   :  { %v1670_v0 = vmul.f32 0.5, %v1669_v27  ;;  %v1682_v25 = vmul.f32 %v6049_v34, %v1679_v5  ;;  %vm1687_vm10 = vweird.f32 %v6049_v34  ;;  %vm1977_vm4 = vcmp.eq.f32.partialorder %v6974_v9, 0.0 }
 0xd17   :  { %6052 = vrsqrt.f32 %v6987_v31  ;;  %vm1688_vm15 = vmor %vm1686_vm11, %vm1687_vm10  ;;  %vm1987_vm5 = vcmp.eq.f32.partialorder %v6987_v31, inf  ;;  %v1990_v29 = vand.u32 2147483648, %v6987_v31  ;;  %vm1989_vm8 = vcmp.eq.f32.partialorder %v6987_v31, 0.0 }
 0xd18   :  { %v1671_v36 = vsub.f32 1.5, %v1670_v0  ;;  %v1683_v48 = vsub.f32 1.0, %v1682_v25 }
 0xd1a   :  { %v1672_v12 = vmul.f32 %v6047_v16, %v1671_v36  ;;  %v1684_v54 = vmul.f32 %v6049_v34, %v1683_v48 }
 0xd1b   :  { %v6051_v15 = vpop.eup %6050 }
 0xd1c   :  { %v1969_v57 = vmul.f32 %v6051_v15, %v6974_v9  ;;  %v1673_v58 = vmul.f32 %v1672_v12, %v6969_v60  ;;  %v1685_v30 = vadd.f32 %v6049_v34, %v1684_v54 }
 0xd1d   :  { %v6053_v46 = vpop.eup %6052 }
 0xd1e   :  { %v1970_v42 = vmul.f32 %v6051_v15, %v1969_v57  ;;  %v1675_v44 = vsel %vm1674_vm12, %v6969_v60, %v1673_v58  ;;  %v1981_v49 = vmul.f32 %v6053_v46, %v6987_v31  ;;  %v1689_v18 = vsel %vm1688_vm15, %v6049_v34, %v1685_v30 }
 0xd1f   :  { %v1678_v33 = vsel %vm1676_vm1, %v1677_v38, %v1675_v44  ;;  %v1694_v1 = vsel %vm1691_vm2, %v1693_v43, %v1689_v18 }
 0xd20   :  { %v1971_v45 = vmul.f32 0.5, %v1970_v42  ;;  %v1680_v47 = vadd.f32 1e-06, %v1678_v33  ;;  %v1982_v59 = vmul.f32 %v6053_v46, %v1981_v49  ;;  %v1695_v61 = vmul.f32 %v1694_v1, %v1653_v50  ;;  %v7037_v1 = vpop.permute.xlu1 %2028 }
 0xd22   :  { %v1972_v62 = vsub.f32 1.5, %v1971_v45  ;;  %6054 = vrcp.f32 %v1680_v47  ;;  %v1983_v60 = vmul.f32 0.5, %v1982_v59  ;;  %1713 = vrot.lane.b32.xlu0 %v1695_v61, %s6298_s13  ;;  %v1705_v34 = vand.u32 2147483647, %v1680_v47 }
 0xd23   :  { %vm1701_vm10 = vweird.f32 %v1680_v47  ;;  %v1967_v59 = vsub.f32 %v6938_v35, %v6964_v39  ;;  %v6256_v35 = vld [vmem:[%s8300_s2 + $0x138] sm:$0xff]  ;;  %v6257_v39 = vld [vmem:[%s8300_s2 + $0x130] sm:$0xff] }
 0xd24   :  { %v1973_v2 = vmul.f32 %v6051_v15, %v1972_v62  ;;  %v1984_v56 = vsub.f32 1.5, %v1983_v60  ;;  %vm1706_vm12 = vcmp.eq.f32.partialorder %v1705_v34, 8.507059e+37 }
 0xd26   :  { %v1974_v3 = vmul.f32 %v1973_v2, %v6974_v9  ;;  %v1985_v17 = vmul.f32 %v6053_v46, %v1984_v56 }
 0xd28   :  { %v6055_v19 = vpop.eup %6054  ;;  %v1976_v5 = vsel %vm1975_vm3, %v6974_v9, %v1974_v3  ;;  %v1986_v8 = vmul.f32 %v1985_v17, %v6987_v31  ;;  %v1707_v9 = vand.u32 2147483648, %v1680_v47  ;;  %v5729_v3 = vpack.i.bf16 %v6257_v39, %v6256_v35  ;;  %v7146_v39 = vld [vmem:[%s8300_s2 + $0x167] ss:$0 sm:$0xff] }
 0xd29   :  { %v1697_v16 = vmul.f32 %v6055_v19, %v1680_v47  ;;  %v1979_v20 = vsel %vm1977_vm4, %v1978_v14, %v1976_v5  ;;  %vm1702_vm9 = vweird.f32 %v6055_v19  ;;  %v6258_v14 = vld [vmem:[%s8300_s2 + $0x108] sm:$0xff] }
 0xd2a   :  { %v1992_v21 = vadd.f32 1e-06, %v1979_v20  ;;  %v1988_v23 = vsel %vm1987_vm5, %v6987_v31, %v1986_v8  ;;  %5720 = vrot.lane.b32.xlu0 %v5719_v41, %s6298_s13  ;;  %vm1703_vm11 = vmor %vm1701_vm10, %vm1702_vm9  ;;  %v1708_v48 = vor.u32 1.1754944e-38, %v1707_v9  ;;  %v1654_v31 = vsub.f32 %v6928_v28, %v6961_v13  ;;  %5730 = vrot.lane.b32.xlu1 %v5729_v3, %s6290_s18  ;;  %v6260_v5 = vld [vmem:[%s8300_s2 + $0x16b] ss:$0 sm:$0xff] }
 0xd2b   :  { %v1698_v63 = vsub.f32 1.0, %v1697_v16  ;;  %v1991_v0 = vsel %vm1989_vm8, %v1990_v29, %v1988_v23  ;;  %v1966_v13 = vsub.f32 %v6922_v26, %v6967_v11  ;;  %v6262_v23 = vld [vmem:[%s8300_s2 + $0x110] sm:$0xff] }
 0xd2c   :  { %6056 = vrcp.f32 %v1992_v21  ;;  %v1993_v25 = vadd.f32 1e-06, %v1991_v0  ;;  %v2003_v55 = vand.u32 2147483647, %v1992_v21  ;;  %v2005_v50 = vand.u32 2147483648, %v1992_v21 }
 0xd2d   :  { %v1699_v27 = vmul.f32 %v6055_v19, %v1698_v63  ;;  %vm1999_vm1 = vweird.f32 %v1992_v21  ;;  %v6261_v63 = vld [vmem:[%s8300_s2 + $0x118] sm:$0xff]  ;;  %v7085_v0 = vld [vmem:[%s8300_s2 + $0x162] ss:$0 sm:$0xff] }
 0xd2e   :  { %6058 = vrcp.f32 %v1993_v25  ;;  %vm2004_vm3 = vcmp.eq.f32.partialorder %v2003_v55, 8.507059e+37  ;;  %v2006_v46 = vor.u32 1.1754944e-38, %v2005_v50  ;;  %v2020_v42 = vand.u32 2147483648, %v1993_v25 }
 0xd2f   :  { %v1700_v36 = vadd.f32 %v6055_v19, %v1699_v27  ;;  %v2018_v49 = vand.u32 2147483647, %v1993_v25  ;;  %vm2014_vm5 = vweird.f32 %v1993_v25  ;;  %v5739_v9 = vpack.i.bf16 %v6262_v23, %v6261_v63  ;;  %v6263_v27 = vld [vmem:[%s8300_s2 + $0x128] sm:$0xff] }
 0xd30   :  { %v2021_v47 = vor.u32 1.1754944e-38, %v2020_v42 }
 0xd31   :  { %v1704_v53 = vsel %vm1703_vm11, %v6055_v19, %v1700_v36  ;;  %vm2019_vm9 = vcmp.eq.f32.partialorder %v2018_v49, 8.507059e+37 }
 0xd32   :  { %v6057_v12 = vpop.eup %6056  ;;  %v1709_v37 = vsel %vm1706_vm12, %v1708_v48, %v1704_v53 }
 0xd33   :  { %v1710_v40 = vmul.f32 %v1709_v37, %v1654_v31  ;;  %v1995_v41 = vmul.f32 %v6057_v12, %v1992_v21  ;;  %vm2000_vm15 = vweird.f32 %v6057_v12 }
 0xd34   :  { %v6059_v54 = vpop.eup %6058  ;;  %vm2001_vm2 = vmor %vm1999_vm1, %vm2000_vm15 }
 0xd35   :  { %1715 = vrot.lane.b32.xlu2 %v1710_v40, %s6298_s13  ;;  %v1996_v15 = vsub.f32 1.0, %v1995_v41  ;;  %v2010_v58 = vmul.f32 %v6059_v54, %v1993_v25  ;;  %vm2015_vm4 = vweird.f32 %v6059_v54 }
 0xd36   :  { %vm2016_vm8 = vmor %vm2014_vm5, %vm2015_vm4 }
 0xd37   :  { %v1997_v57 = vmul.f32 %v6057_v12, %v1996_v15  ;;  %v2011_v38 = vsub.f32 1.0, %v2010_v58 }
 0xd39   :  { %v1998_v30 = vadd.f32 %v6057_v12, %v1997_v57  ;;  %v2012_v44 = vmul.f32 %v6059_v54, %v2011_v38 }
 0xd3b   :  { %v2002_v43 = vsel %vm2001_vm2, %v6057_v12, %v1998_v30  ;;  %v2013_v45 = vadd.f32 %v6059_v54, %v2012_v44  ;;  %v5726_v12 = vpop.permute.xlu1 %5725  ;;  %v6266_v30 = vld [vmem:[%s8301_s1 + $0x8] sm:$0xff] }
 0xd3c   :  { %v2007_v18 = vsel %vm2004_vm3, %v2006_v46, %v2002_v43  ;;  %v5727_v40 = vunpack.i.l.bf16 %v5726_v12  ;;  %v5728_v15 = vunpack.i.h.bf16 %v5726_v12 }
 0xd3d   :  { %v2008_v33 = vmul.f32 %v2007_v18, %v1966_v13  ;;  %v2017_v11 = vsel %vm2016_vm8, %v6059_v54, %v2013_v45  ;;  %v6265_v54 = vld [vmem:[%s8301_s1] sm:$0xff] }
 0xd3e   :  { %v2022_v61 = vsel %vm2019_vm9, %v2021_v47, %v2017_v11 }
 0xd3f   :  { %v2025_v26 = vmul.f32 %v6949_v32, %v2008_v33  ;;  %v2023_v60 = vmul.f32 %v2022_v61, %v1967_v59 }
 0xd41   :  { %v2031_v62 = vadd.f32 %v7037_v1, %v2025_v26  ;;  %v2026_v2 = vmul.f32 %v6949_v32, %v2023_v60  ;;  %v6259_v32 = vld [vmem:[%s8300_s2 + $0x100] sm:$0xff] }
 0xd42   :  { %v5744_v17 = vpack.i.bf16 %v6259_v32, %v6258_v14 }
 0xd43   :  { %5514 = vmatmul.msk.f32.vlgmr.msra.gmra.mxu2 %vm19_vm0, %v2031_v62  ;;  %v2032_v56 = vadd.f32 %v7037_v1, %v2026_v2 }
 0xd44   :  { %5745 = vrot.lane.b32.xlu1 %v5744_v17, %s6290_s18 }
 0xd4b   :  { %5515 = vmatmul.msk.f32.gmra.mxu2 %vm19_vm0, %v2032_v56 }
 0xd8f   :  { %v1716_v19 = vpop.permute.xlu2 %1715 }
 0xd90   :  { %v1720_v8 = vmul.f32 %v6260_v5, %v1716_v19 }
 0xd92   :  { %v1722_v29 = vadd.f32 %v1720_v8, %v6726_v7 }
 0xd94   :  { %1729 = vrot.lane.b32.xlu0 %v1722_v29, %s6298_s13  ;;  %v1714_v16 = vpop.permute.xlu0 %1713 }
 0xd95   :  { %v1719_v20 = vmul.f32 %v6260_v5, %v1714_v16 }
 0xd97   :  { %v1721_v21 = vadd.f32 %v1719_v20, %v6726_v7  ;;  %v6264_v7 = vld [vmem:[%s8300_s2 + $0x120] sm:$0xff] }
 0xd98   :  { %v5734_v34 = vpack.i.bf16 %v6264_v7, %v6263_v27 }
 0xd99   :  { %1727 = vrot.lane.b32.xlu2 %v1721_v21, %s6298_s13 }
 0xd9c   :  { %5740 = vrot.lane.b32.xlu0 %v5739_v9, %s6290_s18  ;;  %v5721_v48 = vpop.permute.xlu0 %5720  ;;  %v5731_v55 = vpop.permute.xlu1 %5730 }
 0xd9d   :  { %v5723_v31 = vunpack.i.h.bf16 %v5721_v48  ;;  %v5722_v53 = vunpack.i.l.bf16 %v5721_v48  ;;  %v5733_v50 = vunpack.i.h.bf16 %v5731_v55  ;;  %v5732_v57 = vunpack.i.l.bf16 %v5731_v55 }
 0xd9f   :  { %1763 = vmatpush.msrb.mxu1 %v5722_v53  ;;  %1826 = vmatpush.msra.mxu3 %v5732_v57 }
 0xda1   :  { %5735 = vrot.lane.b32.xlu2 %v5734_v34, %s6290_s18  ;;  %1764 = vmatpush.msrb.mxu1 %v5723_v31 }
 0xda2   :  { %1827 = vmatpush.msra.mxu3 %v5733_v50 }
 0xda3   :  { %1765 = vmatpush.msrb.mxu1 %v5727_v40 }
 0xda5   :  { %1766 = vmatpush.msrb.mxu1 %v5728_v15 }
 0xdb6   :  { %v5746_v44 = vpop.permute.xlu1 %5745 }
 0xdb7   :  { %v5747_v33 = vunpack.i.l.bf16 %v5746_v44  ;;  %v5748_v45 = vunpack.i.h.bf16 %v5746_v44 }
 0xdc6   :  { %v2062_v25 = vpop.f32.mrf.mxu2 }
 0xdc7   :  { %v7088_v36 = vadd.f32 %v7085_v0, %v2062_v25 }
 0xdc9   :  { %2200 = vrot.lane.b32.xlu1 %v7088_v36, %s6295_s6  ;;  %2204 = vrot.lane.b32.xlu0 %v7088_v36, %s6291_s29 }
 0xdce   :  { %v2065_v37 = vpop.f32.mrf.mxu2 }
 0xdcf   :  { %v7095_v41 = vadd.f32 %v7085_v0, %v2065_v37 }
 0xdd1   :  { %2070 = vrot.lane.b32.xlu0 %v7088_v36, %s6290_s18  ;;  %2202 = vrot.lane.b32.xlu1 %v7095_v41, %s6295_s6 }
 0xdd2   :  { %2206 = vrot.lane.b32.xlu2 %v7095_v41, %s6291_s29 }
 0xdd9   :  { %2456 = vrot.lane.b32.xlu0 %v7088_v36, %s6292_s30  ;;  %2452 = vrot.lane.b32.xlu1 %v7088_v36, %s6293_s4 }
 0xdda   :  { %2072 = vrot.lane.b32.xlu2 %v7095_v41, %s6290_s18 }
 0xde1   :  { %2330 = vrot.lane.b32.xlu0 %v7088_v36, %s6294_s5  ;;  %2454 = vrot.lane.b32.xlu1 %v7095_v41, %s6293_s4 }
 0xde2   :  { %2458 = vrot.lane.b32.xlu2 %v7095_v41, %s6292_s30 }
 0xde9   :  { %2328 = vrot.lane.b32.xlu0 %v7095_v41, %s6296_s7  ;;  %2109 = vrot.lane.b32.xlu1 %v6265_v54, %s6296_s7 }
 0xdea   :  { %2332 = vrot.lane.b32.xlu2 %v7095_v41, %s6294_s5 }
 0xdf2   :  { %2326 = vrot.lane.b32.xlu2 %v7088_v36, %s6296_s7 }
 0xdf3   :  { %v1728_v58 = vpop.permute.xlu2 %1727 }
 0xdf4   :  { %5510 = vmatmul.msk.f32.vlgmr.msrb.gmra.mxu1 %vm19_vm0, %v1728_v58 }
 0xdfa   :  { %2111 = vrot.lane.b32.xlu2 %v6266_v30, %s6296_s7 }
 0xdfb   :  { %v5736_v38 = vpop.permute.xlu2 %5735 }
 0xdfc   :  { %v5738_v13 = vunpack.i.h.bf16 %v5736_v38  ;;  %v5737_v46 = vunpack.i.l.bf16 %v5736_v38 }
 0xdfe   :  { %1828 = vmatpush.msra.mxu3 %v5737_v46 }
 0xe00   :  { %1829 = vmatpush.msra.mxu3 %v5738_v13 }
 0xe06   :  { %v1730_v42 = vpop.permute.xlu0 %1729 }
 0xe07   :  { %5511 = vmatmul.msk.f32.gmra.mxu1 %vm19_vm0, %v1730_v42 }
 0xe0e   :  { %v5741_v43 = vpop.permute.xlu0 %5740 }
 0xe0f   :  { %v5743_v49 = vunpack.i.h.bf16 %v5741_v43  ;;  %v5742_v18 = vunpack.i.l.bf16 %v5741_v43 }
 0xe11   :  { %1830 = vmatpush.msra.mxu3 %v5742_v18 }
 0xe13   :  { %1831 = vmatpush.msra.mxu3 %v5743_v49 }
 0xe15   :  { %1832 = vmatpush.msra.mxu3 %v5747_v33 }
 0xe17   :  { %1833 = vmatpush.msra.mxu3 %v5748_v45 }
 0xe2c   :  { %v2207_v47 = vpop.permute.xlu2 %2206 }
 0xe2d   :  { %5522 = vmatpush.xpose.msk.msrb.mxu3 %vm154_vm13, %v2207_v47 }
 0xe34   :  { %v2073_v59 = vpop.permute.xlu2 %2072 }
 0xe35   :  { %5516 = vmatpush.xpose.msk.msra.mxu0 %vm154_vm13, %v2073_v59 }
 0xe3b   :  { %v2205_v26 = vpop.permute.xlu0 %2204  ;;  %v2201_v8 = vpop.permute.xlu1 %2200 }
 0xe3c   :  { %v2459_v11 = vpop.permute.xlu2 %2458  ;;  %5523 = vmatpush.xpose.msk.msrb.mxu3 %vm154_vm13, %v2205_v26 }
 0xe43   :  { %v2071_v61 = vpop.permute.xlu0 %2070  ;;  %v2203_v29 = vpop.permute.xlu1 %2202 }
 0xe44   :  { %v2333_v62 = vpop.permute.xlu2 %2332  ;;  %5517 = vmatpush.xpose.msk.msra.mxu0 %vm154_vm13, %v2071_v61  ;;  %v5749_v61 = vpack.i.bf16 %v7088_v36, %v7095_v41 }
 0xe47   :  { %5518 = vmatmul.msk.f32.vlgmr.msra.gmra.mxu0 %vm154_vm13, %v7088_v36 }
 0xe48   :  { %5528 = vmatpush.xpose.msk.msrb.mxu0 %vm154_vm13, %v2333_v62 }
 0xe4b   :  { %v2457_v60 = vpop.permute.xlu0 %2456  ;;  %v2453_v16 = vpop.permute.xlu1 %2452 }
 0xe4c   :  { %v2327_v56 = vpop.permute.xlu2 %2326 }
 0xe4f   :  { %5519 = vmatmul.msk.f32.gmra.mxu0 %vm154_vm13, %v7095_v41 }
 0xe53   :  { %v2331_v2 = vpop.permute.xlu0 %2330  ;;  %v2455_v20 = vpop.permute.xlu1 %2454 }
 0xe54   :  { %5529 = vmatpush.xpose.msk.msrb.mxu0 %vm154_vm13, %v2331_v2  ;;  %v7162_v31 = vpop.permute.xlu2 %2111 }
 0xe57   :  { %5530 = vmatmul.msk.f32.vlgmr.msrb.gmra.mxu0 %vm154_vm13, %v2327_v56 }
 0xe5b   :  { %v2329_v35 = vpop.permute.xlu0 %2328  ;;  %v7158_v63 = vpop.permute.xlu1 %2109 }
 0xe5f   :  { %5531 = vmatmul.msk.f32.gmra.mxu0 %vm154_vm13, %v2329_v35 }
 0xe71   :  { %v1768_v3 = vpop.f32.mrf.mxu1 }
 0xe72   :  { %v1769_v14 = vadd.f32 %v7146_v39, %v1768_v3 }
 0xe74   :  { %v1774_v32 = vmax.f32 %v1769_v14, 0.0 }
 0xe76   :  { %5512 = vmatmul.msk.f32.vlgmr.msra.gmra.mxu3 %vm883_vm7, %v1774_v32 }
 0xe77   :  { %5534 = vmatpush.xpose.msk.msra.mxu3 %vm154_vm13, %v2459_v11 }
 0xe7b   :  { %5535 = vmatpush.xpose.msk.msra.mxu3 %vm154_vm13, %v2457_v60 }
 0xe84   :  { %v1771_v17 = vpop.f32.mrf.mxu1 }
 0xe85   :  { %v1772_v19 = vadd.f32 %v7146_v39, %v1771_v17 }
 0xe87   :  { %v1775_v5 = vmax.f32 %v1772_v19, 0.0 }
 0xe89   :  { %5513 = vmatmul.msk.f32.gmra.mxu3 %vm883_vm7, %v1775_v5 }
 0xe91   :  { %5524 = vmatmul.msk.f32.vlgmr.msrb.gmra.mxu3 %vm154_vm13, %v2201_v8 }
 0xe99   :  { %5525 = vmatmul.msk.f32.gmra.mxu3 %vm154_vm13, %v2203_v29 }
 0xea1   :  { %5536 = vmatmul.msk.f32.vlgmr.msra.gmra.mxu3 %vm154_vm13, %v2453_v16 }
 0xea9   :  { %5537 = vmatmul.msk.f32.gmra.mxu3 %vm154_vm13, %v2455_v20 }
 0xec4   :  { %v2099_v21 = vpop.f32.mrf.mxu0 }
 0xec5   :  { %v2105_v23 = vmul.f32 0.35355338, %v2099_v21 }
 0xec7   :  { %v2115_v9 = vadd.f32 %v7158_v63, %v2105_v23 }
 0xec9   :  { %v2117_v27 = vsel %vm190_vm14, %v2115_v9, -inf }
 0xeca   :  { %2118 = vmax.xlane.f32.xlu1 %v2117_v27 }
 0xecc   :  { %v2102_v7 = vpop.f32.mrf.mxu0 }
 0xecd   :  { %v2106_v50 = vmul.f32 0.35355338, %v2102_v7 }
 0xecf   :  { %v2116_v38 = vadd.f32 %v7162_v31, %v2106_v50 }
 0xed1   :  { %v2120_v42 = vsel %vm190_vm14, %v2116_v38, -inf }
 0xed4   :  { %v2359_v34 = vpop.f32.mrf.mxu0 }
 0xed5   :  { %v2365_v46 = vmul.f32 0.35355338, %v2359_v34 }
 0xed7   :  { %v2367_v18 = vadd.f32 %v2365_v46, %v7158_v63 }
 0xed9   :  { %v2369_v47 = vsel %vm190_vm14, %v2367_v18, -inf }
 0xedc   :  { %v2362_v25 = vpop.f32.mrf.mxu0 }
 0xedd   :  { %v2366_v48 = vmul.f32 0.35355338, %v2362_v25 }
 0xedf   :  { %v7165_v53 = vadd.f32 %v2366_v48, %v7162_v31 }
 0xee1   :  { %v2372_v12 = vsel %vm190_vm14, %v7165_v53, -inf }
 0xee2   :  { %2373 = vmax.xlane.f32.xlu1 %v2372_v12 }
 0xef9   :  { %v7169_v37 = vpop.f32.mrf.mxu3 }
 0xf0c   :  { %v7171_v40 = vpop.f32.mrf.mxu3 }
 0xf14   :  { %v2233_v15 = vpop.f32.mrf.mxu3 }
 0xf15   :  { %v2239_v54 = vmul.f32 0.35355338, %v2233_v15 }
 0xf17   :  { %v2241_v55 = vadd.f32 %v2239_v54, %v7158_v63 }
 0xf19   :  { %v2243_v57 = vsel %vm190_vm14, %v2241_v55, -inf }
 0xf1a   :  { %2244 = vmax.xlane.f32.xlu0 %v2243_v57 }
 0xf1c   :  { %v2236_v58 = vpop.f32.mrf.mxu3 }
 0xf1d   :  { %v2240_v30 = vmul.f32 0.35355338, %v2236_v58 }
 0xf1f   :  { %v2242_v13 = vadd.f32 %v2240_v30, %v7162_v31 }
 0xf21   :  { %v2246_v43 = vsel %vm190_vm14, %v2242_v13, -inf }
 0xf22   :  { %2121 = vmax.xlane.f32.xlu0 %v2120_v42  ;;  %2247 = vmax.xlane.f32.xlu2 %v2246_v43 }
 0xf24   :  { %v2485_v44 = vpop.f32.mrf.mxu3 }
 0xf25   :  { %v2491_v49 = vmul.f32 0.35355338, %v2485_v44 }
 0xf27   :  { %v2493_v33 = vadd.f32 %v2491_v49, %v7158_v63 }
 0xf29   :  { %v2495_v45 = vsel %vm190_vm14, %v2493_v33, -inf }
 0xf2a   :  { %2496 = vmax.xlane.f32.xlu1 %v2495_v45  ;;  %2370 = vmax.xlane.f32.xlu2 %v2369_v47 }
 0xf2c   :  { %v2488_v62 = vpop.f32.mrf.mxu3 }
 0xf2d   :  { %v2492_v2 = vmul.f32 0.35355338, %v2488_v62 }
 0xf2f   :  { %v2494_v35 = vadd.f32 %v2492_v2, %v7162_v31 }
 0xf31   :  { %v2498_v3 = vsel %vm190_vm14, %v2494_v35, -inf }
 0xf3d   :  { %v2119_v59 = vpop.xlane.xlu1 %2118 }
 0xf3e   :  { %v2123_v26 = vsub.f32 %v2115_v9, %v2119_v59 }
 0xf40   :  { %v2125_v11 = vmul.f32 1.442695, %v2123_v26 }
 0xf42   :  { %6060 = vpow2.f32 %v2125_v11 }
 0xf43   :  { %5750 = vrot.lane.b32.xlu1 %v5749_v61, %s6297_s12 }
 0xf48   :  { %v7186_v60 = vpop.eup %6060 }
 0xf49   :  { %v2129_v56 = vsel %vm190_vm14, %v7186_v60, 0.0 }
 0xf4a   :  { %2130 = vadd.xlane.f32.xlu0 %v2129_v56 }
 0xf52   :  { %2499 = vmax.xlane.f32.xlu0 %v2498_v3 }
 0xf55   :  { %v2374_v32 = vpop.xlane.xlu1 %2373 }
 0xf66   :  { %5755 = vrot.lane.b32.xlu0 %v5749_v61, %s6298_s13 }
 0xf8d   :  { %v2245_v14 = vpop.xlane.xlu0 %2244 }
 0xf8e   :  { %v2249_v36 = vsub.f32 %v2241_v55, %v2245_v14 }
 0xf90   :  { %v2251_v41 = vmul.f32 1.442695, %v2249_v36 }
 0xf92   :  { %6062 = vpow2.f32 %v2251_v41 }
 0xf95   :  { %v2122_v17 = vpop.xlane.xlu0 %2121  ;;  %v2248_v19 = vpop.xlane.xlu2 %2247 }
 0xf96   :  { %v2124_v5 = vsub.f32 %v2116_v38, %v2122_v17  ;;  %v2250_v8 = vsub.f32 %v2242_v13, %v2248_v19 }
 0xf98   :  { %v7193_v29 = vpop.eup %6062  ;;  %v2127_v16 = vmul.f32 1.442695, %v2124_v5  ;;  %v2253_v20 = vmul.f32 1.442695, %v2250_v8 }
 0xf99   :  { %v2255_v21 = vsel %vm190_vm14, %v7193_v29, 0.0 }
 0xf9a   :  { %6064 = vpow2.f32 %v2127_v16  ;;  %2256 = vadd.xlane.f32.xlu2 %v2255_v21 }
 0xf9b   :  { %6066 = vpow2.f32 %v2253_v20 }
 0xf9d   :  { %v2497_v23 = vpop.xlane.xlu1 %2496  ;;  %v2371_v9 = vpop.xlane.xlu2 %2370 }
 0xf9e   :  { %v2501_v27 = vsub.f32 %v2493_v33, %v2497_v23  ;;  %v2375_v7 = vsub.f32 %v2367_v18, %v2371_v9  ;;  %v2376_v18 = vsub.f32 %v7165_v53, %v2374_v32 }
 0xfa0   :  { %v7197_v34 = vpop.eup %6064  ;;  %v2503_v25 = vmul.f32 1.442695, %v2501_v27  ;;  %v2377_v48 = vmul.f32 1.442695, %v2375_v7  ;;  %v2379_v47 = vmul.f32 1.442695, %v2376_v18 }
 0xfa1   :  { %v7199_v12 = vpop.eup %6066  ;;  %v2132_v15 = vsel %vm190_vm14, %v7197_v34, 0.0 }
 0xfa2   :  { %6068 = vpow2.f32 %v2503_v25  ;;  %2133 = vadd.xlane.f32.xlu2 %v2132_v15  ;;  %v2258_v54 = vsel %vm190_vm14, %v7199_v12, 0.0 }
 0xfa3   :  { %6070 = vpow2.f32 %v2377_v48  ;;  %2259 = vadd.xlane.f32.xlu1 %v2258_v54 }
 0xfa8   :  { %v7205_v55 = vpop.eup %6068 }
 0xfa9   :  { %v7207_v50 = vpop.eup %6070  ;;  %v2507_v57 = vsel %vm190_vm14, %v7205_v55, 0.0 }
 0xfaa   :  { %2508 = vadd.xlane.f32.xlu0 %v2507_v57  ;;  %v2381_v58 = vsel %vm190_vm14, %v7207_v50, 0.0 }
 0xfab   :  { %2382 = vadd.xlane.f32.xlu2 %v2381_v58 }
 0xfb5   :  { %v5751_v30 = vpop.permute.xlu1 %5750 }
 0xfb6   :  { %v5752_v38 = vunpack.i.l.bf16 %v5751_v30  ;;  %v5753_v13 = vunpack.i.h.bf16 %v5751_v30 }
 0xfb8   :  { %2317 = vmatpush.msrb.mxu2 %v5752_v38 }
 0xfba   :  { %2318 = vmatpush.msrb.mxu2 %v5753_v13 }
 0xfbc   :  { %5760 = vrot.lane.b32.xlu1 %v5749_v61, %s6300_s15 }
 0xfbd   :  { %v2131_v46 = vpop.xlane.xlu0 %2130 }
 0xfbe   :  { %6072 = vrcp.f32 %v2131_v46  ;;  %5765 = vrot.lane.b32.xlu0 %v5749_v61, %s6299_s14  ;;  %v2146_v62 = vand.u32 2147483648, %v2131_v46  ;;  %vm2140_vm11 = vweird.f32 %v2131_v46  ;;  %v2144_v10 = vand.u32 2147483647, %v2131_v46 }
 0xfc0   :  { %v2147_v53 = vor.u32 1.1754944e-38, %v2146_v62  ;;  %vm2145_vm15 = vcmp.eq.f32.partialorder %v2144_v10, 8.507059e+37 }
 0xfc4   :  { %v6073_v42 = vpop.eup %6072 }
 0xfc5   :  { %v2500_v43 = vpop.xlane.xlu0 %2499  ;;  %v2136_v44 = vmul.f32 %v6073_v42, %v2131_v46  ;;  %vm2141_vm10 = vweird.f32 %v6073_v42 }
 0xfc6   :  { %v2502_v49 = vsub.f32 %v2494_v35, %v2500_v43  ;;  %5775 = vrot.lane.b32.xlu0 %v5774_v51, %s6301_s16  ;;  %vm2142_vm12 = vmor %vm2140_vm11, %vm2141_vm10 }
 0xfc7   :  { %v2137_v45 = vsub.f32 1.0, %v2136_v44 }
 0xfc8   :  { %v2505_v33 = vmul.f32 1.442695, %v2502_v49 }
 0xfc9   :  { %v2138_v59 = vmul.f32 %v6073_v42, %v2137_v45 }
 0xfca   :  { %6074 = vpow2.f32 %v2505_v33 }
 0xfcb   :  { %6076 = vpow2.f32 %v2379_v47  ;;  %v2139_v61 = vadd.f32 %v6073_v42, %v2138_v59 }
 0xfcd   :  { %v2143_v51 = vsel %vm2142_vm12, %v6073_v42, %v2139_v61 }
 0xfce   :  { %v2148_v3 = vsel %vm2145_vm15, %v2147_v53, %v2143_v51 }
 0xfcf   :  { %v2149_v36 = vmul.f32 %v7186_v60, %v2148_v3 }
 0xfd0   :  { %v7220_v26 = vpop.eup %6074 }
 0xfd1   :  { %v2510_v11 = vsel %vm190_vm14, %v7220_v26, 0.0  ;;  %v7224_v52 = vpop.eup %6076 }
 0xfd2   :  { %2511 = vadd.xlane.f32.xlu2 %v2510_v11  ;;  %v2384_v35 = vsel %vm190_vm14, %v7224_v52, 0.0 }
 0xfd8   :  { %v5756_v2 = vpop.permute.xlu0 %5755 }
 0xfd9   :  { %v5757_v56 = vunpack.i.l.bf16 %v5756_v2  ;;  %v5758_v14 = vunpack.i.h.bf16 %v5756_v2 }
 0xfda   :  { %2385 = vadd.xlane.f32.xlu2 %v2384_v35 }
 0xfdb   :  { %2191 = vmatpush.msra.mxu1 %v5757_v56 }
 0xfdd   :  { %2192 = vmatpush.msra.mxu1 %v5758_v14 }
 0xfde   :  { %5520 = vmatmul.msk.f32.vlgmr.msra.gmra.mxu1 %vm190_vm14, %v2149_v36 }
 0xff2   :  { %5770 = vrot.lane.b32.xlu2 %v5769_v4, %s6301_s16 }
0x100d   :  { %v2257_v41 = vpop.xlane.xlu2 %2256 }
0x100e   :  { %6078 = vrcp.f32 %v2257_v41  ;;  %v2272_v20 = vand.u32 2147483648, %v2257_v41  ;;  %vm2266_vm2 = vweird.f32 %v2257_v41  ;;  %v2270_v23 = vand.u32 2147483647, %v2257_v41 }
0x1010   :  { %v2273_v25 = vor.u32 1.1754944e-38, %v2272_v20  ;;  %vm2271_vm4 = vcmp.eq.f32.partialorder %v2270_v23, 8.507059e+37 }
0x1014   :  { %v6079_v32 = vpop.eup %6078 }
0x1015   :  { %v2262_v17 = vmul.f32 %v6079_v32, %v2257_v41  ;;  %v2134_v19 = vpop.xlane.xlu2 %2133  ;;  %vm2267_vm1 = vweird.f32 %v6079_v32 }
0x1016   :  { %v2260_v5 = vpop.xlane.xlu1 %2259  ;;  %6080 = vrcp.f32 %v2134_v19  ;;  %vm2268_vm3 = vmor %vm2266_vm2, %vm2267_vm1  ;;  %v2159_v54 = vand.u32 2147483647, %v2134_v19  ;;  %v2161_v57 = vand.u32 2147483648, %v2134_v19  ;;  %vm2155_vm9 = vweird.f32 %v2134_v19 }
0x1017   :  { %v2263_v8 = vsub.f32 1.0, %v2262_v17  ;;  %6082 = vrcp.f32 %v2260_v5  ;;  %v2287_v38 = vand.u32 2147483648, %v2260_v5  ;;  %v2285_v42 = vand.u32 2147483647, %v2260_v5 }
0x1018   :  { %v2162_v49 = vor.u32 1.1754944e-38, %v2161_v57  ;;  %vm2281_vm11 = vweird.f32 %v2260_v5  ;;  %vm2160_vm12 = vcmp.eq.f32.partialorder %v2159_v54, 8.507059e+37 }
0x1019   :  { %v2264_v16 = vmul.f32 %v6079_v32, %v2263_v8  ;;  %v2288_v59 = vor.u32 1.1754944e-38, %v2287_v38  ;;  %vm2286_vm1 = vcmp.eq.f32.partialorder %v2285_v42, 8.507059e+37 }
0x101b   :  { %v2265_v60 = vadd.f32 %v6079_v32, %v2264_v16 }
0x101c   :  { %v6081_v21 = vpop.eup %6080 }
0x101d   :  { %v6083_v9 = vpop.eup %6082  ;;  %v2151_v6 = vmul.f32 %v6081_v21, %v2134_v19  ;;  %v2509_v24 = vpop.xlane.xlu0 %2508  ;;  %v2269_v4 = vsel %vm2268_vm3, %v6079_v32, %v2265_v60  ;;  %vm2156_vm5 = vweird.f32 %v6081_v21 }
0x101e   :  { %v2277_v27 = vmul.f32 %v6083_v9, %v2260_v5  ;;  %6084 = vrcp.f32 %v2509_v24  ;;  %v7234_v7 = vpop.xlane.xlu2 %2382  ;;  %v2274_v58 = vsel %vm2271_vm4, %v2273_v25, %v2269_v4  ;;  %vm2282_vm8 = vweird.f32 %v6083_v9  ;;  %vm2157_vm10 = vmor %vm2155_vm9, %vm2156_vm5 }
0x101f   :  { %v2152_v48 = vsub.f32 1.0, %v2151_v6  ;;  %6086 = vrcp.f32 %v7234_v7  ;;  %v2275_v13 = vmul.f32 %v7193_v29, %v2274_v58  ;;  %vm2283_vm15 = vmor %vm2281_vm11, %vm2282_vm8  ;;  %v2524_v35 = vand.u32 2147483648, %v2509_v24 }
0x1020   :  { %v2278_v15 = vsub.f32 1.0, %v2277_v27  ;;  %v2522_v3 = vand.u32 2147483647, %v2509_v24  ;;  %vm2518_vm4 = vweird.f32 %v2509_v24  ;;  %v2398_v41 = vand.u32 2147483648, %v7234_v7 }
0x1021   :  { %v2153_v30 = vmul.f32 %v6081_v21, %v2152_v48  ;;  %5526 = vmatmul.msk.f32.vlgmr.msrb.gmra.mxu2 %vm190_vm14, %v2275_v13  ;;  %vm2392_vm8 = vweird.f32 %v7234_v7  ;;  %v2525_v17 = vor.u32 1.1754944e-38, %v2524_v35 }
0x1022   :  { %v2279_v46 = vmul.f32 %v6083_v9, %v2278_v15  ;;  %v2399_v8 = vor.u32 1.1754944e-38, %v2398_v41 }
0x1023   :  { %v2154_v43 = vadd.f32 %v6081_v21, %v2153_v30 }
0x1024   :  { %v6085_v44 = vpop.eup %6084  ;;  %v2280_v18 = vadd.f32 %v6083_v9, %v2279_v46 }
0x1025   :  { %v6087_v33 = vpop.eup %6086  ;;  %v2514_v45 = vmul.f32 %v6085_v44, %v2509_v24  ;;  %v2158_v47 = vsel %vm2157_vm10, %v6081_v21, %v2154_v43  ;;  %vm2519_vm2 = vweird.f32 %v6085_v44  ;;  %vm2523_vm10 = vcmp.eq.f32.partialorder %v2522_v3, 8.507059e+37 }
0x1026   :  { %v2388_v29 = vmul.f32 %v6087_v33, %v7234_v7  ;;  %v2163_v11 = vsel %vm2160_vm12, %v2162_v49, %v2158_v47  ;;  %v2284_v61 = vsel %vm2283_vm15, %v6083_v9, %v2280_v18  ;;  %vm2393_vm3 = vweird.f32 %v6087_v33  ;;  %vm2520_vm5 = vmor %vm2518_vm4, %vm2519_vm2 }
0x1027   :  { %v2515_v62 = vsub.f32 1.0, %v2514_v45  ;;  %v2164_v10 = vmul.f32 %v7197_v34, %v2163_v11  ;;  %v2289_v51 = vsel %vm2286_vm1, %v2288_v59, %v2284_v61  ;;  %v2396_v34 = vand.u32 2147483647, %v7234_v7  ;;  %vm2394_vm9 = vmor %vm2392_vm8, %vm2393_vm3 }
0x1028   :  { %v2389_v53 = vsub.f32 1.0, %v2388_v29  ;;  %v2290_v2 = vmul.f32 %v7199_v12, %v2289_v51 }
0x1029   :  { %v2516_v56 = vmul.f32 %v6085_v44, %v2515_v62  ;;  %5521 = vmatmul.msk.f32.gmra.mxu1 %vm190_vm14, %v2164_v10  ;;  %vm2397_vm11 = vcmp.eq.f32.partialorder %v2396_v34, 8.507059e+37 }
0x102a   :  { %v2390_v14 = vmul.f32 %v6087_v33, %v2389_v53  ;;  %5527 = vmatmul.msk.f32.gmra.mxu2 %vm190_vm14, %v2290_v2 }
0x102b   :  { %v2517_v36 = vadd.f32 %v6085_v44, %v2516_v56 }
0x102c   :  { %v2391_v32 = vadd.f32 %v6087_v33, %v2390_v14 }
0x102d   :  { %v2521_v12 = vsel %vm2520_vm5, %v6085_v44, %v2517_v36 }
0x102e   :  { %v2395_v19 = vsel %vm2394_vm9, %v6087_v33, %v2391_v32  ;;  %v5761_v5 = vpop.permute.xlu1 %5760  ;;  %v2526_v60 = vsel %vm2523_vm10, %v2525_v17, %v2521_v12 }
0x102f   :  { %v5762_v16 = vunpack.i.l.bf16 %v5761_v5  ;;  %v5763_v21 = vunpack.i.h.bf16 %v5761_v5  ;;  %v2400_v9 = vsel %vm2397_vm11, %v2399_v8, %v2395_v19  ;;  %v2527_v6 = vmul.f32 %v7205_v55, %v2526_v60 }
0x1030   :  { %v5766_v20 = vpop.permute.xlu0 %5765  ;;  %v2401_v4 = vmul.f32 %v7207_v50, %v2400_v9 }
0x1031   :  { %v5767_v23 = vunpack.i.l.bf16 %v5766_v20  ;;  %2569 = vmatpush.msra.mxu2 %v5762_v16  ;;  %v5768_v24 = vunpack.i.h.bf16 %v5766_v20 }
0x1033   :  { %2570 = vmatpush.msra.mxu2 %v5763_v21  ;;  %2443 = vmatpush.msrb.mxu1 %v5767_v23 }
0x1034   :  { %5538 = vmatmul.msk.f32.vlgmr.msra.gmra.mxu2 %vm190_vm14, %v2527_v6  ;;  %v6267_v6 = vld [vmem:[%s8299_s0 + $0x10] sm:$0xff] }
0x1035   :  { %2444 = vmatpush.msrb.mxu1 %v5768_v24 }
0x1036   :  { %5532 = vmatmul.msk.f32.vlgmr.msrb.gmra.mxu1 %vm190_vm14, %v2401_v4 }
0x1038   :  { %v5776_v3 = vpop.permute.xlu0 %5775 }
0x1039   :  { %v5777_v14 = vunpack.i.l.bf16 %v5776_v3  ;;  %v5778_v36 = vunpack.i.h.bf16 %v5776_v3 }
0x1045   :  { %v2512_v27 = vpop.xlane.xlu2 %2511 }
0x1046   :  { %6088 = vrcp.f32 %v2512_v27  ;;  %v2539_v54 = vand.u32 2147483648, %v2512_v27  ;;  %v2537_v55 = vand.u32 2147483647, %v2512_v27  ;;  %vm2533_vm15 = vweird.f32 %v2512_v27 }
0x1048   :  { %v2540_v38 = vor.u32 1.1754944e-38, %v2539_v54  ;;  %vm2538_vm2 = vcmp.eq.f32.partialorder %v2537_v55, 8.507059e+37 }
0x104c   :  { %v6089_v7 = vpop.eup %6088 }
0x104d   :  { %v2529_v25 = vmul.f32 %v6089_v7, %v2512_v27  ;;  %v2386_v48 = vpop.xlane.xlu2 %2385  ;;  %vm2534_vm12 = vweird.f32 %v6089_v7 }
0x104e   :  { %6090 = vrcp.f32 %v2386_v48  ;;  %vm2535_vm1 = vmor %vm2533_vm15, %vm2534_vm12  ;;  %v2413_v44 = vand.u32 2147483648, %v2386_v48  ;;  %v2411_v18 = vand.u32 2147483647, %v2386_v48  ;;  %vm2407_vm4 = vweird.f32 %v2386_v48 }
0x104f   :  { %v2530_v15 = vsub.f32 1.0, %v2529_v25 }
0x1050   :  { %v2414_v45 = vor.u32 1.1754944e-38, %v2413_v44  ;;  %vm2412_vm8 = vcmp.eq.f32.partialorder %v2411_v18, 8.507059e+37 }
0x1051   :  { %v2531_v57 = vmul.f32 %v6089_v7, %v2530_v15  ;;  %v6268_v15 = vld [vmem:[%s8299_s0 + $0x18] sm:$0xff] }
0x1053   :  { %v2532_v58 = vadd.f32 %v6089_v7, %v2531_v57 }
0x1054   :  { %v6091_v30 = vpop.eup %6090 }
0x1055   :  { %v2403_v50 = vmul.f32 %v6091_v30, %v2386_v48  ;;  %v2536_v13 = vsel %vm2535_vm1, %v6089_v7, %v2532_v58  ;;  %vm2408_vm3 = vweird.f32 %v6091_v30  ;;  %v5771_v2 = vpop.permute.xlu2 %5770 }
0x1056   :  { %v2541_v46 = vsel %vm2538_vm2, %v2540_v38, %v2536_v13  ;;  %vm2409_vm5 = vmor %vm2407_vm4, %vm2408_vm3  ;;  %v5773_v56 = vunpack.i.h.bf16 %v5771_v2  ;;  %v5772_v35 = vunpack.i.l.bf16 %v5771_v2 }
0x1057   :  { %v2404_v42 = vsub.f32 1.0, %v2403_v50  ;;  %v2542_v43 = vmul.f32 %v7220_v26, %v2541_v46 }
0x1058   :  { %2646 = vmatpush.msra.mxu0 %v5772_v35 }
0x1059   :  { %5539 = vmatmul.msk.f32.gmra.mxu2 %vm190_vm14, %v2542_v43  ;;  %v2405_v49 = vmul.f32 %v6091_v30, %v2404_v42 }
0x105a   :  { %2647 = vmatpush.msra.mxu0 %v5773_v56 }
0x105b   :  { %v2406_v33 = vadd.f32 %v6091_v30, %v2405_v49  ;;  %v2194_v11 = vpop.f32.mrf.mxu1 }
0x105c   :  { %2648 = vmatpush.msra.mxu0 %v5777_v14 }
0x105d   :  { %v2410_v47 = vsel %vm2409_vm5, %v6091_v30, %v2406_v33 }
0x105e   :  { %v2415_v59 = vsel %vm2412_vm8, %v2414_v45, %v2410_v47  ;;  %2649 = vmatpush.msra.mxu0 %v5778_v36 }
0x105f   :  { %v2416_v29 = vmul.f32 %v7224_v52, %v2415_v59 }
0x1061   :  { %5533 = vmatmul.msk.f32.gmra.mxu1 %vm190_vm14, %v2416_v29 }
0x10a4   :  { %v2320_v61 = vpop.f32.mrf.mxu2 }
0x10a6   :  { %v2197_v26 = vpop.f32.mrf.mxu1 }
0x10ad   :  { %v2323_v62 = vpop.f32.mrf.mxu2 }
0x10b3   :  { %v2446_v10 = vpop.f32.mrf.mxu1 }
0x10b4   :  { %2588 = vrot.lane.b32.xlu1 %v2446_v10, %s6302_s17 }
0x10b7   :  { %v2572_v51 = vpop.f32.mrf.mxu2 }
0x10b8   :  { %2596 = vrot.lane.b32.xlu0 %v2572_v51, %s6304_s20 }
0x10bc   :  { %2580 = vrot.lane.b32.xlu1 %v2320_v61, %s6303_s19 }
0x10c4   :  { %2582 = vrot.lane.b32.xlu1 %v2323_v62, %s6303_s19 }
0x10cc   :  { %2625 = vrot.lane.b32.xlu1 %v7085_v0, %s6301_s16 }
0x10dc   :  { %v2575_v52 = vpop.f32.mrf.mxu2 }
0x10dd   :  { %2598 = vrot.lane.b32.xlu2 %v2575_v52, %s6304_s20 }
0x10de   :  { %v2449_v53 = vpop.f32.mrf.mxu1 }
0x10df   :  { %2590 = vrot.lane.b32.xlu0 %v2449_v53, %s6302_s17 }
0x1126   :  { %v2589_v41 = vpop.permute.xlu1 %2588 }
0x112a   :  { %v2597_v34 = vpop.permute.xlu0 %2596 }
0x112e   :  { %v2581_v32 = vpop.permute.xlu1 %2580 }
0x112f   :  { %v2602_v0 = vsel %vm154_vm13, %v2194_v11, %v2581_v32 }
0x1130   :  { %v2604_v12 = vsel %vm190_vm14, %v2602_v0, %v2589_v41 }
0x1131   :  { %v2606_v17 = vsel %vm680_vm6, %v2604_v12, %v2597_v34 }
0x1132   :  { %5540 = vmatmul.msk.f32.vlgmr.msra.gmra.mxu0 %vm19_vm0, %v2606_v17 }
0x1136   :  { %v2583_v19 = vpop.permute.xlu1 %2582 }
0x1137   :  { %v2603_v5 = vsel %vm154_vm13, %v2197_v26, %v2583_v19  ;;  %v2599_v16 = vpop.permute.xlu2 %2598 }
0x113e   :  { %v2626_v21 = vpop.permute.xlu1 %2625 }
0x1151   :  { %v2591_v8 = vpop.permute.xlu0 %2590 }
0x1152   :  { %v2605_v60 = vsel %vm190_vm14, %v2603_v5, %v2591_v8 }
0x1153   :  { %v2607_v20 = vsel %vm680_vm6, %v2605_v60, %v2599_v16 }
0x1154   :  { %5541 = vmatmul.msk.f32.gmra.mxu0 %vm19_vm0, %v2607_v20 }
0x11af   :  { %v2651_v23 = vpop.f32.mrf.mxu0 }
0x11b0   :  { %v2652_v9 = vadd.f32 %v2651_v23, %v2626_v21 }
0x11b2   :  { %v7274_v24 = vadd.f32 %v6267_v6, %v2652_v9 }
0x11b4   :  { %v2659_v4 = vsel %vm19_vm0, %v7274_v24, 0.0  ;;  %v2667_v27 = vmul.f32 %v7274_v24, %v7274_v24 }
0x11b5   :  { %2660 = vadd.xlane.f32.xlu0 %v2659_v4 }
0x11b6   :  { %v2669_v7 = vsel %vm19_vm0, %v2667_v27, 0.0 }
0x11b7   :  { %2670 = vadd.xlane.f32.xlu2 %v2669_v7 }
0x11c9   :  { %1809 = vrot.lane.b32.xlu0 %v7146_v39, %s6298_s13 }
0x11d1   :  { %v2654_v25 = vpop.f32.mrf.mxu0 }
0x11d2   :  { %v2655_v48 = vadd.f32 %v2654_v25, %v2626_v21  ;;  %v2755_v25 = vld [vmem:[%s8300_s2 + $0x80] sm:$0xff] }
0x11d4   :  { %v7286_v54 = vadd.f32 %v6268_v15, %v2655_v48  ;;  %v2756_v48 = vld [vmem:[%s8300_s2 + $0x88] sm:$0xff]  ;;  %v2757_v15 = vld [vmem:[%s8300_s2 + $0x90] sm:$0xff] }
0x11d6   :  { %v2662_v57 = vsel %vm19_vm0, %v7286_v54, 0.0  ;;  %v2668_v55 = vmul.f32 %v7286_v54, %v7286_v54 }
0x11d7   :  { %2663 = vadd.xlane.f32.xlu1 %v2662_v57  ;;  %v2758_v57 = vld [vmem:[%s8300_s2 + $0x98] sm:$0xff] }
0x11d8   :  { %v2672_v58 = vsel %vm19_vm0, %v2668_v55, 0.0  ;;  %2783 = vmatpush.msra.mxu1 %v2758_v57 }
0x11d9   :  { %2673 = vadd.xlane.f32.xlu2 %v2672_v58  ;;  %v7332_v58 = vpack.i.bf16 %v2757_v15, %v2758_v57 }
0x11da   :  { %2784 = vmatpush.msra.mxu1 %v2757_v15 }
0x11dc   :  { %2785 = vmatpush.msra.mxu1 %v2756_v48 }
0x11de   :  { %2786 = vmatpush.msra.mxu1 %v2755_v25 }
0x1228   :  { %v7293_v30 = vpop.xlane.xlu0 %2660 }
0x1229   :  { %v2665_v39 = vmul.f32 0.03125, %v7293_v30  ;;  %v2685_v21 = vsub.f32 %v7274_v24, %v7293_v30  ;;  %v7334_v30 = vpack.i.bf16 %v2755_v25, %v2756_v48 }
0x122a   :  { %v2671_v13 = vpop.xlane.xlu2 %2670 }
0x122b   :  { %v2675_v38 = vmul.f32 %v2665_v39, %v2665_v39 }
0x122d   :  { %v2677_v50 = vmul.f32 32.0, %v2675_v38 }
0x122f   :  { %v2679_v46 = vsub.f32 %v2671_v13, %v2677_v50 }
0x1231   :  { %v2681_v42 = vmax.f32 %v2679_v46, 0.0 }
0x1233   :  { %v2683_v43 = vmul.f32 0.032258064, %v2681_v42  ;;  %v7343_v42 = vld [vmem:[%s8300_s2 + $0x16f] ss:$0 sm:$0xff] }
0x1235   :  { %6092 = vrsqrt.f32 %v2683_v43  ;;  %vm2694_vm9 = vcmp.eq.f32.partialorder %v2683_v43, inf  ;;  %v2697_v51 = vand.u32 2147483648, %v2683_v43  ;;  %vm2696_vm10 = vcmp.eq.f32.partialorder %v2683_v43, 0.0 }
0x123b   :  { %v6093_v44 = vpop.eup %6092  ;;  %v1810_v49 = vpop.permute.xlu0 %1809 }
0x123c   :  { %v2688_v18 = vmul.f32 %v6093_v44, %v2683_v43  ;;  %v1836_v33 = vadd.f32 %v7169_v37, %v1810_v49  ;;  %v1839_v47 = vadd.f32 %v7171_v40, %v1810_v49 }
0x123e   :  { %v2689_v45 = vmul.f32 %v6093_v44, %v2688_v18  ;;  %v7299_v59 = vadd.f32 %v1836_v33, %v6912_v22  ;;  %v7306_v62 = vadd.f32 %v1839_v47, %v6928_v28 }
0x1240   :  { %v2690_v29 = vmul.f32 0.5, %v2689_v45  ;;  %v1844_v11 = vsel %vm19_vm0, %v7299_v59, 0.0  ;;  %v1852_v61 = vmul.f32 %v7299_v59, %v7299_v59  ;;  %v1853_v22 = vmul.f32 %v7306_v62, %v7306_v62 }
0x1241   :  { %1845 = vadd.xlane.f32.xlu1 %v1844_v11  ;;  %v1847_v52 = vsel %vm19_vm0, %v7306_v62, 0.0 }
0x1242   :  { %v2691_v26 = vsub.f32 1.5, %v2690_v29  ;;  %v1854_v37 = vsel %vm19_vm0, %v1852_v61, 0.0  ;;  %v1857_v28 = vsel %vm19_vm0, %v1853_v22, 0.0 }
0x1243   :  { %1855 = vadd.xlane.f32.xlu2 %v1854_v37 }
0x1244   :  { %v2692_v10 = vmul.f32 %v6093_v44, %v2691_v26 }
0x1246   :  { %v2693_v40 = vmul.f32 %v2692_v10, %v2683_v43 }
0x1248   :  { %v2695_v53 = vsel %vm2694_vm9, %v2683_v43, %v2693_v40 }
0x1249   :  { %1848 = vadd.xlane.f32.xlu1 %v1847_v52  ;;  %v2698_v2 = vsel %vm2696_vm10, %v2697_v51, %v2695_v53 }
0x124a   :  { %v7313_v56 = vpop.xlane.xlu1 %2663  ;;  %v2711_v35 = vadd.f32 1e-06, %v2698_v2 }
0x124b   :  { %v2666_v3 = vmul.f32 0.03125, %v7313_v56  ;;  %1858 = vadd.xlane.f32.xlu2 %v1857_v28  ;;  %v2686_v26 = vsub.f32 %v7286_v54, %v7313_v56 }
0x124c   :  { %6094 = vrcp.f32 %v2711_v35  ;;  %v2674_v41 = vpop.xlane.xlu2 %2673  ;;  %v2724_v5 = vand.u32 2147483648, %v2711_v35  ;;  %v2722_v16 = vand.u32 2147483647, %v2711_v35  ;;  %vm2718_vm12 = vweird.f32 %v2711_v35 }
0x124d   :  { %v2676_v14 = vmul.f32 %v2666_v3, %v2666_v3 }
0x124e   :  { %v2725_v20 = vor.u32 1.1754944e-38, %v2724_v5  ;;  %vm2723_vm1 = vcmp.eq.f32.partialorder %v2722_v16, 8.507059e+37 }
0x124f   :  { %v2678_v36 = vmul.f32 32.0, %v2676_v14 }
0x1251   :  { %v2680_v32 = vsub.f32 %v2674_v41, %v2678_v36 }
0x1252   :  { %v6095_v0 = vpop.eup %6094 }
0x1253   :  { %v2682_v34 = vmax.f32 %v2680_v32, 0.0  ;;  %v2714_v12 = vmul.f32 %v6095_v0, %v2711_v35  ;;  %vm2719_vm11 = vweird.f32 %v6095_v0 }
0x1254   :  { %vm2720_vm15 = vmor %vm2718_vm12, %vm2719_vm11 }
0x1255   :  { %v2684_v17 = vmul.f32 0.032258064, %v2682_v34  ;;  %v2715_v19 = vsub.f32 1.0, %v2714_v12 }
0x1257   :  { %6096 = vrsqrt.f32 %v2684_v17  ;;  %v2716_v8 = vmul.f32 %v6095_v0, %v2715_v19  ;;  %vm2706_vm2 = vcmp.eq.f32.partialorder %v2684_v17, inf  ;;  %v2709_v13 = vand.u32 2147483648, %v2684_v17 }
0x1258   :  { %vm2708_vm3 = vcmp.eq.f32.partialorder %v2684_v17, 0.0 }
0x1259   :  { %v2717_v60 = vadd.f32 %v6095_v0, %v2716_v8 }
0x125b   :  { %v2721_v23 = vsel %vm2720_vm15, %v6095_v0, %v2717_v60 }
0x125c   :  { %v2726_v9 = vsel %vm2723_vm1, %v2725_v20, %v2721_v23 }
0x125d   :  { %v6097_v6 = vpop.eup %6096  ;;  %v2727_v4 = vmul.f32 %v2726_v9, %v2685_v21 }
0x125e   :  { %v2700_v27 = vmul.f32 %v6097_v6, %v2684_v17 }
0x125f   :  { %2745 = vrot.lane.b32.xlu0 %v2727_v4, %s6298_s13 }
0x1260   :  { %v2701_v7 = vmul.f32 %v6097_v6, %v2700_v27 }
0x1262   :  { %v2702_v55 = vmul.f32 0.5, %v2701_v7  ;;  %v7359_v7 = vld [vmem:[%s8300_s2 + $0x16c] ss:$0 sm:$0xff] }
0x1263   :  { %5780 = vrot.lane.b32.xlu2 %v7332_v58, %s6290_s18 }
0x1264   :  { %v2703_v39 = vsub.f32 1.5, %v2702_v55 }
0x1266   :  { %v2704_v38 = vmul.f32 %v6097_v6, %v2703_v39 }
0x1267   :  { %5785 = vrot.lane.b32.xlu0 %v7334_v30, %s6290_s18 }
0x1268   :  { %v2705_v50 = vmul.f32 %v2704_v38, %v2684_v17 }
0x126a   :  { %v2707_v46 = vsel %vm2706_vm2, %v2684_v17, %v2705_v50 }
0x126b   :  { %v2710_v43 = vsel %vm2708_vm3, %v2709_v13, %v2707_v46  ;;  %v7367_v46 = vld [vmem:[%s8300_s2 + $0x164] ss:$0 sm:$0xff] }
0x126c   :  { %v2712_v44 = vadd.f32 1e-06, %v2710_v43  ;;  %2811 = vrot.lane.b32.xlu2 %v7367_v46, %s6290_s18 }
0x126e   :  { %6098 = vrcp.f32 %v2712_v44  ;;  %v2739_v45 = vand.u32 2147483648, %v2712_v44  ;;  %v2737_v29 = vand.u32 2147483647, %v2712_v44  ;;  %vm2733_vm5 = vweird.f32 %v2712_v44 }
0x126f   :  { %1932 = vrot.lane.b32.xlu0 %v7343_v42, %s6290_s18 }
0x1270   :  { %v2740_v61 = vor.u32 1.1754944e-38, %v2739_v45  ;;  %vm2738_vm9 = vcmp.eq.f32.partialorder %v2737_v29, 8.507059e+37 }
0x1274   :  { %v6099_v49 = vpop.eup %6098 }
0x1275   :  { %v2729_v18 = vmul.f32 %v6099_v49, %v2712_v44  ;;  %vm2734_vm4 = vweird.f32 %v6099_v49 }
0x1276   :  { %vm2735_vm8 = vmor %vm2733_vm5, %vm2734_vm4 }
0x1277   :  { %v2730_v33 = vsub.f32 1.0, %v2729_v18 }
0x1279   :  { %v2731_v47 = vmul.f32 %v6099_v49, %v2730_v33 }
0x127b   :  { %v2732_v11 = vadd.f32 %v6099_v49, %v2731_v47 }
0x127d   :  { %v2736_v37 = vsel %vm2735_vm8, %v6099_v49, %v2732_v11 }
0x127e   :  { %v2741_v10 = vsel %vm2738_vm9, %v2740_v61, %v2736_v37 }
0x127f   :  { %v2742_v40 = vmul.f32 %v2741_v10, %v2686_v26 }
0x1281   :  { %2747 = vrot.lane.b32.xlu1 %v2742_v40, %s6298_s13 }
0x12b4   :  { %v7350_v22 = vpop.xlane.xlu1 %1845 }
0x12b5   :  { %v1850_v51 = vmul.f32 0.03125, %v7350_v22 }
0x12b6   :  { %v1856_v52 = vpop.xlane.xlu2 %1855 }
0x12b7   :  { %v1860_v53 = vmul.f32 %v1850_v51, %v1850_v51 }
0x12b9   :  { %v1862_v2 = vmul.f32 32.0, %v1860_v53 }
0x12bb   :  { %v1864_v28 = vsub.f32 %v1856_v52, %v1862_v2 }
0x12bc   :  { %v7353_v35 = vpop.xlane.xlu1 %1848 }
0x12bd   :  { %v1866_v3 = vmax.f32 %v1864_v28, 0.0  ;;  %v1851_v14 = vmul.f32 0.03125, %v7353_v35  ;;  %v1870_v28 = vsub.f32 %v7299_v59, %v7350_v22  ;;  %v1871_v22 = vsub.f32 %v7306_v62, %v7353_v35 }
0x12be   :  { %v1859_v56 = vpop.xlane.xlu2 %1858 }
0x12bf   :  { %v1868_v36 = vmul.f32 0.032258064, %v1866_v3  ;;  %v1861_v41 = vmul.f32 %v1851_v14, %v1851_v14 }
0x12c1   :  { %6100 = vrsqrt.f32 %v1868_v36  ;;  %v1863_v32 = vmul.f32 32.0, %v1861_v41  ;;  %vm1879_vm10 = vcmp.eq.f32.partialorder %v1868_v36, inf  ;;  %v1882_v48 = vand.u32 2147483648, %v1868_v36 }
0x12c2   :  { %vm1881_vm11 = vcmp.eq.f32.partialorder %v1868_v36, 0.0 }
0x12c3   :  { %v1865_v0 = vsub.f32 %v1859_v56, %v1863_v32 }
0x12c5   :  { %v1867_v34 = vmax.f32 %v1865_v0, 0.0 }
0x12c6   :  { %v5781_v12 = vpop.permute.xlu2 %5780 }
0x12c7   :  { %v6101_v17 = vpop.eup %6100  ;;  %v5783_v19 = vunpack.i.h.bf16 %v5781_v12  ;;  %v5782_v5 = vunpack.i.l.bf16 %v5781_v12  ;;  %v1869_v16 = vmul.f32 0.032258064, %v1867_v34 }
0x12c8   :  { %v1873_v8 = vmul.f32 %v6101_v17, %v1868_v36 }
0x12c9   :  { %2832 = vmatpush.msrb.mxu3 %v5782_v5  ;;  %6102 = vrsqrt.f32 %v1869_v16  ;;  %vm1891_vm12 = vcmp.eq.f32.partialorder %v1869_v16, inf  ;;  %v1894_v45 = vand.u32 2147483648, %v1869_v16  ;;  %vm1893_vm15 = vcmp.eq.f32.partialorder %v1869_v16, 0.0 }
0x12ca   :  { %v1874_v60 = vmul.f32 %v6101_v17, %v1873_v8 }
0x12cb   :  { %2833 = vmatpush.msrb.mxu3 %v5783_v19 }
0x12cc   :  { %v1875_v20 = vmul.f32 0.5, %v1874_v60 }
0x12ce   :  { %v1876_v21 = vsub.f32 1.5, %v1875_v20 }
0x12cf   :  { %v6103_v23 = vpop.eup %6102 }
0x12d0   :  { %v1877_v9 = vmul.f32 %v6101_v17, %v1876_v21  ;;  %v1885_v6 = vmul.f32 %v6103_v23, %v1869_v16 }
0x12d1   :  { %v2746_v4 = vpop.permute.xlu0 %2745 }
0x12d2   :  { %v1878_v27 = vmul.f32 %v1877_v9, %v1868_v36  ;;  %v2751_v25 = vmul.f32 %v7359_v7, %v2746_v4  ;;  %v1886_v15 = vmul.f32 %v6103_v23, %v1885_v6  ;;  %v2812_v4 = vpop.permute.xlu2 %2811 }
0x12d4   :  { %v1880_v57 = vsel %vm1879_vm10, %v1868_v36, %v1878_v27  ;;  %v2753_v55 = vadd.f32 %v2751_v25, %v7037_v1  ;;  %v1887_v39 = vmul.f32 0.5, %v1886_v15 }
0x12d5   :  { %v1883_v38 = vsel %vm1881_vm11, %v1882_v48, %v1880_v57 }
0x12d6   :  { %2763 = vrot.lane.b32.xlu0 %v2753_v55, %s6298_s13  ;;  %v1896_v50 = vadd.f32 1e-06, %v1883_v38  ;;  %v1888_v13 = vsub.f32 1.5, %v1887_v39 }
0x12d8   :  { %6104 = vrcp.f32 %v1896_v50  ;;  %v1889_v43 = vmul.f32 %v6103_v23, %v1888_v13  ;;  %v1909_v10 = vand.u32 2147483648, %v1896_v50  ;;  %v1907_v51 = vand.u32 2147483647, %v1896_v50 }
0x12d9   :  { %v5786_v44 = vpop.permute.xlu0 %5785  ;;  %vm1903_vm2 = vweird.f32 %v1896_v50 }
0x12da   :  { %v5788_v49 = vunpack.i.h.bf16 %v5786_v44  ;;  %v5787_v18 = vunpack.i.l.bf16 %v5786_v44  ;;  %v1890_v33 = vmul.f32 %v1889_v43, %v1869_v16  ;;  %v1910_v53 = vor.u32 1.1754944e-38, %v1909_v10  ;;  %v6271_v43 = vld [vmem:[%s8301_s1] sm:$0xff] }
0x12db   :  { %vm1908_vm4 = vcmp.eq.f32.partialorder %v1907_v51, 8.507059e+37 }
0x12dc   :  { %2834 = vmatpush.msrb.mxu3 %v5787_v18  ;;  %v1892_v47 = vsel %vm1891_vm12, %v1869_v16, %v1890_v33 }
0x12dd   :  { %v1895_v11 = vsel %vm1893_vm15, %v1894_v45, %v1892_v47 }
0x12de   :  { %v6105_v29 = vpop.eup %6104  ;;  %2835 = vmatpush.msrb.mxu3 %v5788_v49  ;;  %v1897_v26 = vadd.f32 1e-06, %v1895_v11 }
0x12df   :  { %v1899_v61 = vmul.f32 %v6105_v29, %v1896_v50  ;;  %vm1904_vm1 = vweird.f32 %v6105_v29  ;;  %v6270_v50 = vld [vmem:[%s8301_s1 + $0x8] sm:$0xff] }
0x12e0   :  { %6106 = vrcp.f32 %v1897_v26  ;;  %vm1905_vm3 = vmor %vm1903_vm2, %vm1904_vm1  ;;  %v1924_v34 = vand.u32 2147483648, %v1897_v26  ;;  %v1922_v17 = vand.u32 2147483647, %v1897_v26  ;;  %vm1918_vm8 = vweird.f32 %v1897_v26 }
0x12e1   :  { %v1900_v37 = vsub.f32 1.0, %v1899_v61  ;;  %v7373_v41 = vpop.permute.xlu0 %1932 }
0x12e2   :  { %v1925_v59 = vor.u32 1.1754944e-38, %v1924_v34  ;;  %vm1923_vm10 = vcmp.eq.f32.partialorder %v1922_v17, 8.507059e+37 }
0x12e3   :  { %v1901_v40 = vmul.f32 %v6105_v29, %v1900_v37 }
0x12e5   :  { %v1902_v52 = vadd.f32 %v6105_v29, %v1901_v40 }
0x12e6   :  { %v6107_v2 = vpop.eup %6106 }
0x12e7   :  { %v1906_v3 = vsel %vm1905_vm3, %v6105_v29, %v1902_v52  ;;  %v1914_v56 = vmul.f32 %v6107_v2, %v1897_v26  ;;  %vm1919_vm5 = vweird.f32 %v6107_v2 }
0x12e8   :  { %v1911_v14 = vsel %vm1908_vm4, %v1910_v53, %v1906_v3  ;;  %vm1920_vm9 = vmor %vm1918_vm8, %vm1919_vm5 }
0x12e9   :  { %v1912_v36 = vmul.f32 %v1911_v14, %v1870_v28  ;;  %v1915_v32 = vsub.f32 1.0, %v1914_v56 }
0x12eb   :  { %v1929_v0 = vmul.f32 %v7343_v42, %v1912_v36  ;;  %v1916_v12 = vmul.f32 %v6107_v2, %v1915_v32 }
0x12ed   :  { %v7377_v19 = vadd.f32 %v7373_v41, %v1929_v0  ;;  %v1917_v5 = vadd.f32 %v6107_v2, %v1916_v12 }
0x12ef   :  { %5544 = vmatmul.msk.f32.vlgmr.msrb.gmra.mxu3 %vm19_vm0, %v7377_v19  ;;  %v1921_v8 = vsel %vm1920_vm9, %v6107_v2, %v1917_v5 }
0x12f0   :  { %v1926_v16 = vsel %vm1923_vm10, %v1925_v59, %v1921_v8 }
0x12f1   :  { %v1927_v60 = vmul.f32 %v1926_v16, %v1871_v22 }
0x12f3   :  { %v2748_v20 = vpop.permute.xlu1 %2747  ;;  %v1930_v23 = vmul.f32 %v7343_v42, %v1927_v60 }
0x12f4   :  { %v2752_v21 = vmul.f32 %v7359_v7, %v2748_v20 }
0x12f5   :  { %v7387_v6 = vadd.f32 %v7373_v41, %v1930_v23 }
0x12f6   :  { %v2754_v9 = vadd.f32 %v2752_v21, %v7037_v1 }
0x12f7   :  { %5545 = vmatmul.msk.f32.gmra.mxu3 %vm19_vm0, %v7387_v6 }
0x12f8   :  { %2765 = vrot.lane.b32.xlu1 %v2754_v9, %s6298_s13 }
0x1348   :  { %v2764_v62 = vpop.permute.xlu0 %2763 }
0x1349   :  { %5542 = vmatmul.msk.f32.vlgmr.msra.gmra.mxu1 %vm19_vm0, %v2764_v62 }
0x136a   :  { %v2766_v35 = vpop.permute.xlu1 %2765 }
0x136b   :  { %5543 = vmatmul.msk.f32.gmra.mxu1 %vm19_vm0, %v2766_v35 }
0x1372   :  { %v2837_v27 = vpop.f32.mrf.mxu3 }
0x1373   :  { %v7394_v7 = vadd.f32 %v2837_v27, %v2812_v4 }
0x1375   :  { %2975 = vrot.lane.b32.xlu1 %v7394_v7, %s6295_s6 }
0x137a   :  { %v2840_v1 = vpop.f32.mrf.mxu3 }
0x137b   :  { %v7398_v42 = vadd.f32 %v2840_v1, %v2812_v4 }
0x137d   :  { %2977 = vrot.lane.b32.xlu0 %v7398_v42, %s6295_s6  ;;  %5546 = vmatpush.xpose.msk.msrb.mxu2 %vm154_vm13, %v7398_v42 }
0x137e   :  { %3103 = vrot.lane.b32.xlu1 %v7398_v42, %s6296_s7 }
0x1381   :  { %5547 = vmatpush.xpose.msk.msrb.mxu2 %vm154_vm13, %v7394_v7 }
0x1385   :  { %3101 = vrot.lane.b32.xlu0 %v7394_v7, %s6296_s7 }
0x1386   :  { %3227 = vrot.lane.b32.xlu1 %v7394_v7, %s6293_s4 }
0x13c6   :  { %v2788_v25 = vpop.f32.mrf.mxu1 }
0x13c7   :  { %v2789_v48 = vadd.f32 %v7367_v46, %v2788_v25 }
0x13c9   :  { %2971 = vrot.lane.b32.xlu2 %v2789_v48, %s6295_s6  ;;  %5548 = vmatmul.msk.f32.vlgmr.msrb.gmra.mxu2 %vm154_vm13, %v2789_v48 }
0x13d1   :  { %3229 = vrot.lane.b32.xlu2 %v7398_v42, %s6293_s4 }
0x13d9   :  { %3097 = vrot.lane.b32.xlu2 %v2789_v48, %s6296_s7 }
0x13e7   :  { %v2976_v15 = vpop.permute.xlu1 %2975 }
0x13e8   :  { %v2791_v57 = vpop.f32.mrf.mxu1 }
0x13e9   :  { %v2792_v55 = vadd.f32 %v7367_v46, %v2791_v57 }
0x13eb   :  { %3225 = vrot.lane.b32.xlu2 %v2792_v55, %s6293_s4  ;;  %2973 = vrot.lane.b32.xlu0 %v2792_v55, %s6295_s6 }
0x13ec   :  { %3099 = vrot.lane.b32.xlu1 %v2792_v55, %s6296_s7  ;;  %5549 = vmatmul.msk.f32.gmra.mxu2 %vm154_vm13, %v2792_v55 }
0x13ef   :  { %v2978_v39 = vpop.permute.xlu0 %2977 }
0x13f0   :  { %v3104_v38 = vpop.permute.xlu1 %3103  ;;  %5552 = vmatpush.xpose.msk.msrb.mxu1 %vm154_vm13, %v2978_v39  ;;  %v5789_v39 = vpack.i.bf16 %v7394_v7, %v7398_v42 }
0x13f1   :  { %5558 = vmatpush.xpose.msk.msra.mxu2 %vm154_vm13, %v3104_v38 }
0x13f3   :  { %3223 = vrot.lane.b32.xlu0 %v2789_v48, %s6293_s4 }
0x13f4   :  { %2882 = vrot.lane.b32.xlu1 %v6270_v50, %s6290_s18  ;;  %5553 = vmatpush.xpose.msk.msrb.mxu1 %vm154_vm13, %v2976_v15 }
0x13f7   :  { %v3102_v13 = vpop.permute.xlu0 %3101 }
0x13f8   :  { %5559 = vmatpush.xpose.msk.msra.mxu2 %vm154_vm13, %v3102_v13  ;;  %v3228_v18 = vpop.permute.xlu1 %3227 }
0x13fb   :  { %2880 = vrot.lane.b32.xlu0 %v6271_v43, %s6290_s18 }
0x1423   :  { %v2972_v44 = vpop.permute.xlu2 %2971 }
0x1424   :  { %5554 = vmatmul.msk.f32.vlgmr.msrb.gmra.mxu1 %vm154_vm13, %v2972_v44 }
0x142b   :  { %v3230_v49 = vpop.permute.xlu2 %3229 }
0x142c   :  { %5564 = vmatpush.xpose.msk.msra.mxu1 %vm154_vm13, %v3230_v49 }
0x1430   :  { %5565 = vmatpush.xpose.msk.msra.mxu1 %vm154_vm13, %v3228_v18 }
0x1433   :  { %v3098_v33 = vpop.permute.xlu2 %3097 }
0x1434   :  { %5560 = vmatmul.msk.f32.vlgmr.msra.gmra.mxu2 %vm154_vm13, %v3098_v33 }
0x1445   :  { %v3226_v26 = vpop.permute.xlu2 %3225 }
0x144c   :  { %v2872_v11 = vpop.f32.mrf.mxu2 }
0x144d   :  { %v2878_v61 = vmul.f32 0.35355338, %v2872_v11 }
0x145d   :  { %v2974_v45 = vpop.permute.xlu0 %2973 }
0x145e   :  { %v3100_v47 = vpop.permute.xlu1 %3099  ;;  %5555 = vmatmul.msk.f32.gmra.mxu1 %vm154_vm13, %v2974_v45 }
0x145f   :  { %5561 = vmatmul.msk.f32.gmra.mxu2 %vm154_vm13, %v3100_v47 }
0x1465   :  { %v3224_v29 = vpop.permute.xlu0 %3223 }
0x1466   :  { %5566 = vmatmul.msk.f32.vlgmr.msra.gmra.mxu1 %vm154_vm13, %v3224_v29  ;;  %v7450_v14 = vpop.permute.xlu1 %2882 }
0x146d   :  { %v7443_v37 = vpop.permute.xlu0 %2880 }
0x146e   :  { %5567 = vmatmul.msk.f32.gmra.mxu1 %vm154_vm13, %v3226_v26  ;;  %v2886_v10 = vadd.f32 %v7443_v37, %v2878_v61 }
0x146f   :  { %v2875_v53 = vpop.f32.mrf.mxu2 }
0x1470   :  { %v2888_v40 = vsel %vm190_vm14, %v2886_v10, -inf  ;;  %v2879_v28 = vmul.f32 0.35355338, %v2875_v53 }
0x1471   :  { %2889 = vmax.xlane.f32.xlu0 %v2888_v40 }
0x1472   :  { %v2887_v56 = vadd.f32 %v7450_v14, %v2879_v28 }
0x1474   :  { %v2891_v36 = vsel %vm190_vm14, %v2887_v56, -inf }
0x14a1   :  { %v3004_v51 = vpop.f32.mrf.mxu1 }
0x14a2   :  { %v3010_v52 = vmul.f32 0.35355338, %v3004_v51 }
0x14a4   :  { %v3012_v2 = vadd.f32 %v3010_v52, %v7443_v37 }
0x14a6   :  { %v3014_v3 = vsel %vm190_vm14, %v3012_v2, -inf }
0x14a7   :  { %3015 = vmax.xlane.f32.xlu2 %v3014_v3 }
0x14af   :  { %2892 = vmax.xlane.f32.xlu2 %v2891_v36 }
0x14b7   :  { %v3130_v32 = vpop.f32.mrf.mxu2 }
0x14b8   :  { %v3136_v0 = vmul.f32 0.35355338, %v3130_v32 }
0x14ba   :  { %v3138_v34 = vadd.f32 %v3136_v0, %v7443_v37 }
0x14bc   :  { %v3140_v12 = vsel %vm190_vm14, %v3138_v34, -inf }
0x14bd   :  { %3141 = vmax.xlane.f32.xlu1 %v3140_v12 }
0x14db   :  { %v3007_v17 = vpop.f32.mrf.mxu1 }
0x14dc   :  { %v3011_v5 = vmul.f32 0.35355338, %v3007_v17 }
0x14de   :  { %v3013_v59 = vadd.f32 %v3011_v5, %v7450_v14 }
0x14e0   :  { %v3017_v22 = vsel %vm190_vm14, %v3013_v59, -inf }
0x14e1   :  { %3018 = vmax.xlane.f32.xlu1 %v3017_v22 }
0x14e2   :  { %v3133_v8 = vpop.f32.mrf.mxu2 }
0x14e3   :  { %v3137_v16 = vmul.f32 0.35355338, %v3133_v8  ;;  %v3256_v60 = vpop.f32.mrf.mxu1 }
0x14e4   :  { %v2890_v20 = vpop.xlane.xlu0 %2889  ;;  %v3262_v23 = vmul.f32 0.35355338, %v3256_v60 }
0x14e5   :  { %v3139_v21 = vadd.f32 %v3137_v16, %v7450_v14  ;;  %v2894_v9 = vsub.f32 %v2886_v10, %v2890_v20 }
0x14e6   :  { %v3264_v35 = vadd.f32 %v3262_v23, %v7443_v37 }
0x14e7   :  { %v3143_v62 = vsel %vm190_vm14, %v3139_v21, -inf  ;;  %v2896_v4 = vmul.f32 1.442695, %v2894_v9 }
0x14e8   :  { %3144 = vmax.xlane.f32.xlu0 %v3143_v62  ;;  %v3266_v48 = vsel %vm190_vm14, %v3264_v35, -inf }
0x14e9   :  { %6108 = vpow2.f32 %v2896_v4 }
0x14eb   :  { %v3259_v27 = vpop.f32.mrf.mxu1 }
0x14ec   :  { %v3263_v1 = vmul.f32 0.35355338, %v3259_v27 }
0x14ee   :  { %v3265_v25 = vadd.f32 %v3263_v1, %v7450_v14 }
0x14ef   :  { %v7464_v57 = vpop.eup %6108 }
0x14f0   :  { %3267 = vmax.xlane.f32.xlu0 %v3266_v48  ;;  %v3269_v15 = vsel %vm190_vm14, %v3265_v25, -inf  ;;  %v2900_v55 = vsel %vm190_vm14, %v7464_v57, 0.0 }
0x14f1   :  { %3270 = vmax.xlane.f32.xlu2 %v3269_v15 }
0x14f9   :  { %2901 = vadd.xlane.f32.xlu2 %v2900_v55 }
0x1504   :  { %5790 = vrot.lane.b32.xlu0 %v5789_v39, %s6291_s29 }
0x151a   :  { %v3016_v38 = vpop.xlane.xlu2 %3015 }
0x151b   :  { %v3020_v43 = vsub.f32 %v3012_v2, %v3016_v38 }
0x151d   :  { %v3022_v49 = vmul.f32 1.442695, %v3020_v43 }
0x1522   :  { %v2893_v50 = vpop.xlane.xlu2 %2892 }
0x1523   :  { %v2895_v13 = vsub.f32 %v2887_v56, %v2893_v50 }
0x1525   :  { %v2898_v44 = vmul.f32 1.442695, %v2895_v13 }
0x1527   :  { %6110 = vpow2.f32 %v2898_v44 }
0x1528   :  { %6112 = vpow2.f32 %v3022_v49 }
0x152d   :  { %v7471_v18 = vpop.eup %6110 }
0x152e   :  { %v2903_v33 = vsel %vm190_vm14, %v7471_v18, 0.0  ;;  %v6113_v29 = vpop.eup %6112 }
0x152f   :  { %2904 = vadd.xlane.f32.xlu1 %v2903_v33  ;;  %v3026_v42 = vsel %vm190_vm14, %v6113_v29, 0.0 }
0x1530   :  { %v3142_v45 = vpop.xlane.xlu1 %3141 }
0x1531   :  { %v3146_v47 = vsub.f32 %v3138_v34, %v3142_v45 }
0x1533   :  { %v3148_v7 = vmul.f32 1.442695, %v3146_v47 }
0x1535   :  { %6114 = vpow2.f32 %v3148_v7 }
0x1537   :  { %3027 = vadd.xlane.f32.xlu1 %v3026_v42 }
0x153b   :  { %v7476_v11 = vpop.eup %6114 }
0x153c   :  { %v3152_v61 = vsel %vm190_vm14, %v7476_v11, 0.0 }
0x153f   :  { %3153 = vadd.xlane.f32.xlu1 %v3152_v61 }
0x1554   :  { %v3019_v26 = vpop.xlane.xlu1 %3018 }
0x1555   :  { %v3021_v10 = vsub.f32 %v3013_v59, %v3019_v26 }
0x1557   :  { %v3024_v40 = vmul.f32 1.442695, %v3021_v10 }
0x1559   :  { %6116 = vpow2.f32 %v3024_v40 }
0x155b   :  { %v3145_v51 = vpop.xlane.xlu0 %3144 }
0x155c   :  { %v3147_v52 = vsub.f32 %v3139_v21, %v3145_v51 }
0x155e   :  { %v3150_v53 = vmul.f32 1.442695, %v3147_v52 }
0x155f   :  { %v7480_v2 = vpop.eup %6116 }
0x1560   :  { %6118 = vpow2.f32 %v3150_v53  ;;  %v3029_v28 = vsel %vm190_vm14, %v7480_v2, 0.0 }
0x1561   :  { %3030 = vadd.xlane.f32.xlu0 %v3029_v28 }
0x1563   :  { %v3268_v3 = vpop.xlane.xlu0 %3267 }
0x1564   :  { %v3272_v56 = vsub.f32 %v3264_v35, %v3268_v3  ;;  %v3271_v36 = vpop.xlane.xlu2 %3270 }
0x1565   :  { %v3273_v32 = vsub.f32 %v3265_v25, %v3271_v36 }
0x1566   :  { %v7484_v0 = vpop.eup %6118  ;;  %v3274_v34 = vmul.f32 1.442695, %v3272_v56 }
0x1567   :  { %v3276_v12 = vmul.f32 1.442695, %v3273_v32  ;;  %v3155_v17 = vsel %vm190_vm14, %v7484_v0, 0.0 }
0x1568   :  { %6120 = vpow2.f32 %v3274_v34  ;;  %3156 = vadd.xlane.f32.xlu1 %v3155_v17 }
0x1569   :  { %6122 = vpow2.f32 %v3276_v12 }
0x156e   :  { %v7488_v5 = vpop.eup %6120 }
0x156f   :  { %v7490_v59 = vpop.eup %6122  ;;  %v3278_v22 = vsel %vm190_vm14, %v7488_v5, 0.0 }
0x1570   :  { %3279 = vadd.xlane.f32.xlu2 %v3278_v22  ;;  %v3281_v8 = vsel %vm190_vm14, %v7490_v59, 0.0 }
0x1571   :  { %3282 = vadd.xlane.f32.xlu1 %v3281_v8 }
0x1575   :  { %5800 = vrot.lane.b32.xlu0 %v5789_v39, %s6292_s30 }
0x1576   :  { %v5791_v16 = vpop.permute.xlu0 %5790 }
0x1577   :  { %v5792_v60 = vunpack.i.l.bf16 %v5791_v16  ;;  %v5793_v20 = vunpack.i.h.bf16 %v5791_v16 }
0x1579   :  { %3088 = vmatpush.msra.mxu3 %v5792_v60 }
0x157b   :  { %3089 = vmatpush.msra.mxu3 %v5793_v20 }
0x1588   :  { %5795 = vrot.lane.b32.xlu2 %v5789_v39, %s6290_s18 }
0x158a   :  { %5805 = vrot.lane.b32.xlu1 %v5789_v39, %s6294_s5  ;;  %v2902_v39 = vpop.xlane.xlu2 %2901 }
0x158b   :  { %vm2911_vm4 = vweird.f32 %v2902_v39  ;;  %v2917_v53 = vand.u32 2147483648, %v2902_v39  ;;  %v2915_v56 = vand.u32 2147483647, %v2902_v39 }
0x158d   :  { %v2918_v8 = vor.u32 1.1754944e-38, %v2917_v53 }
0x1590   :  { %5810 = vrot.lane.b32.xlu2 %v7332_v58, %s6301_s16 }
0x1598   :  { %5815 = vrot.lane.b32.xlu2 %v7334_v30, %s6301_s16 }
0x15a2   :  { %v7499_v21 = vpop.xlane.xlu1 %2904 }
0x15aa   :  { %v3028_v23 = vpop.xlane.xlu1 %3027 }
0x15ab   :  { %6124 = vrcp.f32 %v3028_v23  ;;  %v3043_v4 = vand.u32 2147483648, %v3028_v23  ;;  %v3041_v1 = vand.u32 2147483647, %v3028_v23  ;;  %vm3037_vm12 = vweird.f32 %v3028_v23 }
0x15ac   :  { %6126 = vrcp.f32 %v2902_v39 }
0x15ad   :  { %v3044_v48 = vor.u32 1.1754944e-38, %v3043_v4  ;;  %vm3042_vm1 = vcmp.eq.f32.partialorder %v3041_v1, 8.507059e+37 }
0x15b1   :  { %v6125_v9 = vpop.eup %6124 }
0x15b2   :  { %v3033_v62 = vmul.f32 %v6125_v9, %v3028_v23  ;;  %vm3038_vm11 = vweird.f32 %v6125_v9  ;;  %v6127_v50 = vpop.eup %6126  ;;  %v7502_v13 = vpop.xlane.xlu1 %3153 }
0x15b3   :  { %vm3039_vm15 = vmor %vm3037_vm12, %vm3038_vm11  ;;  %v2907_v44 = vmul.f32 %v6127_v50, %v2902_v39  ;;  %vm2912_vm2 = vweird.f32 %v6127_v50  ;;  %vm2916_vm11 = vcmp.eq.f32.partialorder %v2915_v56, 8.507059e+37 }
0x15b4   :  { %v3034_v35 = vsub.f32 1.0, %v3033_v62  ;;  %vm7514_vm5 = vmor %vm2911_vm4, %vm2912_vm2 }
0x15b5   :  { %v2908_v49 = vsub.f32 1.0, %v2907_v44 }
0x15b6   :  { %v3035_v27 = vmul.f32 %v6125_v9, %v3034_v35 }
0x15b8   :  { %v3036_v25 = vadd.f32 %v6125_v9, %v3035_v27 }
0x15ba   :  { %v3040_v15 = vsel %vm3039_vm15, %v6125_v9, %v3036_v25 }
0x15bb   :  { %v3045_v55 = vsel %vm3042_vm1, %v3044_v48, %v3040_v15  ;;  %vm2926_vm1 = vweird.f32 %v7499_v21 }
0x15bc   :  { %v3046_v38 = vmul.f32 %v6113_v29, %v3045_v55  ;;  %v2909_v29 = vmul.f32 %v6127_v50, %v2908_v49 }
0x15be   :  { %5556 = vmatmul.msk.f32.vlgmr.msra.gmra.mxu3 %vm190_vm14, %v3046_v38  ;;  %v2910_v40 = vadd.f32 %v6127_v50, %v2909_v29  ;;  %v2930_v38 = vand.u32 2147483647, %v7499_v21 }
0x15c0   :  { %v2914_v12 = vsel %vm7514_vm5, %v6127_v50, %v2910_v40  ;;  %vm2931_vm4 = vcmp.eq.f32.partialorder %v2930_v38, 8.507059e+37 }
0x15c1   :  { %v2919_v9 = vsel %vm2916_vm11, %v2918_v8, %v2914_v12 }
0x15c2   :  { %v2920_v55 = vmul.f32 %v7464_v57, %v2919_v9 }
0x15d4   :  { %v3031_v43 = vpop.xlane.xlu0 %3030 }
0x15d5   :  { %6128 = vrcp.f32 %v3031_v43  ;;  %v3058_v10 = vand.u32 2147483648, %v3031_v43  ;;  %v3056_v52 = vand.u32 2147483647, %v3031_v43  ;;  %vm3052_vm8 = vweird.f32 %v3031_v43 }
0x15d6   :  { %6130 = vrcp.f32 %v7499_v21 }
0x15d7   :  { %6132 = vrcp.f32 %v7502_v13  ;;  %v3059_v34 = vor.u32 1.1754944e-38, %v3058_v10  ;;  %vm3057_vm10 = vcmp.eq.f32.partialorder %v3056_v52, 8.507059e+37 }
0x15db   :  { %v6129_v33 = vpop.eup %6128  ;;  %v7505_v47 = vpop.xlane.xlu1 %3156 }
0x15dc   :  { %v3048_v45 = vmul.f32 %v6129_v33, %v3031_v43  ;;  %v7507_v7 = vpop.eup %6130  ;;  %vm3053_vm3 = vweird.f32 %v6129_v33  ;;  %v2932_v43 = vand.u32 2147483648, %v7499_v21 }
0x15dd   :  { %v2922_v26 = vmul.f32 %v7507_v7, %v7499_v21  ;;  %vm3054_vm9 = vmor %vm3052_vm8, %vm3053_vm3  ;;  %v7524_v22 = vpop.eup %6132  ;;  %vm2927_vm12 = vweird.f32 %v7507_v7 }
0x15de   :  { %v3049_v42 = vsub.f32 1.0, %v3048_v45  ;;  %v3159_v4 = vmul.f32 %v7524_v22, %v7502_v13  ;;  %vm7548_vm2 = vmor %vm2926_vm1, %vm2927_vm12  ;;  %v2933_v53 = vor.u32 1.1754944e-38, %v2932_v43  ;;  %vm3164_vm11 = vweird.f32 %v7524_v22 }
0x15df   :  { %v2923_v32 = vsub.f32 1.0, %v2922_v26 }
0x15e0   :  { %v3050_v61 = vmul.f32 %v6129_v33, %v3049_v42  ;;  %v3160_v44 = vsub.f32 1.0, %v3159_v4 }
0x15e1   :  { %v2924_v62 = vmul.f32 %v7507_v7, %v2923_v32 }
0x15e2   :  { %v3051_v51 = vadd.f32 %v6129_v33, %v3050_v61 }
0x15e3   :  { %v7512_v28 = vpop.xlane.xlu2 %3279  ;;  %v2925_v50 = vadd.f32 %v7507_v7, %v2924_v62 }
0x15e4   :  { %6134 = vrcp.f32 %v7512_v28  ;;  %v7519_v36 = vpop.xlane.xlu1 %3282  ;;  %v3055_v17 = vsel %vm3054_vm9, %v6129_v33, %v3051_v51  ;;  %v3295_v49 = vand.u32 2147483648, %v7512_v28  ;;  %v3293_v57 = vand.u32 2147483647, %v7512_v28 }
0x15e5   :  { %6136 = vrcp.f32 %v7519_v36  ;;  %v3060_v60 = vsel %vm3057_vm10, %v3059_v34, %v3055_v17  ;;  %vm3289_vm3 = vweird.f32 %v7512_v28  ;;  %v2929_v40 = vsel %vm7548_vm2, %v7507_v7, %v2925_v50 }
0x15e6   :  { %v3061_v23 = vmul.f32 %v7480_v2, %v3060_v60  ;;  %6138 = vrcp.f32 %v7505_v47  ;;  %v3161_v51 = vmul.f32 %v7524_v22, %v3160_v44  ;;  %v3296_v52 = vor.u32 1.1754944e-38, %v3295_v49 }
0x15e7   :  { %v5801_v16 = vpop.permute.xlu0 %5800  ;;  %vm3294_vm8 = vcmp.eq.f32.partialorder %v3293_v57, 8.507059e+37  ;;  %v2934_v34 = vsel %vm2931_vm4, %v2933_v53, %v2929_v40  ;;  %vm3304_vm10 = vweird.f32 %v7519_v36  ;;  %v3308_v12 = vand.u32 2147483647, %v7519_v36 }
0x15e8   :  { %v5802_v20 = vunpack.i.l.bf16 %v5801_v16  ;;  %5557 = vmatmul.msk.f32.gmra.mxu3 %vm190_vm14, %v3061_v23  ;;  %v5803_v25 = vunpack.i.h.bf16 %v5801_v16  ;;  %v3162_v17 = vadd.f32 %v7524_v22, %v3161_v51  ;;  %v3169_v16 = vand.u32 2147483648, %v7502_v13 }
0x15e9   :  { %v2935_v60 = vmul.f32 %v7471_v18, %v2934_v34  ;;  %vm3309_vm2 = vcmp.eq.f32.partialorder %v3308_v12, 8.507059e+37 }
0x15ea   :  { %v6135_v35 = vpop.eup %6134  ;;  %3340 = vmatpush.msrb.mxu3 %v5802_v20 }
0x15eb   :  { %v7532_v27 = vpop.eup %6136  ;;  %v3285_v1 = vmul.f32 %v6135_v35, %v7512_v28  ;;  %v5796_v48 = vpop.permute.xlu2 %5795  ;;  %vm3290_vm15 = vweird.f32 %v6135_v35  ;;  %v3310_v28 = vand.u32 2147483648, %v7519_v36 }
0x15ec   :  { %v3300_v2 = vmul.f32 %v7532_v27, %v7519_v36  ;;  %v5797_v15 = vunpack.i.l.bf16 %v5796_v48  ;;  %3341 = vmatpush.msrb.mxu3 %v5803_v25  ;;  %v5798_v45 = vunpack.i.h.bf16 %v5796_v48  ;;  %v7543_v29 = vpop.eup %6138  ;;  %vm3291_vm5 = vmor %vm3289_vm3, %vm3290_vm15  ;;  %vm3305_vm9 = vweird.f32 %v7532_v27 }
0x15ed   :  { %v3286_v39 = vsub.f32 1.0, %v3285_v1  ;;  %v3174_v21 = vmul.f32 %v7543_v29, %v7505_v47  ;;  %vm3306_vm12 = vmor %vm3304_vm10, %vm3305_vm9  ;;  %vm3163_vm15 = vweird.f32 %v7502_v13  ;;  %v3311_v23 = vor.u32 1.1754944e-38, %v3310_v28 }
0x15ee   :  { %v3301_v33 = vsub.f32 1.0, %v3300_v2  ;;  %2962 = vmatpush.msrb.mxu0 %v5797_v15  ;;  %vm3165_vm1 = vmor %vm3163_vm15, %vm3164_vm11  ;;  %vm3179_vm4 = vweird.f32 %v7543_v29  ;;  %v3182_v2 = vand.u32 2147483647, %v7505_v47 }
0x15ef   :  { %v3287_v42 = vmul.f32 %v6135_v35, %v3286_v39  ;;  %v3175_v8 = vsub.f32 1.0, %v3174_v21  ;;  %v3166_v36 = vsel %vm3165_vm1, %v7524_v22, %v3162_v17 }
0x15f0   :  { %v3302_v61 = vmul.f32 %v7532_v27, %v3301_v33  ;;  %2963 = vmatpush.msrb.mxu0 %v5798_v45  ;;  %vm3183_vm9 = vcmp.eq.f32.partialorder %v3182_v2, 8.507059e+37 }
0x15f1   :  { %v3288_v10 = vadd.f32 %v6135_v35, %v3287_v42  ;;  %5550 = vmatmul.msk.f32.vlgmr.msrb.gmra.mxu0 %vm190_vm14, %v2920_v55  ;;  %v3176_v9 = vmul.f32 %v7543_v29, %v3175_v8 }
0x15f2   :  { %v3303_v56 = vadd.f32 %v7532_v27, %v3302_v61 }
0x15f3   :  { %v3292_v3 = vsel %vm3291_vm5, %v6135_v35, %v3288_v10  ;;  %v3170_v35 = vor.u32 1.1754944e-38, %v3169_v16  ;;  %v3177_v25 = vadd.f32 %v7543_v29, %v3176_v9  ;;  %vm3178_vm5 = vweird.f32 %v7505_v47  ;;  %v5811_v58 = vpop.permute.xlu2 %5810 }
0x15f4   :  { %v3297_v32 = vsel %vm3294_vm8, %v3296_v52, %v3292_v3  ;;  %v3307_v20 = vsel %vm3306_vm12, %v7532_v27, %v3303_v56  ;;  %vm3180_vm8 = vmor %vm3178_vm5, %vm3179_vm4  ;;  %v5813_v30 = vunpack.i.h.bf16 %v5811_v58  ;;  %v5812_v33 = vunpack.i.l.bf16 %v5811_v58 }
0x15f5   :  { %v3298_v7 = vmul.f32 %v7488_v5, %v3297_v32  ;;  %v3167_v5 = vand.u32 2147483647, %v7502_v13  ;;  %v3312_v62 = vsel %vm3309_vm2, %v3311_v23, %v3307_v20  ;;  %v3184_v13 = vand.u32 2147483648, %v7505_v47 }
0x15f6   :  { %v3313_v27 = vmul.f32 %v7490_v59, %v3312_v62  ;;  %v3181_v59 = vsel %vm3180_vm8, %v7543_v29, %v3177_v25  ;;  %3412 = vmatpush.msrb.mxu2 %v5812_v33  ;;  %v7640_v25 = vld [vmem:[%s8300_s2 + $0xf8] sm:$0xff]  ;;  %v7668_v33 = vld [vmem:[%s8300_s2 + $0xe0] sm:$0xff] }
0x15f7   :  { %5568 = vmatmul.msk.f32.vlgmr.msrb.gmra.mxu3 %vm190_vm14, %v3298_v7  ;;  %vm3168_vm3 = vcmp.eq.f32.partialorder %v3167_v5, 8.507059e+37  ;;  %v3185_v15 = vor.u32 1.1754944e-38, %v3184_v13  ;;  %v7645_v13 = vld [vmem:[%s8300_s2 + $0xf0] sm:$0xff] }
0x15f8   :  { %v3171_v18 = vsel %vm3168_vm3, %v3170_v35, %v3166_v36  ;;  %3413 = vmatpush.msrb.mxu2 %v5813_v30  ;;  %v7628_v36 = vld [vmem:[%s8300_s2 + $0x16d] ss:$0 sm:$0xff] }
0x15f9   :  { %5551 = vmatmul.msk.f32.gmra.mxu0 %vm190_vm14, %v2935_v60  ;;  %v3172_v22 = vmul.f32 %v7476_v11, %v3171_v18  ;;  %v3186_v55 = vsel %vm3183_vm9, %v3185_v15, %v3181_v59  ;;  %v5909_v15 = vpack.i.bf16 %v7645_v13, %v7640_v25 }
0x15fa   :  { %v3187_v38 = vmul.f32 %v7484_v0, %v3186_v55 }
0x15fb   :  { %v5816_v45 = vpop.permute.xlu2 %5815 }
0x15fc   :  { %v5806_v4 = vpop.permute.xlu1 %5805  ;;  %v5818_v29 = vunpack.i.h.bf16 %v5816_v45  ;;  %v5817_v42 = vunpack.i.l.bf16 %v5816_v45 }
0x15fd   :  { %v5807_v1 = vunpack.i.l.bf16 %v5806_v4  ;;  %v5808_v48 = vunpack.i.h.bf16 %v5806_v4 }
0x15fe   :  { %3414 = vmatpush.msrb.mxu2 %v5817_v42  ;;  %v6274_v42 = vld [vmem:[%s8300_s2 + $0x118] sm:$0xff] }
0x15ff   :  { %5569 = vmatmul.msk.f32.gmra.mxu3 %vm190_vm14, %v3313_v27  ;;  %3214 = vmatpush.msra.mxu0 %v5807_v1 }
0x1600   :  { %3415 = vmatpush.msrb.mxu2 %v5818_v29 }
0x1601   :  { %3215 = vmatpush.msra.mxu0 %v5808_v48  ;;  %v6272_v48 = vld [vmem:[%s8300_s2 + $0x138] sm:$0xff] }
0x1602   :  { %5562 = vmatmul.msk.f32.vlgmr.msra.gmra.mxu0 %vm190_vm14, %v3172_v22  ;;  %v6273_v22 = vld [vmem:[%s8300_s2 + $0x130] sm:$0xff] }
0x1603   :  { %v5819_v2 = vpack.i.bf16 %v6273_v22, %v6272_v48  ;;  %3543 = vmatpush.msrb.mxu0 %v7640_v25 }
0x1605   :  { %3544 = vmatpush.msrb.mxu0 %v7645_v13 }
0x160a   :  { %5563 = vmatmul.msk.f32.gmra.mxu0 %vm190_vm14, %v3187_v38  ;;  %v7660_v38 = vld [vmem:[%s8300_s2 + $0xe8] sm:$0xff] }
0x160b   :  { %3545 = vmatpush.msrb.mxu0 %v7660_v38  ;;  %v5914_v29 = vpack.i.bf16 %v7668_v33, %v7660_v38 }
0x160d   :  { %3546 = vmatpush.msrb.mxu0 %v7668_v33 }
0x1641   :  { %v3091_v39 = vpop.f32.mrf.mxu3 }
0x1642   :  { %3351 = vrot.lane.b32.xlu0 %v3091_v39, %s6303_s19 }
0x166b   :  { %v3094_v47 = vpop.f32.mrf.mxu3 }
0x166e   :  { %v2965_v11 = vpop.f32.mrf.mxu0 }
0x1676   :  { %v2968_v50 = vpop.f32.mrf.mxu0 }
0x167a   :  { %v3343_v43 = vpop.f32.mrf.mxu3 }
0x167b   :  { %3367 = vrot.lane.b32.xlu2 %v3343_v43, %s6304_s20 }
0x167f   :  { %v3217_v44 = vpop.f32.mrf.mxu0 }
0x1680   :  { %3359 = vrot.lane.b32.xlu0 %v3217_v44, %s6302_s17 }
0x1682   :  { %v3346_v0 = vpop.f32.mrf.mxu3 }
0x1683   :  { %3369 = vrot.lane.b32.xlu2 %v3346_v0, %s6304_s20 }
0x1687   :  { %v3220_v49 = vpop.f32.mrf.mxu0 }
0x1688   :  { %3353 = vrot.lane.b32.xlu0 %v3094_v47, %s6303_s19  ;;  %3361 = vrot.lane.b32.xlu1 %v3220_v49, %s6302_s17 }
0x1690   :  { %3391 = vrot.lane.b32.xlu0 %v7367_v46, %s6301_s16 }
0x16b4   :  { %v3352_v57 = vpop.permute.xlu0 %3351 }
0x16b5   :  { %v3373_v61 = vsel %vm154_vm13, %v2965_v11, %v3352_v57  ;;  %v6275_v57 = vld [vmem:[%s8300_s2 + $0x110] sm:$0xff] }
0x16d5   :  { %v3368_v26 = vpop.permute.xlu2 %3367 }
0x16dd   :  { %v3370_v53 = vpop.permute.xlu2 %3369 }
0x16f2   :  { %v3360_v10 = vpop.permute.xlu0 %3359 }
0x16f3   :  { %v3375_v40 = vsel %vm190_vm14, %v3373_v61, %v3360_v10  ;;  %v5829_v61 = vpack.i.bf16 %v6275_v57, %v6274_v42  ;;  %v6277_v10 = vld [vmem:[%s8300_s2 + $0x100] sm:$0xff] }
0x16f4   :  { %v3377_v51 = vsel %vm680_vm6, %v3375_v40, %v3368_v26  ;;  %v6276_v26 = vld [vmem:[%s8300_s2 + $0x108] sm:$0xff] }
0x16f5   :  { %5570 = vmatmul.msk.f32.vlgmr.msrb.gmra.mxu2 %vm19_vm0, %v3377_v51  ;;  %v5834_v40 = vpack.i.bf16 %v6277_v10, %v6276_v26 }
0x16fa   :  { %v3354_v46 = vpop.permute.xlu0 %3353  ;;  %v3362_v21 = vpop.permute.xlu1 %3361 }
0x16fb   :  { %v3374_v52 = vsel %vm154_vm13, %v2968_v50, %v3354_v46 }
0x16fc   :  { %v3376_v3 = vsel %vm190_vm14, %v3374_v52, %v3362_v21 }
0x16fd   :  { %v3378_v56 = vsel %vm680_vm6, %v3376_v3, %v3370_v53 }
0x16fe   :  { %5571 = vmatmul.msk.f32.gmra.mxu2 %vm19_vm0, %v3378_v56 }
0x1702   :  { %v3392_v28 = vpop.permute.xlu0 %3391 }
0x1778   :  { %v3417_v32 = vpop.f32.mrf.mxu2 }
0x1779   :  { %v3418_v34 = vadd.f32 %v3417_v32, %v3392_v28 }
0x177b   :  { %v7610_v7 = vadd.f32 %v3418_v34, %v7274_v24 }
0x177d   :  { %v3426_v12 = vsel %vm19_vm0, %v7610_v7, 0.0  ;;  %v3434_v17 = vmul.f32 %v7610_v7, %v7610_v7 }
0x177e   :  { %3427 = vadd.xlane.f32.xlu1 %v3426_v12 }
0x177f   :  { %v3436_v8 = vsel %vm19_vm0, %v3434_v17, 0.0 }
0x1780   :  { %3437 = vadd.xlane.f32.xlu2 %v3436_v8  ;;  %v6278_v8 = vld [vmem:[%s8300_s2 + $0x128] sm:$0xff] }
0x1781   :  { %v3420_v16 = vpop.f32.mrf.mxu2 }
0x1782   :  { %v3421_v60 = vadd.f32 %v3420_v16, %v3392_v28  ;;  %v6279_v16 = vld [vmem:[%s8300_s2 + $0x120] sm:$0xff] }
0x1784   :  { %v7618_v20 = vadd.f32 %v3421_v60, %v7286_v54  ;;  %v5824_v60 = vpack.i.bf16 %v6279_v16, %v6278_v8 }
0x1786   :  { %v3429_v5 = vsel %vm19_vm0, %v7618_v20, 0.0  ;;  %v3435_v24 = vmul.f32 %v7618_v20, %v7618_v20 }
0x1787   :  { %3430 = vadd.xlane.f32.xlu0 %v3429_v5 }
0x1788   :  { %v3439_v23 = vsel %vm19_vm0, %v3435_v24, 0.0 }
0x1789   :  { %3440 = vadd.xlane.f32.xlu2 %v3439_v23 }
0x1797   :  { %3514 = vrot.lane.b32.xlu1 %v7628_v36, %s6290_s18 }
0x179b   :  { %5820 = vrot.lane.b32.xlu0 %v5819_v2, %s6298_s13 }
0x179f   :  { %5835 = vrot.lane.b32.xlu1 %v5834_v40, %s6298_s13 }
0x17a1   :  { %5825 = vrot.lane.b32.xlu2 %v5824_v60, %s6298_s13 }
0x17a3   :  { %5830 = vrot.lane.b32.xlu0 %v5829_v61, %s6298_s13 }
0x17f1   :  { %v7632_v54 = vpop.xlane.xlu1 %3427 }
0x17f2   :  { %v3432_v9 = vmul.f32 0.03125, %v7632_v54 }
0x17f3   :  { %v3438_v35 = vpop.xlane.xlu2 %3437 }
0x17f4   :  { %v3442_v62 = vmul.f32 %v3432_v9, %v3432_v9 }
0x17f6   :  { %v3444_v4 = vmul.f32 32.0, %v3442_v62 }
0x17f8   :  { %v3446_v18 = vsub.f32 %v3438_v35, %v3444_v4 }
0x17fa   :  { %v3448_v1 = vmax.f32 %v3446_v18, 0.0  ;;  %v7635_v27 = vpop.xlane.xlu0 %3430 }
0x17fb   :  { %v3433_v59 = vmul.f32 0.03125, %v7635_v27  ;;  %v3453_v61 = vsub.f32 %v7618_v20, %v7635_v27 }
0x17fc   :  { %v3450_v55 = vmul.f32 0.032258064, %v3448_v1  ;;  %v3441_v47 = vpop.xlane.xlu2 %3440 }
0x17fd   :  { %v3443_v39 = vmul.f32 %v3433_v59, %v3433_v59 }
0x17fe   :  { %6140 = vrsqrt.f32 %v3450_v55  ;;  %vm3461_vm10 = vcmp.eq.f32.partialorder %v3450_v55, inf  ;;  %v3464_v53 = vand.u32 2147483648, %v3450_v55  ;;  %vm3463_vm11 = vcmp.eq.f32.partialorder %v3450_v55, 0.0 }
0x17ff   :  { %v3445_v11 = vmul.f32 32.0, %v3443_v39  ;;  %v3452_v39 = vsub.f32 %v7610_v7, %v7632_v54 }
0x1801   :  { %v3447_v50 = vsub.f32 %v3441_v47, %v3445_v11 }
0x1803   :  { %v3449_v43 = vmax.f32 %v3447_v50, 0.0 }
0x1804   :  { %v6141_v44 = vpop.eup %6140  ;;  %v5826_v27 = vpop.permute.xlu2 %5825 }
0x1805   :  { %v3455_v0 = vmul.f32 %v6141_v44, %v3450_v55  ;;  %v3451_v49 = vmul.f32 0.032258064, %v3449_v43 }
0x1807   :  { %v3456_v58 = vmul.f32 %v6141_v44, %v3455_v0  ;;  %6142 = vrsqrt.f32 %v3451_v49  ;;  %vm3473_vm12 = vcmp.eq.f32.partialorder %v3451_v49, inf  ;;  %v3476_v24 = vand.u32 2147483648, %v3451_v49 }
0x1808   :  { %vm3475_vm15 = vcmp.eq.f32.partialorder %v3451_v49, 0.0 }
0x1809   :  { %v3457_v30 = vmul.f32 0.5, %v3456_v58 }
0x180b   :  { %v3458_v45 = vsub.f32 1.5, %v3457_v30 }
0x180d   :  { %v6143_v51 = vpop.eup %6142  ;;  %v3459_v46 = vmul.f32 %v6141_v44, %v3458_v45  ;;  %v7696_v44 = vpop.permute.xlu1 %3514 }
0x180e   :  { %v3467_v21 = vmul.f32 %v6143_v51, %v3451_v49 }
0x180f   :  { %v3460_v52 = vmul.f32 %v3459_v46, %v3450_v55 }
0x1810   :  { %v3468_v3 = vmul.f32 %v6143_v51, %v3467_v21  ;;  %v5950_v21 = vld [vmem:[%s8300_s2 + $0x168] ss:$0 sm:$0xff] }
0x1811   :  { %v3462_v56 = vsel %vm3461_vm10, %v3450_v55, %v3460_v52  ;;  %3581 = vrot.lane.b32.xlu0 %v5950_v21, %s6298_s13  ;;  %v5821_v52 = vpop.permute.xlu0 %5820 }
0x1812   :  { %v3469_v28 = vmul.f32 0.5, %v3468_v3  ;;  %v3465_v32 = vsel %vm3463_vm11, %v3464_v53, %v3462_v56  ;;  %v5823_v53 = vunpack.i.h.bf16 %v5821_v52  ;;  %v5822_v3 = vunpack.i.l.bf16 %v5821_v52 }
0x1813   :  { %v3478_v34 = vadd.f32 1e-06, %v3465_v32  ;;  %v5828_v56 = vunpack.i.h.bf16 %v5826_v27 }
0x1814   :  { %v3470_v12 = vsub.f32 1.5, %v3469_v28  ;;  %3598 = vmatpush.msrb.mxu1 %v5822_v3  ;;  %v5827_v28 = vunpack.i.l.bf16 %v5826_v27 }
0x1815   :  { %6144 = vrcp.f32 %v3478_v34  ;;  %v3491_v1 = vand.u32 2147483648, %v3478_v34  ;;  %v3489_v22 = vand.u32 2147483647, %v3478_v34  ;;  %vm3485_vm2 = vweird.f32 %v3478_v34 }
0x1816   :  { %v3471_v17 = vmul.f32 %v6143_v51, %v3470_v12  ;;  %3599 = vmatpush.msrb.mxu1 %v5823_v53 }
0x1817   :  { %v3492_v59 = vor.u32 1.1754944e-38, %v3491_v1  ;;  %vm3490_vm4 = vcmp.eq.f32.partialorder %v3489_v22, 8.507059e+37 }
0x1818   :  { %v3472_v5 = vmul.f32 %v3471_v17, %v3451_v49  ;;  %3600 = vmatpush.msrb.mxu1 %v5827_v28 }
0x1819   :  { %v5831_v32 = vpop.permute.xlu0 %5830 }
0x181a   :  { %v3474_v23 = vsel %vm3473_vm12, %v3451_v49, %v3472_v5  ;;  %3601 = vmatpush.msrb.mxu1 %v5828_v56  ;;  %v5833_v12 = vunpack.i.h.bf16 %v5831_v32  ;;  %v5832_v17 = vunpack.i.l.bf16 %v5831_v32 }
0x181b   :  { %v6145_v9 = vpop.eup %6144  ;;  %v3477_v62 = vsel %vm3475_vm15, %v3476_v24, %v3474_v23 }
0x181c   :  { %v3481_v35 = vmul.f32 %v6145_v9, %v3478_v34  ;;  %v3479_v4 = vadd.f32 1e-06, %v3477_v62  ;;  %vm3486_vm1 = vweird.f32 %v6145_v9  ;;  %v5836_v34 = vpop.permute.xlu1 %5835  ;;  %3602 = vmatpush.msrb.mxu1 %v5832_v17 }
0x181d   :  { %vm3487_vm3 = vmor %vm3485_vm2, %vm3486_vm1  ;;  %v5837_v8 = vunpack.i.l.bf16 %v5836_v34  ;;  %v5838_v16 = vunpack.i.h.bf16 %v5836_v34 }
0x181e   :  { %v3482_v18 = vsub.f32 1.0, %v3481_v35  ;;  %6146 = vrcp.f32 %v3479_v4  ;;  %v3506_v58 = vand.u32 2147483648, %v3479_v4  ;;  %v3504_v45 = vand.u32 2147483647, %v3479_v4  ;;  %3603 = vmatpush.msrb.mxu1 %v5833_v12 }
0x181f   :  { %vm3500_vm8 = vweird.f32 %v3479_v4 }
0x1820   :  { %v3483_v48 = vmul.f32 %v6145_v9, %v3482_v18  ;;  %v3507_v54 = vor.u32 1.1754944e-38, %v3506_v58  ;;  %vm3505_vm10 = vcmp.eq.f32.partialorder %v3504_v45, 8.507059e+37  ;;  %3604 = vmatpush.msrb.mxu1 %v5837_v8 }
0x1822   :  { %v3484_v2 = vadd.f32 %v6145_v9, %v3483_v48  ;;  %3605 = vmatpush.msrb.mxu1 %v5838_v16 }
0x1824   :  { %v6147_v55 = vpop.eup %6146  ;;  %v3488_v11 = vsel %vm3487_vm3, %v6145_v9, %v3484_v2 }
0x1825   :  { %v3493_v47 = vsel %vm3490_vm4, %v3492_v59, %v3488_v11  ;;  %v3496_v50 = vmul.f32 %v6147_v55, %v3479_v4  ;;  %vm3501_vm5 = vweird.f32 %v6147_v55 }
0x1826   :  { %v3494_v43 = vmul.f32 %v3493_v47, %v3452_v39  ;;  %vm3502_vm9 = vmor %vm3500_vm8, %vm3501_vm5 }
0x1827   :  { %v3497_v0 = vsub.f32 1.0, %v3496_v50 }
0x1828   :  { %v3511_v49 = vmul.f32 %v7628_v36, %v3494_v43 }
0x1829   :  { %v3498_v30 = vmul.f32 %v6147_v55, %v3497_v0 }
0x182a   :  { %v3517_v42 = vadd.f32 %v7696_v44, %v3511_v49 }
0x182b   :  { %v3499_v57 = vadd.f32 %v6147_v55, %v3498_v30 }
0x182c   :  { %5572 = vmatmul.msk.f32.vlgmr.msrb.gmra.mxu0 %vm19_vm0, %v3517_v42 }
0x182d   :  { %v3503_v26 = vsel %vm3502_vm9, %v6147_v55, %v3499_v57 }
0x182e   :  { %v3508_v10 = vsel %vm3505_vm10, %v3507_v54, %v3503_v26 }
0x182f   :  { %v3509_v40 = vmul.f32 %v3508_v10, %v3453_v61 }
0x1831   :  { %v3512_v51 = vmul.f32 %v7628_v36, %v3509_v40 }
0x1833   :  { %v3518_v46 = vadd.f32 %v7696_v44, %v3512_v51 }
0x1835   :  { %5573 = vmatmul.msk.f32.gmra.mxu0 %vm19_vm0, %v3518_v46 }
0x1883   :  { %v3582_v35 = vpop.permute.xlu0 %3581 }
0x18a9   :  { %v3548_v60 = vpop.f32.mrf.mxu0 }
0x18aa   :  { %v3549_v5 = vadd.f32 %v5950_v21, %v3548_v60 }
0x18ac   :  { %v3554_v24 = vmax.f32 %v3549_v5, 0.0 }
0x18ae   :  { %5574 = vmatmul.msk.f32.vlgmr.msrb.gmra.mxu1 %vm883_vm7, %v3554_v24 }
0x18b2   :  { %v3551_v23 = vpop.f32.mrf.mxu0 }
0x18b3   :  { %v3552_v9 = vadd.f32 %v5950_v21, %v3551_v23 }
0x18b5   :  { %v3555_v62 = vmax.f32 %v3552_v9, 0.0 }
0x18b7   :  { %5575 = vmatmul.msk.f32.gmra.mxu1 %vm883_vm7, %v3555_v62 }
0x192b   :  { %v3607_v4 = vpop.f32.mrf.mxu1 }
0x192c   :  { %v3608_v18 = vadd.f32 %v3607_v4, %v3582_v35 }
0x192e   :  { %v7713_v1 = vadd.f32 %v3608_v18, %v7610_v7 }
0x1930   :  { %v3615_v48 = vsel %vm19_vm0, %v7713_v1, 0.0  ;;  %v3623_v22 = vmul.f32 %v7713_v1, %v7713_v1 }
0x1931   :  { %3616 = vadd.xlane.f32.xlu2 %v3615_v48 }
0x1932   :  { %v3625_v2 = vsel %vm19_vm0, %v3623_v22, 0.0 }
0x1933   :  { %3626 = vadd.xlane.f32.xlu1 %v3625_v2 }
0x1934   :  { %v3610_v59 = vpop.f32.mrf.mxu1 }
0x1935   :  { %v3611_v55 = vadd.f32 %v3610_v59, %v3582_v35 }
0x1937   :  { %v7721_v39 = vadd.f32 %v3611_v55, %v7618_v20 }
0x1939   :  { %v3618_v11 = vsel %vm19_vm0, %v7721_v39, 0.0  ;;  %v3624_v7 = vmul.f32 %v7721_v39, %v7721_v39 }
0x193a   :  { %3619 = vadd.xlane.f32.xlu0 %v3618_v11 }
0x193b   :  { %v3628_v47 = vsel %vm19_vm0, %v3624_v7, 0.0 }
0x193c   :  { %3629 = vadd.xlane.f32.xlu2 %v3628_v47 }
0x19a4   :  { %v7728_v50 = vpop.xlane.xlu2 %3616 }
0x19a5   :  { %v3621_v43 = vmul.f32 0.03125, %v7728_v50 }
0x19a6   :  { %v3627_v58 = vpop.xlane.xlu1 %3626 }
0x19a7   :  { %v3631_v0 = vmul.f32 %v3621_v43, %v3621_v43  ;;  %v3641_v43 = vsub.f32 %v7713_v1, %v7728_v50 }
0x19a9   :  { %v3633_v49 = vmul.f32 32.0, %v3631_v0 }
0x19ab   :  { %v3635_v30 = vsub.f32 %v3627_v58, %v3633_v49 }
0x19ad   :  { %v3637_v20 = vmax.f32 %v3635_v30, 0.0  ;;  %v7731_v45 = vpop.xlane.xlu0 %3619 }
0x19ae   :  { %v3622_v42 = vmul.f32 0.03125, %v7731_v45 }
0x19af   :  { %v3639_v57 = vmul.f32 0.032258064, %v3637_v20  ;;  %v3630_v26 = vpop.xlane.xlu2 %3629 }
0x19b0   :  { %v3632_v54 = vmul.f32 %v3622_v42, %v3622_v42 }
0x19b1   :  { %6148 = vrsqrt.f32 %v3639_v57  ;;  %vm3650_vm11 = vcmp.eq.f32.partialorder %v3639_v57, inf  ;;  %v3653_v34 = vand.u32 2147483648, %v3639_v57  ;;  %vm3652_vm12 = vcmp.eq.f32.partialorder %v3639_v57, 0.0 }
0x19b2   :  { %v3634_v61 = vmul.f32 32.0, %v3632_v54 }
0x19b4   :  { %v3636_v10 = vsub.f32 %v3630_v26, %v3634_v61 }
0x19b6   :  { %v3638_v40 = vmax.f32 %v3636_v10, 0.0  ;;  %v3642_v10 = vsub.f32 %v7721_v39, %v7731_v45 }
0x19b7   :  { %v6149_v51 = vpop.eup %6148 }
0x19b8   :  { %v3644_v46 = vmul.f32 %v6149_v51, %v3639_v57  ;;  %v3640_v21 = vmul.f32 0.032258064, %v3638_v40 }
0x19ba   :  { %v3645_v52 = vmul.f32 %v6149_v51, %v3644_v46  ;;  %6150 = vrsqrt.f32 %v3640_v21  ;;  %vm3662_vm15 = vcmp.eq.f32.partialorder %v3640_v21, inf  ;;  %v3665_v9 = vand.u32 2147483648, %v3640_v21  ;;  %v7743_v46 = vld [vmem:[%s8300_s2 + $0x78] sm:$0xff] }
0x19bb   :  { %vm3664_vm1 = vcmp.eq.f32.partialorder %v3640_v21, 0.0  ;;  %3739 = vmatpush.msra.mxu3 %v7743_v46 }
0x19bc   :  { %v3646_v53 = vmul.f32 0.5, %v3645_v52  ;;  %v7756_v52 = vld [vmem:[%s8300_s2 + $0x68] sm:$0xff] }
0x19be   :  { %v3647_v3 = vsub.f32 1.5, %v3646_v53  ;;  %v7761_v53 = vld [vmem:[%s8300_s2 + $0x60] sm:$0xff] }
0x19c0   :  { %v6151_v27 = vpop.eup %6150  ;;  %v3648_v56 = vmul.f32 %v6149_v51, %v3647_v3  ;;  %v5864_v3 = vpack.i.bf16 %v7761_v53, %v7756_v52 }
0x19c1   :  { %v3656_v28 = vmul.f32 %v6151_v27, %v3640_v21 }
0x19c2   :  { %v3649_v32 = vmul.f32 %v3648_v56, %v3639_v57 }
0x19c3   :  { %v3657_v12 = vmul.f32 %v6151_v27, %v3656_v28 }
0x19c4   :  { %v3651_v17 = vsel %vm3650_vm11, %v3639_v57, %v3649_v32 }
0x19c5   :  { %v3658_v8 = vmul.f32 0.5, %v3657_v12  ;;  %v3654_v16 = vsel %vm3652_vm12, %v3653_v34, %v3651_v17 }
0x19c6   :  { %v3667_v60 = vadd.f32 1e-06, %v3654_v16  ;;  %v7779_v16 = vld [vmem:[%s8300_s2 + $0x163] ss:$0 sm:$0xff] }
0x19c7   :  { %v3659_v5 = vsub.f32 1.5, %v3658_v8 }
0x19c8   :  { %6152 = vrcp.f32 %v3667_v60  ;;  %v3680_v2 = vand.u32 2147483648, %v3667_v60  ;;  %v3678_v55 = vand.u32 2147483647, %v3667_v60  ;;  %vm3674_vm3 = vweird.f32 %v3667_v60 }
0x19c9   :  { %v3660_v24 = vmul.f32 %v6151_v27, %v3659_v5 }
0x19ca   :  { %v3681_v7 = vor.u32 1.1754944e-38, %v3680_v2  ;;  %vm3679_vm5 = vcmp.eq.f32.partialorder %v3678_v55, 8.507059e+37 }
0x19cb   :  { %v3661_v23 = vmul.f32 %v3660_v24, %v3640_v21 }
0x19cd   :  { %v3663_v62 = vsel %vm3662_vm15, %v3640_v21, %v3661_v23  ;;  %v7748_v21 = vld [vmem:[%s8300_s2 + $0x70] sm:$0xff] }
0x19ce   :  { %v6153_v35 = vpop.eup %6152  ;;  %v3666_v4 = vsel %vm3664_vm1, %v3665_v9, %v3663_v62  ;;  %v5859_v45 = vpack.i.bf16 %v7748_v21, %v7743_v46  ;;  %3740 = vmatpush.msra.mxu3 %v7748_v21 }
0x19cf   :  { %v3670_v18 = vmul.f32 %v6153_v35, %v3667_v60  ;;  %v3668_v48 = vadd.f32 1e-06, %v3666_v4  ;;  %vm3675_vm2 = vweird.f32 %v6153_v35 }
0x19d0   :  { %vm3676_vm4 = vmor %vm3674_vm3, %vm3675_vm2  ;;  %3741 = vmatpush.msra.mxu3 %v7756_v52 }
0x19d1   :  { %v3671_v22 = vsub.f32 1.0, %v3670_v18  ;;  %6154 = vrcp.f32 %v3668_v48  ;;  %v3695_v42 = vand.u32 2147483648, %v3668_v48  ;;  %v3693_v54 = vand.u32 2147483647, %v3668_v48 }
0x19d2   :  { %vm3689_vm9 = vweird.f32 %v3668_v48  ;;  %3742 = vmatpush.msra.mxu3 %v7761_v53 }
0x19d3   :  { %v3672_v59 = vmul.f32 %v6153_v35, %v3671_v22  ;;  %v3696_v26 = vor.u32 1.1754944e-38, %v3695_v42  ;;  %vm3694_vm11 = vcmp.eq.f32.partialorder %v3693_v54, 8.507059e+37 }
0x19d5   :  { %v3673_v11 = vadd.f32 %v6153_v35, %v3672_v59 }
0x19d7   :  { %v6155_v47 = vpop.eup %6154  ;;  %v3677_v0 = vsel %vm3676_vm4, %v6153_v35, %v3673_v11 }
0x19d8   :  { %v3682_v49 = vsel %vm3679_vm5, %v3681_v7, %v3677_v0  ;;  %v3685_v58 = vmul.f32 %v6155_v47, %v3668_v48  ;;  %vm3690_vm8 = vweird.f32 %v6155_v47 }
0x19d9   :  { %v3683_v30 = vmul.f32 %v3682_v49, %v3641_v43  ;;  %vm3691_vm10 = vmor %vm3689_vm9, %vm3690_vm8 }
0x19da   :  { %v3686_v20 = vsub.f32 1.0, %v3685_v58 }
0x19db   :  { %3701 = vrot.lane.b32.xlu1 %v3683_v30, %s6298_s13 }
0x19dc   :  { %v3687_v57 = vmul.f32 %v6155_v47, %v3686_v20 }
0x19de   :  { %v3688_v61 = vadd.f32 %v6155_v47, %v3687_v57 }
0x19e0   :  { %v3692_v50 = vsel %vm3691_vm10, %v6155_v47, %v3688_v61 }
0x19e1   :  { %v3697_v40 = vsel %vm3694_vm11, %v3696_v26, %v3692_v50 }
0x19e2   :  { %v3698_v51 = vmul.f32 %v3697_v40, %v3642_v10 }
0x19e4   :  { %3703 = vrot.lane.b32.xlu0 %v3698_v51, %s6298_s13 }
0x1a4d   :  { %v3702_v27 = vpop.permute.xlu1 %3701 }
0x1a4e   :  { %v3707_v56 = vmul.f32 %v7628_v36, %v3702_v27 }
0x1a50   :  { %v3709_v28 = vadd.f32 %v3707_v56, %v7696_v44 }
0x1a52   :  { %3719 = vrot.lane.b32.xlu2 %v3709_v28, %s6298_s13 }
0x1a56   :  { %v3704_v32 = vpop.permute.xlu0 %3703 }
0x1a57   :  { %v3708_v34 = vmul.f32 %v7628_v36, %v3704_v32 }
0x1a59   :  { %v3710_v12 = vadd.f32 %v3708_v34, %v7696_v44 }
0x1a5b   :  { %3721 = vrot.lane.b32.xlu0 %v3710_v12, %s6298_s13 }
0x1aac   :  { %v3720_v17 = vpop.permute.xlu2 %3719 }
0x1aad   :  { %5576 = vmatmul.msk.f32.vlgmr.msra.gmra.mxu3 %vm19_vm0, %v3720_v17 }
0x1acd   :  { %v3722_v8 = vpop.permute.xlu0 %3721 }
0x1ace   :  { %5577 = vmatmul.msk.f32.gmra.mxu3 %vm19_vm0, %v3722_v8 }
0x1b30   :  { %v3744_v60 = vpop.f32.mrf.mxu3 }
0x1b31   :  { %v7782_v5 = vadd.f32 %v7779_v16, %v3744_v60 }
0x1b33   :  { %3752 = vrot.lane.b32.xlu0 %v7782_v5, %s6290_s18 }
0x1b3b   :  { %4004 = vrot.lane.b32.xlu0 %v7782_v5, %s6294_s5 }
0x1b51   :  { %v3747_v36 = vpop.f32.mrf.mxu3 }
0x1b52   :  { %v7789_v44 = vadd.f32 %v7779_v16, %v3747_v36 }
0x1b54   :  { %3880 = vrot.lane.b32.xlu2 %v7789_v44, %s6291_s29  ;;  %3754 = vrot.lane.b32.xlu1 %v7789_v44, %s6290_s18 }
0x1b55   :  { %3876 = vrot.lane.b32.xlu0 %v7789_v44, %s6295_s6 }
0x1b5c   :  { %3874 = vrot.lane.b32.xlu2 %v7782_v5, %s6295_s6  ;;  %3878 = vrot.lane.b32.xlu1 %v7782_v5, %s6291_s29 }
0x1b5d   :  { %4126 = vrot.lane.b32.xlu0 %v7782_v5, %s6293_s4 }
0x1b64   :  { %4132 = vrot.lane.b32.xlu2 %v7789_v44, %s6292_s30  ;;  %4006 = vrot.lane.b32.xlu1 %v7789_v44, %s6294_s5 }
0x1b6c   :  { %4000 = vrot.lane.b32.xlu2 %v7782_v5, %s6296_s7  ;;  %4130 = vrot.lane.b32.xlu1 %v7782_v5, %s6292_s30 }
0x1b74   :  { %4128 = vrot.lane.b32.xlu2 %v7789_v44, %s6293_s4  ;;  %4002 = vrot.lane.b32.xlu1 %v7789_v44, %s6296_s7 }
0x1ba5   :  { %v3753_v23 = vpop.permute.xlu0 %3752 }
0x1bad   :  { %v4005_v4 = vpop.permute.xlu0 %4004 }
0x1bae   :  { %v3881_v24 = vpop.permute.xlu2 %3880 }
0x1baf   :  { %5584 = vmatpush.xpose.msk.msra.mxu1 %vm154_vm13, %v3881_v24 }
0x1bb6   :  { %v3875_v9 = vpop.permute.xlu2 %3874 }
0x1bbe   :  { %v4133_v18 = vpop.permute.xlu2 %4132 }
0x1bc6   :  { %v3755_v62 = vpop.permute.xlu1 %3754  ;;  %v4001_v2 = vpop.permute.xlu2 %4000 }
0x1bc7   :  { %5578 = vmatpush.xpose.msk.msra.mxu2 %vm154_vm13, %v3755_v62  ;;  %v3877_v22 = vpop.permute.xlu0 %3876 }
0x1bcb   :  { %5579 = vmatpush.xpose.msk.msra.mxu2 %vm154_vm13, %v3753_v23 }
0x1bce   :  { %v3879_v35 = vpop.permute.xlu1 %3878  ;;  %5580 = vmatmul.msk.f32.vlgmr.msra.gmra.mxu2 %vm154_vm13, %v7782_v5  ;;  %v4129_v7 = vpop.permute.xlu2 %4128 }
0x1bcf   :  { %5585 = vmatpush.xpose.msk.msra.mxu1 %vm154_vm13, %v3879_v35  ;;  %v4127_v55 = vpop.permute.xlu0 %4126 }
0x1bd2   :  { %5586 = vmatmul.msk.f32.vlgmr.msra.gmra.mxu1 %vm154_vm13, %v3875_v9 }
0x1bd3   :  { %5596 = vmatpush.xpose.msk.msrb.mxu1 %vm154_vm13, %v4133_v18 }
0x1bd6   :  { %v4007_v48 = vpop.permute.xlu1 %4006  ;;  %5581 = vmatmul.msk.f32.gmra.mxu2 %vm154_vm13, %v7789_v44 }
0x1bd7   :  { %5590 = vmatpush.xpose.msk.msrb.mxu2 %vm154_vm13, %v4007_v48 }
0x1bda   :  { %5587 = vmatmul.msk.f32.gmra.mxu1 %vm154_vm13, %v3877_v22 }
0x1bdb   :  { %5591 = vmatpush.xpose.msk.msrb.mxu2 %vm154_vm13, %v4005_v4 }
0x1bde   :  { %v4131_v59 = vpop.permute.xlu1 %4130  ;;  %5592 = vmatmul.msk.f32.vlgmr.msrb.gmra.mxu2 %vm154_vm13, %v4001_v2 }
0x1bdf   :  { %5597 = vmatpush.xpose.msk.msrb.mxu1 %vm154_vm13, %v4131_v59 }
0x1be2   :  { %5598 = vmatmul.msk.f32.vlgmr.msrb.gmra.mxu1 %vm154_vm13, %v4127_v55 }
0x1be6   :  { %v4003_v11 = vpop.permute.xlu1 %4002 }
0x1be7   :  { %5593 = vmatmul.msk.f32.gmra.mxu2 %vm154_vm13, %v4003_v11 }
0x1bea   :  { %5599 = vmatmul.msk.f32.gmra.mxu1 %vm154_vm13, %v4129_v7 }
0x1c4f   :  { %v3907_v47 = vpop.f32.mrf.mxu1 }
0x1c50   :  { %v3913_v43 = vmul.f32 0.35355338, %v3907_v47 }
0x1c51   :  { %v3781_v0 = vpop.f32.mrf.mxu2 }
0x1c52   :  { %v3915_v49 = vadd.f32 %v3913_v43, %v7158_v63  ;;  %v3787_v58 = vmul.f32 0.35355338, %v3781_v0 }
0x1c54   :  { %v3789_v30 = vadd.f32 %v3787_v58, %v7158_v63  ;;  %v3917_v20 = vsel %vm190_vm14, %v3915_v49, -inf }
0x1c55   :  { %3918 = vmax.xlane.f32.xlu0 %v3917_v20 }
0x1c56   :  { %v3791_v42 = vsel %vm190_vm14, %v3789_v30, -inf }
0x1c57   :  { %3792 = vmax.xlane.f32.xlu1 %v3791_v42  ;;  %v3910_v57 = vpop.f32.mrf.mxu1 }
0x1c58   :  { %v3914_v54 = vmul.f32 0.35355338, %v3910_v57 }
0x1c59   :  { %v3784_v61 = vpop.f32.mrf.mxu2 }
0x1c5a   :  { %v3916_v26 = vadd.f32 %v3914_v54, %v7162_v31  ;;  %v3788_v10 = vmul.f32 0.35355338, %v3784_v61 }
0x1c5c   :  { %v3790_v50 = vadd.f32 %v3788_v10, %v7162_v31  ;;  %v3920_v40 = vsel %vm190_vm14, %v3916_v26, -inf }
0x1c5d   :  { %3921 = vmax.xlane.f32.xlu2 %v3920_v40 }
0x1c5e   :  { %v3794_v51 = vsel %vm190_vm14, %v3790_v50, -inf }
0x1c5f   :  { %3795 = vmax.xlane.f32.xlu0 %v3794_v51  ;;  %v4159_v27 = vpop.f32.mrf.mxu1 }
0x1c60   :  { %v4165_v56 = vmul.f32 0.35355338, %v4159_v27 }
0x1c61   :  { %v4033_v28 = vpop.f32.mrf.mxu2 }
0x1c62   :  { %v4167_v32 = vadd.f32 %v4165_v56, %v7158_v63  ;;  %v4039_v34 = vmul.f32 0.35355338, %v4033_v28 }
0x1c64   :  { %v4041_v12 = vadd.f32 %v4039_v34, %v7158_v63  ;;  %v4169_v17 = vsel %vm190_vm14, %v4167_v32, -inf  ;;  %v7851_v63 = vpack.i.bf16 %v7782_v5, %v7789_v44 }
0x1c65   :  { %4170 = vmax.xlane.f32.xlu1 %v4169_v17 }
0x1c66   :  { %v4043_v8 = vsel %vm190_vm14, %v4041_v12, -inf }
0x1c67   :  { %4044 = vmax.xlane.f32.xlu2 %v4043_v8  ;;  %v4162_v60 = vpop.f32.mrf.mxu1 }
0x1c68   :  { %v4166_v36 = vmul.f32 0.35355338, %v4162_v60 }
0x1c6a   :  { %v4168_v24 = vadd.f32 %v4166_v36, %v7162_v31  ;;  %v4036_v23 = vpop.f32.mrf.mxu2 }
0x1c6b   :  { %v4040_v9 = vmul.f32 0.35355338, %v4036_v23 }
0x1c6c   :  { %v4172_v62 = vsel %vm190_vm14, %v4168_v24, -inf }
0x1c6d   :  { %v4042_v35 = vadd.f32 %v4040_v9, %v7162_v31  ;;  %4173 = vmax.xlane.f32.xlu0 %v4172_v62 }
0x1c6f   :  { %v4046_v4 = vsel %vm190_vm14, %v4042_v35, -inf }
0x1c70   :  { %4047 = vmax.xlane.f32.xlu1 %v4046_v4 }
0x1c81   :  { %5845 = vrot.lane.b32.xlu0 %v7851_v63, %s6298_s13 }
0x1c89   :  { %5840 = vrot.lane.b32.xlu1 %v7851_v63, %s6297_s12 }
0x1cc8   :  { %v3919_v18 = vpop.xlane.xlu0 %3918 }
0x1cc9   :  { %v3923_v48 = vsub.f32 %v3915_v49, %v3919_v18 }
0x1cca   :  { %v3793_v22 = vpop.xlane.xlu1 %3792 }
0x1ccb   :  { %v3925_v2 = vmul.f32 1.442695, %v3923_v48  ;;  %v3797_v59 = vsub.f32 %v3789_v30, %v3793_v22 }
0x1ccd   :  { %6156 = vpow2.f32 %v3925_v2  ;;  %v3799_v31 = vmul.f32 1.442695, %v3797_v59 }
0x1ccf   :  { %6158 = vpow2.f32 %v3799_v31 }
0x1cd0   :  { %v3922_v55 = vpop.xlane.xlu2 %3921 }
0x1cd1   :  { %v3924_v11 = vsub.f32 %v3916_v26, %v3922_v55 }
0x1cd2   :  { %v3796_v7 = vpop.xlane.xlu0 %3795 }
0x1cd3   :  { %v7857_v47 = vpop.eup %6156  ;;  %v3927_v5 = vmul.f32 1.442695, %v3924_v11  ;;  %v3798_v44 = vsub.f32 %v3790_v50, %v3796_v7 }
0x1cd4   :  { %v3929_v43 = vsel %vm190_vm14, %v7857_v47, 0.0 }
0x1cd5   :  { %v7861_v0 = vpop.eup %6158  ;;  %6160 = vpow2.f32 %v3927_v5  ;;  %v3801_v49 = vmul.f32 1.442695, %v3798_v44  ;;  %3930 = vadd.xlane.f32.xlu2 %v3929_v43 }
0x1cd6   :  { %v3803_v58 = vsel %vm190_vm14, %v7861_v0, 0.0 }
0x1cd7   :  { %6162 = vpow2.f32 %v3801_v49  ;;  %3804 = vadd.xlane.f32.xlu0 %v3803_v58 }
0x1cd8   :  { %v4171_v30 = vpop.xlane.xlu1 %4170 }
0x1cd9   :  { %v4175_v20 = vsub.f32 %v4167_v32, %v4171_v30 }
0x1cda   :  { %v4045_v42 = vpop.xlane.xlu2 %4044 }
0x1cdb   :  { %v7865_v57 = vpop.eup %6160  ;;  %v4177_v54 = vmul.f32 1.442695, %v4175_v20  ;;  %v4049_v61 = vsub.f32 %v4041_v12, %v4045_v42 }
0x1cdc   :  { %v3932_v26 = vsel %vm190_vm14, %v7865_v57, 0.0 }
0x1cdd   :  { %v7869_v10 = vpop.eup %6162  ;;  %6164 = vpow2.f32 %v4177_v54  ;;  %v4051_v50 = vmul.f32 1.442695, %v4049_v61  ;;  %3933 = vadd.xlane.f32.xlu1 %v3932_v26 }
0x1cde   :  { %v3806_v40 = vsel %vm190_vm14, %v7869_v10, 0.0 }
0x1cdf   :  { %6166 = vpow2.f32 %v4051_v50  ;;  %3807 = vadd.xlane.f32.xlu2 %v3806_v40 }
0x1ce0   :  { %v4174_v51 = vpop.xlane.xlu0 %4173 }
0x1ce1   :  { %v4176_v27 = vsub.f32 %v4168_v24, %v4174_v51 }
0x1ce3   :  { %v7873_v56 = vpop.eup %6164  ;;  %v4179_v28 = vmul.f32 1.442695, %v4176_v27  ;;  %v4048_v32 = vpop.xlane.xlu1 %4047 }
0x1ce4   :  { %v4181_v34 = vsel %vm190_vm14, %v7873_v56, 0.0  ;;  %v4050_v17 = vsub.f32 %v4042_v35, %v4048_v32 }
0x1ce5   :  { %v7877_v12 = vpop.eup %6166  ;;  %6168 = vpow2.f32 %v4179_v28  ;;  %4182 = vadd.xlane.f32.xlu0 %v4181_v34 }
0x1ce6   :  { %v4055_v8 = vsel %vm190_vm14, %v7877_v12, 0.0  ;;  %v4053_v60 = vmul.f32 1.442695, %v4050_v17 }
0x1ce7   :  { %4056 = vadd.xlane.f32.xlu2 %v4055_v8 }
0x1ce8   :  { %6170 = vpow2.f32 %v4053_v60 }
0x1ceb   :  { %v7881_v36 = vpop.eup %6168 }
0x1cec   :  { %v4184_v24 = vsel %vm190_vm14, %v7881_v36, 0.0 }
0x1cee   :  { %v7885_v23 = vpop.eup %6170 }
0x1cef   :  { %4185 = vadd.xlane.f32.xlu2 %v4184_v24  ;;  %v4058_v35 = vsel %vm190_vm14, %v7885_v23, 0.0 }
0x1cf3   :  { %v5846_v9 = vpop.permute.xlu0 %5845 }
0x1cf4   :  { %v5847_v62 = vunpack.i.l.bf16 %v5846_v9  ;;  %v5848_v4 = vunpack.i.h.bf16 %v5846_v9 }
0x1cf6   :  { %5850 = vrot.lane.b32.xlu1 %v7851_v63, %s6300_s15  ;;  %3865 = vmatpush.msra.mxu0 %v5847_v62 }
0x1cf7   :  { %4059 = vadd.xlane.f32.xlu2 %v4058_v35 }
0x1cf8   :  { %3866 = vmatpush.msra.mxu0 %v5848_v4 }
0x1cf9   :  { %5855 = vrot.lane.b32.xlu0 %v7851_v63, %s6299_s14 }
0x1cfb   :  { %v5841_v18 = vpop.permute.xlu1 %5840 }
0x1cfc   :  { %v5842_v48 = vunpack.i.l.bf16 %v5841_v18  ;;  %v5843_v22 = vunpack.i.h.bf16 %v5841_v18 }
0x1cfe   :  { %3991 = vmatpush.msrb.mxu3 %v5842_v48 }
0x1d00   :  { %3992 = vmatpush.msrb.mxu3 %v5843_v22 }
0x1d01   :  { %5865 = vrot.lane.b32.xlu0 %v5864_v3, %s6301_s16 }
0x1d0f   :  { %5860 = vrot.lane.b32.xlu2 %v5859_v45, %s6301_s16 }
0x1d48   :  { %v3931_v2 = vpop.xlane.xlu2 %3930 }
0x1d49   :  { %6172 = vrcp.f32 %v3931_v2  ;;  %v3944_v52 = vand.u32 2147483647, %v3931_v2  ;;  %v3946_v53 = vand.u32 2147483648, %v3931_v2  ;;  %vm3940_vm15 = vweird.f32 %v3931_v2 }
0x1d4a   :  { %v3805_v59 = vpop.xlane.xlu0 %3804 }
0x1d4b   :  { %6174 = vrcp.f32 %v3805_v59  ;;  %v3818_v21 = vand.u32 2147483647, %v3805_v59  ;;  %v3820_v45 = vand.u32 2147483648, %v3805_v59  ;;  %vm3945_vm3 = vcmp.eq.f32.partialorder %v3944_v52, 8.507059e+37 }
0x1d4c   :  { %v3947_v30 = vor.u32 1.1754944e-38, %v3946_v53  ;;  %vm3814_vm4 = vweird.f32 %v3805_v59 }
0x1d4d   :  { %vm3819_vm8 = vcmp.eq.f32.partialorder %v3818_v21, 8.507059e+37  ;;  %v3821_v40 = vor.u32 1.1754944e-38, %v3820_v45 }
0x1d4f   :  { %v6173_v63 = vpop.eup %6172 }
0x1d50   :  { %v3936_v31 = vmul.f32 %v6173_v63, %v3931_v2  ;;  %v3934_v55 = vpop.xlane.xlu1 %3933  ;;  %vm3941_vm12 = vweird.f32 %v6173_v63 }
0x1d51   :  { %v6175_v11 = vpop.eup %6174  ;;  %6176 = vrcp.f32 %v3934_v55  ;;  %vm3942_vm2 = vmor %vm3940_vm15, %vm3941_vm12  ;;  %v3959_v8 = vand.u32 2147483647, %v3934_v55  ;;  %v3961_v60 = vand.u32 2147483648, %v3934_v55  ;;  %vm3955_vm10 = vweird.f32 %v3934_v55 }
0x1d52   :  { %v3937_v7 = vsub.f32 1.0, %v3936_v31  ;;  %v3810_v5 = vmul.f32 %v6175_v11, %v3805_v59  ;;  %v7901_v44 = vpop.xlane.xlu2 %3807  ;;  %vm3815_vm1 = vweird.f32 %v6175_v11 }
0x1d53   :  { %6178 = vrcp.f32 %v7901_v44  ;;  %vm3816_vm5 = vmor %vm3814_vm4, %vm3815_vm1  ;;  %v3835_v35 = vand.u32 2147483648, %v7901_v44  ;;  %vm3960_vm15 = vcmp.eq.f32.partialorder %v3959_v8, 8.507059e+37  ;;  %v3962_v48 = vor.u32 1.1754944e-38, %v3961_v60 }
0x1d54   :  { %v3938_v3 = vmul.f32 %v6173_v63, %v3937_v7  ;;  %v3811_v46 = vsub.f32 1.0, %v3810_v5  ;;  %v3833_v22 = vand.u32 2147483647, %v7901_v44  ;;  %vm3829_vm1 = vweird.f32 %v7901_v44 }
0x1d56   :  { %v3939_v43 = vadd.f32 %v6173_v63, %v3938_v3  ;;  %v3812_v49 = vmul.f32 %v6175_v11, %v3811_v46 }
0x1d57   :  { %v6177_v58 = vpop.eup %6176 }
0x1d58   :  { %v3943_v20 = vsel %vm3942_vm2, %v6173_v63, %v3939_v43  ;;  %v3813_v42 = vadd.f32 %v6175_v11, %v3812_v49  ;;  %v3951_v54 = vmul.f32 %v6177_v58, %v3934_v55  ;;  %v7904_v61 = vpop.xlane.xlu0 %4182  ;;  %vm3956_vm9 = vweird.f32 %v6177_v58 }
0x1d59   :  { %v6179_v26 = vpop.eup %6178  ;;  %v3948_v50 = vsel %vm3945_vm3, %v3947_v30, %v3943_v20  ;;  %6180 = vrcp.f32 %v7904_v61  ;;  %vm3957_vm12 = vmor %vm3955_vm10, %vm3956_vm9  ;;  %vm3834_vm3 = vcmp.eq.f32.partialorder %v3833_v22, 8.507059e+37  ;;  %v4196_v21 = vand.u32 2147483647, %v7904_v61 }
0x1d5a   :  { %v3949_v51 = vmul.f32 %v7857_v47, %v3948_v50  ;;  %v3817_v27 = vsel %vm3816_vm5, %v6175_v11, %v3813_v42  ;;  %v3952_v28 = vsub.f32 1.0, %v3951_v54  ;;  %v3825_v32 = vmul.f32 %v6179_v26, %v7901_v44  ;;  %v7909_v34 = vpop.xlane.xlu2 %4056 }
0x1d5b   :  { %v3822_v17 = vsel %vm3819_vm8, %v3821_v40, %v3817_v27  ;;  %6182 = vrcp.f32 %v7909_v34  ;;  %vm3830_vm11 = vweird.f32 %v6179_v26  ;;  %v3836_v11 = vor.u32 1.1754944e-38, %v3835_v35 }
0x1d5c   :  { %v3953_v24 = vmul.f32 %v6177_v58, %v3952_v28  ;;  %v3826_v9 = vsub.f32 1.0, %v3825_v32  ;;  %5588 = vmatmul.msk.f32.vlgmr.msrb.gmra.mxu3 %vm190_vm14, %v3949_v51  ;;  %v3823_v62 = vmul.f32 %v7861_v0, %v3822_v17  ;;  %vm7919_vm2 = vmor %vm3829_vm1, %vm3830_vm11  ;;  %v4198_v44 = vand.u32 2147483648, %v7904_v61 }
0x1d5d   :  { %vm4192_vm5 = vweird.f32 %v7904_v61  ;;  %v4072_v20 = vand.u32 2147483648, %v7909_v34  ;;  %vm4197_vm10 = vcmp.eq.f32.partialorder %v4196_v21, 8.507059e+37  ;;  %v4070_v54 = vand.u32 2147483647, %v7909_v34 }
0x1d5e   :  { %v3954_v47 = vadd.f32 %v6177_v58, %v3953_v24  ;;  %v3827_v4 = vmul.f32 %v6179_v26, %v3826_v9  ;;  %5582 = vmatmul.msk.f32.vlgmr.msra.gmra.mxu0 %vm190_vm14, %v3823_v62  ;;  %vm4066_vm11 = vweird.f32 %v7909_v34 }
0x1d5f   :  { %v6181_v18 = vpop.eup %6180  ;;  %v4073_v32 = vor.u32 1.1754944e-38, %v4072_v20 }
0x1d60   :  { %v3828_v2 = vadd.f32 %v6179_v26, %v3827_v4  ;;  %v4188_v59 = vmul.f32 %v6181_v18, %v7904_v61  ;;  %v3958_v63 = vsel %vm3957_vm12, %v6177_v58, %v3954_v47  ;;  %vm4193_vm4 = vweird.f32 %v6181_v18 }
0x1d61   :  { %v3963_v31 = vsel %vm3960_vm15, %v3962_v48, %v3958_v63  ;;  %v6183_v55 = vpop.eup %6182  ;;  %vm4194_vm8 = vmor %vm4192_vm5, %vm4193_vm4  ;;  %v4199_v58 = vor.u32 1.1754944e-38, %v4198_v44  ;;  %vm4071_vm15 = vcmp.eq.f32.partialorder %v4070_v54, 8.507059e+37 }
0x1d62   :  { %v4189_v7 = vsub.f32 1.0, %v4188_v59  ;;  %v4186_v5 = vpop.xlane.xlu2 %4185  ;;  %v3964_v52 = vmul.f32 %v7865_v57, %v3963_v31  ;;  %v3832_v53 = vsel %vm7919_vm2, %v6179_v26, %v3828_v2  ;;  %v4062_v3 = vmul.f32 %v6183_v55, %v7909_v34 }
0x1d63   :  { %6184 = vrcp.f32 %v4186_v5  ;;  %v3837_v45 = vsel %vm3834_vm3, %v3836_v11, %v3832_v53  ;;  %vm4067_vm9 = vweird.f32 %v6183_v55  ;;  %v4213_v62 = vand.u32 2147483648, %v4186_v5 }
0x1d64   :  { %v4190_v46 = vmul.f32 %v6181_v18, %v4189_v7  ;;  %5589 = vmatmul.msk.f32.gmra.mxu3 %vm190_vm14, %v3964_v52  ;;  %v4063_v43 = vsub.f32 1.0, %v4062_v3  ;;  %v3838_v49 = vmul.f32 %v7869_v10, %v3837_v45  ;;  %vm4068_vm12 = vmor %vm4066_vm11, %vm4067_vm9  ;;  %v4211_v34 = vand.u32 2147483647, %v4186_v5 }
0x1d65   :  { %vm4207_vm2 = vweird.f32 %v4186_v5 }
0x1d66   :  { %v4191_v57 = vadd.f32 %v6181_v18, %v4190_v46  ;;  %v4064_v30 = vmul.f32 %v6183_v55, %v4063_v43  ;;  %5583 = vmatmul.msk.f32.gmra.mxu0 %vm190_vm14, %v3838_v49  ;;  %vm4212_vm4 = vcmp.eq.f32.partialorder %v4211_v34, 8.507059e+37 }
0x1d68   :  { %v4195_v42 = vsel %vm4194_vm8, %v6181_v18, %v4191_v57  ;;  %v5851_v26 = vpop.permute.xlu1 %5850  ;;  %v4065_v51 = vadd.f32 %v6183_v55, %v4064_v30 }
0x1d69   :  { %v6185_v50 = vpop.eup %6184  ;;  %v4200_v40 = vsel %vm4197_vm10, %v4199_v58, %v4195_v42  ;;  %v5852_v10 = vunpack.i.l.bf16 %v5851_v26  ;;  %v5853_v17 = vunpack.i.h.bf16 %v5851_v26 }
0x1d6a   :  { %v4203_v61 = vmul.f32 %v6185_v50, %v4186_v5  ;;  %v4060_v27 = vpop.xlane.xlu2 %4059  ;;  %v4069_v28 = vsel %vm4068_vm12, %v6183_v55, %v4065_v51  ;;  %v4201_v60 = vmul.f32 %v7873_v56, %v4200_v40  ;;  %vm4208_vm1 = vweird.f32 %v6185_v50 }
0x1d6b   :  { %6186 = vrcp.f32 %v4060_v27  ;;  %4243 = vmatpush.msra.mxu3 %v5852_v10  ;;  %v5856_v8 = vpop.permute.xlu0 %5855  ;;  %v4074_v9 = vsel %vm4071_vm15, %v4073_v32, %v4069_v28  ;;  %vm4209_vm3 = vmor %vm4207_vm2, %vm4208_vm1  ;;  %v4214_v56 = vor.u32 1.1754944e-38, %v4213_v62  ;;  %v4087_v55 = vand.u32 2147483648, %v4060_v27  ;;  %v4427_v62 = vld [vmem:[%s8300_s2 + $0xa0] sm:$0xff] }
0x1d6c   :  { %v4204_v24 = vsub.f32 1.0, %v4203_v61  ;;  %v5857_v47 = vunpack.i.l.bf16 %v5856_v8  ;;  %v5858_v35 = vunpack.i.h.bf16 %v5856_v8  ;;  %v4075_v18 = vmul.f32 %v7877_v12, %v4074_v9  ;;  %v4428_v9 = vld [vmem:[%s8300_s2 + $0xa8] sm:$0xff] }
0x1d6d   :  { %4244 = vmatpush.msra.mxu3 %v5853_v17  ;;  %v4085_v7 = vand.u32 2147483647, %v4060_v27  ;;  %vm4081_vm8 = vweird.f32 %v4060_v27  ;;  %v4088_v5 = vor.u32 1.1754944e-38, %v4087_v55  ;;  %v7992_v55 = vpack.i.bf16 %v4427_v62, %v4428_v9 }
0x1d6e   :  { %v4205_v4 = vmul.f32 %v6185_v50, %v4204_v24  ;;  %5600 = vmatmul.msk.f32.vlgmr.msra.gmra.mxu3 %vm190_vm14, %v4201_v60  ;;  %4117 = vmatpush.msrb.mxu0 %v5857_v47  ;;  %v4430_v60 = vld [vmem:[%s8300_s2 + $0xb8] sm:$0xff]  ;;  %v4429_v24 = vld [vmem:[%s8300_s2 + $0xb0] sm:$0xff] }
0x1d6f   :  { %vm4086_vm10 = vcmp.eq.f32.partialorder %v4085_v7, 8.507059e+37 }
0x1d70   :  { %v4206_v48 = vadd.f32 %v6185_v50, %v4205_v4  ;;  %4118 = vmatpush.msrb.mxu0 %v5858_v35 }
0x1d71   :  { %v6187_v22 = vpop.eup %6186  ;;  %5594 = vmatmul.msk.f32.vlgmr.msrb.gmra.mxu0 %vm190_vm14, %v4075_v18 }
0x1d72   :  { %v4077_v2 = vmul.f32 %v6187_v22, %v4060_v27  ;;  %v4210_v59 = vsel %vm4209_vm3, %v6185_v50, %v4206_v48  ;;  %vm4082_vm5 = vweird.f32 %v6187_v22  ;;  %v5861_v3 = vpop.permute.xlu2 %5860  ;;  %4451 = vmatpush.msra.mxu0 %v4430_v60 }
0x1d73   :  { %v4215_v63 = vsel %vm4212_vm4, %v4214_v56, %v4210_v59  ;;  %vm4083_vm9 = vmor %vm4081_vm8, %vm4082_vm5  ;;  %v5862_v21 = vunpack.i.l.bf16 %v5861_v3  ;;  %v5866_v20 = vpop.permute.xlu0 %5865 }
0x1d74   :  { %v4078_v0 = vsub.f32 1.0, %v4077_v2  ;;  %v4216_v31 = vmul.f32 %v7881_v36, %v4215_v63  ;;  %v5863_v36 = vunpack.i.h.bf16 %v5861_v3  ;;  %v5868_v42 = vunpack.i.h.bf16 %v5866_v20  ;;  %4452 = vmatpush.msra.mxu0 %v4429_v24 }
0x1d75   :  { %4320 = vmatpush.msra.mxu2 %v5862_v21  ;;  %v5867_v54 = vunpack.i.l.bf16 %v5866_v20 }
0x1d76   :  { %v4079_v11 = vmul.f32 %v6187_v22, %v4078_v0  ;;  %5601 = vmatmul.msk.f32.gmra.mxu3 %vm190_vm14, %v4216_v31  ;;  %4453 = vmatpush.msra.mxu0 %v4428_v9  ;;  %v7988_v31 = vpack.i.bf16 %v4429_v24, %v4430_v60 }
0x1d77   :  { %4321 = vmatpush.msra.mxu2 %v5863_v36 }
0x1d78   :  { %v4080_v12 = vadd.f32 %v6187_v22, %v4079_v11  ;;  %4454 = vmatpush.msra.mxu0 %v4427_v62 }
0x1d79   :  { %4322 = vmatpush.msra.mxu2 %v5867_v54 }
0x1d7a   :  { %v4084_v52 = vsel %vm4083_vm9, %v6187_v22, %v4080_v12 }
0x1d7b   :  { %v4089_v53 = vsel %vm4086_vm10, %v4088_v5, %v4084_v52  ;;  %4323 = vmatpush.msra.mxu2 %v5868_v42 }
0x1d7c   :  { %v4090_v44 = vmul.f32 %v7885_v23, %v4089_v53 }
0x1d7e   :  { %5595 = vmatmul.msk.f32.gmra.mxu0 %vm190_vm14, %v4090_v44 }
0x1ddb   :  { %v3868_v46 = vpop.f32.mrf.mxu0 }
0x1ddf   :  { %v3994_v45 = vpop.f32.mrf.mxu3 }
0x1de0   :  { %4254 = vrot.lane.b32.xlu1 %v3994_v45, %s6303_s19 }
0x1de3   :  { %v3871_v43 = vpop.f32.mrf.mxu0 }
0x1de7   :  { %v3997_v49 = vpop.f32.mrf.mxu3 }
0x1dee   :  { %v4120_v57 = vpop.f32.mrf.mxu0 }
0x1def   :  { %4262 = vrot.lane.b32.xlu1 %v4120_v57, %s6302_s17 }
0x1df1   :  { %v4246_v58 = vpop.f32.mrf.mxu3 }
0x1df2   :  { %4270 = vrot.lane.b32.xlu0 %v4246_v58, %s6304_s20 }
0x1df7   :  { %4256 = vrot.lane.b32.xlu1 %v3997_v49, %s6303_s19  ;;  %v8012_v49 = vld [vmem:[%s8300_s2 + $0x165] ss:$0 sm:$0xff] }
0x1df9   :  { %v4249_v23 = vpop.f32.mrf.mxu3 }
0x1dfa   :  { %4272 = vrot.lane.b32.xlu2 %v4249_v23, %s6304_s20 }
0x1dfb   :  { %v4123_v30 = vpop.f32.mrf.mxu0 }
0x1dfc   :  { %4264 = vrot.lane.b32.xlu0 %v4123_v30, %s6302_s17 }
0x1dff   :  { %4299 = vrot.lane.b32.xlu1 %v7779_v16, %s6301_s16 }
0x1e52   :  { %v4255_v26 = vpop.permute.xlu1 %4254 }
0x1e53   :  { %v4276_v40 = vsel %vm154_vm13, %v3868_v46, %v4255_v26 }
0x1e54   :  { %v4273_v32 = vpop.permute.xlu2 %4272 }
0x1e61   :  { %v4263_v50 = vpop.permute.xlu1 %4262 }
0x1e62   :  { %v4278_v51 = vsel %vm190_vm14, %v4276_v40, %v4263_v50 }
0x1e64   :  { %v4271_v10 = vpop.permute.xlu0 %4270 }
0x1e65   :  { %v4280_v61 = vsel %vm680_vm6, %v4278_v51, %v4271_v10 }
0x1e66   :  { %5602 = vmatmul.msk.f32.vlgmr.msra.gmra.mxu2 %vm19_vm0, %v4280_v61 }
0x1e69   :  { %v4257_v27 = vpop.permute.xlu1 %4256 }
0x1e6a   :  { %v4277_v28 = vsel %vm154_vm13, %v3871_v43, %v4257_v27 }
0x1e6e   :  { %v4265_v16 = vpop.permute.xlu0 %4264 }
0x1e6f   :  { %v4279_v17 = vsel %vm190_vm14, %v4277_v28, %v4265_v16 }
0x1e70   :  { %v4281_v8 = vsel %vm680_vm6, %v4279_v17, %v4273_v32 }
0x1e71   :  { %5603 = vmatmul.msk.f32.gmra.mxu2 %vm19_vm0, %v4281_v8  ;;  %v4300_v47 = vpop.permute.xlu1 %4299 }
0x1ee9   :  { %v4325_v4 = vpop.f32.mrf.mxu2 }
0x1eea   :  { %v4326_v34 = vadd.f32 %v4325_v4, %v4300_v47 }
0x1eec   :  { %v7973_v35 = vadd.f32 %v4326_v34, %v7713_v1 }
0x1eee   :  { %v4334_v18 = vsel %vm19_vm0, %v7973_v35, 0.0  ;;  %v4342_v48 = vmul.f32 %v7973_v35, %v7973_v35 }
0x1eef   :  { %4335 = vadd.xlane.f32.xlu0 %v4334_v18 }
0x1ef0   :  { %v4344_v22 = vsel %vm19_vm0, %v4342_v48, 0.0 }
0x1ef1   :  { %4345 = vadd.xlane.f32.xlu2 %v4344_v22 }
0x1ef4   :  { %v4328_v56 = vpop.f32.mrf.mxu2 }
0x1ef5   :  { %v4329_v2 = vadd.f32 %v4328_v56, %v4300_v47 }
0x1ef7   :  { %v7981_v59 = vadd.f32 %v4329_v2, %v7721_v39  ;;  %v7997_v39 = vld [vmem:[%s8300_s2 + $0x16e] ss:$0 sm:$0xff] }
0x1ef9   :  { %v4337_v63 = vsel %vm19_vm0, %v7981_v59, 0.0  ;;  %v4343_v1 = vmul.f32 %v7981_v59, %v7981_v59 }
0x1efa   :  { %4338 = vadd.xlane.f32.xlu1 %v4337_v63 }
0x1efb   :  { %v4347_v0 = vsel %vm19_vm0, %v4343_v1, 0.0 }
0x1efc   :  { %4348 = vadd.xlane.f32.xlu2 %v4347_v0 }
0x1f03   :  { %5870 = vrot.lane.b32.xlu0 %v7988_v31, %s6290_s18 }
0x1f0b   :  { %4479 = vrot.lane.b32.xlu0 %v8012_v49, %s6290_s18 }
0x1f13   :  { %5875 = vrot.lane.b32.xlu1 %v7992_v55, %s6290_s18 }
0x1f14   :  { %4422 = vrot.lane.b32.xlu2 %v7997_v39, %s6290_s18 }
0x1f62   :  { %v8003_v11 = vpop.xlane.xlu0 %4335 }
0x1f63   :  { %v4340_v7 = vmul.f32 0.03125, %v8003_v11 }
0x1f64   :  { %v4346_v52 = vpop.xlane.xlu2 %4345 }
0x1f65   :  { %v4350_v12 = vmul.f32 %v4340_v7, %v4340_v7 }
0x1f67   :  { %v4352_v5 = vmul.f32 32.0, %v4350_v12 }
0x1f69   :  { %v4354_v53 = vsub.f32 %v4346_v52, %v4352_v5 }
0x1f6b   :  { %v4356_v44 = vmax.f32 %v4354_v53, 0.0  ;;  %v4360_v53 = vsub.f32 %v7973_v35, %v8003_v11 }
0x1f6d   :  { %v4358_v3 = vmul.f32 0.032258064, %v4356_v44  ;;  %v8006_v46 = vpop.xlane.xlu1 %4338 }
0x1f6e   :  { %v4341_v36 = vmul.f32 0.03125, %v8006_v46 }
0x1f6f   :  { %6188 = vrsqrt.f32 %v4358_v3  ;;  %v4349_v43 = vpop.xlane.xlu2 %4348  ;;  %vm4369_vm11 = vcmp.eq.f32.partialorder %v4358_v3, inf  ;;  %v4372_v28 = vand.u32 2147483648, %v4358_v3  ;;  %vm4371_vm12 = vcmp.eq.f32.partialorder %v4358_v3, 0.0 }
0x1f70   :  { %v4351_v21 = vmul.f32 %v4341_v36, %v4341_v36 }
0x1f72   :  { %v4353_v45 = vmul.f32 32.0, %v4351_v21 }
0x1f74   :  { %v4355_v57 = vsub.f32 %v4349_v43, %v4353_v45 }
0x1f75   :  { %v6189_v58 = vpop.eup %6188  ;;  %v5871_v23 = vpop.permute.xlu0 %5870 }
0x1f76   :  { %v4363_v30 = vmul.f32 %v6189_v58, %v4358_v3  ;;  %v4357_v20 = vmax.f32 %v4355_v57, 0.0  ;;  %v5873_v42 = vunpack.i.h.bf16 %v5871_v23  ;;  %v5872_v54 = vunpack.i.l.bf16 %v5871_v23 }
0x1f77   :  { %v8022_v45 = vpop.permute.xlu2 %4422 }
0x1f78   :  { %v4364_v26 = vmul.f32 %v6189_v58, %v4363_v30  ;;  %v4359_v50 = vmul.f32 0.032258064, %v4357_v20  ;;  %4494 = vmatpush.msra.mxu1 %v5872_v54  ;;  %v4361_v54 = vsub.f32 %v7981_v59, %v8006_v46 }
0x1f7a   :  { %v4365_v40 = vmul.f32 0.5, %v4364_v26  ;;  %6190 = vrsqrt.f32 %v4359_v50  ;;  %4495 = vmatpush.msra.mxu1 %v5873_v42  ;;  %vm4381_vm15 = vcmp.eq.f32.partialorder %v4359_v50, inf  ;;  %v4384_v22 = vand.u32 2147483648, %v4359_v50 }
0x1f7b   :  { %vm4383_vm1 = vcmp.eq.f32.partialorder %v4359_v50, 0.0 }
0x1f7c   :  { %v4366_v51 = vsub.f32 1.5, %v4365_v40 }
0x1f7e   :  { %v4367_v10 = vmul.f32 %v6189_v58, %v4366_v51 }
0x1f80   :  { %v6191_v61 = vpop.eup %6190  ;;  %v4368_v27 = vmul.f32 %v4367_v10, %v4358_v3 }
0x1f81   :  { %v4375_v16 = vmul.f32 %v6191_v61, %v4359_v50 }
0x1f82   :  { %v4370_v32 = vsel %vm4369_vm11, %v4358_v3, %v4368_v27 }
0x1f83   :  { %v4376_v17 = vmul.f32 %v6191_v61, %v4375_v16  ;;  %v4373_v8 = vsel %vm4371_vm12, %v4372_v28, %v4370_v32 }
0x1f84   :  { %v4386_v60 = vadd.f32 1e-06, %v4373_v8 }
0x1f85   :  { %v4377_v24 = vmul.f32 0.5, %v4376_v17  ;;  %v5876_v9 = vpop.permute.xlu1 %5875 }
0x1f86   :  { %v5878_v62 = vunpack.i.h.bf16 %v5876_v9  ;;  %v5877_v47 = vunpack.i.l.bf16 %v5876_v9  ;;  %6192 = vrcp.f32 %v4386_v60  ;;  %v4399_v7 = vand.u32 2147483648, %v4386_v60 }
0x1f87   :  { %v4378_v4 = vsub.f32 1.5, %v4377_v24  ;;  %v4397_v5 = vand.u32 2147483647, %v4386_v60  ;;  %vm4393_vm3 = vweird.f32 %v4386_v60 }
0x1f88   :  { %4496 = vmatpush.msra.mxu1 %v5877_v47 }
0x1f89   :  { %v4379_v34 = vmul.f32 %v6191_v61, %v4378_v4  ;;  %vm4398_vm5 = vcmp.eq.f32.partialorder %v4397_v5, 8.507059e+37  ;;  %v4480_v61 = vpop.permute.xlu0 %4479 }
0x1f8a   :  { %4497 = vmatpush.msra.mxu1 %v5878_v62 }
0x1f8b   :  { %v4380_v18 = vmul.f32 %v4379_v34, %v4359_v50  ;;  %5606 = vmatmul.msk.f32.vlgmr.msra.gmra.mxu1 %vm19_vm0, %v7377_v19  ;;  %v4400_v19 = vor.u32 1.1754944e-38, %v4399_v7 }
0x1f8c   :  { %v6193_v48 = vpop.eup %6192 }
0x1f8d   :  { %v4382_v56 = vsel %vm4381_vm15, %v4359_v50, %v4380_v18  ;;  %v4389_v2 = vmul.f32 %v6193_v48, %v4386_v60  ;;  %vm4394_vm2 = vweird.f32 %v6193_v48 }
0x1f8e   :  { %v4385_v63 = vsel %vm4383_vm1, %v4384_v22, %v4382_v56  ;;  %vm4395_vm4 = vmor %vm4393_vm3, %vm4394_vm2 }
0x1f8f   :  { %v4387_v1 = vadd.f32 1e-06, %v4385_v63  ;;  %v4390_v0 = vsub.f32 1.0, %v4389_v2 }
0x1f91   :  { %v4391_v12 = vmul.f32 %v6193_v48, %v4390_v0  ;;  %6194 = vrcp.f32 %v4387_v1  ;;  %v4414_v23 = vand.u32 2147483648, %v4387_v1  ;;  %v4412_v20 = vand.u32 2147483647, %v4387_v1 }
0x1f92   :  { %vm4408_vm9 = vweird.f32 %v4387_v1 }
0x1f93   :  { %5607 = vmatmul.msk.f32.gmra.mxu1 %vm19_vm0, %v7387_v6  ;;  %v4392_v52 = vadd.f32 %v6193_v48, %v4391_v12  ;;  %v4415_v42 = vor.u32 1.1754944e-38, %v4414_v23  ;;  %vm4413_vm11 = vcmp.eq.f32.partialorder %v4412_v20, 8.507059e+37 }
0x1f95   :  { %v4396_v44 = vsel %vm4395_vm4, %v6193_v48, %v4392_v52 }
0x1f96   :  { %v4401_v3 = vsel %vm4398_vm5, %v4400_v19, %v4396_v44 }
0x1f97   :  { %v6195_v36 = vpop.eup %6194  ;;  %v4402_v21 = vmul.f32 %v4401_v3, %v4360_v53 }
0x1f98   :  { %v4404_v43 = vmul.f32 %v6195_v36, %v4387_v1  ;;  %vm4409_vm8 = vweird.f32 %v6195_v36 }
0x1f99   :  { %v4419_v57 = vmul.f32 %v7997_v39, %v4402_v21  ;;  %vm4410_vm10 = vmor %vm4408_vm9, %vm4409_vm8 }
0x1f9a   :  { %v4405_v58 = vsub.f32 1.0, %v4404_v43 }
0x1f9b   :  { %v4425_v6 = vadd.f32 %v8022_v45, %v4419_v57 }
0x1f9c   :  { %v4406_v30 = vmul.f32 %v6195_v36, %v4405_v58 }
0x1f9d   :  { %5604 = vmatmul.msk.f32.vlgmr.msra.gmra.mxu0 %vm19_vm0, %v4425_v6 }
0x1f9e   :  { %v4407_v11 = vadd.f32 %v6195_v36, %v4406_v30 }
0x1fa0   :  { %v4411_v26 = vsel %vm4410_vm10, %v6195_v36, %v4407_v11 }
0x1fa1   :  { %v4416_v50 = vsel %vm4413_vm11, %v4415_v42, %v4411_v26 }
0x1fa2   :  { %v4417_v40 = vmul.f32 %v4416_v50, %v4361_v54 }
0x1fa4   :  { %v4420_v51 = vmul.f32 %v7997_v39, %v4417_v40 }
0x1fa6   :  { %v4426_v10 = vadd.f32 %v8022_v45, %v4420_v51 }
0x1fa8   :  { %5605 = vmatmul.msk.f32.gmra.mxu0 %vm19_vm0, %v4426_v10 }
0x2008   :  { %v4499_v27 = vpop.f32.mrf.mxu1 }
0x2009   :  { %v4500_v28 = vadd.f32 %v4499_v27, %v4480_v61 }
0x200b   :  { %4631 = vrot.lane.b32.xlu2 %v4500_v28, %s6295_s6 }
0x2010   :  { %v4502_v16 = vpop.f32.mrf.mxu1 }
0x2011   :  { %v4503_v32 = vadd.f32 %v4502_v16, %v4480_v61 }
0x2013   :  { %4759 = vrot.lane.b32.xlu1 %v4503_v32, %s6296_s7  ;;  %4633 = vrot.lane.b32.xlu0 %v4503_v32, %s6295_s6  ;;  %v8035_v46 = vpack.i.bf16 %v4500_v28, %v4503_v32 }
0x2014   :  { %5608 = vmatpush.xpose.msk.msrb.mxu3 %vm154_vm13, %v4503_v32 }
0x2018   :  { %5609 = vmatpush.xpose.msk.msrb.mxu3 %vm154_vm13, %v4500_v28 }
0x201a   :  { %v4456_v39 = vpop.f32.mrf.mxu0 }
0x201b   :  { %v4457_v17 = vadd.f32 %v8012_v49, %v4456_v39  ;;  %4757 = vrot.lane.b32.xlu1 %v4500_v28, %s6296_s7 }
0x201d   :  { %4627 = vrot.lane.b32.xlu0 %v4457_v17, %s6295_s6  ;;  %4753 = vrot.lane.b32.xlu2 %v4457_v17, %s6296_s7 }
0x201e   :  { %5610 = vmatmul.msk.f32.vlgmr.msrb.gmra.mxu3 %vm154_vm13, %v4457_v17 }
0x2023   :  { %4885 = vrot.lane.b32.xlu1 %v4503_v32, %s6293_s4 }
0x2025   :  { %v4459_v8 = vpop.f32.mrf.mxu0 }
0x2026   :  { %v4460_v60 = vadd.f32 %v8012_v49, %v4459_v8 }
0x2028   :  { %4629 = vrot.lane.b32.xlu0 %v4460_v60, %s6295_s6  ;;  %4755 = vrot.lane.b32.xlu2 %v4460_v60, %s6296_s7 }
0x2029   :  { %5611 = vmatmul.msk.f32.gmra.mxu3 %vm154_vm13, %v4460_v60 }
0x202b   :  { %4879 = vrot.lane.b32.xlu1 %v4457_v17, %s6293_s4 }
0x2030   :  { %4883 = vrot.lane.b32.xlu0 %v4500_v28, %s6293_s4  ;;  %4881 = vrot.lane.b32.xlu2 %v4460_v60, %s6293_s4 }
0x2065   :  { %v4632_v62 = vpop.permute.xlu2 %4631 }
0x2077   :  { %v4754_v34 = vpop.permute.xlu2 %4753 }
0x2082   :  { %v4756_v48 = vpop.permute.xlu2 %4755 }
0x2085   :  { %v4760_v24 = vpop.permute.xlu1 %4759  ;;  %v4634_v9 = vpop.permute.xlu0 %4633 }
0x2086   :  { %5614 = vmatpush.xpose.msk.msrb.mxu0 %vm154_vm13, %v4634_v9  ;;  %5620 = vmatpush.xpose.msk.msra.mxu3 %vm154_vm13, %v4760_v24 }
0x208a   :  { %5615 = vmatpush.xpose.msk.msrb.mxu0 %vm154_vm13, %v4632_v62  ;;  %v4882_v5 = vpop.permute.xlu2 %4881 }
0x208d   :  { %v4758_v47 = vpop.permute.xlu1 %4757 }
0x208e   :  { %5621 = vmatpush.xpose.msk.msra.mxu3 %vm154_vm13, %v4758_v47 }
0x208f   :  { %v4628_v4 = vpop.permute.xlu0 %4627 }
0x2090   :  { %5616 = vmatmul.msk.f32.vlgmr.msrb.gmra.mxu0 %vm154_vm13, %v4628_v4 }
0x2091   :  { %5622 = vmatmul.msk.f32.vlgmr.msra.gmra.mxu3 %vm154_vm13, %v4754_v34 }
0x2095   :  { %v4886_v18 = vpop.permute.xlu1 %4885 }
0x2096   :  { %5626 = vmatpush.xpose.msk.msra.mxu0 %vm154_vm13, %v4886_v18 }
0x2099   :  { %5623 = vmatmul.msk.f32.gmra.mxu3 %vm154_vm13, %v4756_v48 }
0x209a   :  { %v4630_v22 = vpop.permute.xlu0 %4629 }
0x209b   :  { %5617 = vmatmul.msk.f32.gmra.mxu0 %vm154_vm13, %v4630_v22 }
0x209d   :  { %v4880_v0 = vpop.permute.xlu1 %4879 }
0x20a1   :  { %v4534_v56 = vpop.f32.mrf.mxu3 }
0x20a2   :  { %v4540_v2 = vmul.f32 0.35355338, %v4534_v56  ;;  %v4884_v63 = vpop.permute.xlu0 %4883 }
0x20a3   :  { %5627 = vmatpush.xpose.msk.msra.mxu0 %vm154_vm13, %v4884_v63 }
0x20a4   :  { %v4542_v1 = vadd.f32 %v4540_v2, %v7443_v37 }
0x20a6   :  { %5628 = vmatmul.msk.f32.vlgmr.msra.gmra.mxu0 %vm154_vm13, %v4880_v0  ;;  %v4544_v7 = vsel %vm190_vm14, %v4542_v1, -inf }
0x20a7   :  { %4545 = vmax.xlane.f32.xlu0 %v4544_v7 }
0x20ac   :  { %v4537_v12 = vpop.f32.mrf.mxu3 }
0x20ad   :  { %v4541_v52 = vmul.f32 0.35355338, %v4537_v12 }
0x20ae   :  { %5629 = vmatmul.msk.f32.gmra.mxu0 %vm154_vm13, %v4882_v5 }
0x20af   :  { %v4543_v19 = vadd.f32 %v4541_v52, %v7450_v14 }
0x20b1   :  { %v4547_v53 = vsel %vm190_vm14, %v4543_v19, -inf }
0x20b2   :  { %4548 = vmax.xlane.f32.xlu2 %v4547_v53 }
0x210d   :  { %v4660_v44 = vpop.f32.mrf.mxu0 }
0x210e   :  { %v4666_v3 = vmul.f32 0.35355338, %v4660_v44 }
0x2110   :  { %v4668_v36 = vadd.f32 %v4666_v3, %v7443_v37 }
0x2112   :  { %v4670_v21 = vsel %vm190_vm14, %v4668_v36, -inf }
0x2113   :  { %4671 = vmax.xlane.f32.xlu1 %v4670_v21 }
0x2114   :  { %v4786_v43 = vpop.f32.mrf.mxu3 }
0x2115   :  { %v4792_v57 = vmul.f32 0.35355338, %v4786_v43 }
0x2117   :  { %v4794_v58 = vadd.f32 %v4792_v57, %v7443_v37 }
0x2118   :  { %v4663_v23 = vpop.f32.mrf.mxu0 }
0x2119   :  { %v4667_v6 = vmul.f32 0.35355338, %v4663_v23  ;;  %v4796_v30 = vsel %vm190_vm14, %v4794_v58, -inf }
0x211a   :  { %4797 = vmax.xlane.f32.xlu2 %v4796_v30  ;;  %v4546_v11 = vpop.xlane.xlu0 %4545 }
0x211b   :  { %v4669_v20 = vadd.f32 %v4667_v6, %v7450_v14  ;;  %v4550_v50 = vsub.f32 %v4542_v1, %v4546_v11 }
0x211c   :  { %v4789_v42 = vpop.f32.mrf.mxu3 }
0x211d   :  { %v4793_v54 = vmul.f32 0.35355338, %v4789_v42  ;;  %v4673_v26 = vsel %vm190_vm14, %v4669_v20, -inf  ;;  %v4552_v51 = vmul.f32 1.442695, %v4550_v50 }
0x211e   :  { %4674 = vmax.xlane.f32.xlu0 %v4673_v26 }
0x211f   :  { %v4795_v40 = vadd.f32 %v4793_v54, %v7450_v14  ;;  %6196 = vpow2.f32 %v4552_v51 }
0x2121   :  { %v4799_v27 = vsel %vm190_vm14, %v4795_v40, -inf }
0x2123   :  { %v4912_v10 = vpop.f32.mrf.mxu0 }
0x2124   :  { %v4918_v61 = vmul.f32 0.35355338, %v4912_v10 }
0x2125   :  { %v8078_v17 = vpop.eup %6196 }
0x2126   :  { %v4920_v28 = vadd.f32 %v4918_v61, %v7443_v37  ;;  %4800 = vmax.xlane.f32.xlu0 %v4799_v27  ;;  %v4556_v60 = vsel %vm190_vm14, %v8078_v17, 0.0  ;;  %v4549_v37 = vpop.xlane.xlu2 %4548 }
0x2127   :  { %v4551_v9 = vsub.f32 %v4543_v19, %v4549_v37 }
0x2128   :  { %v4922_v16 = vsel %vm190_vm14, %v4920_v28, -inf }
0x2129   :  { %4923 = vmax.xlane.f32.xlu1 %v4922_v16  ;;  %v4554_v62 = vmul.f32 1.442695, %v4551_v9 }
0x212b   :  { %v4915_v32 = vpop.f32.mrf.mxu0  ;;  %6198 = vpow2.f32 %v4554_v62 }
0x212c   :  { %v4919_v39 = vmul.f32 0.35355338, %v4915_v32 }
0x212e   :  { %v4921_v8 = vadd.f32 %v4919_v39, %v7450_v14 }
0x2130   :  { %v4925_v24 = vsel %vm190_vm14, %v4921_v8, -inf }
0x2131   :  { %4557 = vadd.xlane.f32.xlu1 %v4556_v60  ;;  %4926 = vmax.xlane.f32.xlu2 %v4925_v24  ;;  %v8086_v47 = vpop.eup %6198 }
0x2132   :  { %v4559_v4 = vsel %vm190_vm14, %v8086_v47, 0.0 }
0x2149   :  { %5880 = vrot.lane.b32.xlu2 %v8035_v46, %s6290_s18 }
0x2172   :  { %4560 = vadd.xlane.f32.xlu2 %v4559_v4 }
0x2186   :  { %v4672_v14 = vpop.xlane.xlu1 %4671 }
0x2187   :  { %v4676_v34 = vsub.f32 %v4668_v36, %v4672_v14 }
0x2189   :  { %v4678_v18 = vmul.f32 1.442695, %v4676_v34 }
0x218a   :  { %5890 = vrot.lane.b32.xlu2 %v8035_v46, %s6294_s5 }
0x218b   :  { %6200 = vpow2.f32 %v4678_v18 }
0x218d   :  { %v4798_v48 = vpop.xlane.xlu2 %4797 }
0x218e   :  { %v4802_v22 = vsub.f32 %v4794_v58, %v4798_v48 }
0x2190   :  { %v4804_v56 = vmul.f32 1.442695, %v4802_v22 }
0x2191   :  { %v8092_v2 = vpop.eup %6200  ;;  %v4675_v63 = vpop.xlane.xlu0 %4674 }
0x2192   :  { %6202 = vpow2.f32 %v4804_v56  ;;  %v4677_v1 = vsub.f32 %v4669_v20, %v4675_v63  ;;  %v4682_v0 = vsel %vm190_vm14, %v8092_v2, 0.0 }
0x2193   :  { %4683 = vadd.xlane.f32.xlu0 %v4682_v0 }
0x2194   :  { %v4680_v7 = vmul.f32 1.442695, %v4677_v1 }
0x2196   :  { %6204 = vpow2.f32 %v4680_v7 }
0x2198   :  { %v8096_v12 = vpop.eup %6202 }
0x2199   :  { %v4801_v5 = vpop.xlane.xlu0 %4800  ;;  %v4808_v52 = vsel %vm190_vm14, %v8096_v12, 0.0 }
0x219a   :  { %v4803_v19 = vsub.f32 %v4795_v40, %v4801_v5 }
0x219b   :  { %4809 = vadd.xlane.f32.xlu0 %v4808_v52 }
0x219c   :  { %v8100_v53 = vpop.eup %6204  ;;  %v4806_v44 = vmul.f32 1.442695, %v4803_v19  ;;  %v4924_v3 = vpop.xlane.xlu1 %4923 }
0x219d   :  { %v4928_v36 = vsub.f32 %v4920_v28, %v4924_v3  ;;  %v4685_v21 = vsel %vm190_vm14, %v8100_v53, 0.0 }
0x219e   :  { %6206 = vpow2.f32 %v4806_v44  ;;  %4686 = vadd.xlane.f32.xlu1 %v4685_v21 }
0x219f   :  { %v4930_v43 = vmul.f32 1.442695, %v4928_v36 }
0x21a1   :  { %6208 = vpow2.f32 %v4930_v43 }
0x21a4   :  { %v8104_v57 = vpop.eup %6206  ;;  %v4558_v58 = vpop.xlane.xlu1 %4557 }
0x21a5   :  { %v4927_v23 = vpop.xlane.xlu2 %4926  ;;  %6210 = vrcp.f32 %v4558_v58  ;;  %v4811_v30 = vsel %vm190_vm14, %v8104_v57, 0.0  ;;  %v4573_v10 = vand.u32 2147483648, %v4558_v58  ;;  %v4571_v27 = vand.u32 2147483647, %v4558_v58 }
0x21a6   :  { %v4929_v6 = vsub.f32 %v4921_v8, %v4927_v23  ;;  %4812 = vadd.xlane.f32.xlu1 %v4811_v30  ;;  %vm4567_vm15 = vweird.f32 %v4558_v58 }
0x21a7   :  { %v8108_v11 = vpop.eup %6208  ;;  %v4574_v39 = vor.u32 1.1754944e-38, %v4573_v10  ;;  %vm4572_vm2 = vcmp.eq.f32.partialorder %v4571_v27, 8.507059e+37 }
0x21a8   :  { %v4932_v20 = vmul.f32 1.442695, %v4929_v6  ;;  %v4934_v51 = vsel %vm190_vm14, %v8108_v11, 0.0 }
0x21aa   :  { %6212 = vpow2.f32 %v4932_v20 }
0x21ab   :  { %v6211_v42 = vpop.eup %6210 }
0x21ac   :  { %v4563_v54 = vmul.f32 %v6211_v42, %v4558_v58  ;;  %vm4568_vm12 = vweird.f32 %v6211_v42 }
0x21ad   :  { %v5881_v26 = vpop.permute.xlu2 %5880  ;;  %vm4569_vm1 = vmor %vm4567_vm15, %vm4568_vm12 }
0x21ae   :  { %v5882_v50 = vunpack.i.l.bf16 %v5881_v26  ;;  %v4564_v40 = vsub.f32 1.0, %v4563_v54  ;;  %4935 = vadd.xlane.f32.xlu1 %v4934_v51  ;;  %v5883_v28 = vunpack.i.h.bf16 %v5881_v26 }
0x21af   :  { %5885 = vrot.lane.b32.xlu0 %v8035_v46, %s6291_s29 }
0x21b0   :  { %v4565_v61 = vmul.f32 %v6211_v42, %v4564_v40  ;;  %4618 = vmatpush.msrb.mxu2 %v5882_v50  ;;  %v8114_v32 = vpop.eup %6212 }
0x21b1   :  { %v4937_v37 = vsel %vm190_vm14, %v8114_v32, 0.0 }
0x21b2   :  { %v4566_v16 = vadd.f32 %v6211_v42, %v4565_v61  ;;  %4619 = vmatpush.msrb.mxu2 %v5883_v28 }
0x21b4   :  { %v4570_v8 = vsel %vm4569_vm1, %v6211_v42, %v4566_v16 }
0x21b5   :  { %v4575_v60 = vsel %vm4572_vm2, %v4574_v39, %v4570_v8 }
0x21b6   :  { %v4576_v24 = vmul.f32 %v8078_v17, %v4575_v60  ;;  %4938 = vadd.xlane.f32.xlu1 %v4937_v37 }
0x21b7   :  { %5900 = vrot.lane.b32.xlu0 %v7988_v31, %s6301_s16 }
0x21b8   :  { %5612 = vmatmul.msk.f32.vlgmr.msrb.gmra.mxu2 %vm190_vm14, %v4576_v24 }
0x21bf   :  { %5905 = vrot.lane.b32.xlu0 %v7992_v55, %s6301_s16 }
0x21cf   :  { %5895 = vrot.lane.b32.xlu1 %v8035_v46, %s6292_s30 }
0x21e5   :  { %v4561_v9 = vpop.xlane.xlu2 %4560 }
0x21e6   :  { %6214 = vrcp.f32 %v4561_v9  ;;  %v4588_v48 = vand.u32 2147483648, %v4561_v9  ;;  %v4586_v56 = vand.u32 2147483647, %v4561_v9  ;;  %vm4582_vm4 = vweird.f32 %v4561_v9 }
0x21e8   :  { %v4589_v1 = vor.u32 1.1754944e-38, %v4588_v48  ;;  %vm4587_vm8 = vcmp.eq.f32.partialorder %v4586_v56, 8.507059e+37 }
0x21ec   :  { %v6215_v62 = vpop.eup %6214 }
0x21ed   :  { %v4578_v4 = vmul.f32 %v6215_v62, %v4561_v9  ;;  %v5891_v14 = vpop.permute.xlu2 %5890  ;;  %vm4583_vm3 = vweird.f32 %v6215_v62 }
0x21ee   :  { %v5892_v34 = vunpack.i.l.bf16 %v5891_v14  ;;  %v5893_v22 = vunpack.i.h.bf16 %v5891_v14  ;;  %vm4584_vm5 = vmor %vm4582_vm4, %vm4583_vm3 }
0x21ef   :  { %v4579_v18 = vsub.f32 1.0, %v4578_v4 }
0x21f0   :  { %4870 = vmatpush.msra.mxu2 %v5892_v34 }
0x21f1   :  { %v4580_v17 = vmul.f32 %v6215_v62, %v4579_v18 }
0x21f2   :  { %4871 = vmatpush.msra.mxu2 %v5893_v22 }
0x21f3   :  { %v4581_v63 = vadd.f32 %v6215_v62, %v4580_v17 }
0x21f5   :  { %v4585_v46 = vsel %vm4584_vm5, %v6215_v62, %v4581_v63 }
0x21f6   :  { %v4590_v0 = vsel %vm4587_vm8, %v4589_v1, %v4585_v46 }
0x21f7   :  { %v4591_v7 = vmul.f32 %v8086_v47, %v4590_v0 }
0x21f9   :  { %5613 = vmatmul.msk.f32.gmra.mxu2 %vm190_vm14, %v4591_v7 }
0x2206   :  { %v4684_v5 = vpop.xlane.xlu0 %4683 }
0x2207   :  { %6216 = vrcp.f32 %v4684_v5  ;;  %v4699_v40 = vand.u32 2147483648, %v4684_v5  ;;  %vm4693_vm12 = vweird.f32 %v4684_v5  ;;  %v4697_v10 = vand.u32 2147483647, %v4684_v5 }
0x2209   :  { %v4700_v8 = vor.u32 1.1754944e-38, %v4699_v40  ;;  %vm4698_vm3 = vcmp.eq.f32.partialorder %v4697_v10, 8.507059e+37 }
0x220d   :  { %v6217_v52 = vpop.eup %6216 }
0x220e   :  { %v4810_v19 = vpop.xlane.xlu0 %4809  ;;  %v4689_v44 = vmul.f32 %v6217_v52, %v4684_v5  ;;  %vm4694_vm10 = vweird.f32 %v6217_v52 }
0x220f   :  { %6218 = vrcp.f32 %v4810_v19  ;;  %v4825_v30 = vand.u32 2147483648, %v4810_v19  ;;  %v4823_v47 = vand.u32 2147483647, %v4810_v19  ;;  %vm4819_vm11 = vweird.f32 %v4810_v19  ;;  %vm4695_vm1 = vmor %vm4693_vm12, %vm4694_vm10 }
0x2210   :  { %v4690_v36 = vsub.f32 1.0, %v4689_v44 }
0x2211   :  { %v4687_v3 = vpop.xlane.xlu1 %4686  ;;  %v4826_v61 = vor.u32 1.1754944e-38, %v4825_v30  ;;  %vm4824_vm2 = vcmp.eq.f32.partialorder %v4823_v47, 8.507059e+37 }
0x2212   :  { %6220 = vrcp.f32 %v4687_v3  ;;  %v4691_v58 = vmul.f32 %v6217_v52, %v4690_v36  ;;  %v4714_v18 = vand.u32 2147483648, %v4687_v3  ;;  %vm4708_vm5 = vweird.f32 %v4687_v3 }
0x2213   :  { %v4712_v56 = vand.u32 2147483647, %v4687_v3 }
0x2214   :  { %v4692_v26 = vadd.f32 %v6217_v52, %v4691_v58  ;;  %v4715_v7 = vor.u32 1.1754944e-38, %v4714_v18 }
0x2215   :  { %v6219_v21 = vpop.eup %6218 }
0x2216   :  { %v4815_v43 = vmul.f32 %v6219_v21, %v4810_v19  ;;  %vm4820_vm9 = vweird.f32 %v6219_v21  ;;  %v4696_v28 = vsel %vm4695_vm1, %v6217_v52, %v4692_v26 }
0x2217   :  { %vm4821_vm15 = vmor %vm4819_vm11, %vm4820_vm9  ;;  %v4701_v9 = vsel %vm4698_vm3, %v4700_v8, %v4696_v28  ;;  %vm4713_vm11 = vcmp.eq.f32.partialorder %v4712_v56, 8.507059e+37 }
0x2218   :  { %v6221_v23 = vpop.eup %6220  ;;  %v4816_v6 = vsub.f32 1.0, %v4815_v43  ;;  %v4702_v17 = vmul.f32 %v8092_v2, %v4701_v9 }
0x2219   :  { %v4704_v20 = vmul.f32 %v6221_v23, %v4687_v3  ;;  %v4813_v54 = vpop.xlane.xlu1 %4812  ;;  %vm4709_vm4 = vweird.f32 %v6221_v23 }
0x221a   :  { %v4817_v42 = vmul.f32 %v6219_v21, %v4816_v6  ;;  %6222 = vrcp.f32 %v4813_v54  ;;  %vm8127_vm8 = vmor %vm4708_vm5, %vm4709_vm4  ;;  %v4840_v1 = vand.u32 2147483648, %v4813_v54  ;;  %v4838_v46 = vand.u32 2147483647, %v4813_v54 }
0x221b   :  { %v4705_v50 = vsub.f32 1.0, %v4704_v20  ;;  %vm4834_vm10 = vweird.f32 %v4813_v54 }
0x221c   :  { %v4818_v51 = vadd.f32 %v6219_v21, %v4817_v42  ;;  %v4841_v2 = vor.u32 1.1754944e-38, %v4840_v1 }
0x221d   :  { %v4706_v39 = vmul.f32 %v6221_v23, %v4705_v50 }
0x221e   :  { %v4822_v27 = vsel %vm4821_vm15, %v6219_v21, %v4818_v51  ;;  %vm4839_vm15 = vcmp.eq.f32.partialorder %v4838_v46, 8.507059e+37 }
0x221f   :  { %v4827_v16 = vsel %vm4824_vm2, %v4826_v61, %v4822_v27  ;;  %v4707_v34 = vadd.f32 %v6221_v23, %v4706_v39 }
0x2220   :  { %v4828_v60 = vmul.f32 %v8096_v12, %v4827_v16  ;;  %v6223_v24 = vpop.eup %6222 }
0x2221   :  { %v5886_v37 = vpop.permute.xlu0 %5885  ;;  %v4830_v62 = vmul.f32 %v6223_v24, %v4813_v54  ;;  %v4936_v4 = vpop.xlane.xlu1 %4935  ;;  %vm4835_vm9 = vweird.f32 %v6223_v24  ;;  %v4711_v0 = vsel %vm8127_vm8, %v6221_v23, %v4707_v34 }
0x2222   :  { %v5887_v14 = vunpack.i.l.bf16 %v5886_v37  ;;  %5624 = vmatmul.msk.f32.vlgmr.msra.gmra.mxu2 %vm190_vm14, %v4828_v60  ;;  %v5888_v22 = vunpack.i.h.bf16 %v5886_v37  ;;  %6224 = vrcp.f32 %v4936_v4  ;;  %vm4836_vm12 = vmor %vm4834_vm10, %vm4835_vm9  ;;  %v4716_v19 = vsel %vm4713_vm11, %v4715_v7, %v4711_v0 }
0x2223   :  { %v4831_v48 = vsub.f32 1.0, %v4830_v62  ;;  %v4717_v43 = vmul.f32 %v8100_v53, %v4716_v19  ;;  %v4951_v54 = vand.u32 2147483648, %v4936_v4  ;;  %vm4945_vm2 = vweird.f32 %v4936_v4 }
0x2224   :  { %4744 = vmatpush.msrb.mxu1 %v5887_v14  ;;  %v4949_v26 = vand.u32 2147483647, %v4936_v4 }
0x2225   :  { %v4832_v63 = vmul.f32 %v6223_v24, %v4831_v48  ;;  %v4952_v53 = vor.u32 1.1754944e-38, %v4951_v54 }
0x2226   :  { %4745 = vmatpush.msrb.mxu1 %v5888_v22  ;;  %vm4950_vm4 = vcmp.eq.f32.partialorder %v4949_v26, 8.507059e+37 }
0x2227   :  { %5618 = vmatmul.msk.f32.vlgmr.msrb.gmra.mxu1 %vm190_vm14, %v4702_v17  ;;  %v4833_v5 = vadd.f32 %v6223_v24, %v4832_v63 }
0x2228   :  { %v6225_v36 = vpop.eup %6224 }
0x2229   :  { %v4837_v52 = vsel %vm4836_vm12, %v6223_v24, %v4833_v5  ;;  %v4939_v44 = vpop.xlane.xlu1 %4938  ;;  %v4941_v58 = vmul.f32 %v6225_v36, %v4936_v4  ;;  %vm4946_vm1 = vweird.f32 %v6225_v36  ;;  %v5901_v55 = vpop.permute.xlu0 %5900 }
0x222a   :  { %v4842_v3 = vsel %vm4839_vm15, %v4841_v2, %v4837_v52  ;;  %6226 = vrcp.f32 %v4939_v44  ;;  %vm4947_vm3 = vmor %vm4945_vm2, %vm4946_vm1  ;;  %v4966_v27 = vand.u32 2147483648, %v4939_v44  ;;  %vm4960_vm8 = vweird.f32 %v4939_v44 }
0x222b   :  { %v4843_v21 = vmul.f32 %v8104_v57, %v4842_v3  ;;  %v4942_v23 = vsub.f32 1.0, %v4941_v58  ;;  %v4964_v39 = vand.u32 2147483647, %v4939_v44  ;;  %v5903_v18 = vunpack.i.h.bf16 %v5901_v55 }
0x222c   :  { %v4967_v60 = vor.u32 1.1754944e-38, %v4966_v27  ;;  %v5902_v48 = vunpack.i.l.bf16 %v5901_v55 }
0x222d   :  { %5625 = vmatmul.msk.f32.gmra.mxu2 %vm190_vm14, %v4843_v21  ;;  %v4943_v30 = vmul.f32 %v6225_v36, %v4942_v23  ;;  %vm4965_vm10 = vcmp.eq.f32.partialorder %v4964_v39, 8.507059e+37 }
0x222e   :  { %5068 = vmatpush.msrb.mxu3 %v5902_v48 }
0x222f   :  { %5619 = vmatmul.msk.f32.gmra.mxu1 %vm190_vm14, %v4717_v43  ;;  %v4944_v42 = vadd.f32 %v6225_v36, %v4943_v30 }
0x2230   :  { %v6227_v6 = vpop.eup %6226  ;;  %5069 = vmatpush.msrb.mxu3 %v5903_v18 }
0x2231   :  { %v4956_v20 = vmul.f32 %v6227_v6, %v4939_v44  ;;  %v4948_v57 = vsel %vm4947_vm3, %v6225_v36, %v4944_v42  ;;  %vm4961_vm5 = vweird.f32 %v6227_v6  ;;  %v5906_v22 = vpop.permute.xlu0 %5905 }
0x2232   :  { %v4953_v51 = vsel %vm4950_vm4, %v4952_v53, %v4948_v57  ;;  %vm4962_vm9 = vmor %vm4960_vm8, %vm4961_vm5  ;;  %v5908_v17 = vunpack.i.h.bf16 %v5906_v22  ;;  %v5907_v56 = vunpack.i.l.bf16 %v5906_v22 }
0x2233   :  { %v4957_v47 = vsub.f32 1.0, %v4956_v20  ;;  %v4954_v16 = vmul.f32 %v8108_v11, %v4953_v51 }
0x2234   :  { %5070 = vmatpush.msrb.mxu3 %v5907_v56 }
0x2235   :  { %v4958_v50 = vmul.f32 %v6227_v6, %v4957_v47 }
0x2236   :  { %5071 = vmatpush.msrb.mxu3 %v5908_v17 }
0x2237   :  { %v4959_v61 = vadd.f32 %v6227_v6, %v4958_v50 }
0x2239   :  { %v4963_v8 = vsel %vm4962_vm9, %v6227_v6, %v4959_v61 }
0x223a   :  { %v4968_v24 = vsel %vm4965_vm10, %v4967_v60, %v4963_v8 }
0x223b   :  { %v4969_v37 = vmul.f32 %v8114_v32, %v4968_v24  ;;  %v4621_v9 = vpop.f32.mrf.mxu2 }
0x2241   :  { %v5896_v40 = vpop.permute.xlu1 %5895 }
0x2242   :  { %v5897_v10 = vunpack.i.l.bf16 %v5896_v40  ;;  %v5898_v28 = vunpack.i.h.bf16 %v5896_v40 }
0x2244   :  { %4996 = vmatpush.msra.mxu1 %v5897_v10 }
0x2246   :  { %4997 = vmatpush.msra.mxu1 %v5898_v28 }
0x2247   :  { %5630 = vmatmul.msk.f32.vlgmr.msra.gmra.mxu1 %vm190_vm14, %v4954_v16 }
0x224f   :  { %5631 = vmatmul.msk.f32.gmra.mxu1 %vm190_vm14, %v4969_v37 }
0x227c   :  { %v4624_v11 = vpop.f32.mrf.mxu2 }
0x22a4   :  { %v4747_v62 = vpop.f32.mrf.mxu1 }
0x22a5   :  { %5007 = vrot.lane.b32.xlu2 %v4747_v62, %s6303_s19  ;;  %v4873_v4 = vpop.f32.mrf.mxu2 }
0x22ac   :  { %v4750_v14 = vpop.f32.mrf.mxu1 }
0x22ad   :  { %5015 = vrot.lane.b32.xlu2 %v4873_v4, %s6302_s17 }
0x22b0   :  { %v4876_v31 = vpop.f32.mrf.mxu2 }
0x22b5   :  { %5009 = vrot.lane.b32.xlu2 %v4750_v14, %s6303_s19 }
0x22bd   :  { %5047 = vrot.lane.b32.xlu2 %v8012_v49, %s6301_s16 }
0x22c4   :  { %v4999_v32 = vpop.f32.mrf.mxu1 }
0x22c5   :  { %5023 = vrot.lane.b32.xlu0 %v4999_v32, %s6304_s20 }
0x22cc   :  { %v5002_v34 = vpop.f32.mrf.mxu1 }
0x22cd   :  { %5025 = vrot.lane.b32.xlu1 %v5002_v34, %s6304_s20  ;;  %5017 = vrot.lane.b32.xlu0 %v4876_v31, %s6302_s17 }
0x22ff   :  { %v5008_v49 = vpop.permute.xlu2 %5007 }
0x2300   :  { %v5029_v63 = vsel %vm154_vm13, %v4621_v9, %v5008_v49 }
0x2307   :  { %v5016_v12 = vpop.permute.xlu2 %5015 }
0x2308   :  { %v5031_v1 = vsel %vm190_vm14, %v5029_v63, %v5016_v12 }
0x230f   :  { %v5010_v7 = vpop.permute.xlu2 %5009 }
0x2310   :  { %v5030_v5 = vsel %vm154_vm13, %v4624_v11, %v5010_v7 }
0x2317   :  { %v5048_v3 = vpop.permute.xlu2 %5047 }
0x2337   :  { %v5024_v46 = vpop.permute.xlu0 %5023 }
0x2338   :  { %v5033_v0 = vsel %vm680_vm6, %v5031_v1, %v5024_v46 }
0x2339   :  { %5632 = vmatmul.msk.f32.vlgmr.msrb.gmra.mxu3 %vm19_vm0, %v5033_v0 }
0x233f   :  { %v5026_v2 = vpop.permute.xlu1 %5025  ;;  %v5018_v52 = vpop.permute.xlu0 %5017 }
0x2340   :  { %v5032_v19 = vsel %vm190_vm14, %v5030_v5, %v5018_v52 }
0x2341   :  { %v5034_v44 = vsel %vm680_vm6, %v5032_v19, %v5026_v2 }
0x2342   :  { %5633 = vmatmul.msk.f32.gmra.mxu3 %vm19_vm0, %v5034_v44 }
0x23bc   :  { %v5073_v36 = vpop.f32.mrf.mxu3 }
0x23bd   :  { %v5074_v21 = vadd.f32 %v5073_v36, %v5048_v3 }
0x23bf   :  { %v8163_v43 = vadd.f32 %v5074_v21, %v7973_v35 }
0x23c1   :  { %v5081_v58 = vsel %vm19_vm0, %v8163_v43, 0.0  ;;  %v5089_v23 = vmul.f32 %v8163_v43, %v8163_v43 }
0x23c2   :  { %5082 = vadd.xlane.f32.xlu0 %v5081_v58 }
0x23c3   :  { %v5091_v6 = vsel %vm19_vm0, %v5089_v23, 0.0 }
0x23c4   :  { %5092 = vadd.xlane.f32.xlu1 %v5091_v6 }
0x23c5   :  { %v5076_v30 = vpop.f32.mrf.mxu3 }
0x23c6   :  { %v5077_v20 = vadd.f32 %v5076_v30, %v5048_v3 }
0x23c8   :  { %v8171_v42 = vadd.f32 %v5077_v20, %v7981_v59 }
0x23ca   :  { %v5084_v47 = vsel %vm19_vm0, %v8171_v42, 0.0  ;;  %v5090_v35 = vmul.f32 %v8171_v42, %v8171_v42 }
0x23cb   :  { %5085 = vadd.xlane.f32.xlu2 %v5084_v47 }
0x23cc   :  { %v5094_v54 = vsel %vm19_vm0, %v5090_v35, 0.0 }
0x23cd   :  { %5095 = vadd.xlane.f32.xlu0 %v5094_v54 }
0x23e1   :  { %5910 = vrot.lane.b32.xlu0 %v5909_v15, %s6298_s13 }
0x2435   :  { %v8182_v26 = vpop.xlane.xlu0 %5082 }
0x2436   :  { %v5087_v59 = vmul.f32 0.03125, %v8182_v26  ;;  %v5107_v36 = vsub.f32 %v8163_v43, %v8182_v26 }
0x2437   :  { %v5093_v53 = vpop.xlane.xlu1 %5092 }
0x2438   :  { %v5097_v57 = vmul.f32 %v5087_v59, %v5087_v59 }
0x243a   :  { %v5099_v50 = vmul.f32 32.0, %v5097_v57 }
0x243c   :  { %v5101_v40 = vsub.f32 %v5093_v53, %v5099_v50 }
0x243e   :  { %v5103_v51 = vmax.f32 %v5101_v40, 0.0  ;;  %v8185_v10 = vpop.xlane.xlu2 %5085 }
0x243f   :  { %v5088_v61 = vmul.f32 0.03125, %v8185_v10  ;;  %v5108_v57 = vsub.f32 %v8171_v42, %v8185_v10 }
0x2440   :  { %v5105_v27 = vmul.f32 0.032258064, %v5103_v51  ;;  %v5096_v39 = vpop.xlane.xlu0 %5095  ;;  %v6280_v51 = vld [vmem:[%s8300_s2 + $0x16e] ss:$0 sm:$0xff] }
0x2441   :  { %v5098_v28 = vmul.f32 %v5088_v61, %v5088_v61 }
0x2442   :  { %6228 = vrsqrt.f32 %v5105_v27  ;;  %vm5116_vm13 = vcmp.eq.f32.partialorder %v5105_v27, inf  ;;  %v5119_v32 = vand.u32 2147483648, %v5105_v27  ;;  %vm5118_vm14 = vcmp.eq.f32.partialorder %v5105_v27, 0.0 }
0x2443   :  { %v5100_v16 = vmul.f32 32.0, %v5098_v28 }
0x2445   :  { %v5102_v25 = vsub.f32 %v5096_v39, %v5100_v16 }
0x2447   :  { %v5104_v13 = vmax.f32 %v5102_v25, 0.0 }
0x2448   :  { %v6229_v15 = vpop.eup %6228 }
0x2449   :  { %v5110_v8 = vmul.f32 %v6229_v15, %v5105_v27  ;;  %v5106_v60 = vmul.f32 0.032258064, %v5104_v13 }
0x244b   :  { %v5111_v24 = vmul.f32 %v6229_v15, %v5110_v8  ;;  %6230 = vrsqrt.f32 %v5106_v60  ;;  %vm5128_vm6 = vcmp.eq.f32.partialorder %v5106_v60, inf  ;;  %v5131_v49 = vand.u32 2147483648, %v5106_v60 }
0x244c   :  { %vm5130_vm11 = vcmp.eq.f32.partialorder %v5106_v60, 0.0 }
0x244d   :  { %v5112_v37 = vmul.f32 0.5, %v5111_v24  ;;  %v6284_v24 = vld [vmem:[%s8300_s2 + $0x120] sm:$0xff] }
0x244f   :  { %v5113_v9 = vsub.f32 1.5, %v5112_v37 }
0x2451   :  { %v6231_v11 = vpop.eup %6230  ;;  %v5114_v62 = vmul.f32 %v6229_v15, %v5113_v9  ;;  %v6281_v15 = vld [vmem:[%s8300_s2 + $0x138] sm:$0xff]  ;;  %v6285_v9 = vld [vmem:[%s8300_s2 + $0x108] sm:$0xff] }
0x2452   :  { %v5122_v4 = vmul.f32 %v6231_v11, %v5106_v60 }
0x2453   :  { %v5115_v14 = vmul.f32 %v5114_v62, %v5105_v27  ;;  %v5911_v38 = vpop.permute.xlu0 %5910 }
0x2454   :  { %v5123_v31 = vmul.f32 %v6231_v11, %v5122_v4  ;;  %v5912_v39 = vunpack.i.l.bf16 %v5911_v38  ;;  %v6287_v4 = vld [vmem:[%s8300_s2 + $0x118] sm:$0xff] }
0x2455   :  { %v5117_v34 = vsel %vm5116_vm13, %v5105_v27, %v5115_v14  ;;  %v6288_v14 = vld [vmem:[%s8300_s2 + $0x110] sm:$0xff] }
0x2456   :  { %v5124_v55 = vmul.f32 0.5, %v5123_v31  ;;  %v5120_v18 = vsel %vm5118_vm14, %v5119_v32, %v5117_v34  ;;  %5217 = vmatpush.msrb.mxu2 %v5912_v39  ;;  %v5929_v32 = vpack.i.bf16 %v6288_v14, %v6287_v4 }
0x2457   :  { %v5133_v48 = vadd.f32 1e-06, %v5120_v18 }
0x2458   :  { %v5125_v22 = vsub.f32 1.5, %v5124_v55  ;;  %v5954_v55 = vld [vmem:[%s8300_s2 + $0x169] ss:$0 sm:$0xff] }
0x2459   :  { %6232 = vrcp.f32 %v5133_v48  ;;  %v5146_v5 = vand.u32 2147483648, %v5133_v48  ;;  %v5144_v52 = vand.u32 2147483647, %v5133_v48  ;;  %vm5140_vm15 = vweird.f32 %v5133_v48 }
0x245a   :  { %v5126_v17 = vmul.f32 %v6231_v11, %v5125_v22  ;;  %v6286_v11 = vld [vmem:[%s8300_s2 + $0x100] sm:$0xff] }
0x245b   :  { %v5147_v44 = vor.u32 1.1754944e-38, %v5146_v5  ;;  %vm5145_vm2 = vcmp.eq.f32.partialorder %v5144_v52, 8.507059e+37  ;;  %v5934_v62 = vpack.i.bf16 %v6286_v11, %v6285_v9 }
0x245c   :  { %v5127_v56 = vmul.f32 %v5126_v17, %v5106_v60 }
0x245e   :  { %v5129_v12 = vsel %vm5128_vm6, %v5106_v60, %v5127_v56  ;;  %v6283_v60 = vld [vmem:[%s8300_s2 + $0x128] sm:$0xff] }
0x245f   :  { %v6233_v63 = vpop.eup %6232  ;;  %v5132_v1 = vsel %vm5130_vm11, %v5131_v49, %v5129_v12  ;;  %v5924_v37 = vpack.i.bf16 %v6284_v24, %v6283_v60 }
0x2460   :  { %v5136_v46 = vmul.f32 %v6233_v63, %v5133_v48  ;;  %v5134_v0 = vadd.f32 1e-06, %v5132_v1  ;;  %vm5141_vm12 = vweird.f32 %v6233_v63 }
0x2461   :  { %vm5142_vm1 = vmor %vm5140_vm15, %vm5141_vm12 }
0x2462   :  { %v5137_v7 = vsub.f32 1.0, %v5136_v46  ;;  %6234 = vrcp.f32 %v5134_v0  ;;  %v5161_v20 = vand.u32 2147483648, %v5134_v0  ;;  %v5159_v35 = vand.u32 2147483647, %v5134_v0 }
0x2463   :  { %vm5155_vm4 = vweird.f32 %v5134_v0 }
0x2464   :  { %v5138_v2 = vmul.f32 %v6233_v63, %v5137_v7  ;;  %v5162_v59 = vor.u32 1.1754944e-38, %v5161_v20  ;;  %vm5160_vm8 = vcmp.eq.f32.partialorder %v5159_v35, 8.507059e+37 }
0x2466   :  { %v5139_v19 = vadd.f32 %v6233_v63, %v5138_v2 }
0x2468   :  { %v6235_v3 = vpop.eup %6234  ;;  %v5143_v21 = vsel %vm5142_vm1, %v6233_v63, %v5139_v19 }
0x2469   :  { %v5148_v58 = vsel %vm5145_vm2, %v5147_v44, %v5143_v21  ;;  %v5151_v23 = vmul.f32 %v6235_v3, %v5134_v0  ;;  %vm5156_vm3 = vweird.f32 %v6235_v3 }
0x246a   :  { %v5149_v6 = vmul.f32 %v5148_v58, %v5107_v36  ;;  %vm5157_vm5 = vmor %vm5155_vm4, %vm5156_vm3 }
0x246b   :  { %v5152_v30 = vsub.f32 1.0, %v5151_v23 }
0x246c   :  { %5167 = vrot.lane.b32.xlu1 %v5149_v6, %s6298_s13 }
0x246d   :  { %v5153_v47 = vmul.f32 %v6235_v3, %v5152_v30 }
0x246f   :  { %v5154_v54 = vadd.f32 %v6235_v3, %v5153_v47 }
0x2471   :  { %v5158_v26 = vsel %vm5157_vm5, %v6235_v3, %v5154_v54 }
0x2472   :  { %v5163_v50 = vsel %vm5160_vm8, %v5162_v59, %v5158_v26 }
0x2473   :  { %v5164_v53 = vmul.f32 %v5163_v50, %v5108_v57 }
0x2474   :  { %5915 = vrot.lane.b32.xlu1 %v5914_v29, %s6298_s13  ;;  %v5913_v29 = vunpack.i.h.bf16 %v5911_v38 }
0x2475   :  { %5169 = vrot.lane.b32.xlu2 %v5164_v53, %s6298_s13 }
0x2476   :  { %5218 = vmatpush.msrb.mxu2 %v5913_v29 }
0x24cf   :  { %v5170_v40 = vpop.permute.xlu2 %5169 }
0x24d0   :  { %v5174_v61 = vmul.f32 %v6280_v51, %v5170_v40 }
0x24d2   :  { %v5176_v27 = vadd.f32 %v5174_v61, %v8022_v45 }
0x24d4   :  { %5183 = vrot.lane.b32.xlu2 %v5176_v27, %s6298_s13 }
0x24dc   :  { %5930 = vrot.lane.b32.xlu2 %v5929_v32, %s6301_s16 }
0x24de   :  { %v5168_v10 = vpop.permute.xlu1 %5167 }
0x24df   :  { %v5173_v28 = vmul.f32 %v6280_v51, %v5168_v10 }
0x24e1   :  { %v5175_v16 = vadd.f32 %v5173_v28, %v8022_v45  ;;  %v6282_v45 = vld [vmem:[%s8300_s2 + $0x130] sm:$0xff] }
0x24e2   :  { %v5919_v8 = vpack.i.bf16 %v6282_v45, %v6281_v15 }
0x24e3   :  { %5181 = vrot.lane.b32.xlu0 %v5175_v16, %s6298_s13 }
0x24e4   :  { %5920 = vrot.lane.b32.xlu1 %v5919_v8, %s6301_s16 }
0x24e6   :  { %v5916_v33 = vpop.permute.xlu1 %5915 }
0x24e7   :  { %v5917_v25 = vunpack.i.l.bf16 %v5916_v33  ;;  %v5918_v13 = vunpack.i.h.bf16 %v5916_v33 }
0x24e9   :  { %5219 = vmatpush.msrb.mxu2 %v5917_v25 }
0x24eb   :  { %5220 = vmatpush.msrb.mxu2 %v5918_v13  ;;  %5925 = vrot.lane.b32.xlu0 %v5924_v37, %s6301_s16 }
0x24ec   :  { %5935 = vrot.lane.b32.xlu1 %v5934_v62, %s6301_s16 }
0x24f3   :  { %5255 = vrot.lane.b32.xlu0 %v5954_v55, %s6298_s13 }
0x252e   :  { %v5184_v34 = vpop.permute.xlu2 %5183 }
0x2536   :  { %v5931_v49 = vpop.permute.xlu2 %5930 }
0x2537   :  { %v5932_v63 = vunpack.i.l.bf16 %v5931_v49  ;;  %v5933_v46 = vunpack.i.h.bf16 %v5931_v49 }
0x2555   :  { %v5182_v31 = vpop.permute.xlu0 %5181 }
0x2556   :  { %5634 = vmatmul.msk.f32.vlgmr.msrb.gmra.mxu2 %vm19_vm0, %v5182_v31  ;;  %v5921_v18 = vpop.permute.xlu1 %5920 }
0x2557   :  { %v5923_v22 = vunpack.i.h.bf16 %v5921_v18  ;;  %v5922_v17 = vunpack.i.l.bf16 %v5921_v18 }
0x2559   :  { %5272 = vmatpush.msrb.mxu0 %v5922_v17 }
0x255b   :  { %5273 = vmatpush.msrb.mxu0 %v5923_v22 }
0x255d   :  { %v5926_v48 = vpop.permute.xlu0 %5925 }
0x255e   :  { %5635 = vmatmul.msk.f32.gmra.mxu2 %vm19_vm0, %v5184_v34  ;;  %v5927_v56 = vunpack.i.l.bf16 %v5926_v48  ;;  %v5928_v12 = vunpack.i.h.bf16 %v5926_v48  ;;  %v5936_v1 = vpop.permute.xlu1 %5935 }
0x255f   :  { %v5937_v0 = vunpack.i.l.bf16 %v5936_v1  ;;  %v5938_v7 = vunpack.i.h.bf16 %v5936_v1 }
0x2560   :  { %5274 = vmatpush.msrb.mxu0 %v5927_v56 }
0x2562   :  { %5275 = vmatpush.msrb.mxu0 %v5928_v12 }
0x2564   :  { %5276 = vmatpush.msrb.mxu0 %v5932_v63 }
0x2565   :  { %v5256_v36 = vpop.permute.xlu0 %5255 }
0x2566   :  { %5277 = vmatpush.msrb.mxu0 %v5933_v46 }
0x2568   :  { %5278 = vmatpush.msrb.mxu0 %v5937_v0 }
0x256a   :  { %5279 = vmatpush.msrb.mxu0 %v5938_v7 }
0x25d9   :  { %v5222_v5 = vpop.f32.mrf.mxu2 }
0x25da   :  { %v5223_v2 = vadd.f32 %v5954_v55, %v5222_v5 }
0x25dc   :  { %v5228_v52 = vmax.f32 %v5223_v2, 0.0 }
0x25de   :  { %5636 = vmatmul.msk.f32.vlgmr.msrb.gmra.mxu0 %vm883_vm7, %v5228_v52 }
0x25e1   :  { %v5225_v19 = vpop.f32.mrf.mxu2 }
0x25e2   :  { %v5226_v44 = vadd.f32 %v5954_v55, %v5225_v19 }
0x25e4   :  { %v5229_v3 = vmax.f32 %v5226_v44, 0.0 }
0x25e6   :  { %5637 = vmatmul.msk.f32.gmra.mxu0 %vm883_vm7, %v5229_v3 }
0x265b   :  { %v5281_v21 = vpop.f32.mrf.mxu0 }
0x265c   :  { %v5282_v58 = vadd.f32 %v5281_v21, %v5256_v36 }
0x265e   :  { %v8242_v23 = vadd.f32 %v5282_v58, %v8163_v43 }
0x2660   :  { %v5289_v6 = vsel %vm19_vm0, %v8242_v23, 0.0  ;;  %v5297_v30 = vmul.f32 %v8242_v23, %v8242_v23 }
0x2661   :  { %5290 = vadd.xlane.f32.xlu2 %v5289_v6 }
0x2662   :  { %v5299_v20 = vsel %vm19_vm0, %v5297_v30, 0.0 }
0x2663   :  { %v5284_v47 = vpop.f32.mrf.mxu0  ;;  %5300 = vadd.xlane.f32.xlu1 %v5299_v20 }
0x2664   :  { %v5285_v35 = vadd.f32 %v5284_v47, %v5256_v36 }
0x2666   :  { %v8250_v54 = vadd.f32 %v5285_v35, %v8171_v42 }
0x2668   :  { %v5292_v59 = vsel %vm19_vm0, %v8250_v54, 0.0  ;;  %v5298_v43 = vmul.f32 %v8250_v54, %v8250_v54 }
0x2669   :  { %5293 = vadd.xlane.f32.xlu0 %v5292_v59 }
0x266a   :  { %v5302_v57 = vsel %vm19_vm0, %v5298_v43, 0.0 }
0x266b   :  { %5303 = vadd.xlane.f32.xlu2 %v5302_v57 }
0x26d4   :  { %v8257_v26 = vpop.xlane.xlu2 %5290 }
0x26d5   :  { %v5295_v50 = vmul.f32 0.03125, %v8257_v26  ;;  %v5315_v19 = vsub.f32 %v8242_v23, %v8257_v26  ;;  %v5388_v26 = vld [vmem:[%s8300_s2 + $0x158] sm:$0xff] }
0x26d6   :  { %v5301_v51 = vpop.xlane.xlu1 %5300  ;;  %5413 = vmatpush.msrb.mxu1 %v5388_v26 }
0x26d7   :  { %v5305_v53 = vmul.f32 %v5295_v50, %v5295_v50  ;;  %v5387_v50 = vld [vmem:[%s8300_s2 + $0x150] sm:$0xff] }
0x26d8   :  { %5414 = vmatpush.msrb.mxu1 %v5387_v50 }
0x26d9   :  { %v5307_v40 = vmul.f32 32.0, %v5305_v53  ;;  %v5386_v53 = vld [vmem:[%s8300_s2 + $0x148] sm:$0xff] }
0x26da   :  { %5415 = vmatpush.msrb.mxu1 %v5386_v53 }
0x26db   :  { %v5309_v61 = vsub.f32 %v5301_v51, %v5307_v40  ;;  %v6289_v51 = vld [vmem:[%s8300_s2 + $0x16f] ss:$0 sm:$0xff] }
0x26dc   :  { %v8260_v42 = vpop.xlane.xlu0 %5293 }
0x26dd   :  { %v5311_v27 = vmax.f32 %v5309_v61, 0.0  ;;  %v5296_v10 = vmul.f32 0.03125, %v8260_v42  ;;  %v5316_v59 = vsub.f32 %v8250_v54, %v8260_v42  ;;  %v5385_v54 = vld [vmem:[%s8300_s2 + $0x140] sm:$0xff] }
0x26de   :  { %v5304_v33 = vpop.xlane.xlu2 %5303  ;;  %5416 = vmatpush.msrb.mxu1 %v5385_v54 }
0x26df   :  { %v5313_v28 = vmul.f32 0.032258064, %v5311_v27  ;;  %v5306_v16 = vmul.f32 %v5296_v10, %v5296_v10 }
0x26e1   :  { %6236 = vrsqrt.f32 %v5313_v28  ;;  %v5308_v38 = vmul.f32 32.0, %v5306_v16  ;;  %vm5324_vm7 = vcmp.eq.f32.partialorder %v5313_v28, inf  ;;  %v5327_v62 = vand.u32 2147483648, %v5313_v28 }
0x26e2   :  { %vm5326_vm9 = vcmp.eq.f32.partialorder %v5313_v28, 0.0 }
0x26e3   :  { %v5310_v29 = vsub.f32 %v5304_v33, %v5308_v38  ;;  %v5955_v33 = vld [vmem:[%s8300_s2 + $0x170] ss:$0 sm:$0xff] }
0x26e5   :  { %v5312_v39 = vmax.f32 %v5310_v29, 0.0 }
0x26e7   :  { %v6237_v25 = vpop.eup %6236  ;;  %v5314_v15 = vmul.f32 0.032258064, %v5312_v39 }
0x26e8   :  { %v5318_v13 = vmul.f32 %v6237_v25, %v5313_v28 }
0x26e9   :  { %6238 = vrsqrt.f32 %v5314_v15  ;;  %vm5336_vm10 = vcmp.eq.f32.partialorder %v5314_v15, inf  ;;  %v5339_v22 = vand.u32 2147483648, %v5314_v15  ;;  %vm5338_vm13 = vcmp.eq.f32.partialorder %v5314_v15, 0.0 }
0x26ea   :  { %v5319_v45 = vmul.f32 %v6237_v25, %v5318_v13 }
0x26ec   :  { %v5320_v8 = vmul.f32 0.5, %v5319_v45 }
0x26ee   :  { %v5321_v60 = vsub.f32 1.5, %v5320_v8 }
0x26ef   :  { %v6239_v24 = vpop.eup %6238 }
0x26f0   :  { %v5322_v37 = vmul.f32 %v6237_v25, %v5321_v60  ;;  %v5330_v9 = vmul.f32 %v6239_v24, %v5314_v15 }
0x26f2   :  { %v5323_v11 = vmul.f32 %v5322_v37, %v5313_v28  ;;  %v5331_v4 = vmul.f32 %v6239_v24, %v5330_v9 }
0x26f4   :  { %v5325_v14 = vsel %vm5324_vm7, %v5313_v28, %v5323_v11  ;;  %v5332_v32 = vmul.f32 0.5, %v5331_v4 }
0x26f5   :  { %v5328_v31 = vsel %vm5326_vm9, %v5327_v62, %v5325_v14 }
0x26f6   :  { %v5341_v34 = vadd.f32 1e-06, %v5328_v31  ;;  %v5333_v55 = vsub.f32 1.5, %v5332_v32 }
0x26f8   :  { %6240 = vrcp.f32 %v5341_v34  ;;  %v5334_v18 = vmul.f32 %v6239_v24, %v5333_v55  ;;  %v5354_v46 = vand.u32 2147483648, %v5341_v34  ;;  %v5352_v7 = vand.u32 2147483647, %v5341_v34 }
0x26f9   :  { %vm5348_vm6 = vweird.f32 %v5341_v34 }
0x26fa   :  { %v5335_v48 = vmul.f32 %v5334_v18, %v5314_v15  ;;  %v5355_v2 = vor.u32 1.1754944e-38, %v5354_v46  ;;  %vm5353_vm12 = vcmp.eq.f32.partialorder %v5352_v7, 8.507059e+37 }
0x26fc   :  { %v5337_v17 = vsel %vm5336_vm10, %v5314_v15, %v5335_v48 }
0x26fd   :  { %v5340_v49 = vsel %vm5338_vm13, %v5339_v22, %v5337_v17 }
0x26fe   :  { %v6241_v56 = vpop.eup %6240  ;;  %v5342_v63 = vadd.f32 1e-06, %v5340_v49 }
0x26ff   :  { %v5344_v12 = vmul.f32 %v6241_v56, %v5341_v34  ;;  %vm5349_vm14 = vweird.f32 %v6241_v56 }
0x2700   :  { %6242 = vrcp.f32 %v5342_v63  ;;  %vm5350_vm11 = vmor %vm5348_vm6, %vm5349_vm14  ;;  %v5369_v6 = vand.u32 2147483648, %v5342_v63  ;;  %v5367_v20 = vand.u32 2147483647, %v5342_v63  ;;  %vm5363_vm1 = vweird.f32 %v5342_v63 }
0x2701   :  { %v5345_v1 = vsub.f32 1.0, %v5344_v12 }
0x2702   :  { %v5370_v35 = vor.u32 1.1754944e-38, %v5369_v6  ;;  %vm5368_vm3 = vcmp.eq.f32.partialorder %v5367_v20, 8.507059e+37 }
0x2703   :  { %v5346_v0 = vmul.f32 %v6241_v56, %v5345_v1 }
0x2705   :  { %v5347_v5 = vadd.f32 %v6241_v56, %v5346_v0 }
0x2706   :  { %v6243_v52 = vpop.eup %6242 }
0x2707   :  { %v5351_v44 = vsel %vm5350_vm11, %v6241_v56, %v5347_v5  ;;  %v5359_v36 = vmul.f32 %v6243_v52, %v5342_v63  ;;  %vm5364_vm15 = vweird.f32 %v6243_v52 }
0x2708   :  { %v5356_v3 = vsel %vm5353_vm12, %v5355_v2, %v5351_v44  ;;  %vm5365_vm2 = vmor %vm5363_vm1, %vm5364_vm15 }
0x2709   :  { %v5357_v21 = vmul.f32 %v5356_v3, %v5315_v19  ;;  %v5360_v58 = vsub.f32 1.0, %v5359_v36 }
0x270b   :  { %5375 = vrot.lane.b32.xlu1 %v5357_v21, %s6298_s13  ;;  %v5361_v30 = vmul.f32 %v6243_v52, %v5360_v58 }
0x270d   :  { %v5362_v47 = vadd.f32 %v6243_v52, %v5361_v30 }
0x270f   :  { %v5366_v23 = vsel %vm5365_vm2, %v6243_v52, %v5362_v47 }
0x2710   :  { %v5371_v43 = vsel %vm5368_vm3, %v5370_v35, %v5366_v23 }
0x2711   :  { %v5372_v57 = vmul.f32 %v5371_v43, %v5316_v59 }
0x2713   :  { %5377 = vrot.lane.b32.xlu0 %v5372_v57, %s6298_s13 }
0x277d   :  { %v5376_v40 = vpop.permute.xlu1 %5375 }
0x277e   :  { %v5381_v61 = vmul.f32 %v6289_v51, %v5376_v40 }
0x2780   :  { %v5383_v42 = vadd.f32 %v5381_v61, %v7373_v41 }
0x2782   :  { %5393 = vrot.lane.b32.xlu2 %v5383_v42, %s6298_s13 }
0x2785   :  { %v5378_v27 = vpop.permute.xlu0 %5377 }
0x2786   :  { %v5382_v10 = vmul.f32 %v6289_v51, %v5378_v27 }
0x2788   :  { %v5384_v28 = vadd.f32 %v5382_v10, %v7373_v41 }
0x278a   :  { %5395 = vrot.lane.b32.xlu0 %v5384_v28, %s6298_s13 }
0x27dc   :  { %v5394_v16 = vpop.permute.xlu2 %5393 }
0x27dd   :  { %5638 = vmatmul.msk.f32.vlgmr.msrb.gmra.mxu1 %vm19_vm0, %v5394_v16 }
0x27fc   :  { %v5396_v38 = vpop.permute.xlu0 %5395 }
0x27fd   :  { %5639 = vmatmul.msk.f32.gmra.mxu1 %vm19_vm0, %v5396_v38 }
0x285a   :  { %v5418_v29 = vpop.f32.mrf.mxu1 }
0x285b   :  { %v5419_v39 = vadd.f32 %v5955_v33, %v5418_v29 }
0x285d   :  { %5424 = vmax.xlane.f32.xlu1 %v5419_v39 }
0x287a   :  { %v5421_v25 = vpop.f32.mrf.mxu1 }
0x287b   :  { %v5422_v13 = vadd.f32 %v5955_v33, %v5421_v25 }
0x287d   :  { %5426 = vmax.xlane.f32.xlu2 %v5422_v13 }
0x28d0   :  { %v5425_v15 = vpop.xlane.xlu1 %5424 }
0x28d1   :  { %v5428_v41 = vsub.f32 %v5419_v39, %v5425_v15 }
0x28d3   :  { %v5430_v45 = vmul.f32 1.442695, %v5428_v41 }
0x28d5   :  { %6244 = vpow2.f32 %v5430_v45 }
0x28db   :  { %v6245_v8 = vpop.eup %6244 }
0x28dc   :  { %5434 = vadd.xlane.f32.xlu0 %v6245_v8 }
0x28f0   :  { %v5427_v60 = vpop.xlane.xlu2 %5426 }
0x28f1   :  { %v5429_v24 = vsub.f32 %v5422_v13, %v5427_v60 }
0x28f3   :  { %v5432_v37 = vmul.f32 1.442695, %v5429_v24 }
0x28f5   :  { %6246 = vpow2.f32 %v5432_v37 }
0x28fb   :  { %v6247_v9 = vpop.eup %6246 }
0x28fc   :  { %5436 = vadd.xlane.f32.xlu1 %v6247_v9 }
0x294f   :  { %v5435_v11 = vpop.xlane.xlu0 %5434 }
0x2950   :  { %6248 = vlog2.f32 %v5435_v11 }
0x2956   :  { %v6249_v62 = vpop.eup %6248 }
0x2957   :  { %v5439_v4 = vmul.f32 0.6931472, %v6249_v62 }
0x2959   :  { %v5442_v14 = vsub.f32 %v5428_v41, %v5439_v4 }
0x295b   :  { %5444 = vst [vmem:[%s8302_s3] sm:$0xff] %v5442_v14 }
0x296f   :  { %v5437_v32 = vpop.xlane.xlu1 %5436 }
0x2970   :  { %6250 = vlog2.f32 %v5437_v32 }
0x2976   :  { %v6251_v31 = vpop.eup %6250 }
0x2977   :  { %v5441_v34 = vmul.f32 0.6931472, %v6251_v31 }
0x2979   :  { %v5443_v55 = vsub.f32 %v5429_v24, %v5441_v34 }
0x297b   :  { %5445 = vst [vmem:[%s8302_s3 + $0x8] sm:$0xff] %v5443_v55 }

</bundles_post_ra>
